<compile_context>
chip_gen: v7x
topology: tpu7x:2x2x1
jax: 0.10.0
libtpu: 0.0.40
codegen_flags: <defaults>
</compile_context>

<pallas_src>
import functools

import jax
import jax.numpy as jnp
from jax.experimental import pallas as pl
from jax.experimental.pallas import tpu as pltpu

FEATURE_DIM = 1408
CH_REDUCED = FEATURE_DIM // 16     # 88
HIDDEN = 512
CH_SP = HIDDEN + CH_REDUCED        # 600  (merged spatial+channel hidden width)
NUM_CLASSES = 2
POOL = 4                           # backbone stand-in spatial reduction

# Fixed Sobel / Laplacian kernels from the module __init__ (requires_grad=False)
SOBEL = (
    ((-1., 0., 1.), (-2., 0., 2.), (-1., 0., 1.)),
    ((-1., -2., -1.), (0., 0., 0.), (1., 2., 1.)),
    ((-1., -1., -1.), (-1., 8., -1.), (-1., -1., -1.)),
)


# ----------------------------------------------------------------------------
# Stage 1: fused edge detect (depthwise 3x3, pad=1) + /POOL average pool
# ----------------------------------------------------------------------------
def prep_kernel(xpad_ref, ah_ref, awt_ref, out_ref):
    # xpad_ref: (1, 3, H+2, W+2)   ah_ref: (Hf, H)   awt_ref: (W, Wf)
    # out_ref : (1, 6, Hf, Wf)  -- channels 0..2 = pooled RGB, 3..5 = pooled edge
    H = xpad_ref.shape[2] - 2
    W = xpad_ref.shape[3] - 2
    xp = xpad_ref[...]                                 # (1, 3, H+2, W+2)
    ah = ah_ref[...]                                   # (Hf, H)  avg-pool rows
    awt = awt_ref[...]                                 # (W, Wf)  avg-pool cols
    for c in range(3):
        raw = xp[0, c, 1:1 + H, 1:1 + W]               # (H, W)
        edge = jnp.zeros((H, W), jnp.float32)
        for ki in range(3):
            for kj in range(3):
                w = SOBEL[c][ki][kj]
                if w != 0.0:
                    edge = edge + w * xp[0, c, ki:ki + H, kj:kj + W]
        # /POOL average pooling expressed as two small matmuls (layout-safe)
        out_ref[0, c, :, :] = jnp.dot(
            jnp.dot(ah, raw, preferred_element_type=jnp.float32), awt,
            preferred_element_type=jnp.float32)
        out_ref[0, 3 + c, :, :] = jnp.dot(
            jnp.dot(ah, edge, preferred_element_type=jnp.float32), awt,
            preferred_element_type=jnp.float32)


def _pool_matrix(nf, n):
    # (nf, n) block-averaging matrix: 1/POOL on each row's POOL-wide window.
    r = jnp.arange(nf, dtype=jnp.int32)[:, None]
    c = jnp.arange(n, dtype=jnp.int32)[None, :]
    return jnp.where((c >= r * POOL) & (c < (r + 1) * POOL),
                     1.0 / POOL, 0.0).astype(jnp.float32)


def prep(x):
    B, C, H, W = x.shape
    Hf, Wf = H // POOL, W // POOL
    xpad = jnp.pad(x, ((0, 0), (0, 0), (1, 1), (1, 1)))
    ah = _pool_matrix(Hf, H)                           # (Hf, H)
    awt = _pool_matrix(Wf, W).T                        # (W, Wf)
    return pl.pallas_call(
        prep_kernel,
        out_shape=jax.ShapeDtypeStruct((B, 6, Hf, Wf), jnp.float32),
        grid=(B,),
        in_specs=[
            pl.BlockSpec((1, C, H + 2, W + 2), lambda b: (b, 0, 0, 0)),
            pl.BlockSpec((Hf, H), lambda b: (0, 0)),
            pl.BlockSpec((W, Wf), lambda b: (0, 0)),
        ],
        out_specs=pl.BlockSpec((1, 6, Hf, Wf), lambda b: (b, 0, 0, 0)),
        compiler_params=pltpu.CompilerParams(
            dimension_semantics=("parallel",)),
    )(xpad, ah, awt)


# ----------------------------------------------------------------------------
# Stage 2: backbone stand-in (1x1 conv 3->1408 + ReLU) fused with spatial mean
# ----------------------------------------------------------------------------
def backbone_pool_kernel(x_ref, w_ref, b_ref, out_ref, *, inv_total):
    # x_ref: (1, tS, 3)  w_ref: (3, C)  b_ref: (1, C)  out_ref: (1, 1, C)
    s = pl.program_id(1)

    @pl.when(s == 0)
    def _init():
        out_ref[...] = jnp.zeros_like(out_ref)

    x = x_ref[0]                                       # (tS, 3)
    w = w_ref[...]                                     # (3, C)
    # K=3 contraction as 3 VPU broadcast rank-1 FMAs (MXU would run ~empty).
    y = (x[:, 0:1] * w[0:1, :]
         + x[:, 1:2] * w[1:2, :]
         + x[:, 2:3] * w[2:3, :]
         + b_ref[...])                                 # (tS, C)
    y = jnp.maximum(y, 0.0)
    out_ref[...] += jnp.sum(y, axis=0)[None, None, :]

    @pl.when(s == pl.num_programs(1) - 1)
    def _finalize():
        out_ref[...] = out_ref[...] * inv_total        # mean over all S


def _pick_tile(s, max_tile=512):
    """Largest spatial tile <= max_tile that divides S and is a multiple of 8
    (falls back to the full extent, which is always a legal block)."""
    if s <= max_tile:
        return s
    for t in range(max_tile - max_tile % 8, 7, -8):
        if s % t == 0:
            return t
    return s


def backbone_pool(x2, wb, bb):
    # TODO(synk): stand-in for the EfficientNet-B2 `features` (see header).
    # x2: (N, S, 3) channel-last pooled inputs -> (N, 1, FEATURE_DIM) means.
    N, S, _ = x2.shape
    tS = _pick_tile(S)
    n_s = S // tS
    kernel = functools.partial(backbone_pool_kernel, inv_total=1.0 / float(S))
    return pl.pallas_call(
        kernel,
        out_shape=jax.ShapeDtypeStruct((N, 1, FEATURE_DIM), jnp.float32),
        grid=(N, n_s),
        in_specs=[
            pl.BlockSpec((1, tS, 3), lambda i, s: (i, s, 0)),
            pl.BlockSpec((3, FEATURE_DIM), lambda i, s: (0, 0)),
            pl.BlockSpec((1, FEATURE_DIM), lambda i, s: (0, 0)),
        ],
        out_specs=pl.BlockSpec((1, 1, FEATURE_DIM), lambda i, s: (i, 0, 0)),
        compiler_params=pltpu.CompilerParams(
            dimension_semantics=("parallel", "arbitrary")),
    )(x2, wb, bb)


# ----------------------------------------------------------------------------
# Stage 3: attention + weighting + classifier head (batched over B, one call)
# ----------------------------------------------------------------------------
def head_kernel(pm_ref, ep_ref, wcs1_ref, bcs1_ref, wc2_ref, bc2_ref,
                ws2_ref, bs2_ref, wf1_ref, bf1_ref, wf2_ref, bf2_ref, o_ref):
    pm = pm_ref[...]                                   # (B, C) pooled main
    ep = ep_ref[...]                                   # (B, C) pooled edge
    # Merged first-layer matmul: [spatial(512) | channel(88)] hidden units.
    h_all = jnp.maximum(
        jnp.dot(pm, wcs1_ref[...], preferred_element_type=jnp.float32)
        + bcs1_ref[...], 0.0)                          # (B, 600)
    hs = h_all[:, :HIDDEN]                             # (B, 512) spatial attn
    hc = h_all[:, HIDDEN:]                             # (B, 88)  channel attn
    ch_w = jax.nn.sigmoid(
        jnp.dot(hc, wc2_ref[...], preferred_element_type=jnp.float32)
        + bc2_ref[...])                                # (B, C)
    sp_w = jax.nn.sigmoid(
        jnp.dot(hs, ws2_ref[...], preferred_element_type=jnp.float32)
        + bs2_ref[...])                                # (B, 1)
    weighted = pm * ch_w * sp_w                        # (B, C)
    # classifier: cat([pooled_main, edge_pooled], 1) -> Linear -> ReLU -> Linear
    combined = jnp.concatenate([weighted, ep], axis=1)  # (B, 2C) lane-aligned
    h1 = jnp.maximum(
        jnp.dot(combined, wf1_ref[...], preferred_element_type=jnp.float32)
        + bf1_ref[...], 0.0)                           # (B, 512)
    o_ref[...] = (jnp.dot(h1, wf2_ref[...], preferred_element_type=jnp.float32)
                  + bf2_ref[...])                      # (B, NUM_CLASSES)


def head(pm, ep, p):
    B = pm.shape[0]
    C = FEATURE_DIM
    wcs1 = jnp.concatenate([p["ws1"], p["wc1"]], axis=1)   # (C, 600)
    bcs1 = jnp.concatenate([p["bs1"], p["bc1"]], axis=1)   # (1, 600)
    return pl.pallas_call(
        head_kernel,
        out_shape=jax.ShapeDtypeStruct((B, NUM_CLASSES), jnp.float32),
        grid=(1,),
        in_specs=[
            pl.BlockSpec((B, C), lambda i: (0, 0)),
            pl.BlockSpec((B, C), lambda i: (0, 0)),
            pl.BlockSpec((C, CH_SP), lambda i: (0, 0)),
            pl.BlockSpec((1, CH_SP), lambda i: (0, 0)),
            pl.BlockSpec((CH_REDUCED, C), lambda i: (0, 0)),
            pl.BlockSpec((1, C), lambda i: (0, 0)),
            pl.BlockSpec((HIDDEN, 1), lambda i: (0, 0)),
            pl.BlockSpec((1, 1), lambda i: (0, 0)),
            pl.BlockSpec((2 * C, HIDDEN), lambda i: (0, 0)),
            pl.BlockSpec((1, HIDDEN), lambda i: (0, 0)),
            pl.BlockSpec((HIDDEN, NUM_CLASSES), lambda i: (0, 0)),
            pl.BlockSpec((1, NUM_CLASSES), lambda i: (0, 0)),
        ],
        out_specs=pl.BlockSpec((B, NUM_CLASSES), lambda i: (0, 0)),
        compiler_params=pltpu.CompilerParams(
            dimension_semantics=("arbitrary",)),
    )(pm, ep, wcs1, bcs1, p["wc2"], p["bc2"], p["ws2"], p["bs2"],
      p["wf1"], p["bf1"], p["wf2"], p["bf2"])


# ----------------------------------------------------------------------------
# Parameters (deterministic synthetic init) and full forward
# ----------------------------------------------------------------------------
def init_params(key):
    ks = jax.random.split(key, 7)
    s = 0.02
    return {
        # backbone stand-in (shared by RGB and edge branches, like base_model)
        "wb": jax.random.normal(ks[0], (3, FEATURE_DIM), jnp.float32) * s,
        "bb": jnp.zeros((1, FEATURE_DIM), jnp.float32),
        # channel attention (1x1 convs 1408->88->1408, as linears)
        "wc1": jax.random.normal(ks[1], (FEATURE_DIM, CH_REDUCED), jnp.float32) * s,
        "bc1": jnp.zeros((1, CH_REDUCED), jnp.float32),
        "wc2": jax.random.normal(ks[2], (CH_REDUCED, FEATURE_DIM), jnp.float32) * s,
        "bc2": jnp.zeros((1, FEATURE_DIM), jnp.float32),
        # spatial attention (1x1 convs 1408->512->1)
        "ws1": jax.random.normal(ks[3], (FEATURE_DIM, HIDDEN), jnp.float32) * s,
        "bs1": jnp.zeros((1, HIDDEN), jnp.float32),
        "ws2": jax.random.normal(ks[4], (HIDDEN, 1), jnp.float32) * s,
        "bs2": jnp.zeros((1, 1), jnp.float32),
        # classifier: Linear(2*1408, 512) + Linear(512, 2)
        "wf1": jax.random.normal(ks[5], (2 * FEATURE_DIM, HIDDEN), jnp.float32) * s,
        "bf1": jnp.zeros((1, HIDDEN), jnp.float32),
        "wf2": jax.random.normal(ks[6], (HIDDEN, NUM_CLASSES), jnp.float32) * s,
        "bf2": jnp.zeros((1, NUM_CLASSES), jnp.float32),
    }


def feature_enhanced_cnn_forward(params, x):
    # x: (B, 3, H, W) NCHW float32
    B, C, H, W = x.shape
    assert C == 3 and H % POOL == 0 and W % POOL == 0
    Hf, Wf = H // POOL, W // POOL
    S = Hf * Wf

    # Stage 1: Sobel + /4 pool for both branches in one pass over the input.
    pooled_in = prep(x)                                       # (B, 6, Hf, Wf)

    # Tiny layout shuffle (B*2*3*S floats) to channel-last rows for stage 2.
    x2 = (pooled_in.reshape(B, 2, 3, Hf, Wf)
          .transpose(0, 1, 3, 4, 2)
          .reshape(2 * B, S, 3))                              # (2B, S, 3)

    # Stage 2: shared backbone stand-in with fused global spatial mean.
    pooled = backbone_pool(x2, params["wb"], params["bb"])    # (2B, 1, 1408)
    pooled = pooled.reshape(B, 2, FEATURE_DIM)
    pm = pooled[:, 0, :]                                      # main branch
    ep = pooled[:, 1, :]                                      # edge branch

    # Stage 3: attention + weighting + classifier (dropout = identity).
    return head(pm, ep, params)                               # (B, 2)


if __name__ == "__main__":
    key = jax.random.PRNGKey(0)
    pkey, xkey = jax.random.split(key)
    params = init_params(pkey)
    x = jax.random.normal(xkey, (2, 3, 16, 16), jnp.float32)  # NCHW
    fwd = jax.jit(feature_enhanced_cnn_forward)
    out = jax.block_until_ready(fwd(params, x))
    assert out.shape == (2, NUM_CLASSES) and out.dtype == jnp.float32
    print("KERNEL_OK")
</pallas_src>

<mosaic_0001>
module attributes {stable_mosaic.version = 11 : i64} {
  func.func @prep_kernel(%arg0: i32, %arg1: memref<1x3x18x18xf32, #tpu.memory_space<vmem>>, %arg2: memref<4x16xf32, #tpu.memory_space<vmem>>, %arg3: memref<16x4xf32, #tpu.memory_space<vmem>>, %arg4: memref<1x6x4x4xf32, #tpu.memory_space<vmem>>) attributes {dimension_semantics = [#tpu.dimension_semantics<parallel>], iteration_bounds = array<i64: 2>, scalar_prefetch = 0 : i64, scratch_operands = 0 : i64, tpu.core_type = #tpu.core_type<tc>, window_params = [{transform_indices = @transform_0, window_bounds = array<i64: 1, 3, 18, 18>}, {pipeline_mode = #tpu.pipeline_mode<synchronous>, transform_indices = @transform_1, window_bounds = array<i64: 4, 16>}, {pipeline_mode = #tpu.pipeline_mode<synchronous>, transform_indices = @transform_2, window_bounds = array<i64: 16, 4>}, {transform_indices = @transform_3, window_bounds = array<i64: 1, 6, 4, 4>}]} {
    %c0 = arith.constant 0 : index
    %c0_0 = arith.constant 0 : index
    %c0_1 = arith.constant 0 : index
    %c0_2 = arith.constant 0 : index
    %0 = vector.load %arg1[%c0, %c0_0, %c0_1, %c0_2] : memref<1x3x18x18xf32, #tpu.memory_space<vmem>>, vector<1x3x18x18xf32>
    %c0_3 = arith.constant 0 : index
    %c0_4 = arith.constant 0 : index
    %1 = vector.load %arg2[%c0_3, %c0_4] : memref<4x16xf32, #tpu.memory_space<vmem>>, vector<4x16xf32>
    %c0_5 = arith.constant 0 : index
    %c0_6 = arith.constant 0 : index
    %2 = vector.load %arg3[%c0_5, %c0_6] : memref<16x4xf32, #tpu.memory_space<vmem>>, vector<16x4xf32>
    %3 = vector.extract_strided_slice %0 {offsets = [0, 0, 1, 1], sizes = [1, 1, 16, 16], strides = [1, 1, 1, 1]} : vector<1x3x18x18xf32> to vector<1x1x16x16xf32>
    %4 = vector.shape_cast %3 : vector<1x1x16x16xf32> to vector<16x16xf32>
    %cst = arith.constant 0.000000e+00 : f32
    %5 = vector.broadcast %cst : f32 to vector<16x16xf32>
    %6 = vector.extract_strided_slice %0 {offsets = [0, 0, 0, 0], sizes = [1, 1, 16, 16], strides = [1, 1, 1, 1]} : vector<1x3x18x18xf32> to vector<1x1x16x16xf32>
    %7 = vector.shape_cast %6 : vector<1x1x16x16xf32> to vector<16x16xf32>
    %cst_7 = arith.constant -1.000000e+00 : f32
    %8 = vector.broadcast %cst_7 : f32 to vector<16x16xf32>
    %9 = arith.mulf %8, %7 : vector<16x16xf32>
    %10 = arith.addf %5, %9 : vector<16x16xf32>
    %11 = vector.extract_strided_slice %0 {offsets = [0, 0, 0, 2], sizes = [1, 1, 16, 16], strides = [1, 1, 1, 1]} : vector<1x3x18x18xf32> to vector<1x1x16x16xf32>
    %12 = vector.shape_cast %11 : vector<1x1x16x16xf32> to vector<16x16xf32>
    %cst_8 = arith.constant 1.000000e+00 : f32
    %13 = vector.broadcast %cst_8 : f32 to vector<16x16xf32>
    %14 = arith.mulf %13, %12 : vector<16x16xf32>
    %15 = arith.addf %10, %14 : vector<16x16xf32>
    %16 = vector.extract_strided_slice %0 {offsets = [0, 0, 1, 0], sizes = [1, 1, 16, 16], strides = [1, 1, 1, 1]} : vector<1x3x18x18xf32> to vector<1x1x16x16xf32>
    %17 = vector.shape_cast %16 : vector<1x1x16x16xf32> to vector<16x16xf32>
    %cst_9 = arith.constant -2.000000e+00 : f32
    %18 = vector.broadcast %cst_9 : f32 to vector<16x16xf32>
    %19 = arith.mulf %18, %17 : vector<16x16xf32>
    %20 = arith.addf %15, %19 : vector<16x16xf32>
    %21 = vector.extract_strided_slice %0 {offsets = [0, 0, 1, 2], sizes = [1, 1, 16, 16], strides = [1, 1, 1, 1]} : vector<1x3x18x18xf32> to vector<1x1x16x16xf32>
    %22 = vector.shape_cast %21 : vector<1x1x16x16xf32> to vector<16x16xf32>
    %cst_10 = arith.constant 2.000000e+00 : f32
    %23 = vector.broadcast %cst_10 : f32 to vector<16x16xf32>
    %24 = arith.mulf %23, %22 : vector<16x16xf32>
    %25 = arith.addf %20, %24 : vector<16x16xf32>
    %26 = vector.extract_strided_slice %0 {offsets = [0, 0, 2, 0], sizes = [1, 1, 16, 16], strides = [1, 1, 1, 1]} : vector<1x3x18x18xf32> to vector<1x1x16x16xf32>
    %27 = vector.shape_cast %26 : vector<1x1x16x16xf32> to vector<16x16xf32>
    %cst_11 = arith.constant -1.000000e+00 : f32
    %28 = vector.broadcast %cst_11 : f32 to vector<16x16xf32>
    %29 = arith.mulf %28, %27 : vector<16x16xf32>
    %30 = arith.addf %25, %29 : vector<16x16xf32>
    %31 = vector.extract_strided_slice %0 {offsets = [0, 0, 2, 2], sizes = [1, 1, 16, 16], strides = [1, 1, 1, 1]} : vector<1x3x18x18xf32> to vector<1x1x16x16xf32>
    %32 = vector.shape_cast %31 : vector<1x1x16x16xf32> to vector<16x16xf32>
    %cst_12 = arith.constant 1.000000e+00 : f32
    %33 = vector.broadcast %cst_12 : f32 to vector<16x16xf32>
    %34 = arith.mulf %33, %32 : vector<16x16xf32>
    %35 = arith.addf %30, %34 : vector<16x16xf32>
    %cst_13 = arith.constant dense<0.000000e+00> : vector<4x16xf32>
    %36 = tpu.matmul %1, %4, %cst_13 {dimension_numbers = #tpu.dot_dimension_numbers<[1], [0], [0], [1], [0, 0, 1, 1], [], []>} : vector<4x16xf32>, vector<16x16xf32>, vector<4x16xf32> -> vector<4x16xf32>
    %cst_14 = arith.constant dense<0.000000e+00> : vector<4x4xf32>
    %37 = tpu.matmul %36, %2, %cst_14 {dimension_numbers = #tpu.dot_dimension_numbers<[1], [0], [0], [1], [0, 0, 1, 1], [], []>} : vector<4x16xf32>, vector<16x4xf32>, vector<4x4xf32> -> vector<4x4xf32>
    %c0_15 = arith.constant 0 : index
    %c0_16 = arith.constant 0 : index
    %c0_17 = arith.constant 0 : index
    %c0_18 = arith.constant 0 : index
    %38 = vector.load %arg4[%c0_15, %c0_16, %c0_17, %c0_18] : memref<1x6x4x4xf32, #tpu.memory_space<vmem>>, vector<1x1x4x4xf32>
    %39 = vector.shape_cast %38 : vector<1x1x4x4xf32> to vector<4x4xf32>
    %40 = vector.shape_cast %37 : vector<4x4xf32> to vector<1x1x4x4xf32>
    tpu.vector_store %arg4[%c0_15, %c0_16, %c0_17, %c0_18], %40 {strides = array<i32>} : memref<1x6x4x4xf32, #tpu.memory_space<vmem>>, vector<1x1x4x4xf32>,
    %cst_19 = arith.constant dense<0.000000e+00> : vector<4x16xf32>
    %41 = tpu.matmul %1, %35, %cst_19 {dimension_numbers = #tpu.dot_dimension_numbers<[1], [0], [0], [1], [0, 0, 1, 1], [], []>} : vector<4x16xf32>, vector<16x16xf32>, vector<4x16xf32> -> vector<4x16xf32>
    %cst_20 = arith.constant dense<0.000000e+00> : vector<4x4xf32>
    %42 = tpu.matmul %41, %2, %cst_20 {dimension_numbers = #tpu.dot_dimension_numbers<[1], [0], [0], [1], [0, 0, 1, 1], [], []>} : vector<4x16xf32>, vector<16x4xf32>, vector<4x4xf32> -> vector<4x4xf32>
    %c0_21 = arith.constant 0 : index
    %c3 = arith.constant 3 : index
    %c0_22 = arith.constant 0 : index
    %c0_23 = arith.constant 0 : index
    %43 = vector.load %arg4[%c0_21, %c3, %c0_22, %c0_23] : memref<1x6x4x4xf32, #tpu.memory_space<vmem>>, vector<1x1x4x4xf32>
    %44 = vector.shape_cast %43 : vector<1x1x4x4xf32> to vector<4x4xf32>
    %45 = vector.shape_cast %42 : vector<4x4xf32> to vector<1x1x4x4xf32>
    tpu.vector_store %arg4[%c0_21, %c3, %c0_22, %c0_23], %45 {strides = array<i32>} : memref<1x6x4x4xf32, #tpu.memory_space<vmem>>, vector<1x1x4x4xf32>,
    %46 = vector.extract_strided_slice %0 {offsets = [0, 1, 1, 1], sizes = [1, 1, 16, 16], strides = [1, 1, 1, 1]} : vector<1x3x18x18xf32> to vector<1x1x16x16xf32>
    %47 = vector.shape_cast %46 : vector<1x1x16x16xf32> to vector<16x16xf32>
    %cst_24 = arith.constant 0.000000e+00 : f32
    %48 = vector.broadcast %cst_24 : f32 to vector<16x16xf32>
    %49 = vector.extract_strided_slice %0 {offsets = [0, 1, 0, 0], sizes = [1, 1, 16, 16], strides = [1, 1, 1, 1]} : vector<1x3x18x18xf32> to vector<1x1x16x16xf32>
    %50 = vector.shape_cast %49 : vector<1x1x16x16xf32> to vector<16x16xf32>
    %cst_25 = arith.constant -1.000000e+00 : f32
    %51 = vector.broadcast %cst_25 : f32 to vector<16x16xf32>
    %52 = arith.mulf %51, %50 : vector<16x16xf32>
    %53 = arith.addf %48, %52 : vector<16x16xf32>
    %54 = vector.extract_strided_slice %0 {offsets = [0, 1, 0, 1], sizes = [1, 1, 16, 16], strides = [1, 1, 1, 1]} : vector<1x3x18x18xf32> to vector<1x1x16x16xf32>
    %55 = vector.shape_cast %54 : vector<1x1x16x16xf32> to vector<16x16xf32>
    %cst_26 = arith.constant -2.000000e+00 : f32
    %56 = vector.broadcast %cst_26 : f32 to vector<16x16xf32>
    %57 = arith.mulf %56, %55 : vector<16x16xf32>
    %58 = arith.addf %53, %57 : vector<16x16xf32>
    %59 = vector.extract_strided_slice %0 {offsets = [0, 1, 0, 2], sizes = [1, 1, 16, 16], strides = [1, 1, 1, 1]} : vector<1x3x18x18xf32> to vector<1x1x16x16xf32>
    %60 = vector.shape_cast %59 : vector<1x1x16x16xf32> to vector<16x16xf32>
    %cst_27 = arith.constant -1.000000e+00 : f32
    %61 = vector.broadcast %cst_27 : f32 to vector<16x16xf32>
    %62 = arith.mulf %61, %60 : vector<16x16xf32>
    %63 = arith.addf %58, %62 : vector<16x16xf32>
    %64 = vector.extract_strided_slice %0 {offsets = [0, 1, 2, 0], sizes = [1, 1, 16, 16], strides = [1, 1, 1, 1]} : vector<1x3x18x18xf32> to vector<1x1x16x16xf32>
    %65 = vector.shape_cast %64 : vector<1x1x16x16xf32> to vector<16x16xf32>
    %cst_28 = arith.constant 1.000000e+00 : f32
    %66 = vector.broadcast %cst_28 : f32 to vector<16x16xf32>
    %67 = arith.mulf %66, %65 : vector<16x16xf32>
    %68 = arith.addf %63, %67 : vector<16x16xf32>
    %69 = vector.extract_strided_slice %0 {offsets = [0, 1, 2, 1], sizes = [1, 1, 16, 16], strides = [1, 1, 1, 1]} : vector<1x3x18x18xf32> to vector<1x1x16x16xf32>
    %70 = vector.shape_cast %69 : vector<1x1x16x16xf32> to vector<16x16xf32>
    %cst_29 = arith.constant 2.000000e+00 : f32
    %71 = vector.broadcast %cst_29 : f32 to vector<16x16xf32>
    %72 = arith.mulf %71, %70 : vector<16x16xf32>
    %73 = arith.addf %68, %72 : vector<16x16xf32>
    %74 = vector.extract_strided_slice %0 {offsets = [0, 1, 2, 2], sizes = [1, 1, 16, 16], strides = [1, 1, 1, 1]} : vector<1x3x18x18xf32> to vector<1x1x16x16xf32>
    %75 = vector.shape_cast %74 : vector<1x1x16x16xf32> to vector<16x16xf32>
    %cst_30 = arith.constant 1.000000e+00 : f32
    %76 = vector.broadcast %cst_30 : f32 to vector<16x16xf32>
    %77 = arith.mulf %76, %75 : vector<16x16xf32>
    %78 = arith.addf %73, %77 : vector<16x16xf32>
    %cst_31 = arith.constant dense<0.000000e+00> : vector<4x16xf32>
    %79 = tpu.matmul %1, %47, %cst_31 {dimension_numbers = #tpu.dot_dimension_numbers<[1], [0], [0], [1], [0, 0, 1, 1], [], []>} : vector<4x16xf32>, vector<16x16xf32>, vector<4x16xf32> -> vector<4x16xf32>
    %cst_32 = arith.constant dense<0.000000e+00> : vector<4x4xf32>
    %80 = tpu.matmul %79, %2, %cst_32 {dimension_numbers = #tpu.dot_dimension_numbers<[1], [0], [0], [1], [0, 0, 1, 1], [], []>} : vector<4x16xf32>, vector<16x4xf32>, vector<4x4xf32> -> vector<4x4xf32>
    %c0_33 = arith.constant 0 : index
    %c1 = arith.constant 1 : index
    %c0_34 = arith.constant 0 : index
    %c0_35 = arith.constant 0 : index
    %81 = vector.load %arg4[%c0_33, %c1, %c0_34, %c0_35] : memref<1x6x4x4xf32, #tpu.memory_space<vmem>>, vector<1x1x4x4xf32>
    %82 = vector.shape_cast %81 : vector<1x1x4x4xf32> to vector<4x4xf32>
    %83 = vector.shape_cast %80 : vector<4x4xf32> to vector<1x1x4x4xf32>
    tpu.vector_store %arg4[%c0_33, %c1, %c0_34, %c0_35], %83 {strides = array<i32>} : memref<1x6x4x4xf32, #tpu.memory_space<vmem>>, vector<1x1x4x4xf32>,
    %cst_36 = arith.constant dense<0.000000e+00> : vector<4x16xf32>
    %84 = tpu.matmul %1, %78, %cst_36 {dimension_numbers = #tpu.dot_dimension_numbers<[1], [0], [0], [1], [0, 0, 1, 1], [], []>} : vector<4x16xf32>, vector<16x16xf32>, vector<4x16xf32> -> vector<4x16xf32>
    %cst_37 = arith.constant dense<0.000000e+00> : vector<4x4xf32>
    %85 = tpu.matmul %84, %2, %cst_37 {dimension_numbers = #tpu.dot_dimension_numbers<[1], [0], [0], [1], [0, 0, 1, 1], [], []>} : vector<4x16xf32>, vector<16x4xf32>, vector<4x4xf32> -> vector<4x4xf32>
    %c0_38 = arith.constant 0 : index
    %c4 = arith.constant 4 : index
    %c0_39 = arith.constant 0 : index
    %c0_40 = arith.constant 0 : index
    %86 = vector.load %arg4[%c0_38, %c4, %c0_39, %c0_40] : memref<1x6x4x4xf32, #tpu.memory_space<vmem>>, vector<1x1x4x4xf32>
    %87 = vector.shape_cast %86 : vector<1x1x4x4xf32> to vector<4x4xf32>
    %88 = vector.shape_cast %85 : vector<4x4xf32> to vector<1x1x4x4xf32>
    tpu.vector_store %arg4[%c0_38, %c4, %c0_39, %c0_40], %88 {strides = array<i32>} : memref<1x6x4x4xf32, #tpu.memory_space<vmem>>, vector<1x1x4x4xf32>,
    %89 = vector.extract_strided_slice %0 {offsets = [0, 2, 1, 1], sizes = [1, 1, 16, 16], strides = [1, 1, 1, 1]} : vector<1x3x18x18xf32> to vector<1x1x16x16xf32>
    %90 = vector.shape_cast %89 : vector<1x1x16x16xf32> to vector<16x16xf32>
    %cst_41 = arith.constant 0.000000e+00 : f32
    %91 = vector.broadcast %cst_41 : f32 to vector<16x16xf32>
    %92 = vector.extract_strided_slice %0 {offsets = [0, 2, 0, 0], sizes = [1, 1, 16, 16], strides = [1, 1, 1, 1]} : vector<1x3x18x18xf32> to vector<1x1x16x16xf32>
    %93 = vector.shape_cast %92 : vector<1x1x16x16xf32> to vector<16x16xf32>
    %cst_42 = arith.constant -1.000000e+00 : f32
    %94 = vector.broadcast %cst_42 : f32 to vector<16x16xf32>
    %95 = arith.mulf %94, %93 : vector<16x16xf32>
    %96 = arith.addf %91, %95 : vector<16x16xf32>
    %97 = vector.extract_strided_slice %0 {offsets = [0, 2, 0, 1], sizes = [1, 1, 16, 16], strides = [1, 1, 1, 1]} : vector<1x3x18x18xf32> to vector<1x1x16x16xf32>
    %98 = vector.shape_cast %97 : vector<1x1x16x16xf32> to vector<16x16xf32>
    %cst_43 = arith.constant -1.000000e+00 : f32
    %99 = vector.broadcast %cst_43 : f32 to vector<16x16xf32>
    %100 = arith.mulf %99, %98 : vector<16x16xf32>
    %101 = arith.addf %96, %100 : vector<16x16xf32>
    %102 = vector.extract_strided_slice %0 {offsets = [0, 2, 0, 2], sizes = [1, 1, 16, 16], strides = [1, 1, 1, 1]} : vector<1x3x18x18xf32> to vector<1x1x16x16xf32>
    %103 = vector.shape_cast %102 : vector<1x1x16x16xf32> to vector<16x16xf32>
    %cst_44 = arith.constant -1.000000e+00 : f32
    %104 = vector.broadcast %cst_44 : f32 to vector<16x16xf32>
    %105 = arith.mulf %104, %103 : vector<16x16xf32>
    %106 = arith.addf %101, %105 : vector<16x16xf32>
    %107 = vector.extract_strided_slice %0 {offsets = [0, 2, 1, 0], sizes = [1, 1, 16, 16], strides = [1, 1, 1, 1]} : vector<1x3x18x18xf32> to vector<1x1x16x16xf32>
    %108 = vector.shape_cast %107 : vector<1x1x16x16xf32> to vector<16x16xf32>
    %cst_45 = arith.constant -1.000000e+00 : f32
    %109 = vector.broadcast %cst_45 : f32 to vector<16x16xf32>
    %110 = arith.mulf %109, %108 : vector<16x16xf32>
    %111 = arith.addf %106, %110 : vector<16x16xf32>
    %112 = vector.extract_strided_slice %0 {offsets = [0, 2, 1, 1], sizes = [1, 1, 16, 16], strides = [1, 1, 1, 1]} : vector<1x3x18x18xf32> to vector<1x1x16x16xf32>
    %113 = vector.shape_cast %112 : vector<1x1x16x16xf32> to vector<16x16xf32>
    %cst_46 = arith.constant 8.000000e+00 : f32
    %114 = vector.broadcast %cst_46 : f32 to vector<16x16xf32>
    %115 = arith.mulf %114, %113 : vector<16x16xf32>
    %116 = arith.addf %111, %115 : vector<16x16xf32>
    %117 = vector.extract_strided_slice %0 {offsets = [0, 2, 1, 2], sizes = [1, 1, 16, 16], strides = [1, 1, 1, 1]} : vector<1x3x18x18xf32> to vector<1x1x16x16xf32>
    %118 = vector.shape_cast %117 : vector<1x1x16x16xf32> to vector<16x16xf32>
    %cst_47 = arith.constant -1.000000e+00 : f32
    %119 = vector.broadcast %cst_47 : f32 to vector<16x16xf32>
    %120 = arith.mulf %119, %118 : vector<16x16xf32>
    %121 = arith.addf %116, %120 : vector<16x16xf32>
    %122 = vector.extract_strided_slice %0 {offsets = [0, 2, 2, 0], sizes = [1, 1, 16, 16], strides = [1, 1, 1, 1]} : vector<1x3x18x18xf32> to vector<1x1x16x16xf32>
    %123 = vector.shape_cast %122 : vector<1x1x16x16xf32> to vector<16x16xf32>
    %cst_48 = arith.constant -1.000000e+00 : f32
    %124 = vector.broadcast %cst_48 : f32 to vector<16x16xf32>
    %125 = arith.mulf %124, %123 : vector<16x16xf32>
    %126 = arith.addf %121, %125 : vector<16x16xf32>
    %127 = vector.extract_strided_slice %0 {offsets = [0, 2, 2, 1], sizes = [1, 1, 16, 16], strides = [1, 1, 1, 1]} : vector<1x3x18x18xf32> to vector<1x1x16x16xf32>
    %128 = vector.shape_cast %127 : vector<1x1x16x16xf32> to vector<16x16xf32>
    %cst_49 = arith.constant -1.000000e+00 : f32
    %129 = vector.broadcast %cst_49 : f32 to vector<16x16xf32>
    %130 = arith.mulf %129, %128 : vector<16x16xf32>
    %131 = arith.addf %126, %130 : vector<16x16xf32>
    %132 = vector.extract_strided_slice %0 {offsets = [0, 2, 2, 2], sizes = [1, 1, 16, 16], strides = [1, 1, 1, 1]} : vector<1x3x18x18xf32> to vector<1x1x16x16xf32>
    %133 = vector.shape_cast %132 : vector<1x1x16x16xf32> to vector<16x16xf32>
    %cst_50 = arith.constant -1.000000e+00 : f32
    %134 = vector.broadcast %cst_50 : f32 to vector<16x16xf32>
    %135 = arith.mulf %134, %133 : vector<16x16xf32>
    %136 = arith.addf %131, %135 : vector<16x16xf32>
    %cst_51 = arith.constant dense<0.000000e+00> : vector<4x16xf32>
    %137 = tpu.matmul %1, %90, %cst_51 {dimension_numbers = #tpu.dot_dimension_numbers<[1], [0], [0], [1], [0, 0, 1, 1], [], []>} : vector<4x16xf32>, vector<16x16xf32>, vector<4x16xf32> -> vector<4x16xf32>
    %cst_52 = arith.constant dense<0.000000e+00> : vector<4x4xf32>
    %138 = tpu.matmul %137, %2, %cst_52 {dimension_numbers = #tpu.dot_dimension_numbers<[1], [0], [0], [1], [0, 0, 1, 1], [], []>} : vector<4x16xf32>, vector<16x4xf32>, vector<4x4xf32> -> vector<4x4xf32>
    %c0_53 = arith.constant 0 : index
    %c2 = arith.constant 2 : index
    %c0_54 = arith.constant 0 : index
    %c0_55 = arith.constant 0 : index
    %139 = vector.load %arg4[%c0_53, %c2, %c0_54, %c0_55] : memref<1x6x4x4xf32, #tpu.memory_space<vmem>>, vector<1x1x4x4xf32>
    %140 = vector.shape_cast %139 : vector<1x1x4x4xf32> to vector<4x4xf32>
    %141 = vector.shape_cast %138 : vector<4x4xf32> to vector<1x1x4x4xf32>
    tpu.vector_store %arg4[%c0_53, %c2, %c0_54, %c0_55], %141 {strides = array<i32>} : memref<1x6x4x4xf32, #tpu.memory_space<vmem>>, vector<1x1x4x4xf32>,
    %cst_56 = arith.constant dense<0.000000e+00> : vector<4x16xf32>
    %142 = tpu.matmul %1, %136, %cst_56 {dimension_numbers = #tpu.dot_dimension_numbers<[1], [0], [0], [1], [0, 0, 1, 1], [], []>} : vector<4x16xf32>, vector<16x16xf32>, vector<4x16xf32> -> vector<4x16xf32>
    %cst_57 = arith.constant dense<0.000000e+00> : vector<4x4xf32>
    %143 = tpu.matmul %142, %2, %cst_57 {dimension_numbers = #tpu.dot_dimension_numbers<[1], [0], [0], [1], [0, 0, 1, 1], [], []>} : vector<4x16xf32>, vector<16x4xf32>, vector<4x4xf32> -> vector<4x4xf32>
    %c0_58 = arith.constant 0 : index
    %c5 = arith.constant 5 : index
    %c0_59 = arith.constant 0 : index
    %c0_60 = arith.constant 0 : index
    %144 = vector.load %arg4[%c0_58, %c5, %c0_59, %c0_60] : memref<1x6x4x4xf32, #tpu.memory_space<vmem>>, vector<1x1x4x4xf32>
    %145 = vector.shape_cast %144 : vector<1x1x4x4xf32> to vector<4x4xf32>
    %146 = vector.shape_cast %143 : vector<4x4xf32> to vector<1x1x4x4xf32>
    tpu.vector_store %arg4[%c0_58, %c5, %c0_59, %c0_60], %146 {strides = array<i32>} : memref<1x6x4x4xf32, #tpu.memory_space<vmem>>, vector<1x1x4x4xf32>,
    return
  }
  func.func @transform_0(%arg0: i32) -> (i32, i32, i32, i32) {
    %c0_i32 = arith.constant 0 : i32
    %c0_i32_0 = arith.constant 0 : i32
    %c0_i32_1 = arith.constant 0 : i32
    %c0_i32_2 = arith.constant 0 : i32
    return %arg0, %c0_i32, %c0_i32_0, %c0_i32_1 : i32, i32, i32, i32
  }
  func.func @transform_1(%arg0: i32) -> (i32, i32) {
    %c0_i32 = arith.constant 0 : i32
    %c0_i32_0 = arith.constant 0 : i32
    %c0_i32_1 = arith.constant 0 : i32
    return %c0_i32, %c0_i32_0 : i32, i32
  }
  func.func @transform_2(%arg0: i32) -> (i32, i32) {
    %c0_i32 = arith.constant 0 : i32
    %c0_i32_0 = arith.constant 0 : i32
    %c0_i32_1 = arith.constant 0 : i32
    return %c0_i32, %c0_i32_0 : i32, i32
  }
  func.func @transform_3(%arg0: i32) -> (i32, i32, i32, i32) {
    %c0_i32 = arith.constant 0 : i32
    %c0_i32_0 = arith.constant 0 : i32
    %c0_i32_1 = arith.constant 0 : i32
    %c0_i32_2 = arith.constant 0 : i32
    return %arg0, %c0_i32, %c0_i32_0, %c0_i32_1 : i32, i32, i32, i32
  }
}

module attributes {stable_mosaic.version = 11 : i64} {
  func.func @backbone_pool_kernel(%arg0: i32, %arg1: i32, %arg2: memref<1x16x3xf32, #tpu.memory_space<vmem>>, %arg3: memref<3x1408xf32, #tpu.memory_space<vmem>>, %arg4: memref<1x1408xf32, #tpu.memory_space<vmem>>, %arg5: memref<1x1x1408xf32, #tpu.memory_space<vmem>>) attributes {dimension_semantics = [#tpu.dimension_semantics<parallel>, #tpu.dimension_semantics<arbitrary>], iteration_bounds = array<i64: 4, 1>, scalar_prefetch = 0 : i64, scratch_operands = 0 : i64, tpu.core_type = #tpu.core_type<tc>, window_params = [{transform_indices = @transform_0, window_bounds = array<i64: 1, 16, 3>}, {pipeline_mode = #tpu.pipeline_mode<synchronous>, transform_indices = @transform_1, window_bounds = array<i64: 3, 1408>}, {pipeline_mode = #tpu.pipeline_mode<synchronous>, transform_indices = @transform_2, window_bounds = array<i64: 1, 1408>}, {transform_indices = @transform_3, window_bounds = array<i64: 1, 1, 1408>}]} {
    %c0_i32 = arith.constant 0 : i32
    %0 = arith.cmpi eq, %arg1, %c0_i32 : i32
    %1 = arith.extui %0 : i1 to i32
    %c0_i32_0 = arith.constant 0 : i32
    %2 = arith.cmpi ne, %1, %c0_i32_0 : i32
    scf.if %2 {
      %cst_16 = arith.constant 0.000000e+00 : f32
      %36 = vector.broadcast %cst_16 : f32 to vector<1x1x1408xf32>
      %c0_17 = arith.constant 0 : index
      %c0_18 = arith.constant 0 : index
      %c0_19 = arith.constant 0 : index
      %37 = vector.load %arg5[%c0_17, %c0_18, %c0_19] : memref<1x1x1408xf32, #tpu.memory_space<vmem>>, vector<1x1x1408xf32>
      tpu.vector_store %arg5[%c0_17, %c0_18, %c0_19], %36 {strides = array<i32>} : memref<1x1x1408xf32, #tpu.memory_space<vmem>>, vector<1x1x1408xf32>,
    } else {
    }
    %c0 = arith.constant 0 : index
    %c0_1 = arith.constant 0 : index
    %c0_2 = arith.constant 0 : index
    %3 = vector.load %arg2[%c0, %c0_1, %c0_2] : memref<1x16x3xf32, #tpu.memory_space<vmem>>, vector<1x16x3xf32>
    %4 = vector.shape_cast %3 : vector<1x16x3xf32> to vector<16x3xf32>
    %c0_3 = arith.constant 0 : index
    %c0_4 = arith.constant 0 : index
    %5 = vector.load %arg3[%c0_3, %c0_4] : memref<3x1408xf32, #tpu.memory_space<vmem>>, vector<3x1408xf32>
    %6 = vector.extract_strided_slice %4 {offsets = [0, 0], sizes = [16, 1], strides = [1, 1]} : vector<16x3xf32> to vector<16x1xf32>
    %7 = vector.extract_strided_slice %5 {offsets = [0, 0], sizes = [1, 1408], strides = [1, 1]} : vector<3x1408xf32> to vector<1x1408xf32>
    %8 = vector.broadcast %6 : vector<16x1xf32> to vector<16x1408xf32>
    %9 = vector.broadcast %7 : vector<1x1408xf32> to vector<16x1408xf32>
    %10 = arith.mulf %8, %9 : vector<16x1408xf32>
    %11 = vector.extract_strided_slice %4 {offsets = [0, 1], sizes = [16, 1], strides = [1, 1]} : vector<16x3xf32> to vector<16x1xf32>
    %12 = vector.extract_strided_slice %5 {offsets = [1, 0], sizes = [1, 1408], strides = [1, 1]} : vector<3x1408xf32> to vector<1x1408xf32>
    %13 = vector.broadcast %11 : vector<16x1xf32> to vector<16x1408xf32>
    %14 = vector.broadcast %12 : vector<1x1408xf32> to vector<16x1408xf32>
    %15 = arith.mulf %13, %14 : vector<16x1408xf32>
    %16 = arith.addf %10, %15 : vector<16x1408xf32>
    %17 = vector.extract_strided_slice %4 {offsets = [0, 2], sizes = [16, 1], strides = [1, 1]} : vector<16x3xf32> to vector<16x1xf32>
    %18 = vector.extract_strided_slice %5 {offsets = [2, 0], sizes = [1, 1408], strides = [1, 1]} : vector<3x1408xf32> to vector<1x1408xf32>
    %19 = vector.broadcast %17 : vector<16x1xf32> to vector<16x1408xf32>
    %20 = vector.broadcast %18 : vector<1x1408xf32> to vector<16x1408xf32>
    %21 = arith.mulf %19, %20 : vector<16x1408xf32>
    %22 = arith.addf %16, %21 : vector<16x1408xf32>
    %c0_5 = arith.constant 0 : index
    %c0_6 = arith.constant 0 : index
    %23 = vector.load %arg4[%c0_5, %c0_6] : memref<1x1408xf32, #tpu.memory_space<vmem>>, vector<1x1408xf32>
    %24 = vector.broadcast %23 : vector<1x1408xf32> to vector<16x1408xf32>
    %25 = arith.addf %22, %24 : vector<16x1408xf32>
    %cst = arith.constant 0.000000e+00 : f32
    %26 = vector.broadcast %cst : f32 to vector<16x1408xf32>
    %27 = arith.maximumf %25, %26 : vector<16x1408xf32>
    %c0_7 = arith.constant 0 : index
    %c0_8 = arith.constant 0 : index
    %c0_9 = arith.constant 0 : index
    %28 = vector.load %arg5[%c0_7, %c0_8, %c0_9] : memref<1x1x1408xf32, #tpu.memory_space<vmem>>, vector<1x1x1408xf32>
    %cst_10 = arith.constant dense<0.000000e+00> : vector<1408xf32>
    %29 = vector.multi_reduction <add>, %27, %cst_10 [0] : vector<16x1408xf32> to vector<1408xf32>
    %30 = vector.shape_cast %29 : vector<1408xf32> to vector<1x1x1408xf32>
    %31 = arith.addf %28, %30 : vector<1x1x1408xf32>
    %c0_11 = arith.constant 0 : index
    %c0_12 = arith.constant 0 : index
    %c0_13 = arith.constant 0 : index
    %32 = vector.load %arg5[%c0_11, %c0_12, %c0_13] : memref<1x1x1408xf32, #tpu.memory_space<vmem>>, vector<1x1x1408xf32>
    tpu.vector_store %arg5[%c0_11, %c0_12, %c0_13], %31 {strides = array<i32>} : memref<1x1x1408xf32, #tpu.memory_space<vmem>>, vector<1x1x1408xf32>,
    %c0_i32_14 = arith.constant 0 : i32
    %33 = arith.cmpi eq, %arg1, %c0_i32_14 : i32
    %34 = arith.extui %33 : i1 to i32
    %c0_i32_15 = arith.constant 0 : i32
    %35 = arith.cmpi ne, %34, %c0_i32_15 : i32
    scf.if %35 {
      %c0_16 = arith.constant 0 : index
      %c0_17 = arith.constant 0 : index
      %c0_18 = arith.constant 0 : index
      %36 = vector.load %arg5[%c0_16, %c0_17, %c0_18] : memref<1x1x1408xf32, #tpu.memory_space<vmem>>, vector<1x1x1408xf32>
      %cst_19 = arith.constant 6.250000e-02 : f32
      %37 = vector.broadcast %cst_19 : f32 to vector<1x1x1408xf32>
      %38 = arith.mulf %36, %37 : vector<1x1x1408xf32>
      %c0_20 = arith.constant 0 : index
      %c0_21 = arith.constant 0 : index
      %c0_22 = arith.constant 0 : index
      %39 = vector.load %arg5[%c0_20, %c0_21, %c0_22] : memref<1x1x1408xf32, #tpu.memory_space<vmem>>, vector<1x1x1408xf32>
      tpu.vector_store %arg5[%c0_20, %c0_21, %c0_22], %38 {strides = array<i32>} : memref<1x1x1408xf32, #tpu.memory_space<vmem>>, vector<1x1x1408xf32>,
    } else {
    }
    return
  }
  func.func @transform_0(%arg0: i32, %arg1: i32) -> (i32, i32, i32) {
    %c0_i32 = arith.constant 0 : i32
    %c0_i32_0 = arith.constant 0 : i32
    return %arg0, %arg1, %c0_i32 : i32, i32, i32
  }
  func.func @transform_1(%arg0: i32, %arg1: i32) -> (i32, i32) {
    %c0_i32 = arith.constant 0 : i32
    %c0_i32_0 = arith.constant 0 : i32
    %c0_i32_1 = arith.constant 0 : i32
    return %c0_i32, %c0_i32_0 : i32, i32
  }
  func.func @transform_2(%arg0: i32, %arg1: i32) -> (i32, i32) {
    %c0_i32 = arith.constant 0 : i32
    %c0_i32_0 = arith.constant 0 : i32
    %c0_i32_1 = arith.constant 0 : i32
    return %c0_i32, %c0_i32_0 : i32, i32
  }
  func.func @transform_3(%arg0: i32, %arg1: i32) -> (i32, i32, i32) {
    %c0_i32 = arith.constant 0 : i32
    %c0_i32_0 = arith.constant 0 : i32
    %c0_i32_1 = arith.constant 0 : i32
    return %arg0, %c0_i32, %c0_i32_0 : i32, i32, i32
  }
}

module attributes {stable_mosaic.version = 11 : i64} {
  func.func @head_kernel(%arg0: i32, %arg1: memref<2x1408xf32, #tpu.memory_space<vmem>>, %arg2: memref<2x1408xf32, #tpu.memory_space<vmem>>, %arg3: memref<1408x600xf32, #tpu.memory_space<vmem>>, %arg4: memref<1x600xf32, #tpu.memory_space<vmem>>, %arg5: memref<88x1408xf32, #tpu.memory_space<vmem>>, %arg6: memref<1x1408xf32, #tpu.memory_space<vmem>>, %arg7: memref<512x1xf32, #tpu.memory_space<vmem>>, %arg8: memref<1x1xf32, #tpu.memory_space<vmem>>, %arg9: memref<2816x512xf32, #tpu.memory_space<vmem>>, %arg10: memref<1x512xf32, #tpu.memory_space<vmem>>, %arg11: memref<512x2xf32, #tpu.memory_space<vmem>>, %arg12: memref<1x2xf32, #tpu.memory_space<vmem>>, %arg13: memref<2x2xf32, #tpu.memory_space<vmem>>) attributes {dimension_semantics = [#tpu.dimension_semantics<arbitrary>], iteration_bounds = array<i64: 1>, scalar_prefetch = 0 : i64, scratch_operands = 0 : i64, tpu.core_type = #tpu.core_type<tc>, window_params = [{pipeline_mode = #tpu.pipeline_mode<synchronous>, transform_indices = @transform_0, window_bounds = array<i64: 2, 1408>}, {pipeline_mode = #tpu.pipeline_mode<synchronous>, transform_indices = @transform_1, window_bounds = array<i64: 2, 1408>}, {pipeline_mode = #tpu.pipeline_mode<synchronous>, transform_indices = @transform_2, window_bounds = array<i64: 1408, 600>}, {pipeline_mode = #tpu.pipeline_mode<synchronous>, transform_indices = @transform_3, window_bounds = array<i64: 1, 600>}, {pipeline_mode = #tpu.pipeline_mode<synchronous>, transform_indices = @transform_4, window_bounds = array<i64: 88, 1408>}, {pipeline_mode = #tpu.pipeline_mode<synchronous>, transform_indices = @transform_5, window_bounds = array<i64: 1, 1408>}, {pipeline_mode = #tpu.pipeline_mode<synchronous>, transform_indices = @transform_6, window_bounds = array<i64: 512, 1>}, {pipeline_mode = #tpu.pipeline_mode<synchronous>, transform_indices = @transform_7, window_bounds = array<i64: 1, 1>}, {pipeline_mode = #tpu.pipeline_mode<synchronous>, transform_indices = @transform_8, window_bounds = array<i64: 2816, 512>}, {pipeline_mode = #tpu.pipeline_mode<synchronous>, transform_indices = @transform_9, window_bounds = array<i64: 1, 512>}, {pipeline_mode = #tpu.pipeline_mode<synchronous>, transform_indices = @transform_10, window_bounds = array<i64: 512, 2>}, {pipeline_mode = #tpu.pipeline_mode<synchronous>, transform_indices = @transform_11, window_bounds = array<i64: 1, 2>}, {pipeline_mode = #tpu.pipeline_mode<synchronous>, transform_indices = @transform_12, window_bounds = array<i64: 2, 2>}]} {
    %c0 = arith.constant 0 : index
    %c0_0 = arith.constant 0 : index
    %0 = vector.load %arg1[%c0, %c0_0] : memref<2x1408xf32, #tpu.memory_space<vmem>>, vector<2x1408xf32>
    %c0_1 = arith.constant 0 : index
    %c0_2 = arith.constant 0 : index
    %1 = vector.load %arg2[%c0_1, %c0_2] : memref<2x1408xf32, #tpu.memory_space<vmem>>, vector<2x1408xf32>
    %c0_3 = arith.constant 0 : index
    %c0_4 = arith.constant 0 : index
    %2 = vector.load %arg3[%c0_3, %c0_4] : memref<1408x600xf32, #tpu.memory_space<vmem>>, vector<1408x600xf32>
    %cst = arith.constant dense<0.000000e+00> : vector<2x600xf32>
    %3 = tpu.matmul %0, %2, %cst {dimension_numbers = #tpu.dot_dimension_numbers<[1], [0], [0], [1], [0, 0, 1, 1], [], []>} : vector<2x1408xf32>, vector<1408x600xf32>, vector<2x600xf32> -> vector<2x600xf32>
    %c0_5 = arith.constant 0 : index
    %c0_6 = arith.constant 0 : index
    %4 = vector.load %arg4[%c0_5, %c0_6] : memref<1x600xf32, #tpu.memory_space<vmem>>, vector<1x600xf32>
    %5 = vector.broadcast %4 : vector<1x600xf32> to vector<2x600xf32>
    %6 = arith.addf %3, %5 : vector<2x600xf32>
    %cst_7 = arith.constant 0.000000e+00 : f32
    %7 = vector.broadcast %cst_7 : f32 to vector<2x600xf32>
    %8 = arith.maximumf %6, %7 : vector<2x600xf32>
    %9 = vector.extract_strided_slice %8 {offsets = [0, 0], sizes = [2, 512], strides = [1, 1]} : vector<2x600xf32> to vector<2x512xf32>
    %10 = vector.extract_strided_slice %8 {offsets = [0, 512], sizes = [2, 88], strides = [1, 1]} : vector<2x600xf32> to vector<2x88xf32>
    %c0_8 = arith.constant 0 : index
    %c0_9 = arith.constant 0 : index
    %11 = vector.load %arg5[%c0_8, %c0_9] : memref<88x1408xf32, #tpu.memory_space<vmem>>, vector<88x1408xf32>
    %cst_10 = arith.constant dense<0.000000e+00> : vector<2x1408xf32>
    %12 = tpu.matmul %10, %11, %cst_10 {dimension_numbers = #tpu.dot_dimension_numbers<[1], [0], [0], [1], [0, 0, 1, 1], [], []>} : vector<2x88xf32>, vector<88x1408xf32>, vector<2x1408xf32> -> vector<2x1408xf32>
    %c0_11 = arith.constant 0 : index
    %c0_12 = arith.constant 0 : index
    %13 = vector.load %arg6[%c0_11, %c0_12] : memref<1x1408xf32, #tpu.memory_space<vmem>>, vector<1x1408xf32>
    %14 = vector.broadcast %13 : vector<1x1408xf32> to vector<2x1408xf32>
    %15 = arith.addf %12, %14 : vector<2x1408xf32>
    %16 = arith.negf %15 : vector<2x1408xf32>
    %17 = math.exp %16 : vector<2x1408xf32>
    %cst_13 = arith.constant 1.000000e+00 : f32
    %18 = vector.broadcast %cst_13 : f32 to vector<2x1408xf32>
    %19 = arith.addf %18, %17 : vector<2x1408xf32>
    %20 = arith.divf %18, %19 : vector<2x1408xf32>
    %c0_14 = arith.constant 0 : index
    %c0_15 = arith.constant 0 : index
    %21 = vector.load %arg7[%c0_14, %c0_15] : memref<512x1xf32, #tpu.memory_space<vmem>>, vector<512x1xf32>
    %cst_16 = arith.constant dense<0.000000e+00> : vector<2x1xf32>
    %22 = tpu.matmul %9, %21, %cst_16 {dimension_numbers = #tpu.dot_dimension_numbers<[1], [0], [0], [1], [0, 0, 1, 1], [], []>} : vector<2x512xf32>, vector<512x1xf32>, vector<2x1xf32> -> vector<2x1xf32>
    %c0_17 = arith.constant 0 : index
    %c0_18 = arith.constant 0 : index
    %23 = vector.load %arg8[%c0_17, %c0_18] : memref<1x1xf32, #tpu.memory_space<vmem>>, vector<1x1xf32>
    %24 = vector.broadcast %23 : vector<1x1xf32> to vector<2x1xf32>
    %25 = arith.addf %22, %24 : vector<2x1xf32>
    %26 = arith.negf %25 : vector<2x1xf32>
    %27 = math.exp %26 : vector<2x1xf32>
    %cst_19 = arith.constant 1.000000e+00 : f32
    %28 = vector.broadcast %cst_19 : f32 to vector<2x1xf32>
    %29 = arith.addf %28, %27 : vector<2x1xf32>
    %30 = arith.divf %28, %29 : vector<2x1xf32>
    %31 = arith.mulf %0, %20 : vector<2x1408xf32>
    %32 = vector.broadcast %30 : vector<2x1xf32> to vector<2x1408xf32>
    %33 = arith.mulf %31, %32 : vector<2x1408xf32>
    %34 = tpu.concatenate %33, %1 in 1 : vector<2x1408xf32>, vector<2x1408xf32> -> vector<2x2816xf32>
    %c0_20 = arith.constant 0 : index
    %c0_21 = arith.constant 0 : index
    %35 = vector.load %arg9[%c0_20, %c0_21] : memref<2816x512xf32, #tpu.memory_space<vmem>>, vector<2816x512xf32>
    %cst_22 = arith.constant dense<0.000000e+00> : vector<2x512xf32>
    %36 = tpu.matmul %34, %35, %cst_22 {dimension_numbers = #tpu.dot_dimension_numbers<[1], [0], [0], [1], [0, 0, 1, 1], [], []>} : vector<2x2816xf32>, vector<2816x512xf32>, vector<2x512xf32> -> vector<2x512xf32>
    %c0_23 = arith.constant 0 : index
    %c0_24 = arith.constant 0 : index
    %37 = vector.load %arg10[%c0_23, %c0_24] : memref<1x512xf32, #tpu.memory_space<vmem>>, vector<1x512xf32>
    %38 = vector.broadcast %37 : vector<1x512xf32> to vector<2x512xf32>
    %39 = arith.addf %36, %38 : vector<2x512xf32>
    %cst_25 = arith.constant 0.000000e+00 : f32
    %40 = vector.broadcast %cst_25 : f32 to vector<2x512xf32>
    %41 = arith.maximumf %39, %40 : vector<2x512xf32>
    %c0_26 = arith.constant 0 : index
    %c0_27 = arith.constant 0 : index
    %42 = vector.load %arg11[%c0_26, %c0_27] : memref<512x2xf32, #tpu.memory_space<vmem>>, vector<512x2xf32>
    %cst_28 = arith.constant dense<0.000000e+00> : vector<2x2xf32>
    %43 = tpu.matmul %41, %42, %cst_28 {dimension_numbers = #tpu.dot_dimension_numbers<[1], [0], [0], [1], [0, 0, 1, 1], [], []>} : vector<2x512xf32>, vector<512x2xf32>, vector<2x2xf32> -> vector<2x2xf32>
    %c0_29 = arith.constant 0 : index
    %c0_30 = arith.constant 0 : index
    %44 = vector.load %arg12[%c0_29, %c0_30] : memref<1x2xf32, #tpu.memory_space<vmem>>, vector<1x2xf32>
    %45 = vector.broadcast %44 : vector<1x2xf32> to vector<2x2xf32>
    %46 = arith.addf %43, %45 : vector<2x2xf32>
    %c0_31 = arith.constant 0 : index
    %c0_32 = arith.constant 0 : index
    %47 = vector.load %arg13[%c0_31, %c0_32] : memref<2x2xf32, #tpu.memory_space<vmem>>, vector<2x2xf32>
    tpu.vector_store %arg13[%c0_31, %c0_32], %46 {strides = array<i32>} : memref<2x2xf32, #tpu.memory_space<vmem>>, vector<2x2xf32>,
    return
  }
  func.func @transform_0(%arg0: i32) -> (i32, i32) {
    %c0_i32 = arith.constant 0 : i32
    %c0_i32_0 = arith.constant 0 : i32
    %c0_i32_1 = arith.constant 0 : i32
    return %c0_i32, %c0_i32_0 : i32, i32
  }
  func.func @transform_1(%arg0: i32) -> (i32, i32) {
    %c0_i32 = arith.constant 0 : i32
    %c0_i32_0 = arith.constant 0 : i32
    %c0_i32_1 = arith.constant 0 : i32
    return %c0_i32, %c0_i32_0 : i32, i32
  }
  func.func @transform_2(%arg0: i32) -> (i32, i32) {
    %c0_i32 = arith.constant 0 : i32
    %c0_i32_0 = arith.constant 0 : i32
    %c0_i32_1 = arith.constant 0 : i32
    return %c0_i32, %c0_i32_0 : i32, i32
  }
  func.func @transform_3(%arg0: i32) -> (i32, i32) {
    %c0_i32 = arith.constant 0 : i32
    %c0_i32_0 = arith.constant 0 : i32
    %c0_i32_1 = arith.constant 0 : i32
    return %c0_i32, %c0_i32_0 : i32, i32
  }
  func.func @transform_4(%arg0: i32) -> (i32, i32) {
    %c0_i32 = arith.constant 0 : i32
    %c0_i32_0 = arith.constant 0 : i32
    %c0_i32_1 = arith.constant 0 : i32
    return %c0_i32, %c0_i32_0 : i32, i32
  }
  func.func @transform_5(%arg0: i32) -> (i32, i32) {
    %c0_i32 = arith.constant 0 : i32
    %c0_i32_0 = arith.constant 0 : i32
    %c0_i32_1 = arith.constant 0 : i32
    return %c0_i32, %c0_i32_0 : i32, i32
  }
  func.func @transform_6(%arg0: i32) -> (i32, i32) {
    %c0_i32 = arith.constant 0 : i32
    %c0_i32_0 = arith.constant 0 : i32
    %c0_i32_1 = arith.constant 0 : i32
    return %c0_i32, %c0_i32_0 : i32, i32
  }
  func.func @transform_7(%arg0: i32) -> (i32, i32) {
    %c0_i32 = arith.constant 0 : i32
    %c0_i32_0 = arith.constant 0 : i32
    %c0_i32_1 = arith.constant 0 : i32
    return %c0_i32, %c0_i32_0 : i32, i32
  }
  func.func @transform_8(%arg0: i32) -> (i32, i32) {
    %c0_i32 = arith.constant 0 : i32
    %c0_i32_0 = arith.constant 0 : i32
    %c0_i32_1 = arith.constant 0 : i32
    return %c0_i32, %c0_i32_0 : i32, i32
  }
  func.func @transform_9(%arg0: i32) -> (i32, i32) {
    %c0_i32 = arith.constant 0 : i32
    %c0_i32_0 = arith.constant 0 : i32
    %c0_i32_1 = arith.constant 0 : i32
    return %c0_i32, %c0_i32_0 : i32, i32
  }
  func.func @transform_10(%arg0: i32) -> (i32, i32) {
    %c0_i32 = arith.constant 0 : i32
    %c0_i32_0 = arith.constant 0 : i32
    %c0_i32_1 = arith.constant 0 : i32
    return %c0_i32, %c0_i32_0 : i32, i32
  }
  func.func @transform_11(%arg0: i32) -> (i32, i32) {
    %c0_i32 = arith.constant 0 : i32
    %c0_i32_0 = arith.constant 0 : i32
    %c0_i32_1 = arith.constant 0 : i32
    return %c0_i32, %c0_i32_0 : i32, i32
  }
  func.func @transform_12(%arg0: i32) -> (i32, i32) {
    %c0_i32 = arith.constant 0 : i32
    %c0_i32_0 = arith.constant 0 : i32
    %c0_i32_1 = arith.constant 0 : i32
    return %c0_i32, %c0_i32_0 : i32, i32
  }
}

</mosaic_0001>

<bundles_post_ra>
// kernel: feature_enhanced_cnn_forward.4
= control target key start
LH: loop header
LB: loop body
LE: loop exit
PB: predicated region body
PF: predicated region fallthrough
CT: control target
= control target key end

     0   :  { %8 = vsyncpa [#allocation3], 0  ;;  %s1822_s0 = inlined_call_operand.vmem [shape: f32[4,16,3], index: 0, kind: input, shape index: {}]   ;;  %s1823_s1 = inlined_call_operand.hbm [shape: f32[3,1408], index: 1, kind: input, shape index: {}]   ;;  %s1824_s2 = inlined_call_operand.hbm [shape: f32[1,1408], index: 2, kind: input, shape index: {}]   ;;  %s1825_s3 = inlined_call_operand.vmem [shape: f32[4,1,1408], index: 3, kind: output, shape index: {}]  }
   0x1   :  { %9 = vsyncpa [#allocation5], 0  ;;  %s1238_s12 = smov 0   ;;  %s1240_s13 = smov 0  }
   0x2   :  { %s1242_s14 = smov 0  }
   0x3 LB: > { %s1054_s15 = sadd.s32 4294967295, %s1209_s14   ;;  %s27_s16 = sadd.s32 1, %s1205_s13  ;;  %s1209_s14 = sphi %s1242_s14, %s15_s14   ;;  %s1205_s13 = sphi %s1240_s13, %s1890_s13   ;;  %s1201_s12 = sphi %s1238_s12, %s1889_s12  }
   0x4   : > { %p29_p0 = scmp.ge.s32.totalorder %s27_s16, 4  ;;  %p1056_p1 = scmp.ge.s32.totalorder %s1209_s14, 1 }
   0x5   : > { %p128_p2 = scmp.lt.s32.totalorder %s1209_s14, 5  ;;  %p1263_p4 = scmp.eq.s32.totalorder %s1054_s15, 0 }
   0x6   : > { %s1892_s16 = smov (%p29_p0, %s27_s16), 0  ;;  %s1211_s19 = smov [#allocation2]  }
   0x7   : > { %p1259_p3 = pnand %p1056_p1, %p128_p2  ;;  %s141_s20 = sshll.u32 %s1211_s19, 4  ;;  %s142_s20 = int_to_ptr.vmem [resolvable:$true] %s141_s20 }
   0x8   : > { %s1833_s18 = scalar_select %p1263_p4, 1, 0 }
   0x9   : > { %s1832_s17 = scalar_select %p1259_p3, 1, 0 }
   0xa   : > { %p1077_p5 = pneg %p1259_p3  ;;  %s1212_s21 = smov [#allocation4]  }
   0xb   : > { %s152_s22 = sshll.u32 %s1212_s21, 4  ;;  %s1123_s26 = scalar_lea.hbm %s1823_s1, 704  ;;  %s1275_s22 = int_to_ptr.vmem [resolvable:$true] %s152_s22 }
   0xc   : > { %p1271_p6 = pnand %p1263_p4, %p1077_p5  ;;  %p1124_p7 = scmp.ne.s32.totalorder %s1823_s1, %s1123_s26 }
   0xd   : > { %p1130_p11 = scmp.lt.u32.totalorder %s1123_s26, %s1823_s1 }
   0xe   : > { %p1125_p8 = pneg %p1271_p6 }
  0x10   : > { %p1126_p9 = pnand %p1125_p8, %p1124_p7 }
  0x12   : > { %p1127_p10 = pneg %p1126_p9 }
  0x14   : > { %p1132_p12 = pnand %p1130_p11, %p1127_p10 }
  0x16   : > { %1135 = shalt.err (!%p1132_p12)
}
  0x17   : > { %s1136_s4 = scalar_lea.vmem %s142_s20, 704  ;;  %p1144_p2 = scmp.lt.s32.totalorder %s142_s20, %s142_s20 }
  0x18   : > { %p1137_p13 = scmp.ne.s32.totalorder %s142_s20, %s1136_s4  ;;  %p1145_p5 = scmp.lt.s32.totalorder %s1136_s4, %s1136_s4 }
  0x1a   : > { %p1139_p0 = pnand %p1137_p13, %p1125_p8  ;;  %p1146_p4 = por %p1145_p5, %p1144_p2 }
  0x1c   : > { %p1140_p1 = pneg %p1139_p0 }
  0x1e   : > { %p1147_p3 = pnand %p1146_p4, %p1140_p1 }
  0x20   : > { %1150 = shalt.err (!%p1147_p3)
}
  0x21   : > { %1080 = dma.hbm_to_vmem [thread:$0]  (!%p1271_p6), %s1823_s1, 704, %s142_s20, [#allocation3]  }
  0x22   : > { %s1151_s9 = scalar_lea.hbm %s1824_s2, 176 }
  0x23   : > { %p1152_p7 = scmp.ne.s32.totalorder %s1824_s2, %s1151_s9  ;;  %p1158_p3 = scmp.lt.u32.totalorder %s1151_s9, %s1824_s2 }
  0x25   : > { %p1154_p9 = pnand %p1152_p7, %p1125_p8 }
  0x27   : > { %p1155_p4 = pneg %p1154_p9 }
  0x29   : > { %p1160_p10 = pnand %p1158_p3, %p1155_p4 }
  0x2b   : > { %1163 = shalt.err (!%p1160_p10)
}
  0x2c   : > { %s1164_s20 = scalar_lea.vmem %s1275_s22, 176  ;;  %s1171_s21 = scalar_lea.vmem %s1275_s22, 192 }
  0x2d   : > { %p1165_p11 = scmp.ne.s32.totalorder %s1275_s22, %s1164_s20  ;;  %p1172_p0 = scmp.lt.s32.totalorder %s1275_s22, %s1275_s22 }
  0x2e   : > { %p1173_p1 = scmp.lt.s32.totalorder %s1171_s21, %s1164_s20 }
  0x2f   : > { %p1167_p12 = pnand %p1165_p11, %p1125_p8 }
  0x30   : > { %p1174_p2 = por %p1173_p1, %p1172_p0 }
  0x31   : > { %p1168_p13 = pneg %p1167_p12 }
  0x33   : > { %p1175_p5 = pnand %p1174_p2, %p1168_p13 }
  0x35   : > { %1178 = shalt.err (!%p1175_p5)
}
  0x36   : > { %1083 = dma.hbm_to_vmem [thread:$0]  (!%p1271_p6), %s1824_s2, 176, %s1275_s22, [#allocation5]  }
  0x37   : > { %p1835_p7 = scmp.ne.s32.totalorder %s1832_s17, 0 }
  0x39   : > { %178 = sbr.rel (%p1835_p7) target bundleno = 293 (0x125), region = 32 }
  0x40   : > { %p1836_p8 = scmp.ne.s32.totalorder %s1833_s18, 0 }
  0x42   : > { %1192 = dma.done.wait (%p1836_p8), [#allocation3], 704  }
  0x43   : > { %1194 = vsyncadd (%p1836_p8), [#allocation3], 4294966592 }
  0x44   : > { %1196 = dma.done.wait (%p1836_p8), [#allocation5], 176  }
  0x45   : > { %1198 = vsyncadd (%p1836_p8), [#allocation5], 4294967120  ;;  %p210_p9 = scmp.lt.s32.totalorder %s1201_s12, 3  ;;  %v1213_v0 = vmov 1   ;;  %v1214_v1 = vmov 0   ;;  %v228_v2 = vlaneseq  ;;  %v1837_v3 = vmov 0 }
  0x46   : > { %1120 = vset.pattern.permute.xlu1 %v1213_v0  ;;  %1119 = vset.pattern.permute.xlu0 %v1214_v1  ;;  %v1215_v5 = vmov 0.0   ;;  %v1216_v7 = vmov 2   ;;  %v1217_v9 = vmov 1966171168   ;;  %v1360_v13 = vld [vmem:[#allocation2] sm:$0x77] }
  0x47   : > { %s1894_s12 = smov (!%p210_p9, %s1201_s12), 3  ;;  %vm1337_vm0 = vcmp.lt.s32.totalorder %v228_v2, 384  ;;  %v1352_v8 = vshrl.u32 %v228_v2, 7  ;;  %v878_v10 = vunpack.c.l.s4 %v1217_v9  ;;  %v1362_v14 = vld [vmem:[#allocation2 + $0x8] sm:$0x77] }
  0x48   : > { %s1067_s17 = sshll.u32 %s1894_s12, 4  ;;  %s1068_s22 = smul.u32 11, %s1894_s12  ;;  %v1838_v3 = vsel %vm1337_vm0, 4294967295, %v1837_v3  ;;  %v1367_v17 = vld [vmem:[#allocation2 + $0x10] sm:$0x77] }
  0x49   : > { %1839 = vst [vmem:[#allocation8_spill] sm:$0xff] %v1838_v3  ;;  %s217_s18 = scalar_lea.vmem %s1822_s0, %s1067_s17  ;;  %v1355_v11 = vsub.s32 1, %v1352_v8  ;;  %v1358_v12 = vsub.s32 5, %v1352_v8  ;;  %v1365_v15 = vsub.s32 0, %v1352_v8  ;;  %v879_v16 = vunpack.c.0.s8 %v878_v10  ;;  %v1369_v18 = vld [vmem:[#allocation2 + $0x18] sm:$0x77] }
  0x4a   : > { %s1347_s29 = scalar_lea.vmem %s1825_s3, %s1068_s22  ;;  %v233_v4 = vld [vmem:[%s217_s18] sm:$0xff]  ;;  %v234_v6 = vld [vmem:[%s217_s18 + $0x8] sm:$0xff]  ;;  %v1390_v28 = vsub.s32 4, %v1352_v8  ;;  %v1393_v29 = vsub.s32 2, %v1352_v8  ;;  %v543_v51 = vsub.s32 6, %v1352_v8 }
  0x4b   : > { %232 = vst.msk [vmem:[%s1347_s29 + $0x8] sm:$0x7] %vm1337_vm0, %v1215_v5  ;;  %379 = vperm.xlu1 %1120, %v233_v4   ;;  %243 = vperm.xlu0 %1119, %v233_v4   ;;  %v1371_v19 = vld [vmem:[#allocation2 + $0x20] sm:$0x77]  ;;  %v1373_v20 = vld [vmem:[#allocation2 + $0x28] sm:$0x7]  ;;  %v389_v21 = vrot.slane %v1360_v13, %v1355_v11  ;;  %v393_v22 = vrot.slane %v1360_v13, %v1358_v12 }
  0x4c   : > { %v397_v23 = vrot.slane %v1362_v14, %v1355_v11  ;;  %v401_v24 = vrot.slane %v1362_v14, %v1358_v12  ;;  %v405_v25 = vrot.slane %v1367_v17, %v1355_v11  ;;  %v409_v26 = vrot.slane %v1367_v17, %v1358_v12 }
  0x4d   : > { %v413_v27 = vrot.slane %v1369_v18, %v1355_v11  ;;  %v1396_v30 = vsub.s32 %v879_v16, %v1352_v8  ;;  %v260_v31 = vrot.slane %v1360_v13, %v1365_v15  ;;  %v417_v32 = vrot.slane %v1369_v18, %v1358_v12 }
  0x4e   : > { %v421_v33 = vrot.slane %v1371_v19, %v1355_v11  ;;  %v425_v34 = vrot.slane %v1371_v19, %v1358_v12  ;;  %v429_v35 = vrot.slane %v1373_v20, %v1355_v11  ;;  %v1409_v36 = vrot.slane %v389_v21, %v1355_v11 }
  0x4f   : > { %383 = vperm.xlu1 %1120, %v234_v6   ;;  %248 = vperm.xlu0 %1119, %v234_v6   ;;  %1840 = vst [vmem:[#allocation9_spill] sm:$0xff] %v1396_v30  ;;  %v1412_v37 = vrot.slane %v393_v22, %v1355_v11  ;;  %v1415_v38 = vrot.slane %v397_v23, %v1355_v11 }
  0x50   : > { %v1418_v39 = vrot.slane %v401_v24, %v1355_v11  ;;  %v1421_v40 = vrot.slane %v405_v25, %v1355_v11  ;;  %v1424_v41 = vrot.slane %v409_v26, %v1355_v11  ;;  %v1427_v42 = vrot.slane %v413_v27, %v1355_v11  ;;  %v680_v26 = vld [vmem:[#allocation4] sm:$0xff] }
  0x51   : > { %v264_v43 = vrot.slane %v1360_v13, %v1390_v28  ;;  %v268_v44 = vrot.slane %v1362_v14, %v1365_v15  ;;  %v272_v45 = vrot.slane %v1362_v14, %v1390_v28  ;;  %v276_v46 = vrot.slane %v1367_v17, %v1365_v15 }
  0x52   : > { %v280_v47 = vrot.slane %v1367_v17, %v1390_v28  ;;  %v1440_v48 = vrot.slane %v417_v32, %v1355_v11  ;;  %v1443_v49 = vrot.slane %v421_v33, %v1355_v11  ;;  %v1446_v50 = vrot.slane %v425_v34, %v1355_v11 }
  0x53   : > { %1122 = vset.pattern.permute.xlu1 %v1216_v7  ;;  %1121 = vset.pattern.permute.xlu0 %v1216_v7  ;;  %v1450_v52 = vrot.slane %v429_v35, %v1355_v11  ;;  %v284_v53 = vrot.slane %v1369_v18, %v1365_v15  ;;  %v288_v54 = vrot.slane %v1369_v18, %v1390_v28  ;;  %v698_v32 = vsub.s32 3, %v1352_v8 }
  0x54   : > { %534 = vperm.xlu1 %1122, %v234_v6   ;;  %530 = vperm.xlu0 %1121, %v233_v4   ;;  %v292_v55 = vrot.slane %v1371_v19, %v1365_v15  ;;  %v296_v56 = vrot.slane %v1371_v19, %v1390_v28  ;;  %v300_v57 = vrot.slane %v1373_v20, %v1365_v15  ;;  %v714_v33 = vsub.s32 7, %v1352_v8 }
  0x55   : > { %v1463_v58 = vrot.slane %v260_v31, %v1365_v15  ;;  %v1466_v59 = vrot.slane %v264_v43, %v1365_v15  ;;  %v1469_v60 = vrot.slane %v268_v44, %v1365_v15  ;;  %v1472_v61 = vrot.slane %v272_v45, %v1365_v15 }
  0x56   : > { %v1475_v62 = vrot.slane %v276_v46, %v1365_v15  ;;  %v1478_v63 = vrot.slane %v280_v47, %v1365_v15  ;;  %v540_v0 = vrot.slane %v1360_v13, %v1393_v29  ;;  %v544_v1 = vrot.slane %v1360_v13, %v543_v51 }
  0x57   : > { %v548_v2 = vrot.slane %v1362_v14, %v1393_v29  ;;  %v552_v4 = vrot.slane %v1362_v14, %v543_v51  ;;  %v1487_v5 = vrot.slane %v284_v53, %v1365_v15  ;;  %v1490_v6 = vrot.slane %v288_v54, %v1365_v15 }
  0x58   : > { %v556_v7 = vrot.slane %v1367_v17, %v1393_v29  ;;  %v560_v9 = vrot.slane %v1367_v17, %v543_v51  ;;  %v564_v10 = vrot.slane %v1369_v18, %v1393_v29  ;;  %v568_v13 = vrot.slane %v1369_v18, %v543_v51 }
  0x59   : > { %v572_v16 = vrot.slane %v1371_v19, %v1393_v29  ;;  %v576_v14 = vrot.slane %v1371_v19, %v543_v51  ;;  %v1502_v21 = vrot.slane %v292_v55, %v1365_v15  ;;  %v1505_v22 = vrot.slane %v296_v56, %v1365_v15 }
  0x5a   : > { %v1508_v23 = vrot.slane %v300_v57, %v1365_v15  ;;  %v580_v17 = vrot.slane %v1373_v20, %v1393_v29  ;;  %v1513_v24 = vrot.slane %v540_v0, %v1393_v29  ;;  %v1516_v18 = vrot.slane %v544_v1, %v1393_v29  ;;  %v681_v20 = vld [vmem:[#allocation4 + $0x8] sm:$0x7] }
  0x5b   : > { %v1519_v19 = vrot.slane %v548_v2, %v1393_v29  ;;  %v1522_v25 = vrot.slane %v552_v4, %v1393_v29  ;;  %v1525_v27 = vrot.slane %v556_v7, %v1393_v29  ;;  %v1528_v31 = vrot.slane %v560_v9, %v1393_v29 }
  0x5c   : > { %v1533_v34 = vrot.slane %v564_v10, %v1393_v29  ;;  %v1536_v35 = vrot.slane %v568_v13, %v1393_v29  ;;  %v1539_v43 = vrot.slane %v572_v16, %v1393_v29  ;;  %v1542_v44 = vrot.slane %v576_v14, %v1393_v29 }
  0x5d   : > { %v1545_v45 = vrot.slane %v580_v17, %v1393_v29  ;;  %v1548_v46 = vrot.slane %v680_v26, %v1365_v15  ;;  %v1551_v8 = vrot.slane %v680_v26, %v1355_v11  ;;  %v1554_v47 = vrot.slane %v680_v26, %v1393_v29 }
  0x5e   : > { %v1557_v53 = vrot.slane %v680_v26, %v1390_v28  ;;  %v1560_v54 = vrot.slane %v680_v26, %v1358_v12  ;;  %v1562_v55 = vrot.slane %v680_v26, %v543_v51  ;;  %v1565_v56 = vrot.slane %v681_v20, %v1365_v15 }
  0x5f   : > { %v1567_v1 = vrot.slane %v680_v26, %v698_v32  ;;  %v1569_v2 = vrot.slane %v680_v26, %v714_v33  ;;  %v1572_v4 = vrot.slane %v681_v20, %v1355_v11  ;;  %v1575_v28 = vrot.slane %v681_v20, %v1393_v29 }
  0xca   : > { %v380_v57 = vpop.permute.xlu1 %379  ;;  %v244_v0 = vpop.permute.xlu0 %243 }
  0xcb   : > { %v1578_v12 = vmul.f32 %v1409_v36, %v380_v57  ;;  %v1581_v51 = vmul.f32 %v1412_v37, %v380_v57  ;;  %v1584_v15 = vmul.f32 %v1415_v38, %v380_v57  ;;  %v1587_v7 = vmul.f32 %v1418_v39, %v380_v57 }
  0xcc   : > { %v1590_v9 = vmul.f32 %v1421_v40, %v380_v57  ;;  %v1593_v11 = vmul.f32 %v1424_v41, %v380_v57  ;;  %v1596_v29 = vmul.f32 %v1427_v42, %v380_v57  ;;  %v1599_v10 = vmul.f32 %v1440_v48, %v380_v57 }
  0xcd   : > { %1841 = vst [vmem:[#allocation10_spill] sm:$0xff] %v1581_v51  ;;  %1842 = vst [vmem:[#allocation11_spill] sm:$0xff] %v1584_v15  ;;  %v1602_v13 = vmul.f32 %v1443_v49, %v380_v57  ;;  %v1605_v16 = vmul.f32 %v1446_v50, %v380_v57  ;;  %v1608_v14 = vmul.f32 %v1450_v52, %v380_v57 }
  0xce   : > { %1843 = vst [vmem:[#allocation12_spill] sm:$0xff] %v1587_v7  ;;  %1844 = vst [vmem:[#allocation13_spill] sm:$0xff] %v1590_v9  ;;  %v1611_v17 = vmul.f32 %v1463_v58, %v244_v0  ;;  %v1614_v26 = vmul.f32 %v1466_v59, %v244_v0  ;;  %v1617_v20 = vmul.f32 %v1469_v60, %v244_v0  ;;  %v384_v3 = vpop.permute.xlu1 %383 }
  0xcf   : > { %1845 = vst [vmem:[#allocation14_spill] sm:$0xff] %v1593_v11  ;;  %1846 = vst [vmem:[#allocation15_spill] sm:$0xff] %v1596_v29  ;;  %v1620_v32 = vmul.f32 %v1472_v61, %v244_v0  ;;  %v1623_v33 = vmul.f32 %v1475_v62, %v244_v0  ;;  %v1626_v30 = vmul.f32 %v1478_v63, %v244_v0 }
  0xd0   : > { %1847 = vst [vmem:[#allocation16_spill] sm:$0xff] %v1599_v10  ;;  %1848 = vst [vmem:[#allocation17_spill] sm:$0xff] %v1602_v13  ;;  %v1629_v57 = vmul.f32 %v1487_v5, %v244_v0  ;;  %v1638_v13 = vmul.f32 %v1505_v22, %v244_v0  ;;  %v1641_v10 = vmul.f32 %v1508_v23, %v244_v0 }
  0xd1   : > { %1849 = vst [vmem:[#allocation18_spill] sm:$0xff] %v1605_v16  ;;  %1850 = vst [vmem:[#allocation19_spill] sm:$0xff] %v1608_v14  ;;  %v1632_v14 = vmul.f32 %v1490_v6, %v244_v0  ;;  %v1635_v16 = vmul.f32 %v1502_v21, %v244_v0  ;;  %v496_v29 = vmul.f32 %v1409_v36, %v384_v3 }
  0xd2   : > { %1851 = vst [vmem:[#allocation20_spill] sm:$0xff] %v1617_v20  ;;  %1852 = vst [vmem:[#allocation21_spill] sm:$0xff] %v1620_v32  ;;  %v497_v11 = vmul.f32 %v1412_v37, %v384_v3  ;;  %v498_v9 = vmul.f32 %v1415_v38, %v384_v3  ;;  %v504_v0 = vmul.f32 %v1443_v49, %v384_v3 }
  0xd3   : > { %1853 = vst [vmem:[#allocation22_spill] sm:$0xff] %v1623_v33  ;;  %1854 = vst [vmem:[#allocation23_spill] sm:$0xff] %v1626_v30  ;;  %v249_v30 = vpop.permute.xlu0 %248  ;;  %v501_v33 = vmul.f32 %v1424_v41, %v384_v3  ;;  %v506_v36 = vmul.f32 %v1450_v52, %v384_v3 }
  0xd4   : > { %1855 = vst [vmem:[#allocation24_spill] sm:$0xff] %v1629_v57  ;;  %1856 = vst [vmem:[#allocation25_spill] sm:$0xff] %v1632_v14  ;;  %v499_v57 = vmul.f32 %v1418_v39, %v384_v3  ;;  %v500_v14 = vmul.f32 %v1421_v40, %v384_v3  ;;  %v367_v37 = vmul.f32 %v1463_v58, %v249_v30  ;;  %v535_v58 = vpop.permute.xlu1 %534 }
  0xd5   : > { %1857 = vst [vmem:[#allocation26_spill] sm:$0xff] %v1635_v16  ;;  %1858 = vst [vmem:[#allocation27_spill] sm:$0xff] %v1638_v13  ;;  %v502_v16 = vmul.f32 %v1427_v42, %v384_v3  ;;  %v503_v13 = vmul.f32 %v1440_v48, %v384_v3  ;;  %v368_v38 = vmul.f32 %v1466_v59, %v249_v30 }
  0xd6   : > { %1859 = vst [vmem:[#allocation28_spill] sm:$0xff] %v1641_v10  ;;  %v505_v10 = vmul.f32 %v1446_v50, %v384_v3  ;;  %v369_v39 = vmul.f32 %v1469_v60, %v249_v30  ;;  %v370_v40 = vmul.f32 %v1472_v61, %v249_v30  ;;  %v371_v41 = vmul.f32 %v1475_v62, %v249_v30 }
  0xd7   : > { %v372_v42 = vmul.f32 %v1478_v63, %v249_v30  ;;  %v373_v48 = vmul.f32 %v1487_v5, %v249_v30  ;;  %v374_v49 = vmul.f32 %v1490_v6, %v249_v30  ;;  %v375_v50 = vmul.f32 %v1502_v21, %v249_v30 }
  0xd8   : > { %v376_v3 = vmul.f32 %v1505_v22, %v249_v30  ;;  %v377_v52 = vmul.f32 %v1508_v23, %v249_v30  ;;  %v518_v59 = vadd.f32 %v496_v29, %v367_v37  ;;  %v519_v7 = vadd.f32 %v497_v11, %v368_v38 }
  0xd9   : > { %v520_v60 = vadd.f32 %v498_v9, %v369_v39  ;;  %v521_v32 = vadd.f32 %v499_v57, %v370_v40  ;;  %v522_v61 = vadd.f32 %v500_v14, %v371_v41  ;;  %v523_v15 = vadd.f32 %v501_v33, %v372_v42 }
  0xda   : > { %v524_v62 = vadd.f32 %v502_v16, %v373_v48  ;;  %v525_v20 = vadd.f32 %v503_v13, %v374_v49  ;;  %v526_v63 = vadd.f32 %v504_v0, %v375_v50  ;;  %v527_v51 = vadd.f32 %v505_v10, %v376_v3 }
  0xdb   : > { %v528_v5 = vadd.f32 %v506_v36, %v377_v52  ;;  %v647_v6 = vmul.f32 %v1513_v24, %v535_v58  ;;  %v648_v21 = vmul.f32 %v1516_v18, %v535_v58  ;;  %v649_v22 = vmul.f32 %v1519_v19, %v535_v58 }
  0xdc   : > { %v650_v30 = vmul.f32 %v1522_v25, %v535_v58  ;;  %v651_v23 = vmul.f32 %v1525_v27, %v535_v58  ;;  %v652_v9 = vmul.f32 %v1528_v31, %v535_v58  ;;  %v653_v11 = vmul.f32 %v1533_v34, %v535_v58 }
  0xdd   : > { %v654_v29 = vmul.f32 %v1536_v35, %v535_v58  ;;  %v655_v13 = vmul.f32 %v1539_v43, %v535_v58  ;;  %v656_v10 = vmul.f32 %v1542_v44, %v535_v58  ;;  %v657_v16 = vmul.f32 %v1545_v45, %v535_v58 }
  0xde   : > { %v669_v14 = vadd.f32 %v647_v6, %v518_v59  ;;  %v670_v33 = vadd.f32 %v648_v21, %v519_v7  ;;  %v671_v57 = vadd.f32 %v649_v22, %v520_v60  ;;  %v672_v0 = vadd.f32 %v650_v30, %v521_v32  ;;  %v1873_v21 = vld [vmem:[#allocation26_spill] sm:$0xff]  ;;  %v1875_v6 = vld [vmem:[#allocation27_spill] sm:$0xff] }
  0xdf   : > { %v673_v36 = vadd.f32 %v651_v23, %v522_v61  ;;  %v674_v37 = vadd.f32 %v652_v9, %v523_v15  ;;  %v675_v38 = vadd.f32 %v653_v11, %v524_v62  ;;  %v676_v39 = vadd.f32 %v654_v29, %v525_v20  ;;  %v531_v11 = vpop.permute.xlu0 %530  ;;  %v1860_v29 = vld [vmem:[#allocation10_spill] sm:$0xff]  ;;  %v1870_v23 = vld [vmem:[#allocation15_spill] sm:$0xff] }
  0xe0   : > { %v677_v40 = vadd.f32 %v655_v13, %v526_v63  ;;  %v678_v41 = vadd.f32 %v656_v10, %v527_v51  ;;  %v679_v42 = vadd.f32 %v657_v16, %v528_v5  ;;  %v1677_v48 = vadd.f32 %v1548_v46, %v669_v14  ;;  %v1861_v10 = vld [vmem:[#allocation20_spill] sm:$0xff]  ;;  %v1862_v16 = vld [vmem:[#allocation11_spill] sm:$0xff] }
  0xe1   : > { %v1680_v49 = vadd.f32 %v1551_v8, %v670_v33  ;;  %v1683_v50 = vadd.f32 %v1554_v47, %v671_v57  ;;  %v1686_v7 = vadd.f32 %v1567_v1, %v672_v0  ;;  %v1689_v32 = vadd.f32 %v1557_v53, %v673_v36  ;;  %v1863_v33 = vld [vmem:[#allocation21_spill] sm:$0xff]  ;;  %v1864_v57 = vld [vmem:[#allocation12_spill] sm:$0xff]  ;;  %v1865_v36 = vld [vmem:[#allocation22_spill] sm:$0xff] }
  0xe2   : > { %v1692_v15 = vadd.f32 %v1560_v54, %v674_v37  ;;  %v1695_v51 = vadd.f32 %v1562_v55, %v675_v38  ;;  %v1698_v20 = vadd.f32 %v1569_v2, %v676_v39  ;;  %v1701_v3 = vadd.f32 %v1565_v56, %v677_v40  ;;  %v1866_v37 = vld [vmem:[#allocation13_spill] sm:$0xff]  ;;  %v1867_v39 = vld [vmem:[#allocation23_spill] sm:$0xff]  ;;  %v1868_v40 = vld [vmem:[#allocation14_spill] sm:$0xff] }
  0xe3   : > { %v1704_v52 = vadd.f32 %v1572_v4, %v678_v41  ;;  %v1707_v58 = vadd.f32 %v1575_v28, %v679_v42  ;;  %v772_v59 = vmax.f32 %v1677_v48, 0.0  ;;  %v773_v60 = vmax.f32 %v1680_v49, 0.0  ;;  %v1869_v42 = vld [vmem:[#allocation24_spill] sm:$0xff] }
  0xe4   : > { %v774_v61 = vmax.f32 %v1683_v50, 0.0  ;;  %v507_v9 = vadd.f32 %v1578_v12, %v1611_v17  ;;  %v508_v13 = vadd.f32 %v1860_v29, %v1614_v26  ;;  %v509_v14 = vadd.f32 %v1862_v16, %v1861_v10  ;;  %v1871_v12 = vld [vmem:[#allocation25_spill] sm:$0xff]  ;;  %v1872_v17 = vld [vmem:[#allocation16_spill] sm:$0xff]  ;;  %v1876_v10 = vld [vmem:[#allocation18_spill] sm:$0xff] }
  0xe5   : > { %v510_v0 = vadd.f32 %v1864_v57, %v1863_v33  ;;  %v511_v38 = vadd.f32 %v1866_v37, %v1865_v36  ;;  %v512_v41 = vadd.f32 %v1868_v40, %v1867_v39  ;;  %v513_v30 = vadd.f32 %v1870_v23, %v1869_v42  ;;  %v1874_v26 = vld [vmem:[#allocation17_spill] sm:$0xff]  ;;  %v1877_v5 = vld [vmem:[#allocation28_spill] sm:$0xff]  ;;  %v1878_v33 = vld [vmem:[#allocation19_spill] sm:$0xff] }
  0xe6   : > { %v514_v22 = vadd.f32 %v1872_v17, %v1871_v12  ;;  %v515_v29 = vadd.f32 %v1874_v26, %v1873_v21  ;;  %v516_v16 = vadd.f32 %v1876_v10, %v1875_v6  ;;  %v517_v57 = vadd.f32 %v1878_v33, %v1877_v5 }
  0xe7   : > { %v636_v36 = vmul.f32 %v1513_v24, %v531_v11  ;;  %v637_v37 = vmul.f32 %v1516_v18, %v531_v11  ;;  %v638_v39 = vmul.f32 %v1519_v19, %v531_v11  ;;  %v639_v23 = vmul.f32 %v1522_v25, %v531_v11 }
  0xe8   : > { %v640_v40 = vmul.f32 %v1525_v27, %v531_v11  ;;  %v641_v42 = vmul.f32 %v1528_v31, %v531_v11  ;;  %v642_v21 = vmul.f32 %v1533_v34, %v531_v11  ;;  %v643_v12 = vmul.f32 %v1536_v35, %v531_v11 }
  0xe9   : > { %v644_v6 = vmul.f32 %v1539_v43, %v531_v11  ;;  %v645_v5 = vmul.f32 %v1542_v44, %v531_v11  ;;  %v646_v24 = vmul.f32 %v1545_v45, %v531_v11  ;;  %v658_v17 = vadd.f32 %v636_v36, %v507_v9 }
  0xea   : > { %v659_v18 = vadd.f32 %v637_v37, %v508_v13  ;;  %v660_v26 = vadd.f32 %v638_v39, %v509_v14  ;;  %v661_v19 = vadd.f32 %v639_v23, %v510_v0  ;;  %v662_v10 = vadd.f32 %v640_v40, %v511_v38 }
  0xeb   : > { %v663_v25 = vadd.f32 %v641_v42, %v512_v41  ;;  %v664_v33 = vadd.f32 %v642_v21, %v513_v30  ;;  %v665_v27 = vadd.f32 %v643_v12, %v514_v22  ;;  %v666_v63 = vadd.f32 %v644_v6, %v515_v29 }
  0xec   : > { %v667_v31 = vadd.f32 %v645_v5, %v516_v16  ;;  %v668_v62 = vadd.f32 %v646_v24, %v517_v57  ;;  %v739_v34 = vadd.f32 %v1548_v46, %v658_v17  ;;  %v740_v35 = vadd.f32 %v1551_v8, %v659_v18 }
  0xed   : > { %v741_v43 = vadd.f32 %v1554_v47, %v660_v26  ;;  %v742_v44 = vadd.f32 %v1567_v1, %v661_v19  ;;  %v743_v45 = vadd.f32 %v1557_v53, %v662_v10  ;;  %v744_v9 = vadd.f32 %v1560_v54, %v663_v25 }
  0xee   : > { %v745_v11 = vadd.f32 %v1562_v55, %v664_v33  ;;  %v746_v30 = vadd.f32 %v1569_v2, %v665_v27  ;;  %v1762_v22 = vadd.f32 %v1565_v56, %v666_v63  ;;  %v1765_v13 = vadd.f32 %v1572_v4, %v667_v31 }
  0xef   : > { %v1768_v46 = vadd.f32 %v1575_v28, %v668_v62  ;;  %v761_v8 = vmax.f32 %v739_v34, 0.0  ;;  %v762_v47 = vmax.f32 %v740_v35, 0.0  ;;  %v763_v1 = vmax.f32 %v741_v43, 0.0 }
  0xf0   : > { %v764_v14 = vmax.f32 %v742_v44, 0.0  ;;  %v765_v53 = vmax.f32 %v743_v45, 0.0  ;;  %v766_v0 = vmax.f32 %v744_v9, 0.0  ;;  %v767_v54 = vmax.f32 %v745_v11, 0.0 }
  0xf1   : > { %v768_v38 = vmax.f32 %v746_v30, 0.0  ;;  %v769_v55 = vmax.f32 %v1762_v22, 0.0  ;;  %v770_v2 = vmax.f32 %v1765_v13, 0.0  ;;  %v771_v56 = vmax.f32 %v1768_v46, 0.0 }
  0xf2   : > { %v785_v4 = vadd.f32 %v772_v59, %v761_v8  ;;  %v792_v28 = vadd.f32 %v773_v60, %v762_v47  ;;  %v799_v62 = vadd.f32 %v774_v61, %v763_v1  ;;  %v1879_v63 = vmax.f32 %v1686_v7, 0.0 }
  0xf3   : > { %v1880_v29 = vmax.f32 %v1689_v32, 0.0  ;;  %v1881_v57 = vmax.f32 %v1692_v15, 0.0  ;;  %v1882_v48 = vmax.f32 %v1695_v51, 0.0  ;;  %v1883_v49 = vmax.f32 %v1698_v20, 0.0 }
  0xf4   : > { %v806_v41 = vadd.f32 %v1879_v63, %v764_v14  ;;  %v786_v37 = vrot.slane %v785_v4, 4  ;;  %v793_v39 = vrot.slane %v792_v28, 4  ;;  %v800_v23 = vrot.slane %v799_v62, 4 }
  0xf5   : > { %v813_v16 = vadd.f32 %v1880_v29, %v765_v53  ;;  %v820_v36 = vadd.f32 %v1881_v57, %v766_v0  ;;  %v827_v59 = vadd.f32 %v1882_v48, %v767_v54  ;;  %v834_v60 = vadd.f32 %v1883_v49, %v768_v38 }
  0xf6   : > { %v807_v50 = vrot.slane %v806_v41, 4  ;;  %v787_v7 = vadd.f32 %v786_v37, %v785_v4  ;;  %v794_v42 = vadd.f32 %v793_v39, %v792_v28  ;;  %v801_v12 = vadd.f32 %v800_v23, %v799_v62 }
  0xf7   : > { %v814_v61 = vrot.slane %v813_v16, 4  ;;  %v821_v40 = vrot.slane %v820_v36, 4  ;;  %v828_v21 = vrot.slane %v827_v59, 4  ;;  %v835_v32 = vrot.slane %v834_v60, 4 }
  0xf8   : > { %v808_v6 = vadd.f32 %v807_v50, %v806_v41  ;;  %v788_v24 = vrot.slane %v787_v7, 2  ;;  %v795_v17 = vrot.slane %v794_v42, 2  ;;  %v802_v26 = vrot.slane %v801_v12, 2  ;;  %v1887_v50 = vld [vmem:[#allocation9_spill] sm:$0xff] }
  0xf9   : > { %v815_v15 = vadd.f32 %v814_v61, %v813_v16  ;;  %v822_v5 = vadd.f32 %v821_v40, %v820_v36  ;;  %v829_v18 = vadd.f32 %v828_v21, %v827_v59  ;;  %v836_v51 = vadd.f32 %v835_v32, %v834_v60 }
  0xfa   : > { %v809_v19 = vrot.slane %v808_v6, 2  ;;  %v789_v25 = vadd.f32 %v788_v24, %v787_v7  ;;  %v796_v33 = vadd.f32 %v795_v17, %v794_v42  ;;  %v803_v34 = vadd.f32 %v802_v26, %v801_v12 }
  0xfb   : > { %v816_v20 = vrot.slane %v815_v15, 2  ;;  %v823_v10 = vrot.slane %v822_v5, 2  ;;  %v830_v27 = vrot.slane %v829_v18, 2  ;;  %v837_v31 = vrot.slane %v836_v51, 2 }
  0xfc   : > { %v810_v35 = vadd.f32 %v809_v19, %v808_v6  ;;  %v790_v45 = vrot.slane %v789_v25, 1  ;;  %v797_v9 = vrot.slane %v796_v33, 1  ;;  %v804_v22 = vrot.slane %v803_v34, 1 }
  0xfd   : > { %v817_v43 = vadd.f32 %v816_v20, %v815_v15  ;;  %v824_v44 = vadd.f32 %v823_v10, %v822_v5  ;;  %v831_v11 = vadd.f32 %v830_v27, %v829_v18  ;;  %v838_v30 = vadd.f32 %v837_v31, %v836_v51 }
  0xfe   : > { %v811_v13 = vrot.slane %v810_v35, 1  ;;  %v791_v47 = vadd.f32 %v790_v45, %v789_v25  ;;  %v798_v1 = vadd.f32 %v797_v9, %v796_v33  ;;  %v805_v0 = vadd.f32 %v804_v22, %v803_v34 }
  0xff   : > { %v818_v46 = vrot.slane %v817_v43, 1  ;;  %v825_v8 = vrot.slane %v824_v44, 1  ;;  %v832_v14 = vrot.slane %v831_v11, 1  ;;  %v839_v53 = vrot.slane %v838_v30, 1 }
 0x100   : > { %v812_v54 = vadd.f32 %v811_v13, %v810_v35  ;;  %v1884_v63 = vmax.f32 %v1701_v3, 0.0  ;;  %v1885_v29 = vmax.f32 %v1704_v52, 0.0  ;;  %v1886_v57 = vmax.f32 %v1707_v58, 0.0  ;;  %v784_v35 = vld [vmem:[%s1347_s29 + $0x8] sm:$0x7] }
 0x101   : > { %v819_v38 = vadd.f32 %v818_v46, %v817_v43  ;;  %v826_v4 = vadd.f32 %v825_v8, %v824_v44  ;;  %v833_v28 = vadd.f32 %v832_v14, %v831_v11  ;;  %v840_v62 = vadd.f32 %v839_v53, %v838_v30 }
 0x102   : > { %v841_v41 = vadd.f32 %v1884_v63, %v769_v55  ;;  %v848_v16 = vadd.f32 %v1885_v29, %v770_v2  ;;  %v855_v36 = vadd.f32 %v1886_v57, %v771_v56  ;;  %v873_v37 = vcombine.low %v791_v47, %v798_v1 }
 0x103   : > { %v874_v39 = vcombine.low %v805_v0, %v812_v54  ;;  %v875_v48 = vcombine.low %v819_v38, %v826_v4  ;;  %v876_v60 = vcombine.low %v833_v28, %v840_v62 }
 0x104   : > { %v842_v59 = vrot.slane %v841_v41, 4  ;;  %v849_v49 = vrot.slane %v848_v16, 4  ;;  %v856_v23 = vrot.slane %v855_v36, 4  ;;  %v883_v61 = vrot.slane %v873_v37, %v1887_v50 }
 0x105   : > { %v890_v40 = vrot.slane %v874_v39, %v1887_v50  ;;  %v897_v3 = vrot.slane %v875_v48, %v1887_v50  ;;  %v904_v52 = vrot.slane %v876_v60, %v1887_v50 }
 0x106   : > { %v843_v55 = vadd.f32 %v842_v59, %v841_v41  ;;  %v850_v7 = vadd.f32 %v849_v49, %v848_v16  ;;  %v857_v2 = vadd.f32 %v856_v23, %v855_v36 }
 0x107   : > { %v905_v58 = vcombine.low %v883_v61, %v890_v40  ;;  %v906_v21 = vcombine.low %v897_v3, %v904_v52 }
 0x108   : > { %v844_v56 = vrot.slane %v843_v55, 2  ;;  %v851_v42 = vrot.slane %v850_v7, 2  ;;  %v858_v32 = vrot.slane %v857_v2, 2 }
 0x109   : > { %v913_v12 = vrot.slane %v905_v58, %v1887_v50  ;;  %v920_v5 = vrot.slane %v906_v21, %v1887_v50 }
 0x10a   : > { %v845_v6 = vadd.f32 %v844_v56, %v843_v55  ;;  %v852_v15 = vadd.f32 %v851_v42, %v850_v7  ;;  %v859_v24 = vadd.f32 %v858_v32, %v857_v2 }
 0x10b   : > { %v921_v51 = vcombine.low %v913_v12, %v920_v5 }
 0x10c   : > { %v846_v17 = vrot.slane %v845_v6, 1  ;;  %v853_v18 = vrot.slane %v852_v15, 1  ;;  %v860_v26 = vrot.slane %v859_v24, 1 }
 0x10d   : > { %v960_v33 = vmul.f32 0.0625, %v921_v51 }
 0x10e   : > { %v847_v19 = vadd.f32 %v846_v17, %v845_v6  ;;  %v854_v20 = vadd.f32 %v853_v18, %v852_v15  ;;  %v861_v10 = vadd.f32 %v860_v26, %v859_v24 }
 0x10f   : > { %962 = vst [vmem:[%s1347_s29] sm:$0xff] %v960_v33 }
 0x110   : > { %v922_v25 = vcombine.low %v847_v19, %v854_v20  ;;  %v936_v31 = vrot.slane %v861_v10, %v1887_v50 }
 0x112   : > { %v929_v27 = vrot.slane %v922_v25, %v1887_v50 }
 0x114   : > { %v937_v34 = vcombine.low %v929_v27, %v936_v31 }
 0x116   : > { %v944_v43 = vrot.slane %v937_v34, %v1887_v50 }
 0x118   : > { %v948_v44 = vadd.f32 %v944_v43, %v784_v35 }
 0x11a   : > { %954 = vst.msk [vmem:[%s1347_s29 + $0x8] sm:$0x7] %vm1337_vm0, %v948_v44 }
 0x121   : > { %v959_v9 = vld [vmem:[%s1347_s29 + $0x8] sm:$0x7] }
 0x122   : > { %v961_v11 = vmul.f32 0.0625, %v959_v9 }
 0x124   : > { %963 = vst.msk [vmem:[%s1347_s29 + $0x8] sm:$0x7] %vm1337_vm0, %v961_v11 }
 0x125 PF: > { %s15_s14 = sadd.s32 1, %s1209_s14   ;;  %s1889_s12 = smov %s1205_s13 }
 0x126   : > { %p12_p6 = scmp.ge.s32.totalorder %s15_s14, 6   ;;  %s1890_s13 = smov %s1892_s16 }
 0x128   :  { %14 = sbr.rel (!%p12_p6) target bundleno = 3 (0x3), region = 79 }
 0x12f   :  { %983 = vsyncpa [#allocation3], 1 }
 0x130   :  { %985 = vsyncpa [#allocation3 + $0x1], 1 }
 0x131   :  { %986 = vsyncpa [#allocation5], 1 }

// kernel: feature_enhanced_cnn_forward.3
= control target key start
LH: loop header
LB: loop body
LE: loop exit
PB: predicated region body
PF: predicated region fallthrough
CT: control target
= control target key end

     0   :  { %s1620_s12 = smov 0   ;;  %s1876_s0 = inlined_call_operand.vmem [shape: f32[2,3,18,18], index: 0, kind: input, shape index: {}]   ;;  %s1877_s1 = inlined_call_operand.vmem [shape: f32[4,16], index: 1, kind: input, shape index: {}]   ;;  %s1878_s2 = inlined_call_operand.vmem [shape: f32[16,4], index: 2, kind: input, shape index: {}]   ;;  %s1879_s3 = inlined_call_operand.vmem [shape: f32[2,6,4,4], index: 3, kind: output, shape index: {}]  }
   0x1 LB: > { %s1375_s13 = sadd.s32 4294967295, %s1593_s12   ;;  %p1379_p0 = scmp.ge.s32.totalorder %s1593_s12, 1  ;;  %s1593_s12 = sphi %s1620_s12, %s13_s12  }
   0x2   : > { %p137_p1 = scmp.lt.s32.totalorder %s1593_s12, 3 }
   0x4   : > { %p138_p2 = pnand %p1379_p0, %p137_p1 }
   0x5   : > { %p161_p3 = scmp.lt.s32.totalorder (!%p138_p2), %s1375_s13, 1  ;;  %v1595_v0 = vmov (!%p138_p2), 0.0|0.0   ;;  %vm236_vm0 = vcmask (!%p138_p2), 1045504   ;;  %vm203_vm1 = vcmask (!%p138_p2), 1046528   ;;  %s1596_s18 = smov (!%p138_p2), 126   ;;  %vm1598_vm2 = vmmov (!%p138_p2), 0  }
   0x6   : > { %141 = sbr.rel (%p138_p2) target bundleno = 621 (0x26d), region = 32  ;;  %1521 = vmatprep.subr.bf16.mxu0 (!%p138_p2), %v1595_v0  ;;  %1524 = vmatprep.subr.bf16.mxu1 (!%p138_p2), %v1595_v0  ;;  %s1597_s19 = smov (!%p138_p2), 127   ;;  %v1599_v51 = vmov (!%p138_p2), 0.0   ;;  %vm271_vm3 = vcmask (!%p138_p2), 130048   ;;  %vm418_vm4 = vcmask (!%p138_p2), 27648  }
   0x7   : > { %1441 = vmatprep.mubr.msk.f32.mxu0 (!%p138_p2), %vm1598_vm2, %v1599_v51  ;;  %1448 = vmatprep.mubr.msk.f32.mxu1 (!%p138_p2), %vm1598_vm2, %v1599_v51 }
   0xd   : > { %s1881_s13 = smov (!%p161_p3, %s1375_s13), 1 }
   0xe   : > { %s1557_s14 = smul.u32 72, %s1881_s13 }
   0xf   : > { %s1558_s26 = smul.u32 24, %s1881_s13 }
  0x10   : > { %s1634_s17 = scalar_lea.vmem %s1876_s0, %s1557_s14 }
  0x11   : > { %v171_v1 = vld [vmem:[%s1634_s17] sm:$0xff]  ;;  %v172_v2 = vld [vmem:[%s1634_s17 + $0x8] sm:$0xff]  ;;  %v1642_v5 = vld [vmem:[%s1634_s17 + $0x18] sm:$0xff]  ;;  %s170_s29 = scalar_lea.vmem %s1879_s3, %s1558_s26 }
  0x12   : > { %189 = vrot.lane.b32.xlu0 %v171_v1, %s1596_s18  ;;  %v247_v3 = vrot.slane %v171_v1, 2  ;;  %v248_v4 = vrot.slane %v172_v2, 2  ;;  %v173_v6 = vld [vmem:[%s1634_s17 + $0x10] sm:$0x3]  ;;  %v260_v7 = vrot.slane %v171_v1, 1  ;;  %v261_v8 = vrot.slane %v172_v2, 1 }
  0x13   : > { %v263_v9 = vrot.slane %v173_v6, 1  ;;  %v213_v10 = vmul.f32 2.0, %v171_v1  ;;  %v214_v11 = vmul.f32 2.0, %v172_v2  ;;  %v569_v13 = vmul.f32 -2.0, %v1642_v5  ;;  %v1656_v24 = vld [vmem:[%s1634_s17 + $0x20] sm:$0xff]  ;;  %v1663_v27 = vld [vmem:[%s1634_s17 + $0x30] sm:$0xff] }
  0x14   : > { %v249_v12 = vsel %vm236_vm0, %v247_v3, %v248_v4  ;;  %v262_v14 = vsel %vm203_vm1, %v260_v7, %v261_v8  ;;  %v215_v19 = vmul.f32 2.0, %v173_v6  ;;  %v250_v20 = vrot.slane %v173_v6, 2  ;;  %v1666_v28 = vld [vmem:[%s1634_s17 + $0x38] sm:$0xff]  ;;  %v176_v38 = vld [vmem:[%s1634_s17 + $0x28] sm:$0x3] }
  0x15   : > { %252 = vrot.lane.b32.xlu1 %v249_v12, %s1596_s18  ;;  %v264_v15 = vsel %vm203_vm1, %v261_v8, %v263_v9  ;;  %v219_v17 = vrot.slane %v213_v10, 1  ;;  %v220_v18 = vrot.slane %v214_v11, 1  ;;  %v570_v26 = vmul.f32 -2.0, %v1656_v24 }
  0x16   : > { %191 = vrot.lane.b32.xlu0 %v172_v2, %s1596_s18  ;;  %v1572_v16 = vpack.i.bf16 %v264_v15, %v262_v14  ;;  %v222_v22 = vrot.slane %v215_v19, 1  ;;  %v251_v23 = vsel %vm236_vm0, %v248_v4, %v250_v20  ;;  %v1670_v29 = vmul.f32 -1.0, %v1642_v5 }
  0x17   : > { %v221_v21 = vsel %vm203_vm1, %v219_v17, %v220_v18  ;;  %v1674_v30 = vmul.f32 -1.0, %v1656_v24  ;;  %v1677_v31 = vmul.f32 -1.0, %v1663_v27  ;;  %v1679_v32 = vmul.f32 -1.0, %v171_v1 }
  0x18   : > { %v223_v25 = vsel %vm203_vm1, %v220_v18, %v222_v22  ;;  %v1682_v33 = vmul.f32 -1.0, %v1666_v28  ;;  %v1684_v34 = vmul.f32 -1.0, %v172_v2  ;;  %v198_v35 = vmul.f32 -2.0, %v172_v2 }
  0x19   : > { %573 = vrot.lane.b32.xlu1 %v569_v13, %s1597_s19  ;;  %v197_v36 = vmul.f32 -2.0, %v171_v1  ;;  %v603_v37 = vmul.f32 2.0, %v1642_v5  ;;  %v237_v39 = vrot.slane %v1679_v32, 2  ;;  %v199_v40 = vmul.f32 -2.0, %v173_v6 }
  0x1a   : > { %1573 = vrot.lane.b32.xlu0 %v1572_v16, %s1597_s19  ;;  %v232_v41 = vmul.f32 -1.0, %v173_v6  ;;  %v238_v42 = vrot.slane %v1684_v34, 2  ;;  %v205_v43 = vrot.slane %v198_v35, 1  ;;  %v604_v45 = vmul.f32 2.0, %v1656_v24  ;;  %v179_v6 = vld [vmem:[%s1634_s17 + $0x40] sm:$0x3] }
  0x1b   : > { %v204_v44 = vrot.slane %v197_v36, 1  ;;  %v207_v46 = vrot.slane %v199_v40, 1  ;;  %v605_v48 = vmul.f32 2.0, %v176_v38  ;;  %v630_v54 = vrot.slane %v1642_v5, 1  ;;  %v182_v40 = vld [vmem:[%s1878_s2 + $0x8] sm:$0xff] }
  0x1c   : > { %v240_v47 = vrot.slane %v232_v41, 2  ;;  %v1699_v50 = vsel %vm236_vm0, %v237_v39, %v238_v42  ;;  %v609_v55 = vrot.slane %v603_v37, 2  ;;  %v610_v56 = vrot.slane %v604_v45, 2  ;;  %v181_v39 = vld [vmem:[%s1878_s2] sm:$0xff] }
  0x1d   : > { %224 = vrot.lane.b32.xlu1 %v221_v21, %s1596_s18  ;;  %v1696_v49 = vsel %vm203_vm1, %v204_v44, %v205_v43  ;;  %v1706_v52 = vsel %vm203_vm1, %v205_v43, %v207_v46  ;;  %v631_v57 = vrot.slane %v1656_v24, 1  ;;  %v633_v58 = vrot.slane %v176_v38, 1 }
  0x1e   : > { %254 = vrot.lane.b32.xlu0 %v251_v23, %s1596_s18  ;;  %v1709_v53 = vsel %vm236_vm0, %v238_v42, %v240_v47  ;;  %v612_v59 = vrot.slane %v605_v48, 2  ;;  %v611_v60 = vsel %vm236_vm0, %v609_v55, %v610_v56  ;;  %v594_v63 = vrot.slane %v1642_v5, 2 }
  0x1f   : > { %v632_v61 = vsel %vm203_vm1, %v630_v54, %v631_v57  ;;  %v634_v62 = vsel %vm203_vm1, %v631_v57, %v633_v58  ;;  %v595_v2 = vrot.slane %v1656_v24, 2  ;;  %v964_v3 = vmul.f32 8.0, %v1663_v27 }
  0x20   : > { %v613_v1 = vsel %vm236_vm0, %v610_v56, %v612_v59  ;;  %v965_v4 = vmul.f32 8.0, %v1666_v28  ;;  %v1577_v7 = vpack.i.bf16 %v634_v62, %v632_v61  ;;  %v597_v8 = vrot.slane %v176_v38, 2 }
  0x21   : > { %226 = vrot.lane.b32.xlu1 %v223_v25, %s1596_s18  ;;  %v966_v9 = vmul.f32 8.0, %v179_v6  ;;  %v1733_v10 = vsel %vm236_vm0, %v594_v63, %v595_v2  ;;  %v970_v5 = vrot.slane %v964_v3, 1  ;;  %v953_v14 = vmul.f32 -1.0, %v179_v6 }
  0x22   : > { %575 = vrot.lane.b32.xlu0 %v570_v26, %s1597_s19  ;;  %v971_v11 = vrot.slane %v965_v4, 1  ;;  %v1739_v12 = vsel %vm236_vm0, %v595_v2, %v597_v8  ;;  %v955_v16 = vrot.slane %v1677_v31, 1  ;;  %v956_v17 = vrot.slane %v1682_v33, 1 }
  0x23   : > { %v973_v13 = vrot.slane %v966_v9, 1  ;;  %v958_v19 = vrot.slane %v953_v14, 1  ;;  %v991_v20 = vrot.slane %v1677_v31, 2  ;;  %v992_v21 = vrot.slane %v1682_v33, 2 }
  0x24   : > { %v972_v15 = vsel %vm203_vm1, %v970_v5, %v971_v11  ;;  %v1751_v22 = vsel %vm203_vm1, %v955_v16, %v956_v17  ;;  %v1019_v23 = vrot.slane %v1663_v27, 1  ;;  %v1020_v24 = vrot.slane %v1666_v28, 1 }
  0x25   : > { %583 = vrot.lane.b32.xlu1 %v1670_v29, %s1596_s18  ;;  %v974_v18 = vsel %vm203_vm1, %v971_v11, %v973_v13  ;;  %v1022_v25 = vrot.slane %v179_v6, 1  ;;  %v1759_v26 = vsel %vm203_vm1, %v956_v17, %v958_v19  ;;  %v994_v35 = vrot.slane %v953_v14, 2 }
  0x26   : > { %585 = vrot.lane.b32.xlu0 %v1674_v30, %s1596_s18  ;;  %v1762_v36 = vsel %vm236_vm0, %v991_v20, %v992_v21  ;;  %v1021_v37 = vsel %vm203_vm1, %v1019_v23, %v1020_v24  ;;  %v1781_v41 = vpack.c.bf16 %v182_v40, %v181_v39 }
  0x27   : > { %v1023_v38 = vsel %vm203_vm1, %v1020_v24, %v1022_v25  ;;  %v1771_v27 = vsel %vm236_vm0, %v992_v21, %v994_v35 }
  0x28   : > { %v1582_v28 = vpack.i.bf16 %v1023_v38, %v1021_v37  ;;  %1526 = vmatpush3.bf16.msra.mxu1 %v1781_v41 }
  0x29   : > { %937 = vrot.lane.b32.xlu1 %v1677_v31, %s1597_s19  ;;  %1530 = vmatprep.subr.bf16.mxu1 %v1595_v0 }
  0x2a   : > { %939 = vrot.lane.b32.xlu0 %v1682_v33, %s1597_s19 }
  0x2d   : > { %945 = vrot.lane.b32.xlu1 %v1677_v31, %s1596_s18 }
  0x2e   : > { %947 = vrot.lane.b32.xlu0 %v1682_v33, %s1596_s18 }
  0x31   : > { %614 = vrot.lane.b32.xlu1 %v611_v60, %s1597_s19 }
  0x32   : > { %616 = vrot.lane.b32.xlu0 %v613_v1, %s1597_s19 }
  0x35   : > { %1578 = vrot.lane.b32.xlu1 %v1577_v7, %s1597_s19 }
  0x36   : > { %622 = vrot.lane.b32.xlu0 %v1733_v10, %s1596_s18 }
  0x39   : > { %624 = vrot.lane.b32.xlu1 %v1739_v12, %s1596_s18 }
  0x3a   : > { %975 = vrot.lane.b32.xlu0 %v972_v15, %s1597_s19 }
  0x3d   : > { %977 = vrot.lane.b32.xlu1 %v974_v18, %s1597_s19 }
  0x3e   : > { %983 = vrot.lane.b32.xlu0 %v1751_v22, %s1596_s18 }
  0x41   : > { %985 = vrot.lane.b32.xlu1 %v1759_v26, %s1596_s18 }
  0x42   : > { %1000 = vrot.lane.b32.xlu0 %v1762_v36, %s1597_s19 }
  0x45   : > { %1002 = vrot.lane.b32.xlu1 %v1771_v27, %s1597_s19 }
  0x46   : > { %1583 = vrot.lane.b32.xlu0 %v1582_v28, %s1597_s19 }
  0x49   : > { %1008 = vrot.lane.b32.xlu1 %v1762_v36, %s1596_s18 }
  0x4a   : > { %1010 = vrot.lane.b32.xlu0 %v1771_v27, %s1596_s18 }
  0x84   : > { %v190_v42 = vpop.permute.xlu0 %189 }
  0x85   : > { %v195_v43 = vadd.f32 %v190_v42, %v1679_v32  ;;  %v1797_v32 = vld [vmem:[%s1877_s1] sm:$0xf] }
  0x87   : > { %v253_v44 = vpop.permute.xlu1 %252  ;;  %v211_v45 = vadd.f32 %v1696_v49, %v195_v43 }
  0x88   : > { %v192_v46 = vpop.permute.xlu0 %191 }
  0x89   : > { %v196_v47 = vadd.f32 %v192_v46, %v1684_v34 }
  0x8b   : > { %v574_v48 = vpop.permute.xlu1 %573  ;;  %v212_v54 = vadd.f32 %v1706_v52, %v196_v47 }
  0x8c   : > { %v1574_v55 = vpop.permute.xlu0 %1573 }
  0x8d   : > { %v1576_v56 = vunpack.i.h.bf16 %v1574_v55  ;;  %v1575_v57 = vunpack.i.l.bf16 %v1574_v55 }
  0x8f   : > { %v225_v58 = vpop.permute.xlu1 %224  ;;  %v1522_v59 = vpack.c.bf16 %v1576_v56, %v1575_v57 }
  0x90   : > { %v230_v60 = vadd.f32 %v225_v58, %v211_v45  ;;  %v255_v61 = vpop.permute.xlu0 %254 }
  0x91   : > { %1523 = vmatpush3.bf16.msra.mxu0 %v1522_v59 }
  0x92   : > { %v244_v49 = vadd.f32 %v1699_v50, %v230_v60  ;;  %1527 = vmatprep.subr.bf16.mxu0 %v1595_v0 }
  0x93   : > { %v227_v34 = vpop.permute.xlu1 %226 }
  0x94   : > { %v231_v52 = vadd.f32 %v227_v34, %v212_v54  ;;  %v576_v62 = vpop.permute.xlu0 %575  ;;  %1442 = vmatmul.mubr.msk.f32.vlgmr.msra.gmra.mrb[0].mxu0 %vm271_vm3, %v1797_v32  ;;  %v258_v2 = vadd.f32 %v253_v44, %v244_v49 }
  0x95   : > { %1455 = vmatprep.mubr.msk.f32.mxu0 %vm1598_vm2, %v1599_v51  ;;  %v580_v5 = vadd.f32 %v576_v62, %v1674_v30 }
  0x96   : > { %v245_v63 = vadd.f32 %v1709_v53, %v231_v52  ;;  %v579_v53 = vadd.f32 %v574_v48, %v1670_v29 }
  0x97   : > { %v584_v1 = vpop.permute.xlu1 %583 }
  0x98   : > { %v259_v3 = vadd.f32 %v255_v61, %v245_v63  ;;  %v586_v4 = vpop.permute.xlu0 %585  ;;  %v589_v13 = vadd.f32 %v584_v1, %v579_v53 }
  0x99   : > { %v590_v14 = vadd.f32 %v586_v4, %v580_v5 }
  0x9a   : > { %v1528_v6 = vpack.c.bf16 %v259_v3, %v258_v2  ;;  %v601_v18 = vadd.f32 %v1733_v10, %v589_v13 }
  0x9b   : > { %v938_v7 = vpop.permute.xlu1 %937  ;;  %v602_v19 = vadd.f32 %v1739_v12, %v590_v14 }
  0x9c   : > { %v940_v50 = vpop.permute.xlu0 %939  ;;  %1529 = vmatpush3.bf16.msra.mxu0 %v1528_v6  ;;  %v943_v16 = vadd.f32 %v938_v7, %v1677_v31 }
  0x9d   : > { %1533 = vmatprep.subr.bf16.mxu0 %v1595_v0  ;;  %v944_v24 = vadd.f32 %v940_v50, %v1682_v33 }
  0x9f   : > { %v946_v8 = vpop.permute.xlu1 %945  ;;  %1456 = vmatmul.mubr.msk.f32.vlgmr.msra.gmra.mrb[2].mxu0 %vm271_vm3, %v1797_v32 }
  0xa0   : > { %v948_v9 = vpop.permute.xlu0 %947  ;;  %1469 = vmatprep.mubr.msk.f32.mxu0 %vm1598_vm2, %v1599_v51  ;;  %v951_v25 = vadd.f32 %v946_v8, %v943_v16 }
  0xa1   : > { %v952_v38 = vadd.f32 %v948_v9, %v944_v24 }
  0xa2   : > { %v962_v10 = vadd.f32 %v1751_v22, %v951_v25 }
  0xa3   : > { %v615_v11 = vpop.permute.xlu1 %614  ;;  %v963_v42 = vadd.f32 %v1759_v26, %v952_v38 }
  0xa4   : > { %v617_v15 = vpop.permute.xlu0 %616  ;;  %v620_v29 = vadd.f32 %v615_v11, %v601_v18 }
  0xa5   : > { %v621_v35 = vadd.f32 %v617_v15, %v602_v19 }
  0xa7   : > { %v1579_v17 = vpop.permute.xlu1 %1578 }
  0xa8   : > { %v1581_v20 = vunpack.i.h.bf16 %v1579_v17  ;;  %v1580_v21 = vunpack.i.l.bf16 %v1579_v17  ;;  %v623_v23 = vpop.permute.xlu0 %622 }
  0xa9   : > { %v628_v28 = vadd.f32 %v623_v23, %v620_v29 }
  0xaa   : > { %v1534_v30 = vpack.c.bf16 %v1581_v20, %v1580_v21 }
  0xab   : > { %v625_v37 = vpop.permute.xlu1 %624 }
  0xac   : > { %v629_v39 = vadd.f32 %v625_v37, %v621_v35  ;;  %v976_v40 = vpop.permute.xlu0 %975  ;;  %1535 = vmatpush3.bf16.msra.mxu0 %v1534_v30 }
  0xad   : > { %1539 = vmatprep.subr.bf16.mxu0 %v1595_v0  ;;  %v981_v33 = vadd.f32 %v976_v40, %v962_v10 }
  0xae   : > { %v1540_v31 = vpack.c.bf16 %v629_v39, %v628_v28 }
  0xaf   : > { %v978_v12 = vpop.permute.xlu1 %977  ;;  %1470 = vmatmul.mubr.msk.f32.vlgmr.msra.gmra.mrb[4].mxu0 %vm271_vm3, %v1797_v32 }
  0xb0   : > { %v984_v43 = vpop.permute.xlu0 %983  ;;  %1541 = vmatpush3.bf16.msra.mxu0 %v1540_v31  ;;  %1483 = vmatprep.mubr.msk.f32.mxu0 %vm1598_vm2, %v1599_v51  ;;  %v982_v44 = vadd.f32 %v978_v12, %v963_v42 }
  0xb1   : > { %1545 = vmatprep.subr.bf16.mxu0 %v1595_v0  ;;  %v989_v45 = vadd.f32 %v984_v43, %v981_v33 }
  0xb3   : > { %v986_v46 = vpop.permute.xlu1 %985  ;;  %1484 = vmatmul.mubr.msk.f32.vlgmr.msra.gmra.mrb[6].mxu0 %vm271_vm3, %v1797_v32  ;;  %v998_v26 = vadd.f32 %v1762_v36, %v989_v45 }
  0xb4   : > { %v990_v22 = vadd.f32 %v986_v46, %v982_v44  ;;  %v1001_v47 = vpop.permute.xlu0 %1000  ;;  %1497 = vmatprep.mubr.msk.f32.mxu0 %vm1598_vm2, %v1599_v51 }
  0xb5   : > { %v1006_v58 = vadd.f32 %v1001_v47, %v998_v26 }
  0xb6   : > { %v999_v48 = vadd.f32 %v1771_v27, %v990_v22 }
  0xb7   : > { %v1003_v54 = vpop.permute.xlu1 %1002 }
  0xb8   : > { %v1584_v55 = vpop.permute.xlu0 %1583  ;;  %v1007_v59 = vadd.f32 %v1003_v54, %v999_v48 }
  0xb9   : > { %v1586_v56 = vunpack.i.h.bf16 %v1584_v55  ;;  %v1585_v57 = vunpack.i.l.bf16 %v1584_v55 }
  0xbb   : > { %v1546_v60 = vpack.c.bf16 %v1586_v56, %v1585_v57  ;;  %v1009_v61 = vpop.permute.xlu1 %1008 }
  0xbc   : > { %v1014_v49 = vadd.f32 %v1009_v61, %v1006_v58  ;;  %v1011_v34 = vpop.permute.xlu0 %1010 }
  0xbd   : > { %v1015_v52 = vadd.f32 %v1011_v34, %v1007_v59  ;;  %1547 = vmatpush3.bf16.msra.mxu0 %v1546_v60 }
  0xbe   : > { %1551 = vmatprep.subr.bf16.mxu0 %v1595_v0 }
  0xbf   : > { %v1552_v62 = vpack.c.bf16 %v1015_v52, %v1014_v49 }
  0xc0   : > { %1498 = vmatmul.mubr.msk.f32.vlgmr.msra.gmra.mrb[8].mxu0 %vm271_vm3, %v1797_v32 }
  0xc1   : > { %1553 = vmatpush3.bf16.msra.mxu0 %v1552_v62  ;;  %1511 = vmatprep.mubr.msk.f32.mxu0 %vm1598_vm2, %v1599_v51 }
  0xc4   : > { %1512 = vmatmul.mubr.msk.f32.vlgmr.msra.gmra.mrb[10].mxu0 %vm271_vm3, %v1797_v32 }
 0x167   : > { %v341_v36 = vpop.f32.mrb[0].mxu0 }
 0x168   : > { %v1443_v27 = vpop.f32.mrb[1].mxu0  ;;  %1449 = vmatmul.mubr.msk.f32.vlgmr.msra.gmra.mrb[0].mxu1 %vm271_vm3, %v341_v36 }
 0x169   : > { %1532 = vmatpush3.bf16.msra.mxu1 %v1781_v41  ;;  %1462 = vmatprep.mubr.msk.f32.mxu1 %vm1598_vm2, %v1599_v51 }
 0x16a   : > { %1536 = vmatprep.subr.bf16.mxu1 %v1595_v0 }
 0x172   : > { %v486_v63 = vpop.f32.mrb[2].mxu0 }
 0x173   : > { %v1457_v1 = vpop.f32.mrb[3].mxu0  ;;  %1463 = vmatmul.mubr.msk.f32.vlgmr.msra.gmra.mrb[2].mxu1 %vm271_vm3, %v486_v63 }
 0x174   : > { %1538 = vmatpush3.bf16.msra.mxu1 %v1781_v41  ;;  %1476 = vmatprep.mubr.msk.f32.mxu1 %vm1598_vm2, %v1599_v51 }
 0x175   : > { %1542 = vmatprep.subr.bf16.mxu1 %v1595_v0 }
 0x182   : > { %v707_v32 = vpop.f32.mrb[4].mxu0 }
 0x183   : > { %v1471_v2 = vpop.f32.mrb[5].mxu0  ;;  %1477 = vmatmul.mubr.msk.f32.vlgmr.msra.gmra.mrb[4].mxu1 %vm271_vm3, %v707_v32 }
 0x184   : > { %1544 = vmatpush3.bf16.msra.mxu1 %v1781_v41  ;;  %1490 = vmatprep.mubr.msk.f32.mxu1 %vm1598_vm2, %v1599_v51 }
 0x185   : > { %1548 = vmatprep.subr.bf16.mxu1 %v1595_v0 }
 0x186   : > { %v852_v3 = vpop.f32.mrb[6].mxu0 }
 0x187   : > { %v1485_v4 = vpop.f32.mrb[7].mxu0  ;;  %1491 = vmatmul.mubr.msk.f32.vlgmr.msra.gmra.mrb[6].mxu1 %vm271_vm3, %v852_v3 }
 0x188   : > { %1550 = vmatpush3.bf16.msra.mxu1 %v1781_v41  ;;  %1504 = vmatprep.mubr.msk.f32.mxu1 %vm1598_vm2, %v1599_v51 }
 0x189   : > { %1554 = vmatprep.subr.bf16.mxu1 %v1595_v0 }
 0x193   : > { %v1096_v6 = vpop.f32.mrb[8].mxu0 }
 0x194   : > { %v1499_v7 = vpop.f32.mrb[9].mxu0  ;;  %1505 = vmatmul.mubr.msk.f32.vlgmr.msra.gmra.mrb[8].mxu1 %vm271_vm3, %v1096_v6 }
 0x195   : > { %1556 = vmatpush3.bf16.msra.mxu1 %v1781_v41  ;;  %1518 = vmatprep.mubr.msk.f32.mxu1 %vm1598_vm2, %v1599_v51 }
 0x197   : > { %v1241_v50 = vpop.f32.mrb[10].mxu0 }
 0x198   : > { %v1513_v8 = vpop.f32.mrb[11].mxu0  ;;  %1519 = vmatmul.mubr.msk.f32.vlgmr.msra.gmra.mrb[10].mxu1 %vm271_vm3, %v1241_v50 }
 0x23b   : > { %v414_v0 = vpop.f32.mrb[0].mxu1 }
 0x23c   : > { %419 = vst.msk [vmem:[%s170_s29] sm:$0xf] %vm418_vm4, %v414_v0  ;;  %v1450_v9 = vpop.f32.mrb[1].mxu1 }
 0x246   : > { %v559_v53 = vpop.f32.mrb[2].mxu1 }
 0x247   : > { %1386 = vst.msk [vmem:[%s170_s29 + $0xc] sm:$0xf] %vm418_vm4, %v559_v53  ;;  %v1464_v41 = vpop.f32.mrb[3].mxu1 }
 0x256   : > { %v780_v5 = vpop.f32.mrb[4].mxu1 }
 0x257   : > { %1389 = vst.msk [vmem:[%s170_s29 + $0x4] sm:$0xf] %vm418_vm4, %v780_v5  ;;  %v1478_v51 = vpop.f32.mrb[5].mxu1 }
 0x25a   : > { %v925_v11 = vpop.f32.mrb[6].mxu1 }
 0x25b   : > { %1392 = vst.msk [vmem:[%s170_s29 + $0x10] sm:$0xf] %vm418_vm4, %v925_v11  ;;  %v1492_v13 = vpop.f32.mrb[7].mxu1 }
 0x267   : > { %v1169_v14 = vpop.f32.mrb[8].mxu1 }
 0x268   : > { %1395 = vst.msk [vmem:[%s170_s29 + $0x8] sm:$0xf] %vm418_vm4, %v1169_v14  ;;  %v1506_v15 = vpop.f32.mrb[9].mxu1 }
 0x26b   : > { %v1314_v16 = vpop.f32.mrb[10].mxu1 }
 0x26c   : > { %1398 = vst.msk [vmem:[%s170_s29 + $0x14] sm:$0xf] %vm418_vm4, %v1314_v16  ;;  %v1520_v17 = vpop.f32.mrb[11].mxu1 }
 0x26d PF: > { %s13_s12 = sadd.s32 1, %s1593_s12  }
 0x26e   : > { %p10_p4 = scmp.ge.s32.totalorder %s13_s12, 4  }
 0x270   :  { %12 = sbr.rel (!%p10_p4) target bundleno = 1 (0x1), region = 67 }

// kernel: feature_enhanced_cnn_forward.5
= control target key start
LH: loop header
LB: loop body
LE: loop exit
PB: predicated region body
PF: predicated region fallthrough
CT: control target
= control target key end

     0   :  { %s17793_s0 = inlined_call_operand.vmem [shape: f32[2,1408], index: 0, kind: input, shape index: {}]   ;;  %s17794_s1 = inlined_call_operand.vmem [shape: f32[2,1408], index: 1, kind: input, shape index: {}]   ;;  %s17795_s2 = inlined_call_operand.vmem [shape: f32[1408,600], index: 2, kind: input, shape index: {}]   ;;  %s17796_s3 = inlined_call_operand.vmem [shape: f32[1,600], index: 3, kind: input, shape index: {}]   ;;  %s17797_s4 = inlined_call_operand.vmem [shape: f32[88,1408], index: 4, kind: input, shape index: {}]   ;;  %s17798_s5 = inlined_call_operand.vmem [shape: f32[1,1408], index: 5, kind: input, shape index: {}]   ;;  %s17799_s6 = inlined_call_operand.vmem [shape: f32[512,1], index: 6, kind: input, shape index: {}]   ;;  %s17800_s7 = inlined_call_operand.<no memory space> [shape: f32[1,1], index: 7, kind: input, shape index: {}]   ;;  %s17801_s8 = inlined_call_operand.vmem [shape: f32[2816,512], index: 8, kind: input, shape index: {}]   ;;  %s17802_s9 = inlined_call_operand.vmem [shape: f32[1,512], index: 9, kind: input, shape index: {}]   ;;  %s17803_s10 = inlined_call_operand.vmem [shape: f32[512,2], index: 10, kind: input, shape index: {}]   ;;  %s17804_s11 = inlined_call_operand.vmem [shape: f32[1,2], index: 11, kind: input, shape index: {}]   ;;  %s17805_s12 = inlined_call_operand.hbm [shape: f32[2,2], index: 12, kind: output, shape index: {}]  }
   0x1   :  { %v17_v0 = vstv %s17800_s7 }
   0x2   :  { %18 = vst [vmem:[#allocation2] sm:$0x1] %v17_v0 }
   0x3   :  { %v51_v1 = vld [vmem:[%s17795_s2 + $0x8] sm:$0xff]  ;;  %v56_v2 = vld [vmem:[%s17795_s2 + $0x30] sm:$0xff]  ;;  %v53_v3 = vld [vmem:[%s17795_s2 + $0x18] sm:$0xff] }
   0x4   :  { %v7047_v4 = vpack.c.bf16 %v56_v2, %v51_v1  ;;  %v58_v5 = vld [vmem:[%s17795_s2 + $0x40] sm:$0xff]  ;;  %v55_v7 = vld [vmem:[%s17795_s2 + $0x28] sm:$0xff]  ;;  %v52_v10 = vld [vmem:[%s17795_s2 + $0x10] sm:$0xff] }
   0x5   :  { %v50_v6 = vld [vmem:[%s17795_s2] sm:$0xff]  ;;  %v7399_v8 = vpack.c.bf16 %v58_v5, %v53_v3  ;;  %v57_v11 = vld [vmem:[%s17795_s2 + $0x38] sm:$0xff]  ;;  %v63_v15 = vld [vmem:[%s17795_s2 + $0x68] sm:$0xff] }
   0x6   :  { %v7049_v9 = vpack.c.bf16 %v55_v7, %v50_v6  ;;  %v61_v12 = vld [vmem:[%s17795_s2 + $0x58] sm:$0xff]  ;;  %7048 = vmatprep.subr.bf16.mxu0 %v7047_v4  ;;  %v7401_v13 = vpack.c.bf16 %v57_v11, %v52_v10  ;;  %v66_v14 = vld [vmem:[%s17795_s2 + $0x80] sm:$0xff]  ;;  %v68_v16 = vld [vmem:[%s17795_s2 + $0x90] sm:$0xff] }
   0x7   :  { %7400 = vmatprep.subr.bf16.mxu1 %v7399_v8  ;;  %v7051_v17 = vpack.c.bf16 %v66_v14, %v61_v12  ;;  %v7403_v18 = vpack.c.bf16 %v68_v16, %v63_v15  ;;  %v60_v19 = vld [vmem:[%s17795_s2 + $0x50] sm:$0xff]  ;;  %v65_v20 = vld [vmem:[%s17795_s2 + $0x78] sm:$0xff]  ;;  %v62_v21 = vld [vmem:[%s17795_s2 + $0x60] sm:$0xff] }
   0x8   :  { %7050 = vmatpush1.bf16.msra.mxu0 %v7049_v9  ;;  %7402 = vmatpush1.bf16.msra.mxu1 %v7401_v13  ;;  %v7053_v22 = vpack.c.bf16 %v65_v20, %v60_v19  ;;  %v67_v23 = vld [vmem:[%s17795_s2 + $0x88] sm:$0xff]  ;;  %v76_v25 = vld [vmem:[%s17795_s2 + $0xd0] sm:$0xff]  ;;  %v73_v28 = vld [vmem:[%s17795_s2 + $0xb8] sm:$0xff] }
   0x9   :  { %v71_v24 = vld [vmem:[%s17795_s2 + $0xa8] sm:$0xff]  ;;  %7052 = vmatprep.subr.bf16.mxu0 %v7051_v17  ;;  %7404 = vmatprep.subr.bf16.mxu1 %v7403_v18  ;;  %v7405_v26 = vpack.c.bf16 %v67_v23, %v62_v21  ;;  %v78_v29 = vld [vmem:[%s17795_s2 + $0xe0] sm:$0xff]  ;;  %v72_v33 = vld [vmem:[%s17795_s2 + $0xb0] sm:$0xff] }
   0xa   :  { %v7055_v27 = vpack.c.bf16 %v76_v25, %v71_v24  ;;  %v70_v30 = vld [vmem:[%s17795_s2 + $0xa0] sm:$0xff]  ;;  %v7407_v31 = vpack.c.bf16 %v78_v29, %v73_v28  ;;  %v75_v32 = vld [vmem:[%s17795_s2 + $0xc8] sm:$0xff]  ;;  %v77_v34 = vld [vmem:[%s17795_s2 + $0xd8] sm:$0xff] }
   0xb   :  { %v7057_v35 = vpack.c.bf16 %v75_v32, %v70_v30  ;;  %v81_v36 = vld [vmem:[%s17795_s2 + $0xf8] sm:$0xff]  ;;  %v86_v37 = vld [vmem:[%s17795_s2 + $0x120] sm:$0xff]  ;;  %v83_v38 = vld [vmem:[%s17795_s2 + $0x108] sm:$0xff]  ;;  %v7409_v39 = vpack.c.bf16 %v77_v34, %v72_v33 }
   0xc   :  { %7054 = vmatpush1.bf16.msra.mxu0 %v7053_v22  ;;  %7406 = vmatpush1.bf16.msra.mxu1 %v7405_v26  ;;  %v7059_v40 = vpack.c.bf16 %v86_v37, %v81_v36  ;;  %v88_v41 = vld [vmem:[%s17795_s2 + $0x130] sm:$0xff]  ;;  %v85_v43 = vld [vmem:[%s17795_s2 + $0x118] sm:$0xff]  ;;  %v82_v45 = vld [vmem:[%s17795_s2 + $0x100] sm:$0xff] }
   0xd   :  { %7056 = vmatprep.subr.bf16.mxu0 %v7055_v27  ;;  %v80_v42 = vld [vmem:[%s17795_s2 + $0xf0] sm:$0xff]  ;;  %7408 = vmatprep.subr.bf16.mxu1 %v7407_v31  ;;  %v7411_v44 = vpack.c.bf16 %v88_v41, %v83_v38  ;;  %v87_v46 = vld [vmem:[%s17795_s2 + $0x128] sm:$0xff]  ;;  %v93_v49 = vld [vmem:[%s17795_s2 + $0x158] sm:$0xff] }
   0xe   :  { %v91_v47 = vld [vmem:[%s17795_s2 + $0x148] sm:$0xff]  ;;  %v96_v48 = vld [vmem:[%s17795_s2 + $0x170] sm:$0xff]  ;;  %v98_v50 = vld [vmem:[%s17795_s2 + $0x180] sm:$0xff]  ;;  %v7061_v51 = vpack.c.bf16 %v85_v43, %v80_v42  ;;  %v7413_v52 = vpack.c.bf16 %v87_v46, %v82_v45 }
   0xf   :  { %v7063_v53 = vpack.c.bf16 %v96_v48, %v91_v47  ;;  %v90_v54 = vld [vmem:[%s17795_s2 + $0x140] sm:$0xff]  ;;  %v95_v55 = vld [vmem:[%s17795_s2 + $0x168] sm:$0xff]  ;;  %v92_v56 = vld [vmem:[%s17795_s2 + $0x150] sm:$0xff]  ;;  %v7415_v57 = vpack.c.bf16 %v98_v50, %v93_v49  ;;  %v932_v47 = vlaneseq  ;;  %v9743_v48 = vmov 1983009808  }
  0x10   :  { %7058 = vmatpush1.bf16.msra.mxu0 %v7057_v35  ;;  %7410 = vmatpush1.bf16.msra.mxu1 %v7409_v39  ;;  %v97_v58 = vld [vmem:[%s17795_s2 + $0x178] sm:$0xff]  ;;  %v106_v60 = vld [vmem:[%s17795_s2 + $0x1c0] sm:$0xff]  ;;  %v103_v61 = vld [vmem:[%s17795_s2 + $0x1a8] sm:$0xff]  ;;  %v7065_v63 = vpack.c.bf16 %v95_v55, %v90_v54  ;;  %v962_v49 = vunpack.c.l.s4 %v9743_v48 }
  0x11   :  { %7060 = vmatprep.subr.bf16.mxu0 %v7059_v40  ;;  %7412 = vmatprep.subr.bf16.mxu1 %v7411_v44  ;;  %v101_v59 = vld [vmem:[%s17795_s2 + $0x198] sm:$0xff]  ;;  %v108_v62 = vld [vmem:[%s17795_s2 + $0x1d0] sm:$0xff]  ;;  %v7417_v0 = vpack.c.bf16 %v97_v58, %v92_v56  ;;  %v102_v4 = vld [vmem:[%s17795_s2 + $0x1a0] sm:$0xff] }
  0x12   :  { %v7067_v1 = vpack.c.bf16 %v106_v60, %v101_v59  ;;  %v100_v2 = vld [vmem:[%s17795_s2 + $0x190] sm:$0xff]  ;;  %v105_v3 = vld [vmem:[%s17795_s2 + $0x1b8] sm:$0xff]  ;;  %v7419_v5 = vpack.c.bf16 %v108_v62, %v103_v61  ;;  %v107_v6 = vld [vmem:[%s17795_s2 + $0x1c8] sm:$0xff]  ;;  %v10070_v62 = vshrl.u32 %v932_v47, 7 }
  0x13   :  { %v111_v7 = vld [vmem:[%s17795_s2 + $0x1e8] sm:$0xff]  ;;  %v116_v8 = vld [vmem:[%s17795_s2 + $0x210] sm:$0xff]  ;;  %v113_v9 = vld [vmem:[%s17795_s2 + $0x1f8] sm:$0xff]  ;;  %v7069_v11 = vpack.c.bf16 %v105_v3, %v100_v2  ;;  %v7421_v12 = vpack.c.bf16 %v107_v6, %v102_v4 }
  0x14   :  { %7062 = vmatpush1.bf16.msra.mxu0 %v7061_v51  ;;  %7414 = vmatpush1.bf16.msra.mxu1 %v7413_v52  ;;  %v118_v10 = vld [vmem:[%s17795_s2 + $0x220] sm:$0xff]  ;;  %v7071_v13 = vpack.c.bf16 %v116_v8, %v111_v7  ;;  %v115_v15 = vld [vmem:[%s17795_s2 + $0x208] sm:$0xff]  ;;  %v112_v16 = vld [vmem:[%s17795_s2 + $0x1f0] sm:$0xff] }
  0x15   :  { %7064 = vmatprep.subr.bf16.mxu0 %v7063_v53  ;;  %7416 = vmatprep.subr.bf16.mxu1 %v7415_v57  ;;  %v110_v14 = vld [vmem:[%s17795_s2 + $0x1e0] sm:$0xff]  ;;  %v7423_v17 = vpack.c.bf16 %v118_v10, %v113_v9  ;;  %v117_v18 = vld [vmem:[%s17795_s2 + $0x218] sm:$0xff]  ;;  %v123_v21 = vld [vmem:[%s17795_s2 + $0x248] sm:$0xff] }
  0x16   :  { %v121_v19 = vld [vmem:[%s17795_s2 + $0x238] sm:$0xff]  ;;  %v126_v20 = vld [vmem:[%s17795_s2 + $0x260] sm:$0xff]  ;;  %v128_v22 = vld [vmem:[%s17795_s2 + $0x270] sm:$0xff]  ;;  %v7073_v23 = vpack.c.bf16 %v115_v15, %v110_v14  ;;  %v7425_v24 = vpack.c.bf16 %v117_v18, %v112_v16 }
  0x17   :  { %v7075_v25 = vpack.c.bf16 %v126_v20, %v121_v19  ;;  %v120_v26 = vld [vmem:[%s17795_s2 + $0x230] sm:$0xff]  ;;  %v125_v27 = vld [vmem:[%s17795_s2 + $0x258] sm:$0xff]  ;;  %v122_v28 = vld [vmem:[%s17795_s2 + $0x240] sm:$0xff]  ;;  %v7427_v29 = vpack.c.bf16 %v128_v22, %v123_v21 }
  0x18   :  { %7066 = vmatpush1.bf16.msra.mxu0 %v7065_v63  ;;  %7418 = vmatpush1.bf16.msra.mxu1 %v7417_v0  ;;  %v127_v30 = vld [vmem:[%s17795_s2 + $0x268] sm:$0xff]  ;;  %v136_v32 = vld [vmem:[%s17795_s2 + $0x2b0] sm:$0xff]  ;;  %v133_v33 = vld [vmem:[%s17795_s2 + $0x298] sm:$0xff]  ;;  %v7077_v35 = vpack.c.bf16 %v125_v27, %v120_v26  ;;  %v963_v63 = vunpack.c.0.s8 %v962_v49 }
  0x19   :  { %7068 = vmatprep.subr.bf16.mxu0 %v7067_v1  ;;  %7420 = vmatprep.subr.bf16.mxu1 %v7419_v5  ;;  %v131_v31 = vld [vmem:[%s17795_s2 + $0x288] sm:$0xff]  ;;  %v138_v34 = vld [vmem:[%s17795_s2 + $0x2c0] sm:$0xff]  ;;  %v7429_v36 = vpack.c.bf16 %v127_v30, %v122_v28  ;;  %v132_v40 = vld [vmem:[%s17795_s2 + $0x290] sm:$0xff] }
  0x1a   :  { %v7079_v37 = vpack.c.bf16 %v136_v32, %v131_v31  ;;  %v130_v38 = vld [vmem:[%s17795_s2 + $0x280] sm:$0xff]  ;;  %v135_v39 = vld [vmem:[%s17795_s2 + $0x2a8] sm:$0xff]  ;;  %v7431_v41 = vpack.c.bf16 %v138_v34, %v133_v33  ;;  %v137_v42 = vld [vmem:[%s17795_s2 + $0x2b8] sm:$0xff] }
  0x1b   :  { %v141_v43 = vld [vmem:[%s17795_s2 + $0x2d8] sm:$0xff]  ;;  %v146_v44 = vld [vmem:[%s17795_s2 + $0x300] sm:$0xff]  ;;  %v143_v45 = vld [vmem:[%s17795_s2 + $0x2e8] sm:$0xff]  ;;  %v7081_v50 = vpack.c.bf16 %v135_v39, %v130_v38  ;;  %v7433_v51 = vpack.c.bf16 %v137_v42, %v132_v40 }
  0x1c   :  { %7070 = vmatpush1.bf16.msra.mxu0 %v7069_v11  ;;  %7422 = vmatpush1.bf16.msra.mxu1 %v7421_v12  ;;  %v148_v46 = vld [vmem:[%s17795_s2 + $0x310] sm:$0xff]  ;;  %v7083_v52 = vpack.c.bf16 %v146_v44, %v141_v43  ;;  %v145_v54 = vld [vmem:[%s17795_s2 + $0x2f8] sm:$0xff]  ;;  %v142_v55 = vld [vmem:[%s17795_s2 + $0x2e0] sm:$0xff]  ;;  %v10097_v12 = vsub.s32 %v963_v63, %v10070_v62 }
  0x1d   :  { %7072 = vmatprep.subr.bf16.mxu0 %v7071_v13  ;;  %7424 = vmatprep.subr.bf16.mxu1 %v7423_v17  ;;  %v140_v53 = vld [vmem:[%s17795_s2 + $0x2d0] sm:$0xff]  ;;  %v7435_v56 = vpack.c.bf16 %v148_v46, %v143_v45  ;;  %v147_v57 = vld [vmem:[%s17795_s2 + $0x308] sm:$0xff]  ;;  %v153_v60 = vld [vmem:[%s17795_s2 + $0x338] sm:$0xff] }
  0x1e   :  { %v151_v58 = vld [vmem:[%s17795_s2 + $0x328] sm:$0xff]  ;;  %v156_v59 = vld [vmem:[%s17795_s2 + $0x350] sm:$0xff]  ;;  %v158_v61 = vld [vmem:[%s17795_s2 + $0x360] sm:$0xff]  ;;  %v7085_v0 = vpack.c.bf16 %v145_v54, %v140_v53  ;;  %v7437_v1 = vpack.c.bf16 %v147_v57, %v142_v55 }
  0x1f   :  { %v7087_v2 = vpack.c.bf16 %v156_v59, %v151_v58  ;;  %v150_v3 = vld [vmem:[%s17795_s2 + $0x320] sm:$0xff]  ;;  %v155_v4 = vld [vmem:[%s17795_s2 + $0x348] sm:$0xff]  ;;  %v152_v5 = vld [vmem:[%s17795_s2 + $0x330] sm:$0xff]  ;;  %v7439_v6 = vpack.c.bf16 %v158_v61, %v153_v60 }
  0x20   :  { %7074 = vmatpush1.bf16.msra.mxu0 %v7073_v23  ;;  %7426 = vmatpush1.bf16.msra.mxu1 %v7425_v24  ;;  %v157_v7 = vld [vmem:[%s17795_s2 + $0x358] sm:$0xff]  ;;  %v166_v9 = vld [vmem:[%s17795_s2 + $0x3a0] sm:$0xff]  ;;  %v163_v10 = vld [vmem:[%s17795_s2 + $0x388] sm:$0xff]  ;;  %v7089_v13 = vpack.c.bf16 %v155_v4, %v150_v3 }
  0x21   :  { %7076 = vmatprep.subr.bf16.mxu0 %v7075_v25  ;;  %7428 = vmatprep.subr.bf16.mxu1 %v7427_v29  ;;  %v161_v8 = vld [vmem:[%s17795_s2 + $0x378] sm:$0xff]  ;;  %v168_v11 = vld [vmem:[%s17795_s2 + $0x3b0] sm:$0xff]  ;;  %v7441_v15 = vpack.c.bf16 %v157_v7, %v152_v5  ;;  %v162_v18 = vld [vmem:[%s17795_s2 + $0x380] sm:$0xff] }
  0x22   :  { %v160_v14 = vld [vmem:[%s17795_s2 + $0x370] sm:$0xff]  ;;  %v7091_v16 = vpack.c.bf16 %v166_v9, %v161_v8  ;;  %v165_v17 = vld [vmem:[%s17795_s2 + $0x398] sm:$0xff]  ;;  %v167_v19 = vld [vmem:[%s17795_s2 + $0x3a8] sm:$0xff]  ;;  %v7443_v20 = vpack.c.bf16 %v168_v11, %v163_v10 }
  0x23   :  { %v171_v21 = vld [vmem:[%s17795_s2 + $0x3c8] sm:$0xff]  ;;  %v176_v22 = vld [vmem:[%s17795_s2 + $0x3f0] sm:$0xff]  ;;  %v10120_v23 = vld [vmem:[%s17793_s0] sm:$0xff]  ;;  %v7093_v27 = vpack.c.bf16 %v165_v17, %v160_v14  ;;  %v7445_v28 = vpack.c.bf16 %v167_v19, %v162_v18 }
  0x24   :  { %7078 = vmatpush1.bf16.msra.mxu0 %v7077_v35  ;;  %7430 = vmatpush1.bf16.msra.mxu1 %v7429_v36  ;;  %v173_v24 = vld [vmem:[%s17795_s2 + $0x3d8] sm:$0xff]  ;;  %v178_v25 = vld [vmem:[%s17795_s2 + $0x400] sm:$0xff]  ;;  %v10130_v26 = vrot.slane %v10120_v23, %v10097_v12  ;;  %v7095_v29 = vpack.c.bf16 %v176_v22, %v171_v21  ;;  %v175_v31 = vld [vmem:[%s17795_s2 + $0x3e8] sm:$0xff]  ;;  %v960_v11 = vcombine.high %v10120_v23, %v10120_v23 }
  0x25   :  { %7080 = vmatprep.subr.bf16.mxu0 %v7079_v37  ;;  %7432 = vmatprep.subr.bf16.mxu1 %v7431_v41  ;;  %v170_v30 = vld [vmem:[%s17795_s2 + $0x3c0] sm:$0xff]  ;;  %v172_v32 = vld [vmem:[%s17795_s2 + $0x3d0] sm:$0xff]  ;;  %v7447_v34 = vpack.c.bf16 %v178_v25, %v173_v24  ;;  %v177_v35 = vld [vmem:[%s17795_s2 + $0x3f8] sm:$0xff] }
  0x26   :  { %v10143_v33 = vcombine.high %v10130_v26, %v10130_v26  ;;  %v181_v36 = vld [vmem:[%s17795_s2 + $0x418] sm:$0xff]  ;;  %v186_v37 = vld [vmem:[%s17795_s2 + $0x440] sm:$0xff]  ;;  %v183_v38 = vld [vmem:[%s17795_s2 + $0x428] sm:$0xff]  ;;  %v7097_v40 = vpack.c.bf16 %v175_v31, %v170_v30  ;;  %v7449_v41 = vpack.c.bf16 %v177_v35, %v172_v32  ;;  %v10255_v25 = vrot.slane %v960_v11, %v10097_v12 }
  0x27   :  { %v188_v39 = vld [vmem:[%s17795_s2 + $0x450] sm:$0xff]  ;;  %v7099_v42 = vpack.c.bf16 %v186_v37, %v181_v36  ;;  %v185_v44 = vld [vmem:[%s17795_s2 + $0x438] sm:$0xff]  ;;  %v182_v45 = vld [vmem:[%s17795_s2 + $0x420] sm:$0xff] }
  0x28   :  { %7082 = vmatpush1.bf16.msra.mxu0 %v7081_v50  ;;  %7434 = vmatpush1.bf16.msra.mxu1 %v7433_v51  ;;  %v180_v43 = vld [vmem:[%s17795_s2 + $0x410] sm:$0xff]  ;;  %v7451_v46 = vpack.c.bf16 %v188_v39, %v183_v38  ;;  %v187_v47 = vld [vmem:[%s17795_s2 + $0x448] sm:$0xff]  ;;  %v193_v50 = vld [vmem:[%s17795_s2 + $0x478] sm:$0xff] }
  0x29   :  { %7084 = vmatprep.subr.bf16.mxu0 %v7083_v52  ;;  %7436 = vmatprep.subr.bf16.mxu1 %v7435_v56  ;;  %v191_v48 = vld [vmem:[%s17795_s2 + $0x468] sm:$0xff]  ;;  %v196_v49 = vld [vmem:[%s17795_s2 + $0x490] sm:$0xff]  ;;  %v198_v51 = vld [vmem:[%s17795_s2 + $0x4a0] sm:$0xff]  ;;  %v7101_v52 = vpack.c.bf16 %v185_v44, %v180_v43  ;;  %v7453_v53 = vpack.c.bf16 %v187_v47, %v182_v45 }
  0x2a   :  { %1085 = vmatprep.mubr.f32.mxu0 %v10143_v33  ;;  %1511 = vmatprep.mubr.f32.mxu1 %v10143_v33  ;;  %v7103_v54 = vpack.c.bf16 %v196_v49, %v191_v48  ;;  %v190_v55 = vld [vmem:[%s17795_s2 + $0x460] sm:$0xff]  ;;  %v195_v56 = vld [vmem:[%s17795_s2 + $0x488] sm:$0xff]  ;;  %v192_v57 = vld [vmem:[%s17795_s2 + $0x470] sm:$0xff]  ;;  %v7455_v58 = vpack.c.bf16 %v198_v51, %v193_v50 }
  0x2b   :  { %v197_v59 = vld [vmem:[%s17795_s2 + $0x498] sm:$0xff]  ;;  %v206_v61 = vld [vmem:[%s17795_s2 + $0x4e0] sm:$0xff]  ;;  %v203_v63 = vld [vmem:[%s17795_s2 + $0x4c8] sm:$0xff] }
  0x2c   :  { %7086 = vmatpush1.bf16.msra.mxu0 %v7085_v0  ;;  %7438 = vmatpush1.bf16.msra.mxu1 %v7437_v1  ;;  %v201_v60 = vld [vmem:[%s17795_s2 + $0x4b8] sm:$0xff]  ;;  %v208_v0 = vld [vmem:[%s17795_s2 + $0x4f0] sm:$0xff]  ;;  %v7105_v1 = vpack.c.bf16 %v195_v56, %v190_v55  ;;  %v207_v8 = vld [vmem:[%s17795_s2 + $0x4e8] sm:$0xff] }
  0x2d   :  { %7088 = vmatprep.subr.bf16.mxu0 %v7087_v2  ;;  %7440 = vmatprep.subr.bf16.mxu1 %v7439_v6  ;;  %v7457_v2 = vpack.c.bf16 %v197_v59, %v192_v57  ;;  %v7107_v3 = vpack.c.bf16 %v206_v61, %v201_v60  ;;  %v200_v4 = vld [vmem:[%s17795_s2 + $0x4b0] sm:$0xff]  ;;  %v205_v5 = vld [vmem:[%s17795_s2 + $0x4d8] sm:$0xff]  ;;  %v202_v6 = vld [vmem:[%s17795_s2 + $0x4c0] sm:$0xff]  ;;  %v7459_v7 = vpack.c.bf16 %v208_v0, %v203_v63 }
  0x2e   :  { %v211_v9 = vld [vmem:[%s17795_s2 + $0x508] sm:$0xff]  ;;  %v216_v10 = vld [vmem:[%s17795_s2 + $0x530] sm:$0xff]  ;;  %v218_v14 = vld [vmem:[%s17795_s2 + $0x540] sm:$0xff] }
  0x2f   :  { %v7111_v17 = vpack.c.bf16 %v216_v10, %v211_v9  ;;  %v210_v18 = vld [vmem:[%s17795_s2 + $0x500] sm:$0xff]  ;;  %v215_v19 = vld [vmem:[%s17795_s2 + $0x528] sm:$0xff]  ;;  %v217_v22 = vld [vmem:[%s17795_s2 + $0x538] sm:$0xff] }
  0x30   :  { %7090 = vmatpush1.bf16.msra.mxu0 %v7089_v13  ;;  %7442 = vmatpush1.bf16.msra.mxu1 %v7441_v15  ;;  %v213_v13 = vld [vmem:[%s17795_s2 + $0x518] sm:$0xff]  ;;  %v7109_v15 = vpack.c.bf16 %v205_v5, %v200_v4  ;;  %v226_v24 = vld [vmem:[%s17795_s2 + $0x580] sm:$0xff]  ;;  %v220_v32 = vld [vmem:[%s17795_s2 + $0x550] sm:$0xff] }
  0x31   :  { %7092 = vmatprep.subr.bf16.mxu0 %v7091_v16  ;;  %7444 = vmatprep.subr.bf16.mxu1 %v7443_v20  ;;  %v7461_v16 = vpack.c.bf16 %v207_v8, %v202_v6  ;;  %v212_v20 = vld [vmem:[%s17795_s2 + $0x510] sm:$0xff]  ;;  %v7463_v21 = vpack.c.bf16 %v218_v14, %v213_v13  ;;  %v221_v23 = vld [vmem:[%s17795_s2 + $0x558] sm:$0xff]  ;;  %v222_v35 = vld [vmem:[%s17795_s2 + $0x560] sm:$0xff] }
  0x32   :  { %v7465_v30 = vpack.c.bf16 %v217_v22, %v212_v20  ;;  %v7115_v31 = vpack.c.bf16 %v226_v24, %v221_v23  ;;  %v227_v37 = vld [vmem:[%s17795_s2 + $0x588] sm:$0xff]  ;;  %v236_v39 = vld [vmem:[%s17795_s2 + $0x5d0] sm:$0xff]  ;;  %v237_v50 = vld [vmem:[%s17795_s2 + $0x5d8] sm:$0xff] }
  0x33   :  { %v231_v38 = vld [vmem:[%s17795_s2 + $0x5a8] sm:$0xff]  ;;  %v7469_v44 = vpack.c.bf16 %v227_v37, %v222_v35  ;;  %v232_v48 = vld [vmem:[%s17795_s2 + $0x5b0] sm:$0xff]  ;;  %v241_v51 = vld [vmem:[%s17795_s2 + $0x5f8] sm:$0xff] }
  0x34   :  { %7094 = vmatpush1.bf16.msra.mxu0 %v7093_v27  ;;  %7446 = vmatpush1.bf16.msra.mxu1 %v7445_v28  ;;  %v223_v27 = vld [vmem:[%s17795_s2 + $0x568] sm:$0xff]  ;;  %v228_v28 = vld [vmem:[%s17795_s2 + $0x590] sm:$0xff]  ;;  %v7119_v45 = vpack.c.bf16 %v236_v39, %v231_v38  ;;  %v7473_v56 = vpack.c.bf16 %v237_v50, %v232_v48  ;;  %v245_v59 = vld [vmem:[%s17795_s2 + $0x618] sm:$0xff] }
  0x35   :  { %7096 = vmatprep.subr.bf16.mxu0 %v7095_v29  ;;  %7448 = vmatprep.subr.bf16.mxu1 %v7447_v34  ;;  %v7113_v29 = vpack.c.bf16 %v215_v19, %v210_v18  ;;  %v225_v34 = vld [vmem:[%s17795_s2 + $0x578] sm:$0xff]  ;;  %v7467_v36 = vpack.c.bf16 %v228_v28, %v223_v27  ;;  %v235_v47 = vld [vmem:[%s17795_s2 + $0x5c8] sm:$0xff]  ;;  %v242_v60 = vld [vmem:[%s17795_s2 + $0x600] sm:$0xff] }
  0x36   :  { %v7117_v43 = vpack.c.bf16 %v225_v34, %v220_v32  ;;  %v247_v63 = vld [vmem:[%s17795_s2 + $0x628] sm:$0xff]  ;;  %v252_v9 = vld [vmem:[%s17795_s2 + $0x650] sm:$0xff]  ;;  %v257_v11 = vld [vmem:[%s17795_s2 + $0x678] sm:$0xff] }
  0x37   :  { %v251_v0 = vld [vmem:[%s17795_s2 + $0x648] sm:$0xff]  ;;  %v7477_v5 = vpack.c.bf16 %v247_v63, %v242_v60  ;;  %v261_v13 = vld [vmem:[%s17795_s2 + $0x698] sm:$0xff]  ;;  %v266_v14 = vld [vmem:[%s17795_s2 + $0x6c0] sm:$0xff]  ;;  %v7481_v18 = vpack.c.bf16 %v257_v11, %v252_v9 }
  0x38   :  { %7098 = vmatpush1.bf16.msra.mxu0 %v7097_v40  ;;  %7450 = vmatpush1.bf16.msra.mxu1 %v7449_v41  ;;  %v10283_v40 = vcombine.high %v10255_v25, %v10255_v25  ;;  %v233_v41 = vld [vmem:[%s17795_s2 + $0x5b8] sm:$0xff]  ;;  %v255_v8 = vld [vmem:[%s17795_s2 + $0x668] sm:$0xff]  ;;  %v7131_v19 = vpack.c.bf16 %v266_v14, %v261_v13  ;;  %v260_v20 = vld [vmem:[%s17795_s2 + $0x690] sm:$0xff] }
  0x39   :  { %7100 = vmatprep.subr.bf16.mxu0 %v7099_v42  ;;  %7452 = vmatprep.subr.bf16.mxu1 %v7451_v46  ;;  %v238_v42 = vld [vmem:[%s17795_s2 + $0x5e0] sm:$0xff]  ;;  %v267_v24 = vld [vmem:[%s17795_s2 + $0x6c8] sm:$0xff]  ;;  %v276_v28 = vld [vmem:[%s17795_s2 + $0x710] sm:$0xff] }
  0x3a   :  { %v230_v46 = vld [vmem:[%s17795_s2 + $0x5a0] sm:$0xff]  ;;  %v7471_v49 = vpack.c.bf16 %v238_v42, %v233_v41  ;;  %v271_v27 = vld [vmem:[%s17795_s2 + $0x6e8] sm:$0xff]  ;;  %v272_v37 = vld [vmem:[%s17795_s2 + $0x6f0] sm:$0xff] }
  0x3b   :  { %v7121_v55 = vpack.c.bf16 %v235_v47, %v230_v46  ;;  %v262_v22 = vld [vmem:[%s17795_s2 + $0x6a0] sm:$0xff]  ;;  %v7135_v34 = vpack.c.bf16 %v276_v28, %v271_v27  ;;  %v277_v39 = vld [vmem:[%s17795_s2 + $0x718] sm:$0xff]  ;;  %v280_v48 = vld [vmem:[%s17795_s2 + $0x730] sm:$0xff] }
  0x3c   :  { %7102 = vmatpush1.bf16.msra.mxu0 %v7101_v52  ;;  %7454 = vmatpush1.bf16.msra.mxu1 %v7453_v53  ;;  %v246_v52 = vld [vmem:[%s17795_s2 + $0x620] sm:$0xff]  ;;  %v243_v53 = vld [vmem:[%s17795_s2 + $0x608] sm:$0xff]  ;;  %v7485_v32 = vpack.c.bf16 %v267_v24, %v262_v22  ;;  %v281_v41 = vld [vmem:[%s17795_s2 + $0x738] sm:$0xff]  ;;  %v7489_v46 = vpack.c.bf16 %v277_v39, %v272_v37 }
  0x3d   :  { %7104 = vmatprep.subr.bf16.mxu0 %v7103_v54  ;;  %7456 = vmatprep.subr.bf16.mxu1 %v7455_v58  ;;  %v248_v54 = vld [vmem:[%s17795_s2 + $0x630] sm:$0xff]  ;;  %v7123_v57 = vpack.c.bf16 %v246_v52, %v241_v51  ;;  %v270_v35 = vld [vmem:[%s17795_s2 + $0x6e0] sm:$0xff]  ;;  %v287_v52 = vld [vmem:[%s17795_s2 + $0x768] sm:$0xff] }
  0x3e   :  { %v240_v58 = vld [vmem:[%s17795_s2 + $0x5f0] sm:$0xff]  ;;  %v7475_v61 = vpack.c.bf16 %v248_v54, %v243_v53  ;;  %v286_v42 = vld [vmem:[%s17795_s2 + $0x760] sm:$0xff]  ;;  %v291_v53 = vld [vmem:[%s17795_s2 + $0x788] sm:$0xff] }
  0x3f   :  { %v7125_v4 = vpack.c.bf16 %v245_v59, %v240_v58  ;;  %v7139_v47 = vpack.c.bf16 %v286_v42, %v281_v41  ;;  %v282_v50 = vld [vmem:[%s17795_s2 + $0x740] sm:$0xff]  ;;  %v296_v54 = vld [vmem:[%s17795_s2 + $0x7b0] sm:$0xff]  ;;  %v307_v14 = vld [vmem:[%s17795_s2 + $0x808] sm:$0xff] }
  0x40   :  { %7106 = vmatpush1.bf16.msra.mxu0 %v7105_v1  ;;  %7458 = vmatpush1.bf16.msra.mxu1 %v7457_v2  ;;  %v256_v1 = vld [vmem:[%s17795_s2 + $0x670] sm:$0xff]  ;;  %v253_v2 = vld [vmem:[%s17795_s2 + $0x658] sm:$0xff]  ;;  %v7493_v58 = vpack.c.bf16 %v287_v52, %v282_v50  ;;  %v7143_v59 = vpack.c.bf16 %v296_v54, %v291_v53  ;;  %v290_v60 = vld [vmem:[%s17795_s2 + $0x780] sm:$0xff] }
  0x41   :  { %7108 = vmatprep.subr.bf16.mxu0 %v7107_v3  ;;  %7460 = vmatprep.subr.bf16.mxu1 %v7459_v7  ;;  %v258_v3 = vld [vmem:[%s17795_s2 + $0x680] sm:$0xff]  ;;  %v7127_v6 = vpack.c.bf16 %v256_v1, %v251_v0  ;;  %v292_v63 = vld [vmem:[%s17795_s2 + $0x790] sm:$0xff]  ;;  %v297_v1 = vld [vmem:[%s17795_s2 + $0x7b8] sm:$0xff] }
  0x42   :  { %v250_v7 = vld [vmem:[%s17795_s2 + $0x640] sm:$0xff]  ;;  %v7479_v10 = vpack.c.bf16 %v258_v3, %v253_v2  ;;  %v301_v2 = vld [vmem:[%s17795_s2 + $0x7d8] sm:$0xff]  ;;  %v300_v9 = vld [vmem:[%s17795_s2 + $0x7d0] sm:$0xff] }
  0x43   :  { %v306_v3 = vld [vmem:[%s17795_s2 + $0x800] sm:$0xff]  ;;  %v312_v24 = vld [vmem:[%s17795_s2 + $0x830] sm:$0xff]  ;;  %v317_v28 = vld [vmem:[%s17795_s2 + $0x858] sm:$0xff] }
  0x44   :  { %7110 = vmatpush1.bf16.msra.mxu0 %v7109_v15  ;;  %7462 = vmatpush1.bf16.msra.mxu1 %v7461_v16  ;;  %v263_v15 = vld [vmem:[%s17795_s2 + $0x6a8] sm:$0xff]  ;;  %v268_v16 = vld [vmem:[%s17795_s2 + $0x6d0] sm:$0xff]  ;;  %v302_v11 = vld [vmem:[%s17795_s2 + $0x7e0] sm:$0xff] }
  0x45   :  { %7112 = vmatprep.subr.bf16.mxu0 %v7111_v17  ;;  %7464 = vmatprep.subr.bf16.mxu1 %v7463_v21  ;;  %v7129_v17 = vpack.c.bf16 %v255_v8, %v250_v7  ;;  %v265_v21 = vld [vmem:[%s17795_s2 + $0x6b8] sm:$0xff]  ;;  %v7483_v23 = vpack.c.bf16 %v268_v16, %v263_v15  ;;  %v7497_v7 = vpack.c.bf16 %v297_v1, %v292_v63  ;;  %v311_v15 = vld [vmem:[%s17795_s2 + $0x828] sm:$0xff]  ;;  %v316_v16 = vld [vmem:[%s17795_s2 + $0x850] sm:$0xff] }
  0x46   :  { %v7147_v8 = vpack.c.bf16 %v306_v3, %v301_v2  ;;  %v310_v22 = vld [vmem:[%s17795_s2 + $0x820] sm:$0xff]  ;;  %v320_v37 = vld [vmem:[%s17795_s2 + $0x870] sm:$0xff]  ;;  %v327_v42 = vld [vmem:[%s17795_s2 + $0x8a8] sm:$0xff] }
  0x47   :  { %1086 = vmatmul.mubr.f32.vlgmr.msra.gmra.mrb[0].mxu0 %v10130_v26  ;;  %1512 = vmatmul.mubr.f32.vlgmr.msra.gmra.mrb[0].mxu1 %v10130_v26  ;;  %v322_v39 = vld [vmem:[%s17795_s2 + $0x880] sm:$0xff]  ;;  %v332_v52 = vld [vmem:[%s17795_s2 + $0x8d0] sm:$0xff]  ;;  %v337_v54 = vld [vmem:[%s17795_s2 + $0x8f8] sm:$0xff] }
  0x48   :  { %7114 = vmatpush1.bf16.msra.mxu0 %v7113_v29  ;;  %7466 = vmatpush1.bf16.msra.mxu1 %v7465_v30  ;;  %v273_v29 = vld [vmem:[%s17795_s2 + $0x6f8] sm:$0xff]  ;;  %v278_v30 = vld [vmem:[%s17795_s2 + $0x720] sm:$0xff]  ;;  %v340_v63 = vld [vmem:[%s17795_s2 + $0x910] sm:$0xff] }
  0x49   :  { %7116 = vmatprep.subr.bf16.mxu0 %v7115_v31  ;;  %7468 = vmatprep.subr.bf16.mxu1 %v7467_v36  ;;  %v7133_v31 = vpack.c.bf16 %v265_v21, %v260_v20  ;;  %v275_v36 = vld [vmem:[%s17795_s2 + $0x708] sm:$0xff]  ;;  %v7487_v38 = vpack.c.bf16 %v278_v30, %v273_v29  ;;  %v7501_v20 = vpack.c.bf16 %v307_v14, %v302_v11  ;;  %v321_v29 = vld [vmem:[%s17795_s2 + $0x878] sm:$0xff]  ;;  %v326_v30 = vld [vmem:[%s17795_s2 + $0x8a0] sm:$0xff] }
  0x4a   :  { %1156 = vmatprep.mubr.f32.mxu0 %v10283_v40  ;;  %1582 = vmatprep.mubr.f32.mxu1 %v10283_v40  ;;  %v7151_v21 = vpack.c.bf16 %v316_v16, %v311_v15  ;;  %v330_v50 = vld [vmem:[%s17795_s2 + $0x8c0] sm:$0xff]  ;;  %v347_v3 = vld [vmem:[%s17795_s2 + $0x948] sm:$0xff]  ;;  %v352_v14 = vld [vmem:[%s17795_s2 + $0x970] sm:$0xff] }
  0x4b   :  { %v342_v1 = vld [vmem:[%s17795_s2 + $0x920] sm:$0xff]  ;;  %v357_v16 = vld [vmem:[%s17795_s2 + $0x998] sm:$0xff] }
  0x4c   :  { %7118 = vmatpush1.bf16.msra.mxu0 %v7117_v43  ;;  %7470 = vmatpush1.bf16.msra.mxu1 %v7469_v44  ;;  %v283_v43 = vld [vmem:[%s17795_s2 + $0x748] sm:$0xff]  ;;  %v288_v44 = vld [vmem:[%s17795_s2 + $0x770] sm:$0xff]  ;;  %v350_v11 = vld [vmem:[%s17795_s2 + $0x960] sm:$0xff] }
  0x4d   :  { %7120 = vmatprep.subr.bf16.mxu0 %v7119_v45  ;;  %7472 = vmatprep.subr.bf16.mxu1 %v7471_v49  ;;  %v7137_v45 = vpack.c.bf16 %v275_v36, %v270_v35  ;;  %v285_v49 = vld [vmem:[%s17795_s2 + $0x758] sm:$0xff]  ;;  %v7491_v51 = vpack.c.bf16 %v288_v44, %v283_v43  ;;  %v7505_v35 = vpack.c.bf16 %v317_v28, %v312_v24  ;;  %v331_v43 = vld [vmem:[%s17795_s2 + $0x8c8] sm:$0xff]  ;;  %v336_v44 = vld [vmem:[%s17795_s2 + $0x8f0] sm:$0xff] }
  0x4e   :  { %v7155_v36 = vpack.c.bf16 %v326_v30, %v321_v29  ;;  %v360_v24 = vld [vmem:[%s17795_s2 + $0x9b0] sm:$0xff]  ;;  %v362_v28 = vld [vmem:[%s17795_s2 + $0x9c0] sm:$0xff]  ;;  %v367_v30 = vld [vmem:[%s17795_s2 + $0x9e8] sm:$0xff] }
  0x50   :  { %7122 = vmatpush1.bf16.msra.mxu0 %v7121_v55  ;;  %7474 = vmatpush1.bf16.msra.mxu1 %v7473_v56  ;;  %v293_v55 = vld [vmem:[%s17795_s2 + $0x798] sm:$0xff]  ;;  %v298_v56 = vld [vmem:[%s17795_s2 + $0x7c0] sm:$0xff] }
  0x51   :  { %7124 = vmatprep.subr.bf16.mxu0 %v7123_v57  ;;  %7476 = vmatprep.subr.bf16.mxu1 %v7475_v61  ;;  %v7141_v57 = vpack.c.bf16 %v285_v49, %v280_v48  ;;  %v295_v61 = vld [vmem:[%s17795_s2 + $0x7a8] sm:$0xff]  ;;  %v7495_v0 = vpack.c.bf16 %v298_v56, %v293_v55  ;;  %v7509_v48 = vpack.c.bf16 %v327_v42, %v322_v39  ;;  %v341_v55 = vld [vmem:[%s17795_s2 + $0x918] sm:$0xff]  ;;  %v346_v56 = vld [vmem:[%s17795_s2 + $0x940] sm:$0xff] }
  0x52   :  { %v7159_v49 = vpack.c.bf16 %v336_v44, %v331_v43  ;;  %v370_v39 = vld [vmem:[%s17795_s2 + $0xa00] sm:$0xff]  ;;  %v372_v42 = vld [vmem:[%s17795_s2 + $0xa10] sm:$0xff]  ;;  %v377_v44 = vld [vmem:[%s17795_s2 + $0xa38] sm:$0xff] }
  0x54   :  { %7126 = vmatpush1.bf16.msra.mxu0 %v7125_v4  ;;  %7478 = vmatpush1.bf16.msra.mxu1 %v7477_v5  ;;  %v303_v4 = vld [vmem:[%s17795_s2 + $0x7e8] sm:$0xff]  ;;  %v308_v5 = vld [vmem:[%s17795_s2 + $0x810] sm:$0xff] }
  0x55   :  { %7128 = vmatprep.subr.bf16.mxu0 %v7127_v6  ;;  %7480 = vmatprep.subr.bf16.mxu1 %v7479_v10  ;;  %v7145_v6 = vpack.c.bf16 %v295_v61, %v290_v60  ;;  %v305_v10 = vld [vmem:[%s17795_s2 + $0x7f8] sm:$0xff]  ;;  %v7499_v13 = vpack.c.bf16 %v308_v5, %v303_v4  ;;  %v7513_v60 = vpack.c.bf16 %v337_v54, %v332_v52  ;;  %v351_v4 = vld [vmem:[%s17795_s2 + $0x968] sm:$0xff]  ;;  %v356_v5 = vld [vmem:[%s17795_s2 + $0x990] sm:$0xff] }
  0x56   :  { %v7163_v61 = vpack.c.bf16 %v346_v56, %v341_v55  ;;  %v385_v54 = vld [vmem:[%s17795_s2 + $0xa78] sm:$0xff]  ;;  %v382_v55 = vld [vmem:[%s17795_s2 + $0xa60] sm:$0xff] }
  0x58   :  { %7130 = vmatpush1.bf16.msra.mxu0 %v7129_v17  ;;  %7482 = vmatpush1.bf16.msra.mxu1 %v7481_v18  ;;  %v313_v17 = vld [vmem:[%s17795_s2 + $0x838] sm:$0xff]  ;;  %v318_v18 = vld [vmem:[%s17795_s2 + $0x860] sm:$0xff] }
  0x59   :  { %7132 = vmatprep.subr.bf16.mxu0 %v7131_v19  ;;  %7484 = vmatprep.subr.bf16.mxu1 %v7483_v23  ;;  %v7149_v19 = vpack.c.bf16 %v305_v10, %v300_v9  ;;  %v315_v23 = vld [vmem:[%s17795_s2 + $0x848] sm:$0xff]  ;;  %v7503_v27 = vpack.c.bf16 %v318_v18, %v313_v17  ;;  %v7517_v9 = vpack.c.bf16 %v347_v3, %v342_v1  ;;  %v361_v17 = vld [vmem:[%s17795_s2 + $0x9b8] sm:$0xff]  ;;  %v366_v18 = vld [vmem:[%s17795_s2 + $0x9e0] sm:$0xff] }
  0x5a   :  { %v7167_v10 = vpack.c.bf16 %v356_v5, %v351_v4  ;;  %v390_v4 = vld [vmem:[%s17795_s2 + $0xaa0] sm:$0xff]  ;;  %v395_v5 = vld [vmem:[%s17795_s2 + $0xac8] sm:$0xff] }
  0x5c   :  { %7134 = vmatpush1.bf16.msra.mxu0 %v7133_v31  ;;  %7486 = vmatpush1.bf16.msra.mxu1 %v7485_v32  ;;  %v323_v31 = vld [vmem:[%s17795_s2 + $0x888] sm:$0xff]  ;;  %v328_v32 = vld [vmem:[%s17795_s2 + $0x8b0] sm:$0xff] }
  0x5d   :  { %7136 = vmatprep.subr.bf16.mxu0 %v7135_v34  ;;  %7488 = vmatprep.subr.bf16.mxu1 %v7487_v38  ;;  %v7153_v34 = vpack.c.bf16 %v315_v23, %v310_v22  ;;  %v325_v38 = vld [vmem:[%s17795_s2 + $0x898] sm:$0xff]  ;;  %v7507_v41 = vpack.c.bf16 %v328_v32, %v323_v31  ;;  %v7521_v22 = vpack.c.bf16 %v357_v16, %v352_v14  ;;  %v371_v31 = vld [vmem:[%s17795_s2 + $0xa08] sm:$0xff]  ;;  %v376_v32 = vld [vmem:[%s17795_s2 + $0xa30] sm:$0xff] }
  0x5e   :  { %v7171_v23 = vpack.c.bf16 %v366_v18, %v361_v17  ;;  %v7185_v14 = vpack.c.bf16 %v395_v5, %v390_v4  ;;  %v400_v17 = vld [vmem:[%s17795_s2 + $0xaf0] sm:$0xff]  ;;  %v405_v18 = vld [vmem:[%s17795_s2 + $0xb18] sm:$0xff]  ;;  %v443_v4 = vld [vmem:[%s17795_s2 + $0xc48] sm:$0xff] }
  0x5f   :  { %v448_v5 = vld [vmem:[%s17795_s2 + $0xc70] sm:$0xff] }
  0x60   :  { %7138 = vmatpush1.bf16.msra.mxu0 %v7137_v45  ;;  %7490 = vmatpush1.bf16.msra.mxu1 %v7489_v46  ;;  %v333_v45 = vld [vmem:[%s17795_s2 + $0x8d8] sm:$0xff]  ;;  %v338_v46 = vld [vmem:[%s17795_s2 + $0x900] sm:$0xff] }
  0x61   :  { %7140 = vmatprep.subr.bf16.mxu0 %v7139_v47  ;;  %7492 = vmatprep.subr.bf16.mxu1 %v7491_v51  ;;  %v7157_v47 = vpack.c.bf16 %v325_v38, %v320_v37  ;;  %v335_v51 = vld [vmem:[%s17795_s2 + $0x8e8] sm:$0xff]  ;;  %v7511_v53 = vpack.c.bf16 %v338_v46, %v333_v45  ;;  %v7525_v37 = vpack.c.bf16 %v367_v30, %v362_v28  ;;  %v381_v45 = vld [vmem:[%s17795_s2 + $0xa58] sm:$0xff]  ;;  %v386_v46 = vld [vmem:[%s17795_s2 + $0xa80] sm:$0xff] }
  0x62   :  { %v7175_v38 = vpack.c.bf16 %v376_v32, %v371_v31  ;;  %v7179_v52 = vpack.c.bf16 %v386_v46, %v381_v45  ;;  %v7189_v28 = vpack.c.bf16 %v405_v18, %v400_v17  ;;  %v410_v31 = vld [vmem:[%s17795_s2 + $0xb40] sm:$0xff]  ;;  %v415_v32 = vld [vmem:[%s17795_s2 + $0xb68] sm:$0xff]  ;;  %v420_v45 = vld [vmem:[%s17795_s2 + $0xb90] sm:$0xff] }
  0x63   :  { %v425_v46 = vld [vmem:[%s17795_s2 + $0xbb8] sm:$0xff]  ;;  %v458_v18 = vld [vmem:[%s17795_s2 + $0xcc0] sm:$0xff] }
  0x64   :  { %7142 = vmatpush1.bf16.msra.mxu0 %v7141_v57  ;;  %7494 = vmatpush1.bf16.msra.mxu1 %v7493_v58  ;;  %v343_v57 = vld [vmem:[%s17795_s2 + $0x928] sm:$0xff]  ;;  %v348_v58 = vld [vmem:[%s17795_s2 + $0x950] sm:$0xff]  ;;  %v453_v17 = vld [vmem:[%s17795_s2 + $0xc98] sm:$0xff] }
  0x65   :  { %7144 = vmatprep.subr.bf16.mxu0 %v7143_v59  ;;  %7496 = vmatprep.subr.bf16.mxu1 %v7495_v0  ;;  %v7161_v59 = vpack.c.bf16 %v335_v51, %v330_v50  ;;  %v345_v0 = vld [vmem:[%s17795_s2 + $0x938] sm:$0xff]  ;;  %v7515_v2 = vpack.c.bf16 %v348_v58, %v343_v57  ;;  %v10658_v50 = vld [vmem:[%s17793_s0 + $0x8] sm:$0xff]  ;;  %v7529_v51 = vpack.c.bf16 %v377_v44, %v372_v42 }
  0x66   :  { %v10671_v56 = vrot.slane %v10658_v50, %v10097_v12  ;;  %v387_v58 = vld [vmem:[%s17795_s2 + $0xa88] sm:$0xff]  ;;  %v7193_v42 = vpack.c.bf16 %v415_v32, %v410_v31  ;;  %v468_v32 = vld [vmem:[%s17795_s2 + $0xd10] sm:$0xff] }
  0x67   :  { %v463_v31 = vld [vmem:[%s17795_s2 + $0xce8] sm:$0xff] }
  0x68   :  { %7146 = vmatpush1.bf16.msra.mxu0 %v7145_v6  ;;  %7498 = vmatpush1.bf16.msra.mxu1 %v7497_v7  ;;  %v353_v6 = vld [vmem:[%s17795_s2 + $0x978] sm:$0xff]  ;;  %v358_v7 = vld [vmem:[%s17795_s2 + $0x9a0] sm:$0xff] }
  0x69   :  { %7148 = vmatprep.subr.bf16.mxu0 %v7147_v8  ;;  %7500 = vmatprep.subr.bf16.mxu1 %v7499_v13  ;;  %v7165_v8 = vpack.c.bf16 %v345_v0, %v340_v63  ;;  %v355_v13 = vld [vmem:[%s17795_s2 + $0x988] sm:$0xff]  ;;  %v7519_v15 = vpack.c.bf16 %v358_v7, %v353_v6  ;;  %v398_v63 = vld [vmem:[%s17795_s2 + $0xae0] sm:$0xff]  ;;  %v10691_v0 = vcombine.high %v10671_v56, %v10671_v56  ;;  %v392_v6 = vld [vmem:[%s17795_s2 + $0xab0] sm:$0xff] }
  0x6c   :  { %7150 = vmatpush1.bf16.msra.mxu0 %v7149_v19  ;;  %7502 = vmatpush1.bf16.msra.mxu1 %v7501_v20  ;;  %v363_v19 = vld [vmem:[%s17795_s2 + $0x9c8] sm:$0xff]  ;;  %v368_v20 = vld [vmem:[%s17795_s2 + $0x9f0] sm:$0xff] }
  0x6d   :  { %7152 = vmatprep.subr.bf16.mxu0 %v7151_v21  ;;  %7504 = vmatprep.subr.bf16.mxu1 %v7503_v27  ;;  %v7169_v21 = vpack.c.bf16 %v355_v13, %v350_v11  ;;  %v365_v27 = vld [vmem:[%s17795_s2 + $0x9d8] sm:$0xff]  ;;  %v7523_v29 = vpack.c.bf16 %v368_v20, %v363_v19  ;;  %v403_v11 = vld [vmem:[%s17795_s2 + $0xb08] sm:$0xff]  ;;  %v408_v13 = vld [vmem:[%s17795_s2 + $0xb30] sm:$0xff] }
  0x6e   :  { %v402_v19 = vld [vmem:[%s17795_s2 + $0xb00] sm:$0xff]  ;;  %v7539_v20 = vpack.c.bf16 %v408_v13, %v403_v11  ;;  %v7555_v13 = vpack.c.bf16 %v448_v5, %v443_v4 }
  0x6f   :  { %v442_v11 = vld [vmem:[%s17795_s2 + $0xc40] sm:$0xff] }
  0x70   :  { %7154 = vmatpush1.bf16.msra.mxu0 %v7153_v34  ;;  %7506 = vmatpush1.bf16.msra.mxu1 %v7505_v35  ;;  %v373_v34 = vld [vmem:[%s17795_s2 + $0xa18] sm:$0xff]  ;;  %v378_v35 = vld [vmem:[%s17795_s2 + $0xa40] sm:$0xff] }
  0x71   :  { %7156 = vmatprep.subr.bf16.mxu0 %v7155_v36  ;;  %7508 = vmatprep.subr.bf16.mxu1 %v7507_v41  ;;  %v7173_v36 = vpack.c.bf16 %v365_v27, %v360_v24  ;;  %v375_v41 = vld [vmem:[%s17795_s2 + $0xa28] sm:$0xff]  ;;  %v7527_v43 = vpack.c.bf16 %v378_v35, %v373_v34  ;;  %v413_v24 = vld [vmem:[%s17795_s2 + $0xb58] sm:$0xff]  ;;  %v418_v27 = vld [vmem:[%s17795_s2 + $0xb80] sm:$0xff] }
  0x72   :  { %v412_v34 = vld [vmem:[%s17795_s2 + $0xb50] sm:$0xff]  ;;  %v7543_v35 = vpack.c.bf16 %v418_v27, %v413_v24  ;;  %v7559_v27 = vpack.c.bf16 %v458_v18, %v453_v17  ;;  %v482_v4 = vld [vmem:[%s17795_s2 + $0xd80] sm:$0xff] }
  0x73   :  { %v452_v24 = vld [vmem:[%s17795_s2 + $0xc90] sm:$0xff] }
  0x74   :  { %7158 = vmatpush1.bf16.msra.mxu0 %v7157_v47  ;;  %7510 = vmatpush1.bf16.msra.mxu1 %v7509_v48  ;;  %v383_v47 = vld [vmem:[%s17795_s2 + $0xa68] sm:$0xff]  ;;  %v388_v48 = vld [vmem:[%s17795_s2 + $0xa90] sm:$0xff] }
  0x75   :  { %7160 = vmatprep.subr.bf16.mxu0 %v7159_v49  ;;  %7512 = vmatprep.subr.bf16.mxu1 %v7511_v53  ;;  %v7177_v49 = vpack.c.bf16 %v375_v41, %v370_v39  ;;  %v380_v53 = vld [vmem:[%s17795_s2 + $0xa50] sm:$0xff]  ;;  %v7531_v57 = vpack.c.bf16 %v388_v48, %v383_v47  ;;  %v423_v39 = vld [vmem:[%s17795_s2 + $0xba8] sm:$0xff]  ;;  %v422_v47 = vld [vmem:[%s17795_s2 + $0xba0] sm:$0xff] }
  0x76   :  { %v7181_v1 = vpack.c.bf16 %v385_v54, %v380_v53  ;;  %v428_v41 = vld [vmem:[%s17795_s2 + $0xbd0] sm:$0xff]  ;;  %v433_v53 = vld [vmem:[%s17795_s2 + $0xbf8] sm:$0xff]  ;;  %v438_v54 = vld [vmem:[%s17795_s2 + $0xc20] sm:$0xff] }
  0x77   :  { %v7547_v48 = vpack.c.bf16 %v428_v41, %v423_v39  ;;  %v462_v39 = vld [vmem:[%s17795_s2 + $0xce0] sm:$0xff]  ;;  %v7563_v41 = vpack.c.bf16 %v468_v32, %v463_v31  ;;  %v492_v17 = vld [vmem:[%s17795_s2 + $0xdd0] sm:$0xff] }
  0x78   :  { %7162 = vmatpush1.bf16.msra.mxu0 %v7161_v59  ;;  %7514 = vmatpush1.bf16.msra.mxu1 %v7513_v60  ;;  %v391_v59 = vld [vmem:[%s17795_s2 + $0xaa8] sm:$0xff]  ;;  %v396_v60 = vld [vmem:[%s17795_s2 + $0xad0] sm:$0xff]  ;;  %v502_v31 = vld [vmem:[%s17795_s2 + $0xe20] sm:$0xff] }
  0x79   :  { %7164 = vmatprep.subr.bf16.mxu0 %v7163_v61  ;;  %7516 = vmatprep.subr.bf16.mxu1 %v7515_v2  ;;  %v393_v61 = vld [vmem:[%s17795_s2 + $0xab8] sm:$0xff]  ;;  %v7533_v2 = vpack.c.bf16 %v387_v58, %v382_v55  ;;  %v7183_v3 = vpack.c.bf16 %v396_v60, %v391_v59  ;;  %v7197_v55 = vpack.c.bf16 %v425_v46, %v420_v45  ;;  %v430_v59 = vld [vmem:[%s17795_s2 + $0xbe0] sm:$0xff]  ;;  %v435_v60 = vld [vmem:[%s17795_s2 + $0xc08] sm:$0xff] }
  0x7a   :  { %v7535_v7 = vpack.c.bf16 %v398_v63, %v393_v61  ;;  %v432_v61 = vld [vmem:[%s17795_s2 + $0xbf0] sm:$0xff]  ;;  %v7551_v63 = vpack.c.bf16 %v438_v54, %v433_v53  ;;  %v473_v45 = vld [vmem:[%s17795_s2 + $0xd38] sm:$0xff]  ;;  %v478_v46 = vld [vmem:[%s17795_s2 + $0xd60] sm:$0xff] }
  0x7b   :  { %v472_v53 = vld [vmem:[%s17795_s2 + $0xd30] sm:$0xff]  ;;  %v7567_v54 = vpack.c.bf16 %v478_v46, %v473_v45 }
  0x7c   :  { %7166 = vmatpush1.bf16.msra.mxu0 %v7165_v8  ;;  %7518 = vmatpush1.bf16.msra.mxu1 %v7517_v9  ;;  %v397_v8 = vld [vmem:[%s17795_s2 + $0xad8] sm:$0xff]  ;;  %v512_v45 = vld [vmem:[%s17795_s2 + $0xe70] sm:$0xff] }
  0x7d   :  { %7168 = vmatprep.subr.bf16.mxu0 %v7167_v10  ;;  %7520 = vmatprep.subr.bf16.mxu1 %v7519_v15  ;;  %v401_v9 = vld [vmem:[%s17795_s2 + $0xaf8] sm:$0xff]  ;;  %v406_v10 = vld [vmem:[%s17795_s2 + $0xb20] sm:$0xff]  ;;  %v7537_v15 = vpack.c.bf16 %v397_v8, %v392_v6  ;;  %v7201_v6 = vpack.c.bf16 %v435_v60, %v430_v59  ;;  %v483_v59 = vld [vmem:[%s17795_s2 + $0xd88] sm:$0xff] }
  0x7e   :  { %v7187_v16 = vpack.c.bf16 %v406_v10, %v401_v9  ;;  %v440_v9 = vld [vmem:[%s17795_s2 + $0xc30] sm:$0xff]  ;;  %v445_v10 = vld [vmem:[%s17795_s2 + $0xc58] sm:$0xff] }
  0x7f   :  { %v488_v60 = vld [vmem:[%s17795_s2 + $0xdb0] sm:$0xff] }
  0x80   :  { %7170 = vmatpush1.bf16.msra.mxu0 %v7169_v21  ;;  %7522 = vmatpush1.bf16.msra.mxu1 %v7521_v22  ;;  %v407_v21 = vld [vmem:[%s17795_s2 + $0xb28] sm:$0xff]  ;;  %v7571_v5 = vpack.c.bf16 %v488_v60, %v483_v59  ;;  %v522_v59 = vld [vmem:[%s17795_s2 + $0xec0] sm:$0xff] }
  0x81   :  { %7172 = vmatprep.subr.bf16.mxu0 %v7171_v23  ;;  %7524 = vmatprep.subr.bf16.mxu1 %v7523_v29  ;;  %v411_v22 = vld [vmem:[%s17795_s2 + $0xb48] sm:$0xff]  ;;  %v416_v23 = vld [vmem:[%s17795_s2 + $0xb70] sm:$0xff]  ;;  %v7541_v29 = vpack.c.bf16 %v407_v21, %v402_v19  ;;  %v7205_v19 = vpack.c.bf16 %v445_v10, %v440_v9  ;;  %v493_v9 = vld [vmem:[%s17795_s2 + $0xdd8] sm:$0xff] }
  0x82   :  { %v7191_v30 = vpack.c.bf16 %v416_v23, %v411_v22  ;;  %v450_v22 = vld [vmem:[%s17795_s2 + $0xc80] sm:$0xff]  ;;  %v455_v23 = vld [vmem:[%s17795_s2 + $0xca8] sm:$0xff] }
  0x83   :  { %v498_v10 = vld [vmem:[%s17795_s2 + $0xe00] sm:$0xff] }
  0x84   :  { %7174 = vmatpush1.bf16.msra.mxu0 %v7173_v36  ;;  %7526 = vmatpush1.bf16.msra.mxu1 %v7525_v37  ;;  %v417_v36 = vld [vmem:[%s17795_s2 + $0xb78] sm:$0xff]  ;;  %v7575_v18 = vpack.c.bf16 %v498_v10, %v493_v9  ;;  %v532_v9 = vld [vmem:[%s17795_s2 + $0xf10] sm:$0xff] }
  0x85   :  { %7176 = vmatprep.subr.bf16.mxu0 %v7175_v38  ;;  %7528 = vmatprep.subr.bf16.mxu1 %v7527_v43  ;;  %v421_v37 = vld [vmem:[%s17795_s2 + $0xb98] sm:$0xff]  ;;  %v426_v38 = vld [vmem:[%s17795_s2 + $0xbc0] sm:$0xff]  ;;  %v7545_v43 = vpack.c.bf16 %v417_v36, %v412_v34  ;;  %v7209_v34 = vpack.c.bf16 %v455_v23, %v450_v22  ;;  %v503_v22 = vld [vmem:[%s17795_s2 + $0xe28] sm:$0xff] }
  0x86   :  { %v7195_v44 = vpack.c.bf16 %v426_v38, %v421_v37  ;;  %v460_v37 = vld [vmem:[%s17795_s2 + $0xcd0] sm:$0xff]  ;;  %v465_v38 = vld [vmem:[%s17795_s2 + $0xcf8] sm:$0xff] }
  0x87   :  { %1157 = vmatmul.mubr.f32.vlgmr.msra.gmra.mrb[0].mxu0 %v10255_v25  ;;  %1583 = vmatmul.mubr.f32.vlgmr.msra.gmra.mrb[0].mxu1 %v10255_v25  ;;  %v508_v23 = vld [vmem:[%s17795_s2 + $0xe50] sm:$0xff] }
  0x88   :  { %7178 = vmatpush1.bf16.msra.mxu0 %v7177_v49  ;;  %7530 = vmatpush1.bf16.msra.mxu1 %v7529_v51  ;;  %v427_v49 = vld [vmem:[%s17795_s2 + $0xbc8] sm:$0xff]  ;;  %v7579_v32 = vpack.c.bf16 %v508_v23, %v503_v22  ;;  %v545_v22 = vld [vmem:[%s17795_s2 + $0xf78] sm:$0xff]  ;;  %v542_v23 = vld [vmem:[%s17795_s2 + $0xf60] sm:$0xff] }
  0x89   :  { %7180 = vmatprep.subr.bf16.mxu0 %v7179_v52  ;;  %7532 = vmatprep.subr.bf16.mxu1 %v7531_v57  ;;  %v431_v51 = vld [vmem:[%s17795_s2 + $0xbe8] sm:$0xff]  ;;  %v436_v52 = vld [vmem:[%s17795_s2 + $0xc10] sm:$0xff]  ;;  %v7549_v57 = vpack.c.bf16 %v427_v49, %v422_v47  ;;  %v7213_v47 = vpack.c.bf16 %v465_v38, %v460_v37  ;;  %v513_v37 = vld [vmem:[%s17795_s2 + $0xe78] sm:$0xff] }
  0x8a   :  { %1227 = vmatprep.mubr.f32.mxu0 %v10691_v0  ;;  %1653 = vmatprep.mubr.f32.mxu1 %v10691_v0  ;;  %v7199_v58 = vpack.c.bf16 %v436_v52, %v431_v51  ;;  %v470_v51 = vld [vmem:[%s17795_s2 + $0xd20] sm:$0xff]  ;;  %v475_v52 = vld [vmem:[%s17795_s2 + $0xd48] sm:$0xff] }
  0x8b   :  { %v518_v38 = vld [vmem:[%s17795_s2 + $0xea0] sm:$0xff] }
  0x8c   :  { %7182 = vmatpush1.bf16.msra.mxu0 %v7181_v1  ;;  %7534 = vmatpush1.bf16.msra.mxu1 %v7533_v2  ;;  %v437_v1 = vld [vmem:[%s17795_s2 + $0xc18] sm:$0xff]  ;;  %v7583_v46 = vpack.c.bf16 %v518_v38, %v513_v37  ;;  %v550_v37 = vld [vmem:[%s17795_s2 + $0xfa0] sm:$0xff]  ;;  %v555_v38 = vld [vmem:[%s17795_s2 + $0xfc8] sm:$0xff] }
  0x8d   :  { %7184 = vmatprep.subr.bf16.mxu0 %v7183_v3  ;;  %7536 = vmatprep.subr.bf16.mxu1 %v7535_v7  ;;  %v441_v2 = vld [vmem:[%s17795_s2 + $0xc38] sm:$0xff]  ;;  %v446_v3 = vld [vmem:[%s17795_s2 + $0xc60] sm:$0xff]  ;;  %v7553_v7 = vpack.c.bf16 %v437_v1, %v432_v61  ;;  %v7217_v61 = vpack.c.bf16 %v475_v52, %v470_v51  ;;  %v523_v51 = vld [vmem:[%s17795_s2 + $0xec8] sm:$0xff] }
  0x8e   :  { %v7203_v8 = vpack.c.bf16 %v446_v3, %v441_v2  ;;  %v480_v2 = vld [vmem:[%s17795_s2 + $0xd70] sm:$0xff]  ;;  %v485_v3 = vld [vmem:[%s17795_s2 + $0xd98] sm:$0xff] }
  0x8f   :  { %v528_v52 = vld [vmem:[%s17795_s2 + $0xef0] sm:$0xff] }
  0x90   :  { %7186 = vmatpush1.bf16.msra.mxu0 %v7185_v14  ;;  %7538 = vmatpush1.bf16.msra.mxu1 %v7537_v15  ;;  %v447_v14 = vld [vmem:[%s17795_s2 + $0xc68] sm:$0xff]  ;;  %v7587_v60 = vpack.c.bf16 %v528_v52, %v523_v51  ;;  %v560_v51 = vld [vmem:[%s17795_s2 + $0xff0] sm:$0xff]  ;;  %v565_v52 = vld [vmem:[%s17795_s2 + $0x1018] sm:$0xff] }
  0x91   :  { %7188 = vmatprep.subr.bf16.mxu0 %v7187_v16  ;;  %7540 = vmatprep.subr.bf16.mxu1 %v7539_v20  ;;  %v451_v15 = vld [vmem:[%s17795_s2 + $0xc88] sm:$0xff]  ;;  %v456_v16 = vld [vmem:[%s17795_s2 + $0xcb0] sm:$0xff]  ;;  %v7557_v20 = vpack.c.bf16 %v447_v14, %v442_v11  ;;  %v7221_v11 = vpack.c.bf16 %v485_v3, %v480_v2  ;;  %v977_v2 = vcombine.high %v10658_v50, %v10658_v50  ;;  %v533_v3 = vld [vmem:[%s17795_s2 + $0xf18] sm:$0xff] }
  0x92   :  { %v7207_v21 = vpack.c.bf16 %v456_v16, %v451_v15  ;;  %v490_v15 = vld [vmem:[%s17795_s2 + $0xdc0] sm:$0xff]  ;;  %v495_v16 = vld [vmem:[%s17795_s2 + $0xde8] sm:$0xff] }
  0x93   :  { %v535_v50 = vld [vmem:[%s17795_s2 + $0xf28] sm:$0xff] }
  0x94   :  { %7190 = vmatpush1.bf16.msra.mxu0 %v7189_v28  ;;  %7542 = vmatpush1.bf16.msra.mxu1 %v7541_v29  ;;  %v457_v28 = vld [vmem:[%s17795_s2 + $0xcb8] sm:$0xff] }
  0x95   :  { %7192 = vmatprep.subr.bf16.mxu0 %v7191_v30  ;;  %7544 = vmatprep.subr.bf16.mxu1 %v7543_v35  ;;  %v461_v29 = vld [vmem:[%s17795_s2 + $0xcd8] sm:$0xff]  ;;  %v466_v30 = vld [vmem:[%s17795_s2 + $0xd00] sm:$0xff]  ;;  %v7561_v35 = vpack.c.bf16 %v457_v28, %v452_v24  ;;  %v7225_v24 = vpack.c.bf16 %v495_v16, %v490_v15  ;;  %v11053_v15 = vrot.slane %v977_v2, %v10097_v12  ;;  %v543_v16 = vld [vmem:[%s17795_s2 + $0xf68] sm:$0xff] }
  0x96   :  { %v7211_v36 = vpack.c.bf16 %v466_v30, %v461_v29  ;;  %v500_v29 = vld [vmem:[%s17795_s2 + $0xe10] sm:$0xff]  ;;  %v505_v30 = vld [vmem:[%s17795_s2 + $0xe38] sm:$0xff]  ;;  %v570_v2 = vld [vmem:[%s17795_s2 + $0x1040] sm:$0xff] }
  0x98   :  { %7194 = vmatpush1.bf16.msra.mxu0 %v7193_v42  ;;  %7546 = vmatpush1.bf16.msra.mxu1 %v7545_v43  ;;  %v467_v42 = vld [vmem:[%s17795_s2 + $0xd08] sm:$0xff] }
  0x99   :  { %7196 = vmatprep.subr.bf16.mxu0 %v7195_v44  ;;  %7548 = vmatprep.subr.bf16.mxu1 %v7547_v48  ;;  %v471_v43 = vld [vmem:[%s17795_s2 + $0xd28] sm:$0xff]  ;;  %v476_v44 = vld [vmem:[%s17795_s2 + $0xd50] sm:$0xff]  ;;  %v7565_v48 = vpack.c.bf16 %v467_v42, %v462_v39  ;;  %v7229_v39 = vpack.c.bf16 %v505_v30, %v500_v29  ;;  %v11081_v30 = vcombine.high %v11053_v15, %v11053_v15 }
  0x9a   :  { %v7215_v49 = vpack.c.bf16 %v476_v44, %v471_v43  ;;  %v510_v43 = vld [vmem:[%s17795_s2 + $0xe60] sm:$0xff]  ;;  %v515_v44 = vld [vmem:[%s17795_s2 + $0xe88] sm:$0xff]  ;;  %v556_v29 = vld [vmem:[%s17795_s2 + $0xfd0] sm:$0xff] }
  0x9c   :  { %7198 = vmatpush1.bf16.msra.mxu0 %v7197_v55  ;;  %7550 = vmatpush1.bf16.msra.mxu1 %v7549_v57  ;;  %v477_v55 = vld [vmem:[%s17795_s2 + $0xd58] sm:$0xff] }
  0x9d   :  { %7200 = vmatprep.subr.bf16.mxu0 %v7199_v58  ;;  %7552 = vmatprep.subr.bf16.mxu1 %v7551_v63  ;;  %v481_v57 = vld [vmem:[%s17795_s2 + $0xd78] sm:$0xff]  ;;  %v486_v58 = vld [vmem:[%s17795_s2 + $0xda0] sm:$0xff]  ;;  %v7569_v63 = vpack.c.bf16 %v477_v55, %v472_v53  ;;  %v7233_v53 = vpack.c.bf16 %v515_v44, %v510_v43 }
  0x9e   :  { %v7219_v1 = vpack.c.bf16 %v486_v58, %v481_v57  ;;  %v520_v57 = vld [vmem:[%s17795_s2 + $0xeb0] sm:$0xff]  ;;  %v525_v58 = vld [vmem:[%s17795_s2 + $0xed8] sm:$0xff]  ;;  %v566_v44 = vld [vmem:[%s17795_s2 + $0x1020] sm:$0xff] }
  0x9f   :  { %v561_v43 = vld [vmem:[%s17795_s2 + $0xff8] sm:$0xff] }
  0xa0   :  { %7202 = vmatpush1.bf16.msra.mxu0 %v7201_v6  ;;  %7554 = vmatpush1.bf16.msra.mxu1 %v7553_v7  ;;  %v487_v6 = vld [vmem:[%s17795_s2 + $0xda8] sm:$0xff] }
  0xa1   :  { %7204 = vmatprep.subr.bf16.mxu0 %v7203_v8  ;;  %7556 = vmatprep.subr.bf16.mxu1 %v7555_v13  ;;  %v491_v7 = vld [vmem:[%s17795_s2 + $0xdc8] sm:$0xff]  ;;  %v496_v8 = vld [vmem:[%s17795_s2 + $0xdf0] sm:$0xff]  ;;  %v7573_v13 = vpack.c.bf16 %v487_v6, %v482_v4  ;;  %v538_v4 = vld [vmem:[%s17795_s2 + $0xf40] sm:$0xff] }
  0xa2   :  { %v7223_v14 = vpack.c.bf16 %v496_v8, %v491_v7  ;;  %v530_v8 = vld [vmem:[%s17795_s2 + $0xf00] sm:$0xff]  ;;  %v7591_v10 = vpack.c.bf16 %v538_v4, %v533_v3  ;;  %v575_v3 = vld [vmem:[%s17795_s2 + $0x1068] sm:$0xff]  ;;  %v572_v4 = vld [vmem:[%s17795_s2 + $0x1050] sm:$0xff] }
  0xa4   :  { %7206 = vmatpush1.bf16.msra.mxu0 %v7205_v19  ;;  %7558 = vmatpush1.bf16.msra.mxu1 %v7557_v20  ;;  %v497_v19 = vld [vmem:[%s17795_s2 + $0xdf8] sm:$0xff] }
  0xa5   :  { %7208 = vmatprep.subr.bf16.mxu0 %v7207_v21  ;;  %7560 = vmatprep.subr.bf16.mxu1 %v7559_v27  ;;  %v501_v20 = vld [vmem:[%s17795_s2 + $0xe18] sm:$0xff]  ;;  %v506_v21 = vld [vmem:[%s17795_s2 + $0xe40] sm:$0xff]  ;;  %v7577_v27 = vpack.c.bf16 %v497_v19, %v492_v17  ;;  %v548_v17 = vld [vmem:[%s17795_s2 + $0xf90] sm:$0xff] }
  0xa6   :  { %v7227_v28 = vpack.c.bf16 %v506_v21, %v501_v20  ;;  %v540_v21 = vld [vmem:[%s17795_s2 + $0xf50] sm:$0xff] }
  0xa8   :  { %7210 = vmatpush1.bf16.msra.mxu0 %v7209_v34  ;;  %7562 = vmatpush1.bf16.msra.mxu1 %v7561_v35  ;;  %v507_v34 = vld [vmem:[%s17795_s2 + $0xe48] sm:$0xff] }
  0xa9   :  { %7212 = vmatprep.subr.bf16.mxu0 %v7211_v36  ;;  %7564 = vmatprep.subr.bf16.mxu1 %v7563_v41  ;;  %v511_v35 = vld [vmem:[%s17795_s2 + $0xe68] sm:$0xff]  ;;  %v516_v36 = vld [vmem:[%s17795_s2 + $0xe90] sm:$0xff]  ;;  %v7581_v41 = vpack.c.bf16 %v507_v34, %v502_v31  ;;  %v553_v31 = vld [vmem:[%s17795_s2 + $0xfb8] sm:$0xff]  ;;  %v7245_v34 = vpack.c.bf16 %v545_v22, %v540_v21 }
  0xaa   :  { %v7231_v42 = vpack.c.bf16 %v516_v36, %v511_v35  ;;  %v596_v21 = vld [vmem:[%s17795_s2 + $0x1110] sm:$0xff]  ;;  %v593_v22 = vld [vmem:[%s17795_s2 + $0x10f8] sm:$0xff] }
  0xac   :  { %7214 = vmatpush1.bf16.msra.mxu0 %v7213_v47  ;;  %7566 = vmatpush1.bf16.msra.mxu1 %v7565_v48  ;;  %v517_v47 = vld [vmem:[%s17795_s2 + $0xe98] sm:$0xff] }
  0xad   :  { %7216 = vmatprep.subr.bf16.mxu0 %v7215_v49  ;;  %7568 = vmatprep.subr.bf16.mxu1 %v7567_v54  ;;  %v521_v48 = vld [vmem:[%s17795_s2 + $0xeb8] sm:$0xff]  ;;  %v526_v49 = vld [vmem:[%s17795_s2 + $0xee0] sm:$0xff]  ;;  %v7585_v54 = vpack.c.bf16 %v517_v47, %v512_v45  ;;  %v563_v45 = vld [vmem:[%s17795_s2 + $0x1008] sm:$0xff]  ;;  %v7249_v47 = vpack.c.bf16 %v555_v38, %v550_v37 }
  0xae   :  { %v7235_v55 = vpack.c.bf16 %v526_v49, %v521_v48  ;;  %v7251_v49 = vpack.c.bf16 %v566_v44, %v561_v43  ;;  %v606_v37 = vld [vmem:[%s17795_s2 + $0x1160] sm:$0xff]  ;;  %v603_v38 = vld [vmem:[%s17795_s2 + $0x1148] sm:$0xff]  ;;  %v600_v44 = vld [vmem:[%s17795_s2 + $0x1130] sm:$0xff] }
  0xb0   :  { %7218 = vmatpush1.bf16.msra.mxu0 %v7217_v61  ;;  %7570 = vmatpush1.bf16.msra.mxu1 %v7569_v63  ;;  %v527_v61 = vld [vmem:[%s17795_s2 + $0xee8] sm:$0xff] }
  0xb1   :  { %7220 = vmatprep.subr.bf16.mxu0 %v7219_v1  ;;  %7572 = vmatprep.subr.bf16.mxu1 %v7571_v5  ;;  %v531_v63 = vld [vmem:[%s17795_s2 + $0xf08] sm:$0xff]  ;;  %v536_v1 = vld [vmem:[%s17795_s2 + $0xf30] sm:$0xff]  ;;  %v7237_v5 = vpack.c.bf16 %v525_v58, %v520_v57  ;;  %v7589_v6 = vpack.c.bf16 %v527_v61, %v522_v59  ;;  %v573_v59 = vld [vmem:[%s17795_s2 + $0x1058] sm:$0xff]  ;;  %v7253_v61 = vpack.c.bf16 %v565_v52, %v560_v51 }
  0xb2   :  { %v7239_v7 = vpack.c.bf16 %v536_v1, %v531_v63  ;;  %v571_v57 = vld [vmem:[%s17795_s2 + $0x1048] sm:$0xff]  ;;  %v576_v58 = vld [vmem:[%s17795_s2 + $0x1070] sm:$0xff]  ;;  %v613_v52 = vld [vmem:[%s17795_s2 + $0x1198] sm:$0xff] }
  0xb3   :  { %v7255_v1 = vpack.c.bf16 %v576_v58, %v571_v57  ;;  %v616_v51 = vld [vmem:[%s17795_s2 + $0x11b0] sm:$0xff]  ;;  %v610_v58 = vld [vmem:[%s17795_s2 + $0x1180] sm:$0xff] }
  0xb4   :  { %7222 = vmatpush1.bf16.msra.mxu0 %v7221_v11  ;;  %7574 = vmatpush1.bf16.msra.mxu1 %v7573_v13  ;;  %v537_v11 = vld [vmem:[%s17795_s2 + $0xf38] sm:$0xff] }
  0xb5   :  { %7224 = vmatprep.subr.bf16.mxu0 %v7223_v14  ;;  %7576 = vmatprep.subr.bf16.mxu1 %v7575_v18  ;;  %v541_v13 = vld [vmem:[%s17795_s2 + $0xf58] sm:$0xff]  ;;  %v546_v14 = vld [vmem:[%s17795_s2 + $0xf80] sm:$0xff]  ;;  %v7241_v18 = vpack.c.bf16 %v535_v50, %v530_v8  ;;  %v7593_v19 = vpack.c.bf16 %v537_v11, %v532_v9  ;;  %v583_v50 = vld [vmem:[%s17795_s2 + $0x10a8] sm:$0xff] }
  0xb6   :  { %v7243_v20 = vpack.c.bf16 %v546_v14, %v541_v13  ;;  %v586_v8 = vld [vmem:[%s17795_s2 + $0x10c0] sm:$0xff]  ;;  %v588_v9 = vld [vmem:[%s17795_s2 + $0x10d0] sm:$0xff] }
  0xb7   :  { %v580_v14 = vld [vmem:[%s17795_s2 + $0x1090] sm:$0xff] }
  0xb8   :  { %7226 = vmatpush1.bf16.msra.mxu0 %v7225_v24  ;;  %7578 = vmatpush1.bf16.msra.mxu1 %v7577_v27  ;;  %v7595_v24 = vpack.c.bf16 %v548_v17, %v543_v16  ;;  %v547_v27 = vld [vmem:[%s17795_s2 + $0xf88] sm:$0xff]  ;;  %v585_v16 = vld [vmem:[%s17795_s2 + $0x10b8] sm:$0xff]  ;;  %v582_v17 = vld [vmem:[%s17795_s2 + $0x10a0] sm:$0xff] }
  0xb9   :  { %7228 = vmatprep.subr.bf16.mxu0 %v7227_v28  ;;  %7580 = vmatprep.subr.bf16.mxu1 %v7579_v32  ;;  %v551_v28 = vld [vmem:[%s17795_s2 + $0xfa8] sm:$0xff]  ;;  %v558_v32 = vld [vmem:[%s17795_s2 + $0xfe0] sm:$0xff]  ;;  %v7597_v35 = vpack.c.bf16 %v547_v27, %v542_v23 }
  0xba   :  { %v7247_v36 = vpack.c.bf16 %v556_v29, %v551_v28  ;;  %v598_v23 = vld [vmem:[%s17795_s2 + $0x1120] sm:$0xff] }
  0xbb   :  { %v590_v29 = vld [vmem:[%s17795_s2 + $0x10e0] sm:$0xff] }
  0xbc   :  { %7230 = vmatpush1.bf16.msra.mxu0 %v7229_v39  ;;  %7582 = vmatpush1.bf16.msra.mxu1 %v7581_v41  ;;  %v552_v39 = vld [vmem:[%s17795_s2 + $0xfb0] sm:$0xff]  ;;  %v7599_v41 = vpack.c.bf16 %v558_v32, %v553_v31  ;;  %v595_v31 = vld [vmem:[%s17795_s2 + $0x1108] sm:$0xff] }
  0xbd   :  { %7232 = vmatprep.subr.bf16.mxu0 %v7231_v42  ;;  %7584 = vmatprep.subr.bf16.mxu1 %v7583_v46  ;;  %v557_v42 = vld [vmem:[%s17795_s2 + $0xfd8] sm:$0xff]  ;;  %v568_v46 = vld [vmem:[%s17795_s2 + $0x1030] sm:$0xff] }
  0xbe   :  { %v7601_v48 = vpack.c.bf16 %v557_v42, %v552_v39  ;;  %v592_v32 = vld [vmem:[%s17795_s2 + $0x10f0] sm:$0xff] }
  0xbf   :  { %v608_v39 = vld [vmem:[%s17795_s2 + $0x1170] sm:$0xff] }
  0xc0   :  { %7234 = vmatpush1.bf16.msra.mxu0 %v7233_v53  ;;  %7586 = vmatpush1.bf16.msra.mxu1 %v7585_v54  ;;  %v562_v53 = vld [vmem:[%s17795_s2 + $0x1000] sm:$0xff]  ;;  %v7603_v54 = vpack.c.bf16 %v568_v46, %v563_v45  ;;  %v605_v45 = vld [vmem:[%s17795_s2 + $0x1158] sm:$0xff] }
  0xc1   :  { %7236 = vmatprep.subr.bf16.mxu0 %v7235_v55  ;;  %7588 = vmatprep.subr.bf16.mxu1 %v7587_v60  ;;  %v567_v55 = vld [vmem:[%s17795_s2 + $0x1028] sm:$0xff]  ;;  %v578_v60 = vld [vmem:[%s17795_s2 + $0x1080] sm:$0xff] }
  0xc2   :  { %v7605_v63 = vpack.c.bf16 %v567_v55, %v562_v53  ;;  %v602_v46 = vld [vmem:[%s17795_s2 + $0x1140] sm:$0xff] }
  0xc3   :  { %v618_v53 = vld [vmem:[%s17795_s2 + $0x11c0] sm:$0xff] }
  0xc4   :  { %7238 = vmatpush1.bf16.msra.mxu0 %v7237_v5  ;;  %7590 = vmatpush1.bf16.msra.mxu1 %v7589_v6  ;;  %v7607_v5 = vpack.c.bf16 %v578_v60, %v573_v59  ;;  %v577_v6 = vld [vmem:[%s17795_s2 + $0x1078] sm:$0xff]  ;;  %v615_v59 = vld [vmem:[%s17795_s2 + $0x11a8] sm:$0xff]  ;;  %v612_v60 = vld [vmem:[%s17795_s2 + $0x1190] sm:$0xff] }
  0xc5   :  { %7240 = vmatprep.subr.bf16.mxu0 %v7239_v7  ;;  %7592 = vmatprep.subr.bf16.mxu1 %v7591_v10  ;;  %v581_v7 = vld [vmem:[%s17795_s2 + $0x1098] sm:$0xff]  ;;  %v7257_v10 = vpack.c.bf16 %v575_v3, %v570_v2  ;;  %v7609_v11 = vpack.c.bf16 %v577_v6, %v572_v4  ;;  %v626_v2 = vld [vmem:[%s17795_s2 + $0x1200] sm:$0xff]  ;;  %v623_v3 = vld [vmem:[%s17795_s2 + $0x11e8] sm:$0xff] }
  0xc6   :  { %v7259_v13 = vpack.c.bf16 %v586_v8, %v581_v7  ;;  %v628_v4 = vld [vmem:[%s17795_s2 + $0x1210] sm:$0xff] }
  0xc7   :  { %1228 = vmatmul.mubr.f32.vlgmr.msra.gmra.mrb[0].mxu0 %v10671_v56  ;;  %1654 = vmatmul.mubr.f32.vlgmr.msra.gmra.mrb[0].mxu1 %v10671_v56  ;;  %v620_v8 = vld [vmem:[%s17795_s2 + $0x11d0] sm:$0xff] }
  0xc8   :  { %7242 = vmatpush1.bf16.msra.mxu0 %v7241_v18  ;;  %7594 = vmatpush1.bf16.msra.mxu1 %v7593_v19  ;;  %v7611_v18 = vpack.c.bf16 %v588_v9, %v583_v50  ;;  %v587_v19 = vld [vmem:[%s17795_s2 + $0x10c8] sm:$0xff]  ;;  %v625_v50 = vld [vmem:[%s17795_s2 + $0x11f8] sm:$0xff]  ;;  %v622_v9 = vld [vmem:[%s17795_s2 + $0x11e0] sm:$0xff] }
  0xc9   :  { %7244 = vmatprep.subr.bf16.mxu0 %v7243_v20  ;;  %7596 = vmatprep.subr.bf16.mxu1 %v7595_v24  ;;  %v591_v20 = vld [vmem:[%s17795_s2 + $0x10e8] sm:$0xff]  ;;  %v7261_v24 = vpack.c.bf16 %v585_v16, %v580_v14  ;;  %v7613_v27 = vpack.c.bf16 %v587_v19, %v582_v17  ;;  %v636_v14 = vld [vmem:[%s17795_s2 + $0x1250] sm:$0xff]  ;;  %v633_v16 = vld [vmem:[%s17795_s2 + $0x1238] sm:$0xff] }
  0xca   :  { %1298 = vmatprep.mubr.f32.mxu0 %v11081_v30  ;;  %1724 = vmatprep.mubr.f32.mxu1 %v11081_v30  ;;  %v7263_v28 = vpack.c.bf16 %v596_v21, %v591_v20  ;;  %v638_v17 = vld [vmem:[%s17795_s2 + $0x1260] sm:$0xff] }
  0xcb   :  { %v630_v21 = vld [vmem:[%s17795_s2 + $0x1220] sm:$0xff] }
  0xcc   :  { %7246 = vmatpush1.bf16.msra.mxu0 %v7245_v34  ;;  %7598 = vmatpush1.bf16.msra.mxu1 %v7597_v35  ;;  %v7615_v34 = vpack.c.bf16 %v598_v23, %v593_v22  ;;  %v597_v35 = vld [vmem:[%s17795_s2 + $0x1118] sm:$0xff]  ;;  %v635_v22 = vld [vmem:[%s17795_s2 + $0x1248] sm:$0xff]  ;;  %v632_v23 = vld [vmem:[%s17795_s2 + $0x1230] sm:$0xff] }
  0xcd   :  { %7248 = vmatprep.subr.bf16.mxu0 %v7247_v36  ;;  %7600 = vmatprep.subr.bf16.mxu1 %v7599_v41  ;;  %v601_v36 = vld [vmem:[%s17795_s2 + $0x1138] sm:$0xff]  ;;  %v7265_v41 = vpack.c.bf16 %v595_v31, %v590_v29  ;;  %v7617_v42 = vpack.c.bf16 %v597_v35, %v592_v32  ;;  %v646_v29 = vld [vmem:[%s17795_s2 + $0x12a0] sm:$0xff]  ;;  %v643_v31 = vld [vmem:[%s17795_s2 + $0x1288] sm:$0xff] }
  0xce   :  { %v7267_v43 = vpack.c.bf16 %v606_v37, %v601_v36  ;;  %v648_v32 = vld [vmem:[%s17795_s2 + $0x12b0] sm:$0xff] }
  0xcf   :  { %v640_v37 = vld [vmem:[%s17795_s2 + $0x1270] sm:$0xff] }
  0xd0   :  { %7250 = vmatpush1.bf16.msra.mxu0 %v7249_v47  ;;  %7602 = vmatpush1.bf16.msra.mxu1 %v7601_v48  ;;  %v7619_v47 = vpack.c.bf16 %v608_v39, %v603_v38  ;;  %v607_v48 = vld [vmem:[%s17795_s2 + $0x1168] sm:$0xff]  ;;  %v645_v38 = vld [vmem:[%s17795_s2 + $0x1298] sm:$0xff]  ;;  %v642_v39 = vld [vmem:[%s17795_s2 + $0x1280] sm:$0xff] }
  0xd1   :  { %7252 = vmatprep.subr.bf16.mxu0 %v7251_v49  ;;  %7604 = vmatprep.subr.bf16.mxu1 %v7603_v54  ;;  %v611_v49 = vld [vmem:[%s17795_s2 + $0x1188] sm:$0xff]  ;;  %v7269_v54 = vpack.c.bf16 %v605_v45, %v600_v44  ;;  %v7621_v55 = vpack.c.bf16 %v607_v48, %v602_v46  ;;  %v656_v44 = vld [vmem:[%s17795_s2 + $0x12f0] sm:$0xff]  ;;  %v653_v45 = vld [vmem:[%s17795_s2 + $0x12d8] sm:$0xff] }
  0xd2   :  { %v7271_v57 = vpack.c.bf16 %v616_v51, %v611_v49  ;;  %v658_v46 = vld [vmem:[%s17795_s2 + $0x1300] sm:$0xff] }
  0xd3   :  { %v650_v51 = vld [vmem:[%s17795_s2 + $0x12c0] sm:$0xff] }
  0xd4   :  { %7254 = vmatpush1.bf16.msra.mxu0 %v7253_v61  ;;  %7606 = vmatpush1.bf16.msra.mxu1 %v7605_v63  ;;  %v7623_v61 = vpack.c.bf16 %v618_v53, %v613_v52  ;;  %v617_v63 = vld [vmem:[%s17795_s2 + $0x11b8] sm:$0xff]  ;;  %v655_v52 = vld [vmem:[%s17795_s2 + $0x12e8] sm:$0xff]  ;;  %v652_v53 = vld [vmem:[%s17795_s2 + $0x12d0] sm:$0xff] }
  0xd5   :  { %7256 = vmatprep.subr.bf16.mxu0 %v7255_v1  ;;  %7608 = vmatprep.subr.bf16.mxu1 %v7607_v5  ;;  %v621_v1 = vld [vmem:[%s17795_s2 + $0x11d8] sm:$0xff]  ;;  %v7273_v5 = vpack.c.bf16 %v615_v59, %v610_v58  ;;  %v7625_v6 = vpack.c.bf16 %v617_v63, %v612_v60  ;;  %v666_v58 = vld [vmem:[%s17795_s2 + $0x1340] sm:$0xff]  ;;  %v663_v59 = vld [vmem:[%s17795_s2 + $0x1328] sm:$0xff] }
  0xd6   :  { %v7275_v7 = vpack.c.bf16 %v626_v2, %v621_v1  ;;  %v668_v60 = vld [vmem:[%s17795_s2 + $0x1350] sm:$0xff] }
  0xd7   :  { %v660_v2 = vld [vmem:[%s17795_s2 + $0x1310] sm:$0xff] }
  0xd8   :  { %7258 = vmatpush1.bf16.msra.mxu0 %v7257_v10  ;;  %7610 = vmatpush1.bf16.msra.mxu1 %v7609_v11  ;;  %v7627_v10 = vpack.c.bf16 %v628_v4, %v623_v3  ;;  %v627_v11 = vld [vmem:[%s17795_s2 + $0x1208] sm:$0xff]  ;;  %v665_v3 = vld [vmem:[%s17795_s2 + $0x1338] sm:$0xff]  ;;  %v662_v4 = vld [vmem:[%s17795_s2 + $0x1320] sm:$0xff] }
  0xd9   :  { %7260 = vmatprep.subr.bf16.mxu0 %v7259_v13  ;;  %7612 = vmatprep.subr.bf16.mxu1 %v7611_v18  ;;  %v631_v13 = vld [vmem:[%s17795_s2 + $0x1228] sm:$0xff]  ;;  %v7277_v18 = vpack.c.bf16 %v625_v50, %v620_v8  ;;  %v7629_v19 = vpack.c.bf16 %v627_v11, %v622_v9  ;;  %v676_v8 = vld [vmem:[%s17795_s2 + $0x1390] sm:$0xff]  ;;  %v673_v50 = vld [vmem:[%s17795_s2 + $0x1378] sm:$0xff] }
  0xda   :  { %v7279_v20 = vpack.c.bf16 %v636_v14, %v631_v13  ;;  %v678_v9 = vld [vmem:[%s17795_s2 + $0x13a0] sm:$0xff] }
  0xdb   :  { %v670_v14 = vld [vmem:[%s17795_s2 + $0x1360] sm:$0xff] }
  0xdc   :  { %7262 = vmatpush1.bf16.msra.mxu0 %v7261_v24  ;;  %7614 = vmatpush1.bf16.msra.mxu1 %v7613_v27  ;;  %v7631_v24 = vpack.c.bf16 %v638_v17, %v633_v16  ;;  %v637_v27 = vld [vmem:[%s17795_s2 + $0x1258] sm:$0xff]  ;;  %v675_v16 = vld [vmem:[%s17795_s2 + $0x1388] sm:$0xff]  ;;  %v672_v17 = vld [vmem:[%s17795_s2 + $0x1370] sm:$0xff] }
  0xdd   :  { %7264 = vmatprep.subr.bf16.mxu0 %v7263_v28  ;;  %7616 = vmatprep.subr.bf16.mxu1 %v7615_v34  ;;  %v641_v28 = vld [vmem:[%s17795_s2 + $0x1278] sm:$0xff]  ;;  %v7281_v34 = vpack.c.bf16 %v635_v22, %v630_v21  ;;  %v7633_v35 = vpack.c.bf16 %v637_v27, %v632_v23  ;;  %v686_v21 = vld [vmem:[%s17795_s2 + $0x13e0] sm:$0xff]  ;;  %v683_v22 = vld [vmem:[%s17795_s2 + $0x13c8] sm:$0xff] }
  0xde   :  { %v7283_v36 = vpack.c.bf16 %v646_v29, %v641_v28  ;;  %v688_v23 = vld [vmem:[%s17795_s2 + $0x13f0] sm:$0xff] }
  0xdf   :  { %v680_v29 = vld [vmem:[%s17795_s2 + $0x13b0] sm:$0xff] }
  0xe0   :  { %7266 = vmatpush1.bf16.msra.mxu0 %v7265_v41  ;;  %7618 = vmatpush1.bf16.msra.mxu1 %v7617_v42  ;;  %v7635_v41 = vpack.c.bf16 %v648_v32, %v643_v31  ;;  %v647_v42 = vld [vmem:[%s17795_s2 + $0x12a8] sm:$0xff]  ;;  %v685_v31 = vld [vmem:[%s17795_s2 + $0x13d8] sm:$0xff]  ;;  %v682_v32 = vld [vmem:[%s17795_s2 + $0x13c0] sm:$0xff] }
  0xe1   :  { %7268 = vmatprep.subr.bf16.mxu0 %v7267_v43  ;;  %7620 = vmatprep.subr.bf16.mxu1 %v7619_v47  ;;  %v651_v43 = vld [vmem:[%s17795_s2 + $0x12c8] sm:$0xff]  ;;  %v7285_v47 = vpack.c.bf16 %v645_v38, %v640_v37  ;;  %v7637_v48 = vpack.c.bf16 %v647_v42, %v642_v39  ;;  %v696_v37 = vld [vmem:[%s17795_s2 + $0x1430] sm:$0xff]  ;;  %v693_v38 = vld [vmem:[%s17795_s2 + $0x1418] sm:$0xff]  ;;  %v7301_v42 = vpack.c.bf16 %v685_v31, %v680_v29 }
  0xe2   :  { %v7287_v49 = vpack.c.bf16 %v656_v44, %v651_v43  ;;  %v698_v39 = vld [vmem:[%s17795_s2 + $0x1440] sm:$0xff] }
  0xe4   :  { %7270 = vmatpush1.bf16.msra.mxu0 %v7269_v54  ;;  %7622 = vmatpush1.bf16.msra.mxu1 %v7621_v55  ;;  %v7639_v54 = vpack.c.bf16 %v658_v46, %v653_v45  ;;  %v657_v55 = vld [vmem:[%s17795_s2 + $0x12f8] sm:$0xff]  ;;  %v690_v45 = vld [vmem:[%s17795_s2 + $0x1400] sm:$0xff]  ;;  %v695_v46 = vld [vmem:[%s17795_s2 + $0x1428] sm:$0xff] }
  0xe5   :  { %7272 = vmatprep.subr.bf16.mxu0 %v7271_v57  ;;  %7624 = vmatprep.subr.bf16.mxu1 %v7623_v61  ;;  %v661_v57 = vld [vmem:[%s17795_s2 + $0x1318] sm:$0xff]  ;;  %v7289_v61 = vpack.c.bf16 %v655_v52, %v650_v51  ;;  %v7641_v63 = vpack.c.bf16 %v657_v55, %v652_v53  ;;  %v706_v52 = vld [vmem:[%s17795_s2 + $0x1480] sm:$0xff]  ;;  %v708_v55 = vld [vmem:[%s17795_s2 + $0x1490] sm:$0xff] }
  0xe6   :  { %v7291_v1 = vpack.c.bf16 %v666_v58, %v661_v57  ;;  %v701_v51 = vld [vmem:[%s17795_s2 + $0x1458] sm:$0xff]  ;;  %v7305_v57 = vpack.c.bf16 %v695_v46, %v690_v45  ;;  %v700_v58 = vld [vmem:[%s17795_s2 + $0x1450] sm:$0xff] }
  0xe8   :  { %7274 = vmatpush1.bf16.msra.mxu0 %v7273_v5  ;;  %7626 = vmatpush1.bf16.msra.mxu1 %v7625_v6  ;;  %v7643_v5 = vpack.c.bf16 %v668_v60, %v663_v59  ;;  %v667_v6 = vld [vmem:[%s17795_s2 + $0x1348] sm:$0xff]  ;;  %v7307_v60 = vpack.c.bf16 %v706_v52, %v701_v51 }
  0xe9   :  { %7276 = vmatprep.subr.bf16.mxu0 %v7275_v7  ;;  %7628 = vmatprep.subr.bf16.mxu1 %v7627_v10  ;;  %v671_v7 = vld [vmem:[%s17795_s2 + $0x1368] sm:$0xff]  ;;  %v7293_v10 = vpack.c.bf16 %v665_v3, %v660_v2  ;;  %v7645_v11 = vpack.c.bf16 %v667_v6, %v662_v4 }
  0xea   :  { %v7295_v13 = vpack.c.bf16 %v676_v8, %v671_v7 }
  0xec   :  { %7278 = vmatpush1.bf16.msra.mxu0 %v7277_v18  ;;  %7630 = vmatpush1.bf16.msra.mxu1 %v7629_v19  ;;  %v7647_v18 = vpack.c.bf16 %v678_v9, %v673_v50  ;;  %v677_v19 = vld [vmem:[%s17795_s2 + $0x1398] sm:$0xff] }
  0xed   :  { %7280 = vmatprep.subr.bf16.mxu0 %v7279_v20  ;;  %7632 = vmatprep.subr.bf16.mxu1 %v7631_v24  ;;  %v681_v20 = vld [vmem:[%s17795_s2 + $0x13b8] sm:$0xff]  ;;  %v7297_v24 = vpack.c.bf16 %v675_v16, %v670_v14  ;;  %v7649_v27 = vpack.c.bf16 %v677_v19, %v672_v17 }
  0xee   :  { %v7299_v28 = vpack.c.bf16 %v686_v21, %v681_v20 }
  0xf0   :  { %7282 = vmatpush1.bf16.msra.mxu0 %v7281_v34  ;;  %7634 = vmatpush1.bf16.msra.mxu1 %v7633_v35  ;;  %v7651_v34 = vpack.c.bf16 %v688_v23, %v683_v22  ;;  %v687_v35 = vld [vmem:[%s17795_s2 + $0x13e8] sm:$0xff] }
  0xf1   :  { %7284 = vmatprep.subr.bf16.mxu0 %v7283_v36  ;;  %7636 = vmatprep.subr.bf16.mxu1 %v7635_v41  ;;  %v691_v36 = vld [vmem:[%s17795_s2 + $0x1408] sm:$0xff]  ;;  %v11432_v41 = vld [vmem:[%s17793_s0 + $0x10] sm:$0x3f]  ;;  %v7653_v43 = vpack.c.bf16 %v687_v35, %v682_v32 }
  0xf2   :  { %v7303_v44 = vpack.c.bf16 %v696_v37, %v691_v36  ;;  %v11454_v53 = vrot.slane %v11432_v41, %v10097_v12 }
  0xf4   :  { %7286 = vmatpush1.bf16.msra.mxu0 %v7285_v47  ;;  %7638 = vmatpush1.bf16.msra.mxu1 %v7637_v48  ;;  %v692_v47 = vld [vmem:[%s17795_s2 + $0x1410] sm:$0xff]  ;;  %v7655_v48 = vpack.c.bf16 %v698_v39, %v693_v38 }
  0xf5   :  { %7288 = vmatprep.subr.bf16.mxu0 %v7287_v49  ;;  %7640 = vmatprep.subr.bf16.mxu1 %v7639_v54  ;;  %v697_v49 = vld [vmem:[%s17795_s2 + $0x1438] sm:$0xff]  ;;  %v703_v54 = vld [vmem:[%s17795_s2 + $0x1468] sm:$0xff] }
  0xf6   :  { %v7657_v59 = vpack.c.bf16 %v697_v49, %v692_v47 }
  0xf8   :  { %7290 = vmatpush1.bf16.msra.mxu0 %v7289_v61  ;;  %7642 = vmatpush1.bf16.msra.mxu1 %v7641_v63  ;;  %v705_v61 = vld [vmem:[%s17795_s2 + $0x1478] sm:$0xff]  ;;  %v702_v63 = vld [vmem:[%s17795_s2 + $0x1460] sm:$0xff] }
  0xf9   :  { %7292 = vmatprep.subr.bf16.mxu0 %v7291_v1  ;;  %7644 = vmatprep.subr.bf16.mxu1 %v7643_v5 }
  0xfc   :  { %7294 = vmatpush1.bf16.msra.mxu0 %v7293_v10  ;;  %7646 = vmatpush1.bf16.msra.mxu1 %v7645_v11 }
  0xfd   :  { %7296 = vmatprep.subr.bf16.mxu0 %v7295_v13  ;;  %7648 = vmatprep.subr.bf16.mxu1 %v7647_v18 }
 0x100   :  { %7298 = vmatpush1.bf16.msra.mxu0 %v7297_v24  ;;  %7650 = vmatpush1.bf16.msra.mxu1 %v7649_v27 }
 0x101   :  { %7300 = vmatprep.subr.bf16.mxu0 %v7299_v28  ;;  %7652 = vmatprep.subr.bf16.mxu1 %v7651_v34 }
 0x104   :  { %7302 = vmatpush1.bf16.msra.mxu0 %v7301_v42  ;;  %7654 = vmatpush1.bf16.msra.mxu1 %v7653_v43 }
 0x105   :  { %7304 = vmatprep.subr.bf16.mxu0 %v7303_v44 }
 0x106   :  { %19 = vsyncpa [#allocation4], 0  ;;  %7656 = vmatprep.subr.bf16.mxu1 %v7655_v48  ;;  %v7659_v1 = vpack.c.bf16 %v708_v55, %v703_v54  ;;  %v707_v2 = vld [vmem:[%s17795_s2 + $0x1488] sm:$0xff]  ;;  %v716_v4 = vld [vmem:[%s17795_s2 + $0x14d0] sm:$0xff]  ;;  %v11482_v5 = vcombine.high %v11454_v53, %v11454_v53  ;;  %v7309_v8 = vpack.c.bf16 %v705_v61, %v700_v58  ;;  %vm9746_vm0 = vmmov 0   ;;  %s9749_s17 = smov [#allocation3]  }
 0x107   :  { %v711_v3 = vld [vmem:[%s17795_s2 + $0x14a8] sm:$0xff]  ;;  %1299 = vmatmul.mubr.f32.vlgmr.msra.gmra.mrb[0].mxu0 %v11053_v15  ;;  %v713_v6 = vld [vmem:[%s17795_s2 + $0x14b8] sm:$0xff]  ;;  %v718_v7 = vld [vmem:[%s17795_s2 + $0x14e0] sm:$0xff]  ;;  %1725 = vmatmul.mubr.f32.vlgmr.msra.gmra.mrb[0].mxu1 %v11053_v15  ;;  %v7661_v50 = vpack.c.bf16 %v707_v2, %v702_v63  ;;  %vm2478_vm1 = vcmask 719872   ;;  %s6615_s18 = sshll.u32 %s9749_s17, 4  ;;  %vm6607_vm2 = vcmask 9216   ;;  %s6616_s18 = int_to_ptr.vmem [resolvable:$true] %s6615_s18 }
 0x108   :  { %7306 = vmatpush1.bf16.msra.mxu0 %v7305_v57  ;;  %7658 = vmatpush1.bf16.msra.mxu1 %v7657_v59  ;;  %v7311_v9 = vpack.c.bf16 %v716_v4, %v711_v3  ;;  %v710_v10 = vld [vmem:[%s17795_s2 + $0x14a0] sm:$0xff]  ;;  %v715_v11 = vld [vmem:[%s17795_s2 + $0x14c8] sm:$0xff]  ;;  %v712_v13 = vld [vmem:[%s17795_s2 + $0x14b0] sm:$0xff]  ;;  %v7663_v14 = vpack.c.bf16 %v718_v7, %v713_v6  ;;  %s9719_s19 = scalar_lea.vmem %s6616_s18, 32  ;;  %p9724_p1 = scmp.lt.s32.totalorder %s6616_s18, %s6616_s18 }
 0x109   :  { %7308 = vmatprep.subr.bf16.mxu0 %v7307_v60  ;;  %7660 = vmatprep.subr.bf16.mxu1 %v7659_v1  ;;  %v717_v16 = vld [vmem:[%s17795_s2 + $0x14d8] sm:$0xff]  ;;  %v726_v18 = vld [vmem:[%s17795_s2 + $0x1520] sm:$0xff]  ;;  %v723_v19 = vld [vmem:[%s17795_s2 + $0x1508] sm:$0xff]  ;;  %v7313_v21 = vpack.c.bf16 %v715_v11, %v710_v10  ;;  %p9720_p0 = scmp.ne.s32.totalorder %s6616_s18, %s9719_s19  ;;  %p9725_p2 = scmp.lt.s32.totalorder %s9719_s19, %s9719_s19 }
 0x10a   :  { %v721_v17 = vld [vmem:[%s17795_s2 + $0x14f8] sm:$0xff]  ;;  %1369 = vmatprep.mubr.f32.mxu0 %v11482_v5  ;;  %v728_v20 = vld [vmem:[%s17795_s2 + $0x1530] sm:$0xff]  ;;  %1795 = vmatprep.mubr.f32.mxu1 %v11482_v5  ;;  %v7665_v22 = vpack.c.bf16 %v717_v16, %v712_v13  ;;  %v722_v28 = vld [vmem:[%s17795_s2 + $0x1500] sm:$0xff] }
 0x10b   :  { %v7315_v23 = vpack.c.bf16 %v726_v18, %v721_v17  ;;  %v720_v24 = vld [vmem:[%s17795_s2 + $0x14f0] sm:$0xff]  ;;  %v725_v27 = vld [vmem:[%s17795_s2 + $0x1518] sm:$0xff]  ;;  %v7667_v29 = vpack.c.bf16 %v728_v20, %v723_v19  ;;  %v727_v31 = vld [vmem:[%s17795_s2 + $0x1528] sm:$0xff]  ;;  %p9726_p3 = por %p9725_p2, %p9724_p1 }
 0x10c   :  { %7310 = vmatpush1.bf16.msra.mxu0 %v7309_v8  ;;  %7662 = vmatpush1.bf16.msra.mxu1 %v7661_v50  ;;  %v731_v32 = vld [vmem:[%s17795_s2 + $0x1548] sm:$0xff]  ;;  %v736_v34 = vld [vmem:[%s17795_s2 + $0x1570] sm:$0xff]  ;;  %v733_v35 = vld [vmem:[%s17795_s2 + $0x1558] sm:$0xff]  ;;  %v7317_v37 = vpack.c.bf16 %v725_v27, %v720_v24  ;;  %v7669_v38 = vpack.c.bf16 %v727_v31, %v722_v28 }
 0x10d   :  { %7312 = vmatprep.subr.bf16.mxu0 %v7311_v9  ;;  %7664 = vmatprep.subr.bf16.mxu1 %v7663_v14  ;;  %v738_v36 = vld [vmem:[%s17795_s2 + $0x1580] sm:$0xff]  ;;  %v7319_v39 = vpack.c.bf16 %v736_v34, %v731_v32  ;;  %v735_v43 = vld [vmem:[%s17795_s2 + $0x1568] sm:$0xff]  ;;  %v732_v44 = vld [vmem:[%s17795_s2 + $0x1550] sm:$0xff]  ;;  %p9727_p4 = pnand %p9726_p3, %p9720_p0 }
 0x10e   :  { %v730_v42 = vld [vmem:[%s17795_s2 + $0x1540] sm:$0xff]  ;;  %v7671_v45 = vpack.c.bf16 %v738_v36, %v733_v35  ;;  %v737_v46 = vld [vmem:[%s17795_s2 + $0x1578] sm:$0xff]  ;;  %v743_v49 = vld [vmem:[%s17795_s2 + $0x15a8] sm:$0xff] }
 0x10f   :  { %v741_v47 = vld [vmem:[%s17795_s2 + $0x1598] sm:$0xff]  ;;  %v746_v48 = vld [vmem:[%s17795_s2 + $0x15c0] sm:$0xff]  ;;  %v748_v51 = vld [vmem:[%s17795_s2 + $0x15d0] sm:$0xff]  ;;  %v7321_v52 = vpack.c.bf16 %v735_v43, %v730_v42  ;;  %v7673_v54 = vpack.c.bf16 %v737_v46, %v732_v44 }
 0x110   :  { %7314 = vmatpush1.bf16.msra.mxu0 %v7313_v21  ;;  %7666 = vmatpush1.bf16.msra.mxu1 %v7665_v22  ;;  %v7323_v55 = vpack.c.bf16 %v746_v48, %v741_v47  ;;  %v740_v57 = vld [vmem:[%s17795_s2 + $0x1590] sm:$0xff]  ;;  %v745_v58 = vld [vmem:[%s17795_s2 + $0x15b8] sm:$0xff]  ;;  %v742_v59 = vld [vmem:[%s17795_s2 + $0x15a0] sm:$0xff]  ;;  %v7675_v60 = vpack.c.bf16 %v748_v51, %v743_v49 }
 0x111   :  { %7316 = vmatprep.subr.bf16.mxu0 %v7315_v23  ;;  %7668 = vmatprep.subr.bf16.mxu1 %v7667_v29  ;;  %v747_v61 = vld [vmem:[%s17795_s2 + $0x15c8] sm:$0xff]  ;;  %v756_v1 = vld [vmem:[%s17795_s2 + $0x1610] sm:$0xff]  ;;  %v753_v2 = vld [vmem:[%s17795_s2 + $0x15f8] sm:$0xff]  ;;  %v7325_v4 = vpack.c.bf16 %v745_v58, %v740_v57 }
 0x112   :  { %v751_v63 = vld [vmem:[%s17795_s2 + $0x15e8] sm:$0xff]  ;;  %v758_v3 = vld [vmem:[%s17795_s2 + $0x1620] sm:$0xff]  ;;  %v7677_v6 = vpack.c.bf16 %v747_v61, %v742_v59  ;;  %v752_v9 = vld [vmem:[%s17795_s2 + $0x15f0] sm:$0xff] }
 0x113   :  { %v7327_v7 = vpack.c.bf16 %v756_v1, %v751_v63  ;;  %v750_v8 = vld [vmem:[%s17795_s2 + $0x15e0] sm:$0xff]  ;;  %v755_v50 = vld [vmem:[%s17795_s2 + $0x1608] sm:$0xff]  ;;  %v7679_v10 = vpack.c.bf16 %v758_v3, %v753_v2  ;;  %v757_v11 = vld [vmem:[%s17795_s2 + $0x1618] sm:$0xff] }
 0x114   :  { %7318 = vmatpush1.bf16.msra.mxu0 %v7317_v37  ;;  %7670 = vmatpush1.bf16.msra.mxu1 %v7669_v38  ;;  %v761_v13 = vld [vmem:[%s17795_s2 + $0x1638] sm:$0xff]  ;;  %v766_v14 = vld [vmem:[%s17795_s2 + $0x1660] sm:$0xff]  ;;  %v763_v16 = vld [vmem:[%s17795_s2 + $0x1648] sm:$0xff]  ;;  %v7329_v18 = vpack.c.bf16 %v755_v50, %v750_v8  ;;  %v7681_v19 = vpack.c.bf16 %v757_v11, %v752_v9 }
 0x115   :  { %7320 = vmatprep.subr.bf16.mxu0 %v7319_v39  ;;  %7672 = vmatprep.subr.bf16.mxu1 %v7671_v45  ;;  %v768_v17 = vld [vmem:[%s17795_s2 + $0x1670] sm:$0xff]  ;;  %v7331_v20 = vpack.c.bf16 %v766_v14, %v761_v13  ;;  %v765_v22 = vld [vmem:[%s17795_s2 + $0x1658] sm:$0xff]  ;;  %v762_v23 = vld [vmem:[%s17795_s2 + $0x1640] sm:$0xff] }
 0x116   :  { %v760_v21 = vld [vmem:[%s17795_s2 + $0x1630] sm:$0xff]  ;;  %v7683_v24 = vpack.c.bf16 %v768_v17, %v763_v16  ;;  %v767_v27 = vld [vmem:[%s17795_s2 + $0x1668] sm:$0xff]  ;;  %v773_v31 = vld [vmem:[%s17795_s2 + $0x1698] sm:$0xff] }
 0x117   :  { %v771_v28 = vld [vmem:[%s17795_s2 + $0x1688] sm:$0xff]  ;;  %v776_v29 = vld [vmem:[%s17795_s2 + $0x16b0] sm:$0xff]  ;;  %v778_v32 = vld [vmem:[%s17795_s2 + $0x16c0] sm:$0xff]  ;;  %v7333_v34 = vpack.c.bf16 %v765_v22, %v760_v21  ;;  %v7685_v35 = vpack.c.bf16 %v767_v27, %v762_v23 }
 0x118   :  { %7322 = vmatpush1.bf16.msra.mxu0 %v7321_v52  ;;  %7674 = vmatpush1.bf16.msra.mxu1 %v7673_v54  ;;  %v7335_v36 = vpack.c.bf16 %v776_v29, %v771_v28  ;;  %v770_v37 = vld [vmem:[%s17795_s2 + $0x1680] sm:$0xff]  ;;  %v775_v38 = vld [vmem:[%s17795_s2 + $0x16a8] sm:$0xff]  ;;  %v772_v39 = vld [vmem:[%s17795_s2 + $0x1690] sm:$0xff]  ;;  %v7687_v42 = vpack.c.bf16 %v778_v32, %v773_v31 }
 0x119   :  { %7324 = vmatprep.subr.bf16.mxu0 %v7323_v55  ;;  %7676 = vmatprep.subr.bf16.mxu1 %v7675_v60  ;;  %v777_v43 = vld [vmem:[%s17795_s2 + $0x16b8] sm:$0xff]  ;;  %v786_v45 = vld [vmem:[%s17795_s2 + $0x1700] sm:$0xff]  ;;  %v783_v46 = vld [vmem:[%s17795_s2 + $0x16e8] sm:$0xff]  ;;  %v7337_v48 = vpack.c.bf16 %v775_v38, %v770_v37 }
 0x11a   :  { %v781_v44 = vld [vmem:[%s17795_s2 + $0x16d8] sm:$0xff]  ;;  %v788_v47 = vld [vmem:[%s17795_s2 + $0x1710] sm:$0xff]  ;;  %v7689_v49 = vpack.c.bf16 %v777_v43, %v772_v39  ;;  %v782_v55 = vld [vmem:[%s17795_s2 + $0x16e0] sm:$0xff] }
 0x11b   :  { %v7339_v51 = vpack.c.bf16 %v786_v45, %v781_v44  ;;  %v780_v52 = vld [vmem:[%s17795_s2 + $0x16d0] sm:$0xff]  ;;  %v785_v54 = vld [vmem:[%s17795_s2 + $0x16f8] sm:$0xff]  ;;  %v7691_v57 = vpack.c.bf16 %v788_v47, %v783_v46  ;;  %v787_v58 = vld [vmem:[%s17795_s2 + $0x1708] sm:$0xff] }
 0x11c   :  { %7326 = vmatpush1.bf16.msra.mxu0 %v7325_v4  ;;  %7678 = vmatpush1.bf16.msra.mxu1 %v7677_v6  ;;  %v791_v59 = vld [vmem:[%s17795_s2 + $0x1728] sm:$0xff]  ;;  %v796_v60 = vld [vmem:[%s17795_s2 + $0x1750] sm:$0xff]  ;;  %v793_v61 = vld [vmem:[%s17795_s2 + $0x1738] sm:$0xff]  ;;  %v7341_v1 = vpack.c.bf16 %v785_v54, %v780_v52  ;;  %v7693_v2 = vpack.c.bf16 %v787_v58, %v782_v55 }
 0x11d   :  { %7328 = vmatprep.subr.bf16.mxu0 %v7327_v7  ;;  %7680 = vmatprep.subr.bf16.mxu1 %v7679_v10  ;;  %v798_v63 = vld [vmem:[%s17795_s2 + $0x1760] sm:$0xff]  ;;  %v7343_v3 = vpack.c.bf16 %v796_v60, %v791_v59  ;;  %v795_v6 = vld [vmem:[%s17795_s2 + $0x1748] sm:$0xff]  ;;  %v792_v7 = vld [vmem:[%s17795_s2 + $0x1730] sm:$0xff] }
 0x11e   :  { %v790_v4 = vld [vmem:[%s17795_s2 + $0x1720] sm:$0xff]  ;;  %v7695_v8 = vpack.c.bf16 %v798_v63, %v793_v61  ;;  %v797_v50 = vld [vmem:[%s17795_s2 + $0x1758] sm:$0xff]  ;;  %v803_v11 = vld [vmem:[%s17795_s2 + $0x1788] sm:$0xff] }
 0x11f   :  { %v801_v9 = vld [vmem:[%s17795_s2 + $0x1778] sm:$0xff]  ;;  %v806_v10 = vld [vmem:[%s17795_s2 + $0x17a0] sm:$0xff]  ;;  %v808_v13 = vld [vmem:[%s17795_s2 + $0x17b0] sm:$0xff]  ;;  %v7345_v14 = vpack.c.bf16 %v795_v6, %v790_v4  ;;  %v7697_v16 = vpack.c.bf16 %v797_v50, %v792_v7 }
 0x120   :  { %7330 = vmatpush1.bf16.msra.mxu0 %v7329_v18  ;;  %7682 = vmatpush1.bf16.msra.mxu1 %v7681_v19  ;;  %v7347_v17 = vpack.c.bf16 %v806_v10, %v801_v9  ;;  %v800_v18 = vld [vmem:[%s17795_s2 + $0x1770] sm:$0xff]  ;;  %v805_v19 = vld [vmem:[%s17795_s2 + $0x1798] sm:$0xff]  ;;  %v7699_v21 = vpack.c.bf16 %v808_v13, %v803_v11  ;;  %v807_v22 = vld [vmem:[%s17795_s2 + $0x17a8] sm:$0xff] }
 0x121   :  { %7332 = vmatprep.subr.bf16.mxu0 %v7331_v20  ;;  %7684 = vmatprep.subr.bf16.mxu1 %v7683_v24  ;;  %v802_v20 = vld [vmem:[%s17795_s2 + $0x1780] sm:$0xff]  ;;  %v811_v23 = vld [vmem:[%s17795_s2 + $0x17c8] sm:$0xff]  ;;  %v816_v24 = vld [vmem:[%s17795_s2 + $0x17f0] sm:$0xff]  ;;  %v7349_v29 = vpack.c.bf16 %v805_v19, %v800_v18 }
 0x122   :  { %v813_v27 = vld [vmem:[%s17795_s2 + $0x17d8] sm:$0xff]  ;;  %v818_v28 = vld [vmem:[%s17795_s2 + $0x1800] sm:$0xff]  ;;  %v7701_v31 = vpack.c.bf16 %v807_v22, %v802_v20  ;;  %v7351_v32 = vpack.c.bf16 %v816_v24, %v811_v23  ;;  %v823_v43 = vld [vmem:[%s17795_s2 + $0x1828] sm:$0xff] }
 0x123   :  { %v7703_v37 = vpack.c.bf16 %v818_v28, %v813_v27  ;;  %v817_v38 = vld [vmem:[%s17795_s2 + $0x17f8] sm:$0xff]  ;;  %v828_v44 = vld [vmem:[%s17795_s2 + $0x1850] sm:$0xff]  ;;  %v827_v54 = vld [vmem:[%s17795_s2 + $0x1848] sm:$0xff] }
 0x124   :  { %7334 = vmatpush1.bf16.msra.mxu0 %v7333_v34  ;;  %7686 = vmatpush1.bf16.msra.mxu1 %v7685_v35  ;;  %v810_v34 = vld [vmem:[%s17795_s2 + $0x17c0] sm:$0xff]  ;;  %v815_v35 = vld [vmem:[%s17795_s2 + $0x17e8] sm:$0xff]  ;;  %v821_v39 = vld [vmem:[%s17795_s2 + $0x1818] sm:$0xff]  ;;  %v7707_v52 = vpack.c.bf16 %v828_v44, %v823_v43 }
 0x125   :  { %7336 = vmatprep.subr.bf16.mxu0 %v7335_v36  ;;  %7688 = vmatprep.subr.bf16.mxu1 %v7687_v42  ;;  %v812_v36 = vld [vmem:[%s17795_s2 + $0x17d0] sm:$0xff]  ;;  %v826_v42 = vld [vmem:[%s17795_s2 + $0x1840] sm:$0xff]  ;;  %v7353_v45 = vpack.c.bf16 %v815_v35, %v810_v34  ;;  %v831_v55 = vld [vmem:[%s17795_s2 + $0x1868] sm:$0xff] }
 0x126   :  { %v7705_v46 = vpack.c.bf16 %v817_v38, %v812_v36  ;;  %v7355_v47 = vpack.c.bf16 %v826_v42, %v821_v39  ;;  %v833_v58 = vld [vmem:[%s17795_s2 + $0x1878] sm:$0xff]  ;;  %v838_v59 = vld [vmem:[%s17795_s2 + $0x18a0] sm:$0xff]  ;;  %v843_v50 = vld [vmem:[%s17795_s2 + $0x18c8] sm:$0xff] }
 0x127   :  { %v7711_v4 = vpack.c.bf16 %v838_v59, %v833_v58  ;;  %v837_v6 = vld [vmem:[%s17795_s2 + $0x1898] sm:$0xff]  ;;  %v848_v9 = vld [vmem:[%s17795_s2 + $0x18f0] sm:$0xff]  ;;  %v847_v19 = vld [vmem:[%s17795_s2 + $0x18e8] sm:$0xff] }
 0x128   :  { %7338 = vmatpush1.bf16.msra.mxu0 %v7337_v48  ;;  %7690 = vmatpush1.bf16.msra.mxu1 %v7689_v49  ;;  %v820_v48 = vld [vmem:[%s17795_s2 + $0x1810] sm:$0xff]  ;;  %v825_v49 = vld [vmem:[%s17795_s2 + $0x1838] sm:$0xff]  ;;  %v7715_v18 = vpack.c.bf16 %v848_v9, %v843_v50  ;;  %v851_v20 = vld [vmem:[%s17795_s2 + $0x1908] sm:$0xff] }
 0x129   :  { %7340 = vmatprep.subr.bf16.mxu0 %v7339_v51  ;;  %7692 = vmatprep.subr.bf16.mxu1 %v7691_v57  ;;  %v822_v51 = vld [vmem:[%s17795_s2 + $0x1820] sm:$0xff]  ;;  %v836_v57 = vld [vmem:[%s17795_s2 + $0x1890] sm:$0xff]  ;;  %v7357_v60 = vpack.c.bf16 %v825_v49, %v820_v48  ;;  %v841_v7 = vld [vmem:[%s17795_s2 + $0x18b8] sm:$0xff] }
 0x12a   :  { %v7709_v61 = vpack.c.bf16 %v827_v54, %v822_v51  ;;  %v7359_v63 = vpack.c.bf16 %v836_v57, %v831_v55  ;;  %v853_v22 = vld [vmem:[%s17795_s2 + $0x1918] sm:$0xff]  ;;  %v858_v23 = vld [vmem:[%s17795_s2 + $0x1940] sm:$0xff]  ;;  %v863_v38 = vld [vmem:[%s17795_s2 + $0x1968] sm:$0xff] }
 0x12b   :  { %v7719_v34 = vpack.c.bf16 %v858_v23, %v853_v22  ;;  %v857_v35 = vld [vmem:[%s17795_s2 + $0x1938] sm:$0xff]  ;;  %v868_v39 = vld [vmem:[%s17795_s2 + $0x1990] sm:$0xff]  ;;  %v867_v49 = vld [vmem:[%s17795_s2 + $0x1988] sm:$0xff] }
 0x12c   :  { %7342 = vmatpush1.bf16.msra.mxu0 %v7341_v1  ;;  %7694 = vmatpush1.bf16.msra.mxu1 %v7693_v2  ;;  %v830_v1 = vld [vmem:[%s17795_s2 + $0x1860] sm:$0xff]  ;;  %v835_v2 = vld [vmem:[%s17795_s2 + $0x1888] sm:$0xff]  ;;  %v861_v36 = vld [vmem:[%s17795_s2 + $0x1958] sm:$0xff]  ;;  %v7723_v48 = vpack.c.bf16 %v868_v39, %v863_v38 }
 0x12d   :  { %7344 = vmatprep.subr.bf16.mxu0 %v7343_v3  ;;  %7696 = vmatprep.subr.bf16.mxu1 %v7695_v8  ;;  %v832_v3 = vld [vmem:[%s17795_s2 + $0x1870] sm:$0xff]  ;;  %v846_v8 = vld [vmem:[%s17795_s2 + $0x18e0] sm:$0xff]  ;;  %v7361_v10 = vpack.c.bf16 %v835_v2, %v830_v1  ;;  %v871_v51 = vld [vmem:[%s17795_s2 + $0x19a8] sm:$0xff] }
 0x12e   :  { %v7713_v11 = vpack.c.bf16 %v837_v6, %v832_v3  ;;  %v7363_v13 = vpack.c.bf16 %v846_v8, %v841_v7  ;;  %v873_v54 = vld [vmem:[%s17795_s2 + $0x19b8] sm:$0xff]  ;;  %v878_v55 = vld [vmem:[%s17795_s2 + $0x19e0] sm:$0xff]  ;;  %v9744_v6 = vmov 0.0   ;;  %v883_v7 = vld [vmem:[%s17795_s2 + $0x1a08] sm:$0xff] }
 0x12f   :  { %v7727_v1 = vpack.c.bf16 %v878_v55, %v873_v54  ;;  %v877_v2 = vld [vmem:[%s17795_s2 + $0x19d8] sm:$0xff]  ;;  %v888_v8 = vld [vmem:[%s17795_s2 + $0x1a30] sm:$0xff] }
 0x130   :  { %7346 = vmatpush1.bf16.msra.mxu0 %v7345_v14  ;;  %7698 = vmatpush1.bf16.msra.mxu1 %v7697_v16  ;;  %v840_v14 = vld [vmem:[%s17795_s2 + $0x18b0] sm:$0xff]  ;;  %v845_v16 = vld [vmem:[%s17795_s2 + $0x18d8] sm:$0xff] }
 0x131   :  { %7348 = vmatprep.subr.bf16.mxu0 %v7347_v17  ;;  %7700 = vmatprep.subr.bf16.mxu1 %v7699_v21  ;;  %v842_v17 = vld [vmem:[%s17795_s2 + $0x18c0] sm:$0xff]  ;;  %v856_v21 = vld [vmem:[%s17795_s2 + $0x1930] sm:$0xff]  ;;  %v7365_v24 = vpack.c.bf16 %v845_v16, %v840_v14  ;;  %v881_v3 = vld [vmem:[%s17795_s2 + $0x19f8] sm:$0xff]  ;;  %v7731_v16 = vpack.c.bf16 %v888_v8, %v883_v7 }
 0x132   :  { %v7717_v27 = vpack.c.bf16 %v847_v19, %v842_v17  ;;  %v7367_v28 = vpack.c.bf16 %v856_v21, %v851_v20  ;;  %v882_v14 = vld [vmem:[%s17795_s2 + $0x1a00] sm:$0xff]  ;;  %v887_v17 = vld [vmem:[%s17795_s2 + $0x1a28] sm:$0xff]  ;;  %v896_v19 = vld [vmem:[%s17795_s2 + $0x1a70] sm:$0xff] }
 0x133   :  { %v893_v20 = vld [vmem:[%s17795_s2 + $0x1a58] sm:$0xff]  ;;  %v898_v21 = vld [vmem:[%s17795_s2 + $0x1a80] sm:$0xff]  ;;  %v7733_v23 = vpack.c.bf16 %v887_v17, %v882_v14  ;;  %v927_v14 = vld [vmem:[%s17795_s2 + $0x1b68] sm:$0xff] }
 0x134   :  { %7350 = vmatpush1.bf16.msra.mxu0 %v7349_v29  ;;  %7702 = vmatpush1.bf16.msra.mxu1 %v7701_v31  ;;  %v850_v29 = vld [vmem:[%s17795_s2 + $0x1900] sm:$0xff]  ;;  %v855_v31 = vld [vmem:[%s17795_s2 + $0x1928] sm:$0xff] }
 0x135   :  { %7352 = vmatprep.subr.bf16.mxu0 %v7351_v32  ;;  %7704 = vmatprep.subr.bf16.mxu1 %v7703_v37  ;;  %v852_v32 = vld [vmem:[%s17795_s2 + $0x1910] sm:$0xff]  ;;  %v866_v37 = vld [vmem:[%s17795_s2 + $0x1980] sm:$0xff]  ;;  %v7369_v42 = vpack.c.bf16 %v855_v31, %v850_v29  ;;  %v7735_v31 = vpack.c.bf16 %v898_v21, %v893_v20  ;;  %v139_v17 = vld [vmem:[%s17795_s2 + $0x2c8] sm:$0xff] }
 0x136   :  { %v7721_v43 = vpack.c.bf16 %v857_v35, %v852_v32  ;;  %v7371_v44 = vpack.c.bf16 %v866_v37, %v861_v36  ;;  %v892_v29 = vld [vmem:[%s17795_s2 + $0x1a50] sm:$0xff]  ;;  %v897_v32 = vld [vmem:[%s17795_s2 + $0x1a78] sm:$0xff]  ;;  %v906_v35 = vld [vmem:[%s17795_s2 + $0x1ac0] sm:$0xff] }
 0x137   :  { %v903_v36 = vld [vmem:[%s17795_s2 + $0x1aa8] sm:$0xff]  ;;  %v908_v37 = vld [vmem:[%s17795_s2 + $0x1ad0] sm:$0xff]  ;;  %v7737_v39 = vpack.c.bf16 %v897_v32, %v892_v29  ;;  %v149_v32 = vld [vmem:[%s17795_s2 + $0x318] sm:$0xff] }
 0x138   :  { %7354 = vmatpush1.bf16.msra.mxu0 %v7353_v45  ;;  %7706 = vmatpush1.bf16.msra.mxu1 %v7705_v46  ;;  %v860_v45 = vld [vmem:[%s17795_s2 + $0x1950] sm:$0xff]  ;;  %v865_v46 = vld [vmem:[%s17795_s2 + $0x1978] sm:$0xff]  ;;  %v299_v20 = vld [vmem:[%s17795_s2 + $0x7c8] sm:$0xff] }
 0x139   :  { %7356 = vmatprep.subr.bf16.mxu0 %v7355_v47  ;;  %7708 = vmatprep.subr.bf16.mxu1 %v7707_v52  ;;  %v862_v47 = vld [vmem:[%s17795_s2 + $0x1960] sm:$0xff]  ;;  %v876_v52 = vld [vmem:[%s17795_s2 + $0x19d0] sm:$0xff]  ;;  %v7373_v57 = vpack.c.bf16 %v865_v46, %v860_v45  ;;  %v7739_v46 = vpack.c.bf16 %v908_v37, %v903_v36  ;;  %v219_v29 = vld [vmem:[%s17795_s2 + $0x548] sm:$0xff] }
 0x13a   :  { %v7725_v58 = vpack.c.bf16 %v867_v49, %v862_v47  ;;  %v7375_v59 = vpack.c.bf16 %v876_v52, %v871_v51  ;;  %v902_v45 = vld [vmem:[%s17795_s2 + $0x1aa0] sm:$0xff]  ;;  %v907_v47 = vld [vmem:[%s17795_s2 + $0x1ac8] sm:$0xff]  ;;  %v916_v49 = vld [vmem:[%s17795_s2 + $0x1b10] sm:$0xff] }
 0x13b   :  { %v913_v51 = vld [vmem:[%s17795_s2 + $0x1af8] sm:$0xff]  ;;  %v918_v52 = vld [vmem:[%s17795_s2 + $0x1b20] sm:$0xff]  ;;  %v7741_v55 = vpack.c.bf16 %v907_v47, %v902_v45 }
 0x13c   :  { %7358 = vmatpush1.bf16.msra.mxu0 %v7357_v60  ;;  %7710 = vmatpush1.bf16.msra.mxu1 %v7709_v61  ;;  %v870_v60 = vld [vmem:[%s17795_s2 + $0x19a0] sm:$0xff]  ;;  %v875_v61 = vld [vmem:[%s17795_s2 + $0x19c8] sm:$0xff]  ;;  %v309_v36 = vld [vmem:[%s17795_s2 + $0x818] sm:$0xff] }
 0x13d   :  { %7360 = vmatprep.subr.bf16.mxu0 %v7359_v63  ;;  %7712 = vmatprep.subr.bf16.mxu1 %v7711_v4  ;;  %v872_v63 = vld [vmem:[%s17795_s2 + $0x19b0] sm:$0xff]  ;;  %v886_v4 = vld [vmem:[%s17795_s2 + $0x1a20] sm:$0xff]  ;;  %v7377_v50 = vpack.c.bf16 %v875_v61, %v870_v60  ;;  %v7743_v61 = vpack.c.bf16 %v918_v52, %v913_v51  ;;  %v319_v51 = vld [vmem:[%s17795_s2 + $0x868] sm:$0xff] }
 0x13e   :  { %v7729_v9 = vpack.c.bf16 %v877_v2, %v872_v63  ;;  %v912_v60 = vld [vmem:[%s17795_s2 + $0x1af0] sm:$0xff]  ;;  %v917_v63 = vld [vmem:[%s17795_s2 + $0x1b18] sm:$0xff]  ;;  %v926_v2 = vld [vmem:[%s17795_s2 + $0x1b60] sm:$0xff] }
 0x13f   :  { %v7745_v8 = vpack.c.bf16 %v917_v63, %v912_v60  ;;  %v154_v47 = vld [vmem:[%s17795_s2 + $0x340] sm:$0xff]  ;;  %v164_v63 = vld [vmem:[%s17795_s2 + $0x390] sm:$0xff] }
 0x140   :  { %7362 = vmatpush1.bf16.msra.mxu0 %v7361_v10  ;;  %7714 = vmatpush1.bf16.msra.mxu1 %v7713_v11  ;;  %v7379_v10 = vpack.c.bf16 %v886_v4, %v881_v3  ;;  %v880_v11 = vld [vmem:[%s17795_s2 + $0x19f0] sm:$0xff]  ;;  %v923_v3 = vld [vmem:[%s17795_s2 + $0x1b48] sm:$0xff] }
 0x141   :  { %7364 = vmatprep.subr.bf16.mxu0 %v7363_v13  ;;  %7716 = vmatprep.subr.bf16.mxu1 %v7715_v18  ;;  %v885_v13 = vld [vmem:[%s17795_s2 + $0x1a18] sm:$0xff]  ;;  %v891_v18 = vld [vmem:[%s17795_s2 + $0x1a48] sm:$0xff]  ;;  %v928_v4 = vld [vmem:[%s17795_s2 + $0x1b70] sm:$0xff] }
 0x142   :  { %v7381_v22 = vpack.c.bf16 %v885_v13, %v880_v11  ;;  %v922_v11 = vld [vmem:[%s17795_s2 + $0x1b40] sm:$0xff]  ;;  %v7747_v13 = vpack.c.bf16 %v928_v4, %v923_v3  ;;  %v329_v3 = vld [vmem:[%s17795_s2 + $0x8b8] sm:$0xff] }
 0x144   :  { %7366 = vmatpush1.bf16.msra.mxu0 %v7365_v24  ;;  %7718 = vmatpush1.bf16.msra.mxu1 %v7717_v27  ;;  %v7383_v24 = vpack.c.bf16 %v896_v19, %v891_v18  ;;  %v890_v27 = vld [vmem:[%s17795_s2 + $0x1a40] sm:$0xff]  ;;  %v994_v18 = vcombine.high %v11432_v41, %v11432_v41  ;;  %v59_v41 = vld [vmem:[%s17795_s2 + $0x48] sm:$0xff] }
 0x145   :  { %7368 = vmatprep.subr.bf16.mxu0 %v7367_v28  ;;  %7720 = vmatprep.subr.bf16.mxu1 %v7719_v34  ;;  %v895_v28 = vld [vmem:[%s17795_s2 + $0x1a68] sm:$0xff]  ;;  %v901_v34 = vld [vmem:[%s17795_s2 + $0x1a98] sm:$0xff]  ;;  %v294_v19 = vld [vmem:[%s17795_s2 + $0x7a0] sm:$0xff] }
 0x146   :  { %v7385_v38 = vpack.c.bf16 %v895_v28, %v890_v27  ;;  %v214_v27 = vld [vmem:[%s17795_s2 + $0x520] sm:$0xff]  ;;  %v7783_v28 = vpack.c.bf16 %v299_v20, %v294_v19 }
 0x147   :  { %1370 = vmatmul.mubr.f32.vlgmr.msra.gmra.mrb[0].mxu0 %v11454_v53  ;;  %1796 = vmatmul.mubr.f32.vlgmr.msra.gmra.mrb[0].mxu1 %v11454_v53  ;;  %v94_v20 = vld [vmem:[%s17795_s2 + $0x160] sm:$0xff] }
 0x148   :  { %7370 = vmatpush1.bf16.msra.mxu0 %v7369_v42  ;;  %7722 = vmatpush1.bf16.msra.mxu1 %v7721_v43  ;;  %v7387_v42 = vpack.c.bf16 %v906_v35, %v901_v34  ;;  %v900_v43 = vld [vmem:[%s17795_s2 + $0x1a90] sm:$0xff]  ;;  %v12047_v34 = vrot.slane %v994_v18, %v10097_v12 }
 0x149   :  { %7372 = vmatprep.subr.bf16.mxu0 %v7371_v44  ;;  %7724 = vmatprep.subr.bf16.mxu1 %v7723_v48  ;;  %v905_v44 = vld [vmem:[%s17795_s2 + $0x1ab8] sm:$0xff]  ;;  %v911_v48 = vld [vmem:[%s17795_s2 + $0x1ae8] sm:$0xff]  ;;  %v304_v35 = vld [vmem:[%s17795_s2 + $0x7f0] sm:$0xff] }
 0x14a   :  { %1440 = vmatprep.mubr.f32.mxu0 %v9744_v6  ;;  %1866 = vmatprep.mubr.f32.mxu1 %v9744_v6  ;;  %v7389_v54 = vpack.c.bf16 %v905_v44, %v900_v43  ;;  %v69_v43 = vld [vmem:[%s17795_s2 + $0x98] sm:$0xff]  ;;  %v224_v44 = vld [vmem:[%s17795_s2 + $0x570] sm:$0xff]  ;;  %v7787_v45 = vpack.c.bf16 %v309_v36, %v304_v35 }
 0x14b   :  { %v104_v36 = vld [vmem:[%s17795_s2 + $0x1b0] sm:$0xff] }
 0x14c   :  { %7374 = vmatpush1.bf16.msra.mxu0 %v7373_v57  ;;  %7726 = vmatpush1.bf16.msra.mxu1 %v7725_v58  ;;  %v7391_v57 = vpack.c.bf16 %v916_v49, %v911_v48  ;;  %v910_v58 = vld [vmem:[%s17795_s2 + $0x1ae0] sm:$0xff]  ;;  %v159_v48 = vld [vmem:[%s17795_s2 + $0x368] sm:$0xff] }
 0x14d   :  { %7376 = vmatprep.subr.bf16.mxu0 %v7375_v59  ;;  %7728 = vmatprep.subr.bf16.mxu1 %v7727_v1  ;;  %v915_v59 = vld [vmem:[%s17795_s2 + $0x1b08] sm:$0xff]  ;;  %v921_v1 = vld [vmem:[%s17795_s2 + $0x1b38] sm:$0xff]  ;;  %v314_v49 = vld [vmem:[%s17795_s2 + $0x840] sm:$0xff] }
 0x14e   :  { %v7393_v7 = vpack.c.bf16 %v915_v59, %v910_v58  ;;  %v79_v58 = vld [vmem:[%s17795_s2 + $0xe8] sm:$0xff]  ;;  %v234_v59 = vld [vmem:[%s17795_s2 + $0x5c0] sm:$0xff]  ;;  %v7791_v60 = vpack.c.bf16 %v319_v51, %v314_v49 }
 0x14f   :  { %v114_v51 = vld [vmem:[%s17795_s2 + $0x200] sm:$0xff] }
 0x150   :  { %7378 = vmatpush1.bf16.msra.mxu0 %v7377_v50  ;;  %7730 = vmatpush1.bf16.msra.mxu1 %v7729_v9  ;;  %v7395_v50 = vpack.c.bf16 %v926_v2, %v921_v1  ;;  %v920_v9 = vld [vmem:[%s17795_s2 + $0x1b30] sm:$0xff]  ;;  %v169_v1 = vld [vmem:[%s17795_s2 + $0x3b8] sm:$0xff] }
 0x151   :  { %7380 = vmatprep.subr.bf16.mxu0 %v7379_v10  ;;  %7732 = vmatprep.subr.bf16.mxu1 %v7731_v16  ;;  %v925_v10 = vld [vmem:[%s17795_s2 + $0x1b58] sm:$0xff]  ;;  %v134_v16 = vld [vmem:[%s17795_s2 + $0x2a0] sm:$0xff]  ;;  %v324_v2 = vld [vmem:[%s17795_s2 + $0x890] sm:$0xff] }
 0x152   :  { %v7397_v21 = vpack.c.bf16 %v925_v10, %v920_v9  ;;  %v244_v9 = vld [vmem:[%s17795_s2 + $0x610] sm:$0xff]  ;;  %v249_v10 = vld [vmem:[%s17795_s2 + $0x638] sm:$0xff] }
 0x153   :  { %v7797_v18 = vpack.c.bf16 %v249_v10, %v244_v9  ;;  %v459_v9 = vld [vmem:[%s17795_s2 + $0xcc8] sm:$0xff] }
 0x154   :  { %7382 = vmatpush1.bf16.msra.mxu0 %v7381_v22  ;;  %7734 = vmatpush1.bf16.msra.mxu1 %v7733_v23  ;;  %v7749_v22 = vpack.c.bf16 %v927_v14, %v922_v11  ;;  %v7751_v23 = vpack.c.bf16 %v139_v17, %v134_v16  ;;  %v174_v11 = vld [vmem:[%s17795_s2 + $0x3e0] sm:$0xff]  ;;  %v339_v16 = vld [vmem:[%s17795_s2 + $0x908] sm:$0xff] }
 0x155   :  { %7384 = vmatprep.subr.bf16.mxu0 %v7383_v24  ;;  %7736 = vmatprep.subr.bf16.mxu1 %v7735_v31  ;;  %v54_v24 = vld [vmem:[%s17795_s2 + $0x20] sm:$0xff]  ;;  %v144_v31 = vld [vmem:[%s17795_s2 + $0x2f0] sm:$0xff]  ;;  %v619_v10 = vld [vmem:[%s17795_s2 + $0x11c8] sm:$0xff] }
 0x156   :  { %v7753_v37 = vpack.c.bf16 %v59_v41, %v54_v24  ;;  %v334_v14 = vld [vmem:[%s17795_s2 + $0x8e0] sm:$0xff]  ;;  %v259_v24 = vld [vmem:[%s17795_s2 + $0x688] sm:$0xff]  ;;  %v184_v41 = vld [vmem:[%s17795_s2 + $0x430] sm:$0xff] }
 0x158   :  { %7386 = vmatpush1.bf16.msra.mxu0 %v7385_v38  ;;  %7738 = vmatpush1.bf16.msra.mxu1 %v7737_v39  ;;  %v7785_v38 = vpack.c.bf16 %v219_v29, %v214_v27  ;;  %v7755_v39 = vpack.c.bf16 %v149_v32, %v144_v31  ;;  %v189_v27 = vld [vmem:[%s17795_s2 + $0x458] sm:$0xff] }
 0x159   :  { %7388 = vmatprep.subr.bf16.mxu0 %v7387_v42  ;;  %7740 = vmatprep.subr.bf16.mxu1 %v7739_v46  ;;  %v64_v42 = vld [vmem:[%s17795_s2 + $0x70] sm:$0xff]  ;;  %v229_v46 = vld [vmem:[%s17795_s2 + $0x598] sm:$0xff]  ;;  %v7771_v35 = vpack.c.bf16 %v189_v27, %v184_v41 }
 0x15a   :  { %v7757_v52 = vpack.c.bf16 %v69_v43, %v64_v42  ;;  %v349_v29 = vld [vmem:[%s17795_s2 + $0x958] sm:$0xff]  ;;  %v194_v43 = vld [vmem:[%s17795_s2 + $0x480] sm:$0xff] }
 0x15b   :  { %v269_v42 = vld [vmem:[%s17795_s2 + $0x6d8] sm:$0xff] }
 0x15c   :  { %7390 = vmatpush1.bf16.msra.mxu0 %v7389_v54  ;;  %7742 = vmatpush1.bf16.msra.mxu1 %v7741_v55  ;;  %v7789_v54 = vpack.c.bf16 %v229_v46, %v224_v44  ;;  %v7759_v55 = vpack.c.bf16 %v159_v48, %v154_v47  ;;  %v199_v44 = vld [vmem:[%s17795_s2 + $0x4a8] sm:$0xff] }
 0x15d   :  { %7392 = vmatprep.subr.bf16.mxu0 %v7391_v57  ;;  %7744 = vmatprep.subr.bf16.mxu1 %v7743_v61  ;;  %v74_v57 = vld [vmem:[%s17795_s2 + $0xc0] sm:$0xff]  ;;  %v239_v61 = vld [vmem:[%s17795_s2 + $0x5e8] sm:$0xff]  ;;  %v7775_v49 = vpack.c.bf16 %v199_v44, %v194_v43 }
 0x15e   :  { %v7761_v4 = vpack.c.bf16 %v79_v58, %v74_v57  ;;  %v359_v46 = vld [vmem:[%s17795_s2 + $0x9a8] sm:$0xff]  ;;  %v204_v58 = vld [vmem:[%s17795_s2 + $0x4d0] sm:$0xff] }
 0x15f   :  { %v279_v57 = vld [vmem:[%s17795_s2 + $0x728] sm:$0xff] }
 0x160   :  { %7394 = vmatpush1.bf16.msra.mxu0 %v7393_v7  ;;  %7746 = vmatpush1.bf16.msra.mxu1 %v7745_v8  ;;  %v7793_v7 = vpack.c.bf16 %v239_v61, %v234_v59  ;;  %v7763_v8 = vpack.c.bf16 %v169_v1, %v164_v63  ;;  %v209_v59 = vld [vmem:[%s17795_s2 + $0x4f8] sm:$0xff] }
 0x161   :  { %7396 = vmatprep.subr.bf16.mxu0 %v7395_v50  ;;  %7748 = vmatprep.subr.bf16.mxu1 %v7747_v13  ;;  %v89_v50 = vld [vmem:[%s17795_s2 + $0x138] sm:$0xff]  ;;  %v179_v13 = vld [vmem:[%s17795_s2 + $0x408] sm:$0xff] }
 0x162   :  { %v7767_v19 = vpack.c.bf16 %v179_v13, %v174_v11  ;;  %v369_v61 = vld [vmem:[%s17795_s2 + $0x9f8] sm:$0xff] }
 0x164   :  { %7398 = vmatpush1.bf16.msra.mxu0 %v7397_v21  ;;  %7750 = vmatpush1.bf16.msra.mxu1 %v7749_v22  ;;  %v99_v21 = vld [vmem:[%s17795_s2 + $0x188] sm:$0xff]  ;;  %v254_v22 = vld [vmem:[%s17795_s2 + $0x660] sm:$0xff] }
 0x165   :  { %7752 = vmatprep.subr.bf16.mxu0 %v7751_v23  ;;  %7784 = vmatprep.subr.bf16.mxu1 %v7783_v28  ;;  %v7799_v23 = vpack.c.bf16 %v339_v16, %v334_v14  ;;  %v344_v28 = vld [vmem:[%s17795_s2 + $0x930] sm:$0xff]  ;;  %v7769_v31 = vpack.c.bf16 %v99_v21, %v94_v20  ;;  %v7801_v32 = vpack.c.bf16 %v259_v24, %v254_v22  ;;  %v374_v16 = vld [vmem:[%s17795_s2 + $0xa20] sm:$0xff]  ;;  %v539_v20 = vld [vmem:[%s17795_s2 + $0xf48] sm:$0xff] }
 0x166   :  { %v464_v21 = vld [vmem:[%s17795_s2 + $0xcf0] sm:$0xff]  ;;  %v469_v22 = vld [vmem:[%s17795_s2 + $0xd18] sm:$0xff] }
 0x167   :  { %1441 = vmatmul.mubr.f32.vlgmr.msra.gmra.mrb[0].mxu0 %v12047_v34  ;;  %1867 = vmatmul.mubr.f32.vlgmr.msra.gmra.mrb[0].mxu1 %v12047_v34  ;;  %v629_v24 = vld [vmem:[%s17795_s2 + $0x1218] sm:$0xff] }
 0x168   :  { %7754 = vmatpush3.bf16.msra.mxu0 %v7753_v37  ;;  %7786 = vmatpush3.bf16.msra.mxu1 %v7785_v38  ;;  %v109_v37 = vld [vmem:[%s17795_s2 + $0x1d8] sm:$0xff]  ;;  %v264_v38 = vld [vmem:[%s17795_s2 + $0x6b0] sm:$0xff] }
 0x169   :  { %7756 = vmatprep.subr.bf16.mxu0 %v7755_v39  ;;  %7788 = vmatprep.subr.bf16.mxu1 %v7787_v45  ;;  %v7803_v39 = vpack.c.bf16 %v349_v29, %v344_v28  ;;  %v354_v45 = vld [vmem:[%s17795_s2 + $0x980] sm:$0xff]  ;;  %v7773_v47 = vpack.c.bf16 %v109_v37, %v104_v36  ;;  %v7805_v48 = vpack.c.bf16 %v269_v42, %v264_v38  ;;  %v384_v29 = vld [vmem:[%s17795_s2 + $0xa70] sm:$0xff]  ;;  %v549_v36 = vld [vmem:[%s17795_s2 + $0xf98] sm:$0xff] }
 0x16a   :  { %1937 = vmatprep.mubr.f32.mxu0 %v10143_v33  ;;  %2007 = vmatprep.mubr.f32.mxu1 %v10283_v40  ;;  %v84_v33 = vld [vmem:[%s17795_s2 + $0x110] sm:$0xff]  ;;  %v7795_v40 = vpack.c.bf16 %v329_v3, %v324_v2  ;;  %v7779_v2 = vpack.c.bf16 %v209_v59, %v204_v58  ;;  %v7819_v28 = vpack.c.bf16 %v469_v22, %v464_v21  ;;  %v474_v37 = vld [vmem:[%s17795_s2 + $0xd40] sm:$0xff]  ;;  %v479_v38 = vld [vmem:[%s17795_s2 + $0xd68] sm:$0xff] }
 0x16b   :  { %v7765_v17 = vpack.c.bf16 %v89_v50, %v84_v33  ;;  %v124_v3 = vld [vmem:[%s17795_s2 + $0x250] sm:$0xff]  ;;  %v289_v33 = vld [vmem:[%s17795_s2 + $0x778] sm:$0xff]  ;;  %v454_v50 = vld [vmem:[%s17795_s2 + $0xca0] sm:$0xff] }
 0x16c   :  { %7758 = vmatpush3.bf16.msra.mxu0 %v7757_v52  ;;  %7790 = vmatpush3.bf16.msra.mxu1 %v7789_v54  ;;  %v119_v52 = vld [vmem:[%s17795_s2 + $0x228] sm:$0xff]  ;;  %v274_v54 = vld [vmem:[%s17795_s2 + $0x700] sm:$0xff]  ;;  %v7815_v14 = vpack.c.bf16 %v459_v9, %v454_v50  ;;  %v409_v59 = vld [vmem:[%s17795_s2 + $0xb38] sm:$0xff] }
 0x16d   :  { %7760 = vmatprep.subr.bf16.mxu0 %v7759_v55  ;;  %7792 = vmatprep.subr.bf16.mxu1 %v7791_v60  ;;  %v7807_v55 = vpack.c.bf16 %v359_v46, %v354_v45  ;;  %v364_v60 = vld [vmem:[%s17795_s2 + $0x9d0] sm:$0xff]  ;;  %v7777_v63 = vpack.c.bf16 %v119_v52, %v114_v51  ;;  %v7809_v1 = vpack.c.bf16 %v279_v57, %v274_v54  ;;  %v639_v42 = vld [vmem:[%s17795_s2 + $0x1268] sm:$0xff]  ;;  %v489_v51 = vld [vmem:[%s17795_s2 + $0xdb8] sm:$0xff] }
 0x16e   :  { %v7823_v45 = vpack.c.bf16 %v479_v38, %v474_v37  ;;  %v399_v46 = vld [vmem:[%s17795_s2 + $0xae8] sm:$0xff]  ;;  %v644_v52 = vld [vmem:[%s17795_s2 + $0x1290] sm:$0xff]  ;;  %v649_v54 = vld [vmem:[%s17795_s2 + $0x12b8] sm:$0xff] }
 0x16f   :  { %v419_v50 = vld [vmem:[%s17795_s2 + $0xb88] sm:$0xff]  ;;  %v574_v9 = vld [vmem:[%s17795_s2 + $0x1060] sm:$0xff]  ;;  %v429_v21 = vld [vmem:[%s17795_s2 + $0xbd8] sm:$0xff] }
 0x170   :  { %7762 = vmatpush3.bf16.msra.mxu0 %v7761_v4  ;;  %7794 = vmatpush3.bf16.msra.mxu1 %v7793_v7  ;;  %v129_v4 = vld [vmem:[%s17795_s2 + $0x278] sm:$0xff]  ;;  %v284_v7 = vld [vmem:[%s17795_s2 + $0x750] sm:$0xff]  ;;  %v439_v37 = vld [vmem:[%s17795_s2 + $0xc28] sm:$0xff] }
 0x171   :  { %7764 = vmatprep.subr.bf16.mxu0 %v7763_v8  ;;  %7796 = vmatprep.subr.bf16.mxu1 %v7795_v40  ;;  %v7811_v8 = vpack.c.bf16 %v369_v61, %v364_v60  ;;  %v614_v40 = vld [vmem:[%s17795_s2 + $0x11a0] sm:$0xff]  ;;  %v7781_v11 = vpack.c.bf16 %v129_v4, %v124_v3  ;;  %v7813_v13 = vpack.c.bf16 %v289_v33, %v284_v7  ;;  %v564_v60 = vld [vmem:[%s17795_s2 + $0x1010] sm:$0xff]  ;;  %v569_v61 = vld [vmem:[%s17795_s2 + $0x1038] sm:$0xff] }
 0x172   :  { %v659_v3 = vld [vmem:[%s17795_s2 + $0x1308] sm:$0xff]  ;;  %v7861_v7 = vpack.c.bf16 %v569_v61, %v564_v60  ;;  %v414_v33 = vld [vmem:[%s17795_s2 + $0xb60] sm:$0xff]  ;;  %v584_v22 = vld [vmem:[%s17795_s2 + $0x10b0] sm:$0xff] }
 0x173   :  { %v594_v38 = vld [vmem:[%s17795_s2 + $0x1100] sm:$0xff]  ;;  %v784_v61 = vld [vmem:[%s17795_s2 + $0x16f0] sm:$0xff] }
 0x174   :  { %7766 = vmatpush3.bf16.msra.mxu0 %v7765_v17  ;;  %7798 = vmatpush3.bf16.msra.mxu1 %v7797_v18  ;;  %v379_v17 = vld [vmem:[%s17795_s2 + $0xa48] sm:$0xff]  ;;  %v534_v18 = vld [vmem:[%s17795_s2 + $0xf20] sm:$0xff] }
 0x175   :  { %7768 = vmatprep.subr.bf16.mxu0 %v7767_v19  ;;  %7800 = vmatprep.subr.bf16.mxu1 %v7799_v23  ;;  %v7847_v19 = vpack.c.bf16 %v619_v10, %v614_v40  ;;  %v624_v23 = vld [vmem:[%s17795_s2 + $0x11f0] sm:$0xff]  ;;  %v7817_v41 = vpack.c.bf16 %v379_v17, %v374_v16  ;;  %v7849_v27 = vpack.c.bf16 %v539_v20, %v534_v18  ;;  %v579_v10 = vld [vmem:[%s17795_s2 + $0x1088] sm:$0xff]  ;;  %v669_v16 = vld [vmem:[%s17795_s2 + $0x1358] sm:$0xff] }
 0x176   :  { %v7833_v17 = vpack.c.bf16 %v419_v50, %v414_v33  ;;  %v7865_v18 = vpack.c.bf16 %v579_v10, %v574_v9  ;;  %v424_v20 = vld [vmem:[%s17795_s2 + $0xbb0] sm:$0xff]  ;;  %v694_v60 = vld [vmem:[%s17795_s2 + $0x1420] sm:$0xff]  ;;  %v9745_v9 = vmov 0.0|0.0  }
 0x177   :  { %v794_v50 = vld [vmem:[%s17795_s2 + $0x1740] sm:$0xff]  ;;  %v864_v10 = vld [vmem:[%s17795_s2 + $0x1970] sm:$0xff] }
 0x178   :  { %7770 = vmatpush3.bf16.msra.mxu0 %v7769_v31  ;;  %7802 = vmatpush3.bf16.msra.mxu1 %v7801_v32  ;;  %v389_v31 = vld [vmem:[%s17795_s2 + $0xa98] sm:$0xff]  ;;  %v544_v32 = vld [vmem:[%s17795_s2 + $0xf70] sm:$0xff] }
 0x179   :  { %7772 = vmatprep.subr.bf16.mxu0 %v7771_v35  ;;  %7804 = vmatprep.subr.bf16.mxu1 %v7803_v39  ;;  %v7851_v35 = vpack.c.bf16 %v629_v24, %v624_v23  ;;  %v634_v39 = vld [vmem:[%s17795_s2 + $0x1240] sm:$0xff]  ;;  %v7821_v43 = vpack.c.bf16 %v389_v31, %v384_v29  ;;  %v7853_v44 = vpack.c.bf16 %v549_v36, %v544_v32  ;;  %v589_v24 = vld [vmem:[%s17795_s2 + $0x10d8] sm:$0xff]  ;;  %v679_v29 = vld [vmem:[%s17795_s2 + $0x13a8] sm:$0xff] }
 0x17a   :  { %v7837_v31 = vpack.c.bf16 %v429_v21, %v424_v20  ;;  %v7869_v32 = vpack.c.bf16 %v589_v24, %v584_v22  ;;  %v434_v36 = vld [vmem:[%s17795_s2 + $0xc00] sm:$0xff]  ;;  %v879_v20 = vld [vmem:[%s17795_s2 + $0x19e8] sm:$0xff]  ;;  %v729_v24 = vld [vmem:[%s17795_s2 + $0x1538] sm:$0xff] }
 0x17c   :  { %7774 = vmatpush3.bf16.msra.mxu0 %v7773_v47  ;;  %7806 = vmatpush3.bf16.msra.mxu1 %v7805_v48  ;;  %v554_v47 = vld [vmem:[%s17795_s2 + $0xfc0] sm:$0xff]  ;;  %v7855_v48 = vpack.c.bf16 %v639_v42, %v634_v39  ;;  %v599_v42 = vld [vmem:[%s17795_s2 + $0x1128] sm:$0xff] }
 0x17d   :  { %7776 = vmatprep.subr.bf16.mxu0 %v7775_v49  ;;  %7808 = vmatprep.subr.bf16.mxu1 %v7807_v55  ;;  %v484_v49 = vld [vmem:[%s17795_s2 + $0xd90] sm:$0xff] }
 0x17e   :  { %v7827_v58 = vpack.c.bf16 %v489_v51, %v484_v49  ;;  %v449_v49 = vld [vmem:[%s17795_s2 + $0xc78] sm:$0xff]  ;;  %v604_v51 = vld [vmem:[%s17795_s2 + $0x1150] sm:$0xff] }
 0x180   :  { %7778 = vmatpush3.bf16.msra.mxu0 %v7777_v63  ;;  %7810 = vmatpush3.bf16.msra.mxu1 %v7809_v1  ;;  %v494_v63 = vld [vmem:[%s17795_s2 + $0xde0] sm:$0xff]  ;;  %v499_v1 = vld [vmem:[%s17795_s2 + $0xe08] sm:$0xff] }
 0x181   :  { %7780 = vmatprep.subr.bf16.mxu0 %v7779_v2  ;;  %7812 = vmatprep.subr.bf16.mxu1 %v7811_v8  ;;  %v654_v2 = vld [vmem:[%s17795_s2 + $0x12e0] sm:$0xff]  ;;  %v7831_v8 = vpack.c.bf16 %v499_v1, %v494_v63  ;;  %v789_v63 = vld [vmem:[%s17795_s2 + $0x1718] sm:$0xff] }
 0x182   :  { %v7863_v40 = vpack.c.bf16 %v659_v3, %v654_v2  ;;  %v854_v1 = vld [vmem:[%s17795_s2 + $0x1920] sm:$0xff]  ;;  %v859_v2 = vld [vmem:[%s17795_s2 + $0x1948] sm:$0xff] }
 0x183   :  { %v7912_v33 = vpack.c.bf16 %v859_v2, %v854_v1  ;;  %v764_v1 = vld [vmem:[%s17795_s2 + $0x1650] sm:$0xff]  ;;  %v769_v2 = vld [vmem:[%s17795_s2 + $0x1678] sm:$0xff] }
 0x184   :  { %7782 = vmatpush3.bf16.msra.mxu0 %v7781_v11  ;;  %7814 = vmatpush3.bf16.msra.mxu1 %v7813_v13  ;;  %v504_v11 = vld [vmem:[%s17795_s2 + $0xe30] sm:$0xff]  ;;  %v509_v13 = vld [vmem:[%s17795_s2 + $0xe58] sm:$0xff] }
 0x185   :  { %7816 = vmatprep.subr.bf16.mxu0 %v7815_v14  ;;  %7848 = vmatprep.subr.bf16.mxu1 %v7847_v19  ;;  %v664_v14 = vld [vmem:[%s17795_s2 + $0x1330] sm:$0xff]  ;;  %v7835_v19 = vpack.c.bf16 %v509_v13, %v504_v11  ;;  %v869_v11 = vld [vmem:[%s17795_s2 + $0x1998] sm:$0xff] }
 0x186   :  { %v7867_v23 = vpack.c.bf16 %v669_v16, %v664_v14  ;;  %v714_v16 = vld [vmem:[%s17795_s2 + $0x14c0] sm:$0xff] }
 0x187   :  { %1938 = vmatmul.mubr.f32.vlgmr.msra.gmra.mrb[2].mxu0 %v10130_v26  ;;  %2008 = vmatmul.mubr.f32.vlgmr.msra.gmra.mrb[2].mxu1 %v10255_v25  ;;  %v394_v26 = vld [vmem:[%s17795_s2 + $0xac0] sm:$0xff]  ;;  %v559_v25 = vld [vmem:[%s17795_s2 + $0xfe8] sm:$0xff] }
 0x188   :  { %7818 = vmatpush3.bf16.msra.mxu0 %v7817_v41  ;;  %7850 = vmatpush3.bf16.msra.mxu1 %v7849_v27  ;;  %v7825_v55 = vpack.c.bf16 %v399_v46, %v394_v26  ;;  %v7857_v57 = vpack.c.bf16 %v559_v25, %v554_v47  ;;  %v514_v41 = vld [vmem:[%s17795_s2 + $0xe80] sm:$0xff]  ;;  %v519_v27 = vld [vmem:[%s17795_s2 + $0xea8] sm:$0xff]  ;;  %v689_v26 = vld [vmem:[%s17795_s2 + $0x13f8] sm:$0xff]  ;;  %v7841_v46 = vpack.c.bf16 %v439_v37, %v434_v36 }
 0x189   :  { %7820 = vmatprep.subr.bf16.mxu0 %v7819_v28  ;;  %7852 = vmatprep.subr.bf16.mxu1 %v7851_v35  ;;  %v674_v28 = vld [vmem:[%s17795_s2 + $0x1380] sm:$0xff]  ;;  %v7839_v35 = vpack.c.bf16 %v519_v27, %v514_v41  ;;  %v7873_v47 = vpack.c.bf16 %v599_v42, %v594_v38  ;;  %v444_v25 = vld [vmem:[%s17795_s2 + $0xc50] sm:$0xff]  ;;  %v819_v27 = vld [vmem:[%s17795_s2 + $0x1808] sm:$0xff] }
 0x18a   :  { %2077 = vmatprep.mubr.f32.mxu0 %v10691_v0  ;;  %2147 = vmatprep.mubr.f32.mxu1 %v11081_v30  ;;  %v404_v0 = vld [vmem:[%s17795_s2 + $0xb10] sm:$0xff]  ;;  %v7859_v30 = vpack.c.bf16 %v649_v54, %v644_v52  ;;  %v7871_v39 = vpack.c.bf16 %v679_v29, %v674_v28  ;;  %v609_v54 = vld [vmem:[%s17795_s2 + $0x1178] sm:$0xff]  ;;  %v739_v36 = vld [vmem:[%s17795_s2 + $0x1588] sm:$0xff] }
 0x18b   :  { %v7829_v4 = vpack.c.bf16 %v409_v59, %v404_v0  ;;  %v7877_v0 = vpack.c.bf16 %v609_v54, %v604_v51  ;;  %v884_v28 = vld [vmem:[%s17795_s2 + $0x1a10] sm:$0xff]  ;;  %v889_v29 = vld [vmem:[%s17795_s2 + $0x1a38] sm:$0xff]  ;;  %v894_v42 = vld [vmem:[%s17795_s2 + $0x1a60] sm:$0xff] }
 0x18c   :  { %7822 = vmatpush3.bf16.msra.mxu0 %v7821_v43  ;;  %7854 = vmatpush3.bf16.msra.mxu1 %v7853_v44  ;;  %v524_v43 = vld [vmem:[%s17795_s2 + $0xed0] sm:$0xff]  ;;  %v529_v44 = vld [vmem:[%s17795_s2 + $0xef8] sm:$0xff]  ;;  %v7921_v37 = vpack.c.bf16 %v889_v29, %v884_v28  ;;  %v2343_v29 = vld [vmem:[%s17797_s4 + $0x168] sm:$0xff] }
 0x18d   :  { %7824 = vmatprep.subr.bf16.mxu0 %v7823_v45  ;;  %7856 = vmatprep.subr.bf16.mxu1 %v7855_v48  ;;  %v684_v45 = vld [vmem:[%s17795_s2 + $0x13d0] sm:$0xff]  ;;  %v7843_v48 = vpack.c.bf16 %v529_v44, %v524_v43  ;;  %v899_v43 = vld [vmem:[%s17795_s2 + $0x1a88] sm:$0xff]  ;;  %v909_v51 = vld [vmem:[%s17795_s2 + $0x1ad8] sm:$0xff] }
 0x18e   :  { %v7875_v52 = vpack.c.bf16 %v689_v26, %v684_v45  ;;  %v824_v38 = vld [vmem:[%s17795_s2 + $0x1830] sm:$0xff]  ;;  %v2333_v28 = vld [vmem:[%s17797_s4 + $0x118] sm:$0xff] }
 0x18f   :  { %v744_v26 = vld [vmem:[%s17795_s2 + $0x15b0] sm:$0xff] }
 0x190   :  { %7826 = vmatpush3.bf16.msra.mxu0 %v7825_v55  ;;  %7858 = vmatpush3.bf16.msra.mxu1 %v7857_v57  ;;  %v774_v55 = vld [vmem:[%s17795_s2 + $0x16a0] sm:$0xff]  ;;  %v779_v57 = vld [vmem:[%s17795_s2 + $0x16c8] sm:$0xff] }
 0x191   :  { %7828 = vmatprep.subr.bf16.mxu0 %v7827_v58  ;;  %7860 = vmatprep.subr.bf16.mxu1 %v7859_v30  ;;  %v7845_v58 = vpack.c.bf16 %v449_v49, %v444_v25  ;;  %v7879_v59 = vpack.c.bf16 %v779_v57, %v774_v55  ;;  %v699_v30 = vld [vmem:[%s17795_s2 + $0x1448] sm:$0xff]  ;;  %v904_v49 = vld [vmem:[%s17795_s2 + $0x1ab0] sm:$0xff]  ;;  %v754_v55 = vld [vmem:[%s17795_s2 + $0x1600] sm:$0xff] }
 0x192   :  { %v7881_v3 = vpack.c.bf16 %v699_v30, %v694_v60  ;;  %v839_v25 = vld [vmem:[%s17795_s2 + $0x18a8] sm:$0xff]  ;;  %v914_v60 = vld [vmem:[%s17795_s2 + $0x1b00] sm:$0xff] }
 0x193   :  { %v759_v57 = vld [vmem:[%s17795_s2 + $0x1628] sm:$0xff] }
 0x194   :  { %7830 = vmatpush3.bf16.msra.mxu0 %v7829_v4  ;;  %7862 = vmatpush3.bf16.msra.mxu1 %v7861_v7  ;;  %v7883_v4 = vpack.c.bf16 %v789_v63, %v784_v61  ;;  %v704_v7 = vld [vmem:[%s17795_s2 + $0x1470] sm:$0xff]  ;;  %v919_v30 = vld [vmem:[%s17795_s2 + $0x1b28] sm:$0xff]  ;;  %v7905_v61 = vpack.c.bf16 %v759_v57, %v754_v55  ;;  %v2366_v55 = vld [vmem:[%s17797_s4 + $0x220] sm:$0xff] }
 0x195   :  { %7832 = vmatprep.subr.bf16.mxu0 %v7831_v8  ;;  %7864 = vmatprep.subr.bf16.mxu1 %v7863_v40  ;;  %v709_v8 = vld [vmem:[%s17795_s2 + $0x1498] sm:$0xff]  ;;  %v799_v40 = vld [vmem:[%s17795_s2 + $0x1768] sm:$0xff] }
 0x196   :  { %v7885_v13 = vpack.c.bf16 %v709_v8, %v704_v7  ;;  %v7887_v14 = vpack.c.bf16 %v799_v40, %v794_v50  ;;  %v929_v7 = vld [vmem:[%s17795_s2 + $0x1b78] sm:$0xff]  ;;  %v7909_v8 = vpack.c.bf16 %v769_v2, %v764_v1  ;;  %v2299_v50 = vld [vmem:[%s17797_s4 + $0x8] sm:$0xff]  ;;  %v2310_v40 = vld [vmem:[%s17797_s4 + $0x60] sm:$0xff] }
 0x197   :  { %v2386_v1 = vld [vmem:[%s17797_s4 + $0x2c0] sm:$0xff]  ;;  %v2397_v2 = vld [vmem:[%s17797_s4 + $0x318] sm:$0xff] }
 0x198   :  { %7834 = vmatpush3.bf16.msra.mxu0 %v7833_v17  ;;  %7866 = vmatpush3.bf16.msra.mxu1 %v7865_v18  ;;  %v719_v17 = vld [vmem:[%s17795_s2 + $0x14e8] sm:$0xff]  ;;  %v7915_v18 = vpack.c.bf16 %v869_v11, %v864_v10  ;;  %v2301_v10 = vld [vmem:[%s17797_s4 + $0x18] sm:$0xff]  ;;  %v7935_v11 = vpack.c.bf16 %v2310_v40, %v2299_v50 }
 0x199   :  { %7836 = vmatprep.subr.bf16.mxu0 %v7835_v19  ;;  %7868 = vmatprep.subr.bf16.mxu1 %v7867_v23  ;;  %v874_v19 = vld [vmem:[%s17795_s2 + $0x19c0] sm:$0xff]  ;;  %v7889_v21 = vpack.c.bf16 %v719_v17, %v714_v16  ;;  %v724_v23 = vld [vmem:[%s17795_s2 + $0x1510] sm:$0xff]  ;;  %v2409_v50 = vld [vmem:[%s17797_s4 + $0x378] sm:$0xff] }
 0x19a   :  { %v7918_v41 = vpack.c.bf16 %v879_v20, %v874_v19  ;;  %v2300_v17 = vld [vmem:[%s17797_s4 + $0x10] sm:$0xff]  ;;  %v2323_v20 = vld [vmem:[%s17797_s4 + $0xc8] sm:$0xff] }
 0x19b   :  { %v2332_v19 = vld [vmem:[%s17797_s4 + $0x110] sm:$0xff]  ;;  %v2411_v40 = vld [vmem:[%s17797_s4 + $0x388] sm:$0xff] }
 0x19c   :  { %7838 = vmatpush3.bf16.msra.mxu0 %v7837_v31  ;;  %7870 = vmatpush3.bf16.msra.mxu1 %v7869_v32  ;;  %v7893_v31 = vpack.c.bf16 %v729_v24, %v724_v23  ;;  %v2320_v24 = vld [vmem:[%s17797_s4 + $0xb0] sm:$0xff] }
 0x19d   :  { %7840 = vmatprep.subr.bf16.mxu0 %v7839_v35  ;;  %7872 = vmatprep.subr.bf16.mxu1 %v7871_v39  ;;  %v734_v35 = vld [vmem:[%s17795_s2 + $0x1560] sm:$0xff]  ;;  %v829_v39 = vld [vmem:[%s17795_s2 + $0x1858] sm:$0xff] }
 0x19e   :  { %v7897_v44 = vpack.c.bf16 %v739_v36, %v734_v35  ;;  %v7899_v45 = vpack.c.bf16 %v829_v39, %v824_v38  ;;  %v2345_v36 = vld [vmem:[%s17797_s4 + $0x178] sm:$0xff]  ;;  %v2342_v38 = vld [vmem:[%s17797_s4 + $0x160] sm:$0xff] }
 0x1a0   :  { %7842 = vmatpush3.bf16.msra.mxu0 %v7841_v46  ;;  %7874 = vmatpush3.bf16.msra.mxu1 %v7873_v47  ;;  %v749_v46 = vld [vmem:[%s17795_s2 + $0x15d8] sm:$0xff]  ;;  %v7924_v47 = vpack.c.bf16 %v899_v43, %v894_v42  ;;  %v2344_v43 = vld [vmem:[%s17797_s4 + $0x170] sm:$0xff] }
 0x1a1   :  { %7844 = vmatprep.subr.bf16.mxu0 %v7843_v48  ;;  %7876 = vmatprep.subr.bf16.mxu1 %v7875_v52  ;;  %v834_v48 = vld [vmem:[%s17795_s2 + $0x1880] sm:$0xff]  ;;  %v7901_v52 = vpack.c.bf16 %v749_v46, %v744_v26  ;;  %v2353_v42 = vld [vmem:[%s17797_s4 + $0x1b8] sm:$0xff]  ;;  %v2376_v46 = vld [vmem:[%s17797_s4 + $0x270] sm:$0xff] }
 0x1a2   :  { %v7903_v54 = vpack.c.bf16 %v839_v25, %v834_v48  ;;  %v2365_v26 = vld [vmem:[%s17797_s4 + $0x218] sm:$0xff] }
 0x1a3   :  { %v7947_v25 = vpack.c.bf16 %v2376_v46, %v2365_v26 }
 0x1a4   :  { %7846 = vmatpush3.bf16.msra.mxu0 %v7845_v58  ;;  %7878 = vmatpush3.bf16.msra.mxu1 %v7877_v0  ;;  %v7927_v58 = vpack.c.bf16 %v909_v51, %v904_v49  ;;  %v844_v0 = vld [vmem:[%s17795_s2 + $0x18d0] sm:$0xff]  ;;  %v2378_v49 = vld [vmem:[%s17797_s4 + $0x280] sm:$0xff] }
 0x1a5   :  { %7880 = vmatprep.subr.bf16.mxu0 %v7879_v59  ;;  %7911 = vmatprep.subr.bf16.mxu1 %v9745_v9  ;;  %v849_v59 = vld [vmem:[%s17795_s2 + $0x18f8] sm:$0xff] }
 0x1a6   :  { %v7907_v63 = vpack.c.bf16 %v849_v59, %v844_v0  ;;  %v2387_v59 = vld [vmem:[%s17797_s4 + $0x2c8] sm:$0xff] }
 0x1a7   :  { %2078 = vmatmul.mubr.f32.vlgmr.msra.gmra.mrb[4].mxu0 %v10671_v56  ;;  %2148 = vmatmul.mubr.f32.vlgmr.msra.gmra.mrb[4].mxu1 %v11053_v15  ;;  %v804_v56 = vld [vmem:[%s17795_s2 + $0x1790] sm:$0xff]  ;;  %v809_v15 = vld [vmem:[%s17795_s2 + $0x17b8] sm:$0xff] }
 0x1a8   :  { %7882 = vmatpush3.bf16.msra.mxu0 %v7881_v3  ;;  %7913 = vmatpush3.bf16.msra.mxu1 %v7912_v33  ;;  %v7891_v22 = vpack.c.bf16 %v809_v15, %v804_v56  ;;  %v7930_v3 = vpack.c.bf16 %v919_v30, %v914_v60  ;;  %v2321_v56 = vld [vmem:[%s17797_s4 + $0xb8] sm:$0xff]  ;;  %v2398_v60 = vld [vmem:[%s17797_s4 + $0x320] sm:$0xff] }
 0x1a9   :  { %7884 = vmatprep.subr.bf16.mxu0 %v7883_v4  ;;  %7914 = vmatprep.subr.bf16.mxu1 %v9745_v9  ;;  %v924_v4 = vld [vmem:[%s17795_s2 + $0x1b50] sm:$0xff]  ;;  %v2389_v30 = vld [vmem:[%s17797_s4 + $0x2d8] sm:$0xff] }
 0x1aa   :  { %2217 = vmatprep.mubr.f32.mxu0 %v11482_v5  ;;  %7019 = vmatprep.mubr.msk.f32.mxu1 %vm9746_vm0, %v9744_v6  ;;  %v814_v5 = vld [vmem:[%s17795_s2 + $0x17e0] sm:$0xff]  ;;  %v7933_v33 = vpack.c.bf16 %v929_v7, %v924_v4  ;;  %v7953_v4 = vpack.c.bf16 %v2397_v2, %v2386_v1  ;;  %v2388_v7 = vld [vmem:[%s17797_s4 + $0x2d0] sm:$0xff] }
 0x1ab   :  { %v7895_v32 = vpack.c.bf16 %v819_v27, %v814_v5  ;;  %v2322_v5 = vld [vmem:[%s17797_s4 + $0xc0] sm:$0xff] }
 0x1ac   :  { %7886 = vmatpush3.bf16.msra.mxu0 %v7885_v13  ;;  %7916 = vmatpush3.bf16.msra.mxu1 %v7915_v18  ;;  %v2309_v13 = vld [vmem:[%s17797_s4 + $0x58] sm:$0xff]  ;;  %v2311_v18 = vld [vmem:[%s17797_s4 + $0x68] sm:$0xff] }
 0x1ad   :  { %7888 = vmatprep.subr.bf16.mxu0 %v7887_v14  ;;  %7917 = vmatprep.subr.bf16.mxu1 %v9745_v9  ;;  %v7957_v15 = vpack.c.bf16 %v2311_v18, %v2300_v17 }
 0x1b0   :  { %7890 = vmatpush3.bf16.msra.mxu0 %v7889_v21  ;;  %7919 = vmatpush3.bf16.msra.mxu1 %v7918_v41  ;;  %v2334_v21 = vld [vmem:[%s17797_s4 + $0x120] sm:$0xff]  ;;  %v2331_v41 = vld [vmem:[%s17797_s4 + $0x108] sm:$0xff] }
 0x1b1   :  { %7892 = vmatprep.subr.bf16.mxu0 %v7891_v22  ;;  %7920 = vmatprep.subr.bf16.mxu1 %v9745_v9  ;;  %v7939_v22 = vpack.c.bf16 %v2332_v19, %v2321_v56  ;;  %v7959_v23 = vpack.c.bf16 %v2334_v21, %v2323_v20  ;;  %v7941_v27 = vpack.c.bf16 %v2331_v41, %v2320_v24  ;;  %v950_v20 = vsub.s32 4, %v10070_v62  ;;  %v12728_v21 = vld [vmem:[%s17796_s3] sm:$0x1f] }
 0x1b4   :  { %7894 = vmatpush3.bf16.msra.mxu0 %v7893_v31  ;;  %7922 = vmatpush3.bf16.msra.mxu1 %v7921_v37  ;;  %v2354_v31 = vld [vmem:[%s17797_s4 + $0x1c0] sm:$0xff]  ;;  %v2356_v37 = vld [vmem:[%s17797_s4 + $0x1d0] sm:$0xff] }
 0x1b5   :  { %7896 = vmatprep.subr.bf16.mxu0 %v7895_v32  ;;  %7923 = vmatprep.subr.bf16.mxu1 %v9745_v9  ;;  %v7961_v32 = vpack.c.bf16 %v2333_v28, %v2322_v5  ;;  %v7943_v35 = vpack.c.bf16 %v2354_v31, %v2343_v29  ;;  %v7963_v39 = vpack.c.bf16 %v2356_v37, %v2345_v36 }
 0x1b8   :  { %7898 = vmatpush3.bf16.msra.mxu0 %v7897_v44  ;;  %7925 = vmatpush3.bf16.msra.mxu1 %v7924_v47  ;;  %v2355_v44 = vld [vmem:[%s17797_s4 + $0x1c8] sm:$0xff] }
 0x1b9   :  { %7900 = vmatprep.subr.bf16.mxu0 %v7899_v45  ;;  %7926 = vmatprep.subr.bf16.mxu1 %v9745_v9  ;;  %v7945_v45 = vpack.c.bf16 %v2353_v42, %v2342_v38  ;;  %v2367_v47 = vld [vmem:[%s17797_s4 + $0x228] sm:$0xff]  ;;  %v7965_v48 = vpack.c.bf16 %v2355_v44, %v2344_v43 }
 0x1ba   :  { %v7967_v51 = vpack.c.bf16 %v2378_v49, %v2367_v47 }
 0x1bc   :  { %7902 = vmatpush3.bf16.msra.mxu0 %v7901_v52  ;;  %7928 = vmatpush3.bf16.msra.mxu1 %v7927_v58  ;;  %v2364_v52 = vld [vmem:[%s17797_s4 + $0x210] sm:$0xff]  ;;  %v2377_v58 = vld [vmem:[%s17797_s4 + $0x278] sm:$0xff] }
 0x1bd   :  { %7904 = vmatprep.subr.bf16.mxu0 %v7903_v54  ;;  %7929 = vmatprep.subr.bf16.mxu1 %v9745_v9  ;;  %v2375_v54 = vld [vmem:[%s17797_s4 + $0x268] sm:$0xff]  ;;  %v7969_v0 = vpack.c.bf16 %v2377_v58, %v2366_v55  ;;  %v2336_v55 = vld [vmem:[%s17797_s4 + $0x130] sm:$0xff]  ;;  %v2338_v58 = vld [vmem:[%s17797_s4 + $0x140] sm:$0xff] }
 0x1be   :  { %v7949_v57 = vpack.c.bf16 %v2375_v54, %v2364_v52  ;;  %v2315_v52 = vld [vmem:[%s17797_s4 + $0x88] sm:$0xff]  ;;  %v2325_v54 = vld [vmem:[%s17797_s4 + $0xd8] sm:$0xff] }
 0x1bf   :  { %v7979_v1 = vpack.c.bf16 %v2336_v55, %v2325_v54  ;;  %v2412_v54 = vld [vmem:[%s17797_s4 + $0x390] sm:$0xff]  ;;  %v2307_v55 = vld [vmem:[%s17797_s4 + $0x48] sm:$0xff] }
 0x1c0   :  { %7906 = vmatpush3.bf16.msra.mxu0 %v7905_v61  ;;  %7931 = vmatpush3.bf16.msra.mxu1 %v7930_v3  ;;  %v7951_v61 = vpack.c.bf16 %v2398_v60, %v2387_v59 }
 0x1c1   :  { %7908 = vmatprep.subr.bf16.mxu0 %v7907_v63  ;;  %7932 = vmatprep.subr.bf16.mxu1 %v9745_v9  ;;  %v2400_v63 = vld [vmem:[%s17797_s4 + $0x330] sm:$0xff] }
 0x1c2   :  { %v7971_v3 = vpack.c.bf16 %v2400_v63, %v2389_v30  ;;  %v2324_v30 = vld [vmem:[%s17797_s4 + $0xd0] sm:$0xff] }
 0x1c4   :  { %7910 = vmatpush3.bf16.msra.mxu0 %v7909_v8  ;;  %7934 = vmatpush3.bf16.msra.mxu1 %v7933_v33  ;;  %v2399_v8 = vld [vmem:[%s17797_s4 + $0x328] sm:$0xff] }
 0x1c5   :  { %7936 = vmatprep.subr.bf16.mxu0 %v7935_v11  ;;  %v7973_v33 = vpack.c.bf16 %v2399_v8, %v2388_v7  ;;  %v2408_v11 = vld [vmem:[%s17797_s4 + $0x370] sm:$0xff]  ;;  %v2347_v7 = vld [vmem:[%s17797_s4 + $0x188] sm:$0xff]  ;;  %v2358_v8 = vld [vmem:[%s17797_s4 + $0x1e0] sm:$0xff] }
 0x1c7   :  { %2218 = vmatmul.mubr.f32.vlgmr.msra.gmra.mrb[6].mxu0 %v11454_v53  ;;  %7020 = vmatmul.mubr.f32.vlgmr.msra.gmra.mrb[6].mxu1 %v12047_v34  ;;  %v2312_v53 = vld [vmem:[%s17797_s4 + $0x70] sm:$0xff]  ;;  %v2298_v34 = vld [vmem:[%s17797_s4] sm:$0xff] }
 0x1c8   :  { %2546 = vmatprep.mubr.f32.mxu0 %v9744_v6  ;;  %2617 = vmatprep.mubr.f32.mxu1 %v9744_v6  ;;  %v7955_v14 = vpack.c.bf16 %v2312_v53, %v2301_v10  ;;  %v7937_v16 = vpack.c.bf16 %v2309_v13, %v2298_v34  ;;  %v2303_v10 = vld [vmem:[%s17797_s4 + $0x28] sm:$0xff]  ;;  %v2410_v53 = vld [vmem:[%s17797_s4 + $0x380] sm:$0xff] }
 0x1c9   :  { %v2314_v34 = vld [vmem:[%s17797_s4 + $0x80] sm:$0xff] }
 0x1ca   :  { %7956 = vmatprep.subr.bf16.mxu1 %v7955_v14  ;;  %7938 = vmatpush1.bf16.msra.mxu0 %v7937_v16  ;;  %v7975_v13 = vpack.c.bf16 %v2314_v34, %v2303_v10  ;;  %v2305_v14 = vld [vmem:[%s17797_s4 + $0x38] sm:$0xff]  ;;  %v2316_v16 = vld [vmem:[%s17797_s4 + $0x90] sm:$0xff]  ;;  %v7983_v34 = vpack.c.bf16 %v2358_v8, %v2347_v7 }
 0x1cb   :  { %7958 = vmatpush1.bf16.msra.mxu1 %v7957_v15  ;;  %7940 = vmatprep.subr.bf16.mxu0 %v7939_v22  ;;  %v7995_v17 = vpack.c.bf16 %v2316_v16, %v2305_v14  ;;  %v2348_v14 = vld [vmem:[%s17797_s4 + $0x190] sm:$0xff]  ;;  %v2359_v16 = vld [vmem:[%s17797_s4 + $0x1e8] sm:$0xff] }
 0x1cc   :  { %7960 = vmatprep.subr.bf16.mxu1 %v7959_v23  ;;  %v951_v23 = vrot.slane %v12728_v21, %v950_v20  ;;  %v2328_v7 = vld [vmem:[%s17797_s4 + $0xf0] sm:$0xff] }
 0x1ce   :  { %7942 = vmatpush1.bf16.msra.mxu0 %v7941_v27 }
 0x1cf   :  { %7962 = vmatpush1.bf16.msra.mxu1 %v7961_v32  ;;  %7944 = vmatprep.subr.bf16.mxu0 %v7943_v35 }
 0x1d0   :  { %7964 = vmatprep.subr.bf16.mxu1 %v7963_v39 }
 0x1d2   :  { %7946 = vmatpush1.bf16.msra.mxu0 %v7945_v45 }
 0x1d3   :  { %7966 = vmatpush1.bf16.msra.mxu1 %v7965_v48  ;;  %7948 = vmatprep.subr.bf16.mxu0 %v7947_v25  ;;  %v2302_v48 = vld [vmem:[%s17797_s4 + $0x20] sm:$0xff]  ;;  %v2313_v25 = vld [vmem:[%s17797_s4 + $0x78] sm:$0xff] }
 0x1d4   :  { %7968 = vmatprep.subr.bf16.mxu1 %v7967_v51  ;;  %v2304_v51 = vld [vmem:[%s17797_s4 + $0x30] sm:$0xff]  ;;  %v7977_v59 = vpack.c.bf16 %v2313_v25, %v2302_v48  ;;  %v2403_v48 = vld [vmem:[%s17797_s4 + $0x348] sm:$0xff] }
 0x1d5   :  { %v7997_v60 = vpack.c.bf16 %v2315_v52, %v2304_v51  ;;  %v2413_v51 = vld [vmem:[%s17797_s4 + $0x398] sm:$0xff]  ;;  %v2415_v52 = vld [vmem:[%s17797_s4 + $0x3a8] sm:$0xff] }
 0x1d6   :  { %7950 = vmatpush1.bf16.msra.mxu0 %v7949_v57  ;;  %v2327_v57 = vld [vmem:[%s17797_s4 + $0xe8] sm:$0xff] }
 0x1d7   :  { %7970 = vmatpush1.bf16.msra.mxu1 %v7969_v0  ;;  %7952 = vmatprep.subr.bf16.mxu0 %v7951_v61  ;;  %v2335_v61 = vld [vmem:[%s17797_s4 + $0x128] sm:$0xff]  ;;  %v7999_v2 = vpack.c.bf16 %v2338_v58, %v2327_v57  ;;  %v2318_v57 = vld [vmem:[%s17797_s4 + $0xa0] sm:$0xff] }
 0x1d8   :  { %7972 = vmatprep.subr.bf16.mxu1 %v7971_v3  ;;  %v2326_v3 = vld [vmem:[%s17797_s4 + $0xe0] sm:$0xff] }
 0x1d9   :  { %v2306_v58 = vld [vmem:[%s17797_s4 + $0x40] sm:$0xff] }
 0x1da   :  { %7954 = vmatpush1.bf16.msra.mxu0 %v7953_v4  ;;  %v2337_v4 = vld [vmem:[%s17797_s4 + $0x138] sm:$0xff] }
 0x1db   :  { %7974 = vmatpush1.bf16.msra.mxu1 %v7973_v33  ;;  %2502 = vmatprep.subr.mxu0 %v2409_v50  ;;  %v2349_v33 = vld [vmem:[%s17797_s4 + $0x198] sm:$0xff]  ;;  %v2360_v50 = vld [vmem:[%s17797_s4 + $0x1f0] sm:$0xff]  ;;  %v8001_v10 = vpack.c.bf16 %v2337_v4, %v2326_v3 }
 0x1dc   :  { %2573 = vmatprep.subr.mxu1 %v2411_v40  ;;  %v7981_v40 = vpack.c.bf16 %v2335_v61, %v2324_v30  ;;  %v2414_v30 = vld [vmem:[%s17797_s4 + $0x3a0] sm:$0xff]  ;;  %v2329_v61 = vld [vmem:[%s17797_s4 + $0xf8] sm:$0xff] }
 0x1de   :  { %2503 = vmatpush1.msra.mxu0 %v2408_v11  ;;  %v2346_v11 = vld [vmem:[%s17797_s4 + $0x180] sm:$0xff] }
 0x1df   :  { %2574 = vmatpush1.msra.mxu1 %v2410_v53  ;;  %7976 = vmatprep.subr.bf16.mxu0 %v7975_v13  ;;  %v2357_v53 = vld [vmem:[%s17797_s4 + $0x1d8] sm:$0xff]  ;;  %v8003_v13 = vpack.c.bf16 %v2360_v50, %v2349_v33  ;;  %v2339_v33 = vld [vmem:[%s17797_s4 + $0x148] sm:$0xff]  ;;  %v2330_v50 = vld [vmem:[%s17797_s4 + $0x100] sm:$0xff] }
 0x1e0   :  { %7996 = vmatprep.subr.bf16.mxu1 %v7995_v17  ;;  %v2369_v17 = vld [vmem:[%s17797_s4 + $0x238] sm:$0xff] }
 0x23a   :  { %v12716_v18 = vpop.f32.mrb[0].mxu0  ;;  %v12718_v56 = vpop.f32.mrb[0].mxu1 }
 0x23b   :  { %v12720_v15 = vpop.f32.mrb[1].mxu0  ;;  %v12722_v19 = vpop.f32.mrb[1].mxu1 }
 0x25a   :  { %v6675_v22 = vpop.f32.mrb[2].mxu0  ;;  %v6710_v41 = vpop.f32.mrb[2].mxu1 }
 0x25b   :  { %v6676_v24 = vpop.f32.mrb[3].mxu0  ;;  %v6711_v27 = vpop.f32.mrb[3].mxu1 }
 0x25c   :  { %v6677_v5 = vadd.f32 %v6676_v24, %v6675_v22  ;;  %v6712_v28 = vadd.f32 %v6711_v27, %v6710_v41  ;;  %v2380_v22 = vld [vmem:[%s17797_s4 + $0x290] sm:$0xff]  ;;  %v2382_v24 = vld [vmem:[%s17797_s4 + $0x2a0] sm:$0xff]  ;;  %v7985_v41 = vpack.c.bf16 %v2357_v53, %v2346_v11  ;;  %v8021_v53 = vpack.c.bf16 %v2339_v33, %v2328_v7  ;;  %v3024_v7 = vld [vmem:[%s17799_s6 + $0x198] sm:$0xff] }
 0x25d   :  { %v2368_v27 = vld [vmem:[%s17797_s4 + $0x230] sm:$0xff]  ;;  %v2362_v11 = vld [vmem:[%s17797_s4 + $0x200] sm:$0xff] }
 0x25e   :  { %v1940_v29 = vadd.f32 %v6677_v5, %v951_v23  ;;  %v2371_v23 = vld [vmem:[%s17797_s4 + $0x248] sm:$0xff]  ;;  %v8005_v5 = vpack.c.bf16 %v2359_v16, %v2348_v14  ;;  %v2361_v16 = vld [vmem:[%s17797_s4 + $0x1f8] sm:$0xff] }
 0x260   :  { %v2010_v31 = vadd.f32 %v6712_v28, %v1940_v29  ;;  %v2379_v28 = vld [vmem:[%s17797_s4 + $0x288] sm:$0xff]  ;;  %v7987_v29 = vpack.c.bf16 %v2380_v22, %v2369_v17  ;;  %v2352_v17 = vld [vmem:[%s17797_s4 + $0x1b0] sm:$0xff] }
 0x261   :  { %v2363_v22 = vld [vmem:[%s17797_s4 + $0x208] sm:$0xff] }
 0x27a   :  { %v6745_v32 = vpop.f32.mrb[4].mxu0  ;;  %v6780_v36 = vpop.f32.mrb[4].mxu1 }
 0x27b   :  { %v6746_v35 = vpop.f32.mrb[5].mxu0  ;;  %v6781_v38 = vpop.f32.mrb[5].mxu1 }
 0x27c   :  { %v6747_v37 = vadd.f32 %v6746_v35, %v6745_v32  ;;  %v6782_v39 = vadd.f32 %v6781_v38, %v6780_v36  ;;  %v2370_v32 = vld [vmem:[%s17797_s4 + $0x240] sm:$0xff]  ;;  %v2381_v35 = vld [vmem:[%s17797_s4 + $0x298] sm:$0xff]  ;;  %v2391_v36 = vld [vmem:[%s17797_s4 + $0x2e8] sm:$0xff] }
 0x27d   :  { %v2393_v38 = vld [vmem:[%s17797_s4 + $0x2f8] sm:$0xff] }
 0x27e   :  { %v2080_v42 = vadd.f32 %v6747_v37, %v2010_v31  ;;  %v8007_v31 = vpack.c.bf16 %v2382_v24, %v2371_v23  ;;  %v2402_v37 = vld [vmem:[%s17797_s4 + $0x340] sm:$0xff]  ;;  %v2373_v23 = vld [vmem:[%s17797_s4 + $0x258] sm:$0xff]  ;;  %v2384_v24 = vld [vmem:[%s17797_s4 + $0x2b0] sm:$0xff] }
 0x280   :  { %v2150_v43 = vadd.f32 %v6782_v39, %v2080_v42  ;;  %v2404_v39 = vld [vmem:[%s17797_s4 + $0x350] sm:$0xff]  ;;  %v7989_v42 = vpack.c.bf16 %v2379_v28, %v2368_v27  ;;  %v8027_v28 = vpack.c.bf16 %v2384_v24, %v2373_v23 }
 0x281   :  { %v2372_v27 = vld [vmem:[%s17797_s4 + $0x250] sm:$0xff] }
 0x29a   :  { %v6815_v44 = vpop.f32.mrb[6].mxu0  ;;  %v2289_v26 = vpop.f32.mrb[6].mxu1 }
 0x29b   :  { %v6816_v45 = vpop.f32.mrb[7].mxu0  ;;  %v7021_v47 = vpop.f32.mrb[7].mxu1 }
 0x29c   :  { %v6817_v46 = vadd.f32 %v6816_v45, %v6815_v44  ;;  %v2390_v44 = vld [vmem:[%s17797_s4 + $0x2e0] sm:$0xff]  ;;  %v7991_v45 = vpack.c.bf16 %v2402_v37, %v2391_v36  ;;  %v2392_v47 = vld [vmem:[%s17797_s4 + $0x2f0] sm:$0xff] }
 0x29d   :  { %v2406_v36 = vld [vmem:[%s17797_s4 + $0x360] sm:$0xff] }
 0x29e   :  { %v2220_v49 = vadd.f32 %v6817_v46, %v2150_v43  ;;  %v8009_v43 = vpack.c.bf16 %v2381_v35, %v2370_v32  ;;  %v2401_v46 = vld [vmem:[%s17797_s4 + $0x338] sm:$0xff]  ;;  %v2395_v35 = vld [vmem:[%s17797_s4 + $0x308] sm:$0xff] }
 0x29f   :  { %v7993_v25 = vpack.c.bf16 %v2401_v46, %v2390_v44  ;;  %v2385_v32 = vld [vmem:[%s17797_s4 + $0x2b8] sm:$0xff]  ;;  %v12966_v46 = vsub.s32 3, %v10070_v62 }
 0x2a0   :  { %v2290_v0 = vadd.f32 %v2289_v26, %v2220_v49  ;;  %v8011_v26 = vpack.c.bf16 %v2404_v39, %v2393_v38  ;;  %v8013_v49 = vpack.c.bf16 %v2403_v48, %v2392_v47  ;;  %v2394_v39 = vld [vmem:[%s17797_s4 + $0x300] sm:$0xff]  ;;  %v2405_v44 = vld [vmem:[%s17797_s4 + $0x358] sm:$0xff] }
 0x2a1   :  { %v8033_v47 = vpack.c.bf16 %v2405_v44, %v2394_v39  ;;  %v2980_v44 = vld [vmem:[%s17799_s6 + $0x38] sm:$0xff] }
 0x2a2   :  { %v12763_v63 = vmax.f32 %v2290_v0, 0.0  ;;  %v2317_v0 = vld [vmem:[%s17797_s4 + $0x98] sm:$0xff] }
 0x2a3   :  { %v8017_v3 = vpack.c.bf16 %v2317_v0, %v2306_v58  ;;  %v2418_v58 = vld [vmem:[%s17797_s4 + $0x3c0] sm:$0xff] }
 0x2a4   :  { %6623 = vmatmul.mubr.msk.f32.vlgmr.msra.gmra.mrb[8].mxu0 %vm2478_vm1, %v12763_v63  ;;  %6624 = vmatmul.mubr.msk.f32.vlgmr.msra.gmra.mrb[8].mxu1 %vm2478_vm1, %v12763_v63  ;;  %v2973_v0 = vld [vmem:[%s17799_s6] sm:$0xff] }
 0x2a5   :  { %7978 = vmatpush1.bf16.msra.mxu0 %v7977_v59  ;;  %7998 = vmatpush1.bf16.msra.mxu1 %v7997_v60  ;;  %v2308_v59 = vld [vmem:[%s17797_s4 + $0x50] sm:$0xff]  ;;  %v2319_v60 = vld [vmem:[%s17797_s4 + $0xa8] sm:$0xff] }
 0x2a6   :  { %7980 = vmatprep.subr.bf16.mxu0 %v7979_v1  ;;  %8000 = vmatprep.subr.bf16.mxu1 %v7999_v2  ;;  %v2340_v1 = vld [vmem:[%s17797_s4 + $0x150] sm:$0xff]  ;;  %v8015_v2 = vpack.c.bf16 %v2318_v57, %v2307_v55  ;;  %v8036_v4 = vpack.c.bf16 %v2319_v60, %v2308_v59  ;;  %v2990_v55 = vld [vmem:[%s17799_s6 + $0x88] sm:$0xff] }
 0x2a7   :  { %2688 = vmatprep.mubr.f32.mxu0 %v9744_v6  ;;  %2759 = vmatprep.mubr.f32.mxu1 %v9744_v6  ;;  %v8019_v8 = vpack.c.bf16 %v2340_v1, %v2329_v61  ;;  %v3022_v57 = vld [vmem:[%s17799_s6 + $0x188] sm:$0xff]  ;;  %v2991_v1 = vld [vmem:[%s17799_s6 + $0x90] sm:$0xff] }
 0x2a8   :  { %v2974_v59 = vld [vmem:[%s17799_s6 + $0x8] sm:$0xff] }
 0x2a9   :  { %7982 = vmatpush1.bf16.msra.mxu0 %v7981_v40  ;;  %8002 = vmatpush1.bf16.msra.mxu1 %v8001_v10  ;;  %v2341_v40 = vld [vmem:[%s17797_s4 + $0x158] sm:$0xff]  ;;  %v2351_v10 = vld [vmem:[%s17797_s4 + $0x1a8] sm:$0xff] }
 0x2aa   :  { %7984 = vmatprep.subr.bf16.mxu0 %v7983_v34  ;;  %8004 = vmatprep.subr.bf16.mxu1 %v8003_v13  ;;  %v8039_v34 = vpack.c.bf16 %v2341_v40, %v2330_v50  ;;  %v2350_v13 = vld [vmem:[%s17797_s4 + $0x1a0] sm:$0xff]  ;;  %v8023_v14 = vpack.c.bf16 %v2362_v11, %v2351_v10  ;;  %v3006_v61 = vld [vmem:[%s17799_s6 + $0x108] sm:$0xff]  ;;  %v2976_v50 = vld [vmem:[%s17799_s6 + $0x18] sm:$0xff] }
 0x2ab   :  { %v3007_v40 = vld [vmem:[%s17799_s6 + $0x110] sm:$0xff] }
 0x2ad   :  { %7986 = vmatpush1.bf16.msra.mxu0 %v7985_v41  ;;  %8006 = vmatpush1.bf16.msra.mxu1 %v8005_v5  ;;  %v8025_v41 = vpack.c.bf16 %v2361_v16, %v2350_v13  ;;  %v8042_v5 = vpack.c.bf16 %v2363_v22, %v2352_v17  ;;  %v2993_v13 = vld [vmem:[%s17799_s6 + $0xa0] sm:$0xff]  ;;  %v3026_v17 = vld [vmem:[%s17799_s6 + $0x1a8] sm:$0xff] }
 0x2ae   :  { %7988 = vmatprep.subr.bf16.mxu0 %v7987_v29  ;;  %8008 = vmatprep.subr.bf16.mxu1 %v8007_v31  ;;  %v2383_v29 = vld [vmem:[%s17797_s4 + $0x2a8] sm:$0xff]  ;;  %v2374_v31 = vld [vmem:[%s17797_s4 + $0x260] sm:$0xff] }
 0x2af   :  { %v8029_v37 = vpack.c.bf16 %v2383_v29, %v2372_v27  ;;  %v8045_v38 = vpack.c.bf16 %v2385_v32, %v2374_v31  ;;  %v3009_v27 = vld [vmem:[%s17799_s6 + $0x120] sm:$0xff]  ;;  %v3010_v29 = vld [vmem:[%s17799_s6 + $0x128] sm:$0xff]  ;;  %v2995_v31 = vld [vmem:[%s17799_s6 + $0xb0] sm:$0xff] }
 0x2b0   :  { %v2996_v32 = vld [vmem:[%s17799_s6 + $0xb8] sm:$0xff] }
 0x2b1   :  { %7990 = vmatpush1.bf16.msra.mxu0 %v7989_v42  ;;  %8010 = vmatpush1.bf16.msra.mxu1 %v8009_v43  ;;  %v12953_v42 = vsub.s32 1, %v10070_v62  ;;  %v8031_v43 = vpack.c.bf16 %v2406_v36, %v2395_v35  ;;  %v3027_v35 = vld [vmem:[%s17799_s6 + $0x1b0] sm:$0xff]  ;;  %v3028_v36 = vld [vmem:[%s17799_s6 + $0x1b8] sm:$0xff]  ;;  %v8062_v39 = vpack.c.bf16 %v2996_v32, %v2995_v31 }
 0x2b2   :  { %7992 = vmatprep.subr.bf16.mxu0 %v7991_v45  ;;  %8012 = vmatprep.subr.bf16.mxu1 %v8011_v26  ;;  %v2396_v45 = vld [vmem:[%s17797_s4 + $0x310] sm:$0xff]  ;;  %v2407_v26 = vld [vmem:[%s17797_s4 + $0x368] sm:$0xff] }
 0x2b3   :  { %v8048_v48 = vpack.c.bf16 %v2407_v26, %v2396_v45  ;;  %v3011_v45 = vld [vmem:[%s17799_s6 + $0x130] sm:$0xff]  ;;  %v8094_v26 = vpack.c.bf16 %v3028_v36, %v3027_v35  ;;  %v2988_v36 = vld [vmem:[%s17799_s6 + $0x78] sm:$0xff] }
 0x2b4   :  { %v2987_v35 = vld [vmem:[%s17799_s6 + $0x70] sm:$0xff] }
 0x2b5   :  { %7994 = vmatpush1.bf16.msra.mxu0 %v7993_v25  ;;  %8014 = vmatpush1.bf16.msra.mxu1 %v8013_v49  ;;  %v939_v25 = vrot.slane %v12728_v21, %v12953_v42  ;;  %v947_v49 = vrot.slane %v12728_v21, %v12966_v46 }
 0x2b6   :  { %2644 = vmatprep.subr.mxu0 %v2413_v51  ;;  %2715 = vmatprep.subr.mxu1 %v2415_v52  ;;  %v2417_v51 = vld [vmem:[%s17797_s4 + $0x3b8] sm:$0xff]  ;;  %v2989_v52 = vld [vmem:[%s17799_s6 + $0x80] sm:$0xff] }
 0x2b7   :  { %v9587_v60 = vadd.f32 %v12720_v15, %v939_v25  ;;  %v3023_v15 = vld [vmem:[%s17799_s6 + $0x190] sm:$0xff]  ;;  %v2998_v25 = vld [vmem:[%s17799_s6 + $0xc8] sm:$0xff] }
 0x2b9   :  { %2645 = vmatpush1.msra.mxu0 %v2412_v54  ;;  %2716 = vmatpush1.msra.mxu1 %v2414_v30  ;;  %v2416_v54 = vld [vmem:[%s17797_s4 + $0x3b0] sm:$0xff]  ;;  %v3005_v30 = vld [vmem:[%s17799_s6 + $0x100] sm:$0xff]  ;;  %v2294_v10 = vmax.f32 %v9587_v60, 0.0 }
 0x2ba   :  { %6625 = vmatmul.mubr.msk.f32.vlgmr.msra.gmra.mrb[10].mxu0 %vm2478_vm1, %v12763_v63  ;;  %6626 = vmatmul.mubr.msk.f32.vlgmr.msra.gmra.mrb[10].mxu1 %vm2478_vm1, %v12763_v63  ;;  %v8084_v33 = vpack.c.bf16 %v3006_v61, %v3005_v30  ;;  %v2999_v60 = vld [vmem:[%s17799_s6 + $0xd0] sm:$0xff]  ;;  %v3000_v30 = vld [vmem:[%s17799_s6 + $0xd8] sm:$0xff] }
 0x2bb   :  { %8016 = vmatprep.subr.bf16.mxu0 %v8015_v2  ;;  %8035 = vmatprep.subr.bf16.mxu1 %v9745_v9  ;;  %v9589_v2 = vadd.f32 %v12722_v19, %v947_v49  ;;  %v2975_v19 = vld [vmem:[%s17799_s6 + $0x10] sm:$0xff]  ;;  %v3029_v49 = vld [vmem:[%s17799_s6 + $0x1c0] sm:$0xff] }
 0x2bc   :  { %8018 = vmatpush1.bf16.msra.mxu0 %v8017_v3  ;;  %8037 = vmatpush3.bf16.msra.mxu1 %v8036_v4  ;;  %v8050_v3 = vpack.c.bf16 %v2990_v55, %v2989_v52  ;;  %v8056_v22 = vpack.c.bf16 %v2976_v50, %v2975_v19  ;;  %v3031_v61 = vld [vmem:[%s17799_s6 + $0x1d0] sm:$0xff]  ;;  %v3001_v19 = vld [vmem:[%s17799_s6 + $0xe0] sm:$0xff]  ;;  %v3002_v50 = vld [vmem:[%s17799_s6 + $0xe8] sm:$0xff] }
 0x2bd   :  { %8020 = vmatprep.subr.bf16.mxu0 %v8019_v8  ;;  %8038 = vmatprep.subr.bf16.mxu1 %v9745_v9  ;;  %v8052_v8 = vpack.c.bf16 %v2974_v59, %v2973_v0  ;;  %v2296_v16 = vmax.f32 %v9589_v2, 0.0  ;;  %v3014_v59 = vld [vmem:[%s17799_s6 + $0x148] sm:$0xff] }
 0x2be   :  { %2830 = vmatprep.mubr.f32.mxu0 %v9744_v6  ;;  %7044 = vmatprep.mubr.msk.f32.mxu1 %vm9746_vm0, %v9744_v6 }
 0x2c0   :  { %8022 = vmatpush1.bf16.msra.mxu0 %v8021_v53  ;;  %8040 = vmatpush3.bf16.msra.mxu1 %v8039_v34  ;;  %v8086_v53 = vpack.c.bf16 %v3024_v7, %v3023_v15  ;;  %v3008_v34 = vld [vmem:[%s17799_s6 + $0x118] sm:$0xff]  ;;  %v3015_v7 = vld [vmem:[%s17799_s6 + $0x150] sm:$0xff] }
 0x2c1   :  { %8024 = vmatprep.subr.bf16.mxu0 %v8023_v14  ;;  %8041 = vmatprep.subr.bf16.mxu1 %v9745_v9  ;;  %v2994_v14 = vld [vmem:[%s17799_s6 + $0xa8] sm:$0xff]  ;;  %v8088_v23 = vpack.c.bf16 %v3008_v34, %v3007_v40  ;;  %v2984_v15 = vld [vmem:[%s17799_s6 + $0x58] sm:$0xff]  ;;  %v3033_v40 = vld [vmem:[%s17799_s6 + $0x1e0] sm:$0xff] }
 0x2c2   :  { %v8058_v24 = vpack.c.bf16 %v2994_v14, %v2993_v13  ;;  %v8074_v13 = vpack.c.bf16 %v3002_v50, %v3001_v19  ;;  %v2985_v14 = vld [vmem:[%s17799_s6 + $0x60] sm:$0xff]  ;;  %v3421_v19 = vld [vmem:[%s17801_s8 + $0xa8] sm:$0xff] }
 0x2c4   :  { %8026 = vmatpush1.bf16.msra.mxu0 %v8025_v41  ;;  %8043 = vmatpush3.bf16.msra.mxu1 %v8042_v5  ;;  %v2977_v41 = vld [vmem:[%s17799_s6 + $0x20] sm:$0xff]  ;;  %v2978_v5 = vld [vmem:[%s17799_s6 + $0x28] sm:$0xff] }
 0x2c5   :  { %8028 = vmatprep.subr.bf16.mxu0 %v8027_v28  ;;  %8044 = vmatprep.subr.bf16.mxu1 %v9745_v9 }
 0x2c8   :  { %8030 = vmatpush1.bf16.msra.mxu0 %v8029_v37  ;;  %8046 = vmatpush3.bf16.msra.mxu1 %v8045_v38  ;;  %v8060_v37 = vpack.c.bf16 %v2978_v5, %v2977_v41  ;;  %v8092_v38 = vpack.c.bf16 %v3010_v29, %v3009_v27  ;;  %v3004_v41 = vld [vmem:[%s17799_s6 + $0xf8] sm:$0xff]  ;;  %v3035_v5 = vld [vmem:[%s17799_s6 + $0x1f0] sm:$0xff] }
 0x2c9   :  { %8032 = vmatprep.subr.bf16.mxu0 %v8031_v43  ;;  %8047 = vmatprep.subr.bf16.mxu1 %v9745_v9  ;;  %v3021_v9 = vld [vmem:[%s17799_s6 + $0x180] sm:$0xff]  ;;  %v2979_v43 = vld [vmem:[%s17799_s6 + $0x30] sm:$0xff]  ;;  %v3036_v27 = vld [vmem:[%s17799_s6 + $0x1f8] sm:$0xff] }
 0x2ca   :  { %v8082_v4 = vpack.c.bf16 %v3022_v57, %v3021_v9  ;;  %v8064_v52 = vpack.c.bf16 %v2980_v44, %v2979_v43  ;;  %v2981_v9 = vld [vmem:[%s17799_s6 + $0x40] sm:$0xff]  ;;  %v2982_v57 = vld [vmem:[%s17799_s6 + $0x48] sm:$0xff]  ;;  %v3020_v43 = vld [vmem:[%s17799_s6 + $0x178] sm:$0xff]  ;;  %v8080_v44 = vpack.c.bf16 %v2988_v36, %v2987_v35 }
 0x2cb   :  { %v8068_v2 = vpack.c.bf16 %v2982_v57, %v2981_v9  ;;  %v3426_v36 = vld [vmem:[%s17801_s8 + $0xd0] sm:$0xff] }
 0x2cc   :  { %8034 = vmatpush1.bf16.msra.mxu0 %v8033_v47  ;;  %8049 = vmatpush3.bf16.msra.mxu1 %v8048_v48  ;;  %v3012_v47 = vld [vmem:[%s17799_s6 + $0x138] sm:$0xff]  ;;  %v2997_v48 = vld [vmem:[%s17799_s6 + $0xc0] sm:$0xff] }
 0x2cd   :  { %2786 = vmatprep.subr.mxu0 %v2417_v51  ;;  %7042 = vmatprep.subr.mxu1 %v9744_v6  ;;  %v2992_v6 = vld [vmem:[%s17799_s6 + $0x98] sm:$0xff]  ;;  %v3030_v51 = vld [vmem:[%s17799_s6 + $0x1c8] sm:$0xff]  ;;  %v8066_v55 = vpack.c.bf16 %v2998_v25, %v2997_v48  ;;  %v9747_v25 = vmov 0  }
 0x2ce   :  { %v8054_v11 = vpack.c.bf16 %v2992_v6, %v2991_v1  ;;  %v8098_v0 = vpack.c.bf16 %v3030_v51, %v3029_v49  ;;  %v3032_v1 = vld [vmem:[%s17799_s6 + $0x1d8] sm:$0xff]  ;;  %v2983_v6 = vld [vmem:[%s17799_s6 + $0x50] sm:$0xff]  ;;  %9661 = vset.pattern.permute.xlu0 %v9747_v25  ;;  %v3401_v49 = vld [vmem:[%s17801_s8 + $0x8] sm:$0xff] }
 0x2d0   :  { %2787 = vmatpush1.msra.mxu0 %v2416_v54  ;;  %7043 = vmatpush3.msra.mxu1 %v2418_v58  ;;  %v8096_v54 = vpack.c.bf16 %v3012_v47, %v3011_v45  ;;  %v3013_v58 = vld [vmem:[%s17799_s6 + $0x140] sm:$0xff] }
 0x2d1   :  { %6627 = vmatmul.mubr.msk.f32.vlgmr.msra.gmra.mrb[12].mxu0 %vm2478_vm1, %v12763_v63  ;;  %7045 = vmatmul.mubr.msk.f32.vlgmr.msra.gmra.mrb[12].mxu1 %vm2478_vm1, %v12763_v63  ;;  %v3025_v63 = vld [vmem:[%s17799_s6 + $0x1a0] sm:$0xff] }
 0x2d2   :  { %8051 = vmatprep.subr.bf16.mxu0 %v8050_v3  ;;  %8083 = vmatprep.subr.bf16.mxu1 %v8082_v4  ;;  %v8090_v28 = vpack.c.bf16 %v3026_v17, %v3025_v63  ;;  %v8100_v3 = vpack.c.bf16 %v3014_v59, %v3013_v58  ;;  %v8070_v4 = vpack.c.bf16 %v3000_v30, %v2999_v60  ;;  %v3017_v63 = vld [vmem:[%s17799_s6 + $0x160] sm:$0xff]  ;;  %v13158_v17 = vsub.s32 2, %v10070_v62  ;;  %v3402_v58 = vld [vmem:[%s17801_s8 + $0x10] sm:$0xff]  ;;  %v3409_v59 = vld [vmem:[%s17801_s8 + $0x48] sm:$0xff] }
 0x2d3   :  { %8053 = vmatpush3.bf16.msra.mxu0 %v8052_v8  ;;  %3108 = vmatprep.mubr.f32.mxu0 %v2294_v10  ;;  %v8102_v8 = vpack.c.bf16 %v3032_v1, %v3031_v61  ;;  %v3034_v10 = vld [vmem:[%s17799_s6 + $0x1e8] sm:$0xff]  ;;  %v3411_v61 = vld [vmem:[%s17801_s8 + $0x58] sm:$0xff] }
 0x2d4   :  { %8085 = vmatpush3.bf16.msra.mxu1 %v8084_v33  ;;  %3178 = vmatprep.mubr.f32.mxu1 %v2296_v16  ;;  %v3016_v33 = vld [vmem:[%s17799_s6 + $0x158] sm:$0xff]  ;;  %v2986_v16 = vld [vmem:[%s17799_s6 + $0x68] sm:$0xff] }
 0x2d5   :  { %8055 = vmatprep.subr.bf16.mxu0 %v8054_v11  ;;  %8087 = vmatprep.subr.bf16.mxu1 %v8086_v53  ;;  %v8072_v11 = vpack.c.bf16 %v2984_v15, %v2983_v6  ;;  %v13146_v53 = vsub.s32 0, %v10070_v62  ;;  %v8104_v34 = vpack.c.bf16 %v3016_v33, %v3015_v7  ;;  %v3413_v30 = vld [vmem:[%s17801_s8 + $0x68] sm:$0xff]  ;;  %v3415_v1 = vld [vmem:[%s17801_s8 + $0x78] sm:$0xff]  ;;  %v3412_v6 = vld [vmem:[%s17801_s8 + $0x60] sm:$0xff] }
 0x2d6   :  { %v3410_v15 = vld [vmem:[%s17801_s8 + $0x50] sm:$0xff]  ;;  %v3417_v33 = vld [vmem:[%s17801_s8 + $0x88] sm:$0xff] }
 0x2d7   :  { %8057 = vmatpush3.bf16.msra.mxu0 %v8056_v22  ;;  %v8106_v22 = vpack.c.bf16 %v3034_v10, %v3033_v40  ;;  %v935_v29 = vrot.slane %v12728_v21, %v13146_v53  ;;  %v8122_v40 = vpack.c.bf16 %v3421_v19, %v3417_v33  ;;  %v3419_v10 = vld [vmem:[%s17801_s8 + $0x98] sm:$0xff] }
 0x2d8   :  { %8089 = vmatpush3.bf16.msra.mxu1 %v8088_v23  ;;  %8059 = vmatprep.subr.bf16.mxu0 %v8058_v24  ;;  %v3018_v23 = vld [vmem:[%s17799_s6 + $0x168] sm:$0xff]  ;;  %v3003_v24 = vld [vmem:[%s17799_s6 + $0xf0] sm:$0xff] }
 0x2d9   :  { %8091 = vmatprep.subr.bf16.mxu1 %v8090_v28  ;;  %v8076_v28 = vpack.c.bf16 %v2986_v16, %v2985_v14  ;;  %v8108_v31 = vpack.c.bf16 %v3018_v23, %v3017_v63  ;;  %v8078_v32 = vpack.c.bf16 %v3004_v41, %v3003_v24  ;;  %v9586_v45 = vadd.f32 %v12716_v18, %v935_v29  ;;  %v3405_v18 = vld [vmem:[%s17801_s8 + $0x28] sm:$0xff]  ;;  %v3420_v16 = vld [vmem:[%s17801_s8 + $0xa0] sm:$0xff]  ;;  %v3418_v63 = vld [vmem:[%s17801_s8 + $0x90] sm:$0xff] }
 0x2da   :  { %v8114_v51 = vpack.c.bf16 %v3405_v18, %v3401_v49  ;;  %v3425_v24 = vld [vmem:[%s17801_s8 + $0xc8] sm:$0xff]  ;;  %v3431_v29 = vld [vmem:[%s17801_s8 + $0xf8] sm:$0xff]  ;;  %v3436_v49 = vld [vmem:[%s17801_s8 + $0x120] sm:$0xff] }
 0x2db   :  { %8061 = vmatpush3.bf16.msra.mxu0 %v8060_v37  ;;  %v943_v37 = vrot.slane %v12728_v21, %v13158_v17  ;;  %v2293_v21 = vmax.f32 %v9586_v45, 0.0  ;;  %v3429_v41 = vld [vmem:[%s17801_s8 + $0xe8] sm:$0xff]  ;;  %v3434_v18 = vld [vmem:[%s17801_s8 + $0x110] sm:$0xff] }
 0x2dc   :  { %8093 = vmatpush3.bf16.msra.mxu1 %v8092_v38  ;;  %8063 = vmatprep.subr.bf16.mxu0 %v8062_v39  ;;  %v8110_v38 = vpack.c.bf16 %v3036_v27, %v3035_v5  ;;  %v3019_v39 = vld [vmem:[%s17799_s6 + $0x170] sm:$0xff]  ;;  %v3427_v5 = vld [vmem:[%s17801_s8 + $0xd8] sm:$0xff] }
 0x2dd   :  { %8095 = vmatprep.subr.bf16.mxu1 %v8094_v26  ;;  %v8112_v26 = vpack.c.bf16 %v3020_v43, %v3019_v39  ;;  %v9588_v47 = vadd.f32 %v12718_v56, %v943_v37  ;;  %v3403_v56 = vld [vmem:[%s17801_s8 + $0x18] sm:$0xff]  ;;  %v8830_v35 = vpack.c.bf16 %v3431_v29, %v3427_v5  ;;  %v3430_v37 = vld [vmem:[%s17801_s8 + $0xf0] sm:$0xff]  ;;  %v3437_v39 = vld [vmem:[%s17801_s8 + $0x128] sm:$0xff] }
 0x2de   :  { %v3435_v43 = vld [vmem:[%s17801_s8 + $0x118] sm:$0xff]  ;;  %v3448_v5 = vld [vmem:[%s17801_s8 + $0x180] sm:$0xff] }
 0x2df   :  { %8065 = vmatpush3.bf16.msra.mxu0 %v8064_v52  ;;  %v2295_v48 = vmax.f32 %v9588_v47, 0.0  ;;  %v3407_v52 = vld [vmem:[%s17801_s8 + $0x38] sm:$0xff]  ;;  %v3432_v47 = vld [vmem:[%s17801_s8 + $0x100] sm:$0xff] }
 0x2e0   :  { %8097 = vmatpush3.bf16.msra.mxu1 %v8096_v54  ;;  %8067 = vmatprep.subr.bf16.mxu0 %v8066_v55  ;;  %v3400_v54 = vld [vmem:[%s17801_s8] sm:$0xff]  ;;  %v8818_v9 = vpack.c.bf16 %v3407_v52, %v3403_v56  ;;  %v3438_v56 = vld [vmem:[%s17801_s8 + $0x130] sm:$0xff] }
 0x2e1   :  { %8099 = vmatprep.subr.bf16.mxu1 %v8098_v0  ;;  %v3404_v55 = vld [vmem:[%s17801_s8 + $0x20] sm:$0xff]  ;;  %v3406_v0 = vld [vmem:[%s17801_s8 + $0x30] sm:$0xff] }
 0x2e2   :  { %v8116_v57 = vpack.c.bf16 %v3404_v55, %v3400_v54  ;;  %v8820_v60 = vpack.c.bf16 %v3406_v0, %v3402_v58  ;;  %v3441_v55 = vld [vmem:[%s17801_s8 + $0x148] sm:$0xff]  ;;  %v3447_v58 = vld [vmem:[%s17801_s8 + $0x178] sm:$0xff] }
 0x2e3   :  { %8069 = vmatpush3.bf16.msra.mxu0 %v8068_v2  ;;  %v8118_v2 = vpack.c.bf16 %v3413_v30, %v3409_v59  ;;  %v8836_v30 = vpack.c.bf16 %v3438_v56, %v3434_v18  ;;  %v3471_v18 = vld [vmem:[%s17801_s8 + $0x238] sm:$0xff] }
 0x2e4   :  { %8101 = vmatpush3.bf16.msra.mxu1 %v8100_v3  ;;  %8071 = vmatprep.subr.bf16.mxu0 %v8070_v4  ;;  %v8822_v3 = vpack.c.bf16 %v3415_v1, %v3411_v61  ;;  %v3408_v4 = vld [vmem:[%s17801_s8 + $0x40] sm:$0xff] }
 0x2e5   :  { %8103 = vmatprep.subr.bf16.mxu1 %v8102_v8  ;;  %v8120_v7 = vpack.c.bf16 %v3412_v6, %v3408_v4  ;;  %v3414_v8 = vld [vmem:[%s17801_s8 + $0x70] sm:$0xff]  ;;  %v3440_v6 = vld [vmem:[%s17801_s8 + $0x140] sm:$0xff] }
 0x2e6   :  { %v8824_v50 = vpack.c.bf16 %v3414_v8, %v3410_v15  ;;  %v3444_v15 = vld [vmem:[%s17801_s8 + $0x160] sm:$0xff] }
 0x2e7   :  { %8073 = vmatpush3.bf16.msra.mxu0 %v8072_v11  ;;  %v3423_v11 = vld [vmem:[%s17801_s8 + $0xb8] sm:$0xff] }
 0x2e8   :  { %8105 = vmatpush3.bf16.msra.mxu1 %v8104_v34  ;;  %8075 = vmatprep.subr.bf16.mxu0 %v8074_v13  ;;  %v3416_v34 = vld [vmem:[%s17801_s8 + $0x80] sm:$0xff]  ;;  %v8826_v14 = vpack.c.bf16 %v3423_v11, %v3419_v10  ;;  %v3453_v10 = vld [vmem:[%s17801_s8 + $0x1a8] sm:$0xff] }
 0x2e9   :  { %8107 = vmatprep.subr.bf16.mxu1 %v8106_v22  ;;  %v13259_v13 = vld [vmem:[%s17798_s5] sm:$0xff]  ;;  %v3422_v22 = vld [vmem:[%s17801_s8 + $0xb0] sm:$0xff]  ;;  %v8124_v23 = vpack.c.bf16 %v3420_v16, %v3416_v34  ;;  %v3455_v16 = vld [vmem:[%s17801_s8 + $0x1b8] sm:$0xff] }
 0x2ea   :  { %v8828_v27 = vpack.c.bf16 %v3422_v22, %v3418_v63  ;;  %v2426_v45 = vrot.slane %v13259_v13, %v13146_v53  ;;  %v2438_v52 = vrot.slane %v13259_v13, %v12966_v46 }
 0x2eb   :  { %8077 = vmatpush3.bf16.msra.mxu0 %v8076_v28  ;;  %v8126_v28 = vpack.c.bf16 %v3429_v41, %v3425_v24 }
 0x2ec   :  { %8109 = vmatpush3.bf16.msra.mxu1 %v8108_v31  ;;  %8079 = vmatprep.subr.bf16.mxu0 %v8078_v32  ;;  %v3424_v31 = vld [vmem:[%s17801_s8 + $0xc0] sm:$0xff] }
 0x2ed   :  { %8111 = vmatprep.subr.bf16.mxu1 %v8110_v38  ;;  %v3428_v32 = vld [vmem:[%s17801_s8 + $0xe0] sm:$0xff]  ;;  %v3433_v38 = vld [vmem:[%s17801_s8 + $0x108] sm:$0xff] }
 0x2ee   :  { %v8130_v25 = vpack.c.bf16 %v3437_v39, %v3433_v38 }
 0x2ef   :  { %8081 = vmatpush3.bf16.msra.mxu0 %v8080_v44  ;;  %v3439_v44 = vld [vmem:[%s17801_s8 + $0x138] sm:$0xff] }
 0x2f0   :  { %8113 = vmatpush3.bf16.msra.mxu1 %v8112_v26  ;;  %8115 = vmatprep.subr.bf16.mxu0 %v8114_v51  ;;  %v8128_v26 = vpack.c.bf16 %v3428_v32, %v3424_v31  ;;  %v2430_v51 = vrot.slane %v13259_v13, %v12953_v42  ;;  %v8834_v54 = vpack.c.bf16 %v3439_v44, %v3435_v43  ;;  %v3454_v31 = vld [vmem:[%s17801_s8 + $0x1b0] sm:$0xff]  ;;  %v3457_v32 = vld [vmem:[%s17801_s8 + $0x1c8] sm:$0xff]  ;;  %v3456_v44 = vld [vmem:[%s17801_s8 + $0x1c0] sm:$0xff] }
 0x2f1   :  { %8819 = vmatprep.subr.bf16.mxu1 %v8818_v9  ;;  %v3445_v9 = vld [vmem:[%s17801_s8 + $0x168] sm:$0xff] }
 0x2f2   :  { %3109 = vmatmul.mubr.f32.vlgmr.msra.gmra.mrb[14].mxu0 %v2293_v21  ;;  %v2434_v21 = vrot.slane %v13259_v13, %v13158_v17  ;;  %v8134_v4 = vpack.c.bf16 %v3445_v9, %v3441_v55  ;;  %v3468_v55 = vld [vmem:[%s17801_s8 + $0x220] sm:$0xff]  ;;  %v3466_v9 = vld [vmem:[%s17801_s8 + $0x210] sm:$0xff] }
 0x2f3   :  { %3179 = vmatmul.mubr.f32.vlgmr.msra.gmra.mrb[14].mxu1 %v2295_v48  ;;  %8117 = vmatpush1.bf16.msra.mxu0 %v8116_v57  ;;  %v8832_v48 = vpack.c.bf16 %v3430_v37, %v3426_v36  ;;  %v3443_v57 = vld [vmem:[%s17801_s8 + $0x158] sm:$0xff] }
 0x2f4   :  { %8821 = vmatpush1.bf16.msra.mxu1 %v8820_v60  ;;  %8119 = vmatprep.subr.bf16.mxu0 %v8118_v2  ;;  %v8132_v60 = vpack.c.bf16 %v3436_v49, %v3432_v47  ;;  %v8838_v19 = vpack.c.bf16 %v3447_v58, %v3443_v57  ;;  %v3459_v36 = vld [vmem:[%s17801_s8 + $0x1d8] sm:$0xff]  ;;  %v3470_v58 = vld [vmem:[%s17801_s8 + $0x230] sm:$0xff] }
 0x2f5   :  { %8823 = vmatprep.subr.bf16.mxu1 %v8822_v3  ;;  %v3463_v37 = vld [vmem:[%s17801_s8 + $0x1f8] sm:$0xff] }
 0x2f6   :  { %v8846_v47 = vpack.c.bf16 %v3463_v37, %v3459_v36  ;;  %v3467_v49 = vld [vmem:[%s17801_s8 + $0x218] sm:$0xff]  ;;  %v3484_v36 = vld [vmem:[%s17801_s8 + $0x2a0] sm:$0xff]  ;;  %v3482_v37 = vld [vmem:[%s17801_s8 + $0x290] sm:$0xff] }
 0x2f7   :  { %8121 = vmatpush1.bf16.msra.mxu0 %v8120_v7  ;;  %v3442_v7 = vld [vmem:[%s17801_s8 + $0x150] sm:$0xff]  ;;  %v8850_v57 = vpack.c.bf16 %v3471_v18, %v3467_v49  ;;  %v3495_v49 = vld [vmem:[%s17801_s8 + $0x2f8] sm:$0xff] }
 0x2f8   :  { %8825 = vmatpush1.bf16.msra.mxu1 %v8824_v50  ;;  %8123 = vmatprep.subr.bf16.mxu0 %v8122_v40  ;;  %v3446_v50 = vld [vmem:[%s17801_s8 + $0x170] sm:$0xff]  ;;  %v3449_v40 = vld [vmem:[%s17801_s8 + $0x188] sm:$0xff] }
 0x2f9   :  { %8827 = vmatprep.subr.bf16.mxu1 %v8826_v14  ;;  %v3451_v14 = vld [vmem:[%s17801_s8 + $0x198] sm:$0xff]  ;;  %v8840_v24 = vpack.c.bf16 %v3446_v50, %v3442_v7  ;;  %v8138_v41 = vpack.c.bf16 %v3453_v10, %v3449_v40  ;;  %v3472_v50 = vld [vmem:[%s17801_s8 + $0x240] sm:$0xff]  ;;  %v3474_v10 = vld [vmem:[%s17801_s8 + $0x250] sm:$0xff] }
 0x2fa   :  { %v8842_v29 = vpack.c.bf16 %v3455_v16, %v3451_v14  ;;  %v3476_v40 = vld [vmem:[%s17801_s8 + $0x260] sm:$0xff]  ;;  %v3478_v16 = vld [vmem:[%s17801_s8 + $0x270] sm:$0xff] }
 0x2fb   :  { %8125 = vmatpush1.bf16.msra.mxu0 %v8124_v23  ;;  %v8136_v23 = vpack.c.bf16 %v3444_v15, %v3440_v6  ;;  %v2453_v6 = vsub.s32 7, %v10070_v62 }
 0x2fc   :  { %8829 = vmatpush1.bf16.msra.mxu1 %v8828_v27  ;;  %8127 = vmatprep.subr.bf16.mxu0 %v8126_v28  ;;  %v3452_v27 = vld [vmem:[%s17801_s8 + $0x1a0] sm:$0xff]  ;;  %v3450_v28 = vld [vmem:[%s17801_s8 + $0x190] sm:$0xff] }
 0x2fd   :  { %8831 = vmatprep.subr.bf16.mxu1 %v8830_v35  ;;  %v3461_v35 = vld [vmem:[%s17801_s8 + $0x1e8] sm:$0xff]  ;;  %v8140_v38 = vpack.c.bf16 %v3452_v27, %v3448_v5  ;;  %v8844_v39 = vpack.c.bf16 %v3454_v31, %v3450_v28  ;;  %v3483_v5 = vld [vmem:[%s17801_s8 + $0x298] sm:$0xff]  ;;  %v8152_v31 = vpack.c.bf16 %v3476_v40, %v3472_v50  ;;  %v3500_v50 = vld [vmem:[%s17801_s8 + $0x320] sm:$0xff] }
 0x2fe   :  { %v8142_v43 = vpack.c.bf16 %v3461_v35, %v3457_v32  ;;  %v3487_v27 = vld [vmem:[%s17801_s8 + $0x2b8] sm:$0xff]  ;;  %v3480_v35 = vld [vmem:[%s17801_s8 + $0x280] sm:$0xff]  ;;  %v3498_v40 = vld [vmem:[%s17801_s8 + $0x310] sm:$0xff] }
 0x2ff   :  { %8129 = vmatpush1.bf16.msra.mxu0 %v8128_v26  ;;  %v3458_v26 = vld [vmem:[%s17801_s8 + $0x1d0] sm:$0xff] }
 0x300   :  { %8833 = vmatpush1.bf16.msra.mxu1 %v8832_v48  ;;  %8131 = vmatprep.subr.bf16.mxu0 %v8130_v25  ;;  %v3465_v48 = vld [vmem:[%s17801_s8 + $0x208] sm:$0xff] }
 0x301   :  { %8835 = vmatprep.subr.bf16.mxu1 %v8834_v54  ;;  %v3469_v25 = vld [vmem:[%s17801_s8 + $0x228] sm:$0xff]  ;;  %v3464_v54 = vld [vmem:[%s17801_s8 + $0x200] sm:$0xff] }
 0x302   :  { %v8148_v15 = vpack.c.bf16 %v3468_v55, %v3464_v54  ;;  %v3492_v54 = vld [vmem:[%s17801_s8 + $0x2e0] sm:$0xff] }
 0x303   :  { %8133 = vmatpush1.bf16.msra.mxu0 %v8132_v60 }
 0x304   :  { %8837 = vmatpush1.bf16.msra.mxu1 %v8836_v30  ;;  %8135 = vmatprep.subr.bf16.mxu0 %v8134_v4  ;;  %v2449_v30 = vsub.s32 6, %v10070_v62  ;;  %v2445_v4 = vsub.s32 5, %v10070_v62 }
 0x305   :  { %8839 = vmatprep.subr.bf16.mxu1 %v8838_v19 }
 0x306   :  { %v2446_v28 = vrot.slane %v13259_v13, %v2445_v4  ;;  %v3503_v4 = vld [vmem:[%s17801_s8 + $0x338] sm:$0xff] }
 0x307   :  { %8137 = vmatpush1.bf16.msra.mxu0 %v8136_v23 }
 0x308   :  { %8841 = vmatpush1.bf16.msra.mxu1 %v8840_v24  ;;  %8139 = vmatprep.subr.bf16.mxu0 %v8138_v41  ;;  %v2442_v24 = vrot.slane %v13259_v13, %v950_v20  ;;  %v2450_v41 = vrot.slane %v13259_v13, %v2449_v30  ;;  %v8856_v20 = vpack.c.bf16 %v3478_v16, %v3474_v10  ;;  %v3509_v16 = vld [vmem:[%s17801_s8 + $0x368] sm:$0xff] }
 0x309   :  { %8843 = vmatprep.subr.bf16.mxu1 %v8842_v29  ;;  %v2454_v29 = vrot.slane %v13259_v13, %v2453_v6 }
 0x30b   :  { %8141 = vmatpush1.bf16.msra.mxu0 %v8140_v38 }
 0x30c   :  { %8845 = vmatpush1.bf16.msra.mxu1 %v8844_v39  ;;  %8143 = vmatprep.subr.bf16.mxu0 %v8142_v43  ;;  %v8858_v39 = vpack.c.bf16 %v3487_v27, %v3483_v5  ;;  %v3486_v43 = vld [vmem:[%s17801_s8 + $0x2b0] sm:$0xff] }
 0x30d   :  { %8847 = vmatprep.subr.bf16.mxu1 %v8846_v47 }
 0x377   :  { %v2548_v0 = vpop.f32.mrb[8].mxu0  ;;  %v2619_v59 = vpop.f32.mrb[8].mxu1 }
 0x378   :  { %v2549_v61 = vadd.f32 %v2548_v0, %v2426_v45  ;;  %v2620_v1 = vadd.f32 %v2619_v59, %v2434_v21  ;;  %v2550_v2 = vpop.f32.mrb[9].mxu0  ;;  %v2621_v3 = vpop.f32.mrb[9].mxu1  ;;  %v3460_v45 = vld [vmem:[%s17801_s8 + $0x1e0] sm:$0xff]  ;;  %v3462_v21 = vld [vmem:[%s17801_s8 + $0x1f0] sm:$0xff]  ;;  %v3473_v0 = vld [vmem:[%s17801_s8 + $0x248] sm:$0xff] }
 0x379   :  { %v2551_v8 = vadd.f32 %v2550_v2, %v2430_v51  ;;  %v2622_v33 = vadd.f32 %v2621_v3, %v2438_v52  ;;  %v8144_v56 = vpack.c.bf16 %v3460_v45, %v3456_v44  ;;  %v8848_v51 = vpack.c.bf16 %v3462_v21, %v3458_v26  ;;  %v3477_v59 = vld [vmem:[%s17801_s8 + $0x268] sm:$0xff] }
 0x37a   :  { %v6629_v11 = vmul.f32 -1.442695, %v2549_v61  ;;  %v6631_v34 = vmul.f32 -1.442695, %v2620_v1  ;;  %v8146_v52 = vpack.c.bf16 %v3469_v25, %v3465_v48  ;;  %v3475_v61 = vld [vmem:[%s17801_s8 + $0x258] sm:$0xff]  ;;  %v8150_v19 = vpack.c.bf16 %v3477_v59, %v3473_v0  ;;  %v3489_v44 = vld [vmem:[%s17801_s8 + $0x2c8] sm:$0xff] }
 0x37b   :  { %v6630_v63 = vmul.f32 -1.442695, %v2551_v8  ;;  %v6632_v22 = vmul.f32 -1.442695, %v2622_v33  ;;  %v3479_v1 = vld [vmem:[%s17801_s8 + $0x278] sm:$0xff]  ;;  %8145 = vmatpush1.bf16.msra.mxu0 %v8144_v56  ;;  %8849 = vmatpush1.bf16.msra.mxu1 %v8848_v51  ;;  %v8852_v33 = vpack.c.bf16 %v3470_v58, %v3466_v9  ;;  %v3493_v45 = vld [vmem:[%s17801_s8 + $0x2e8] sm:$0xff]  ;;  %v8156_v51 = vpack.c.bf16 %v3484_v36, %v3480_v35 }
 0x37c   :  { %9668 = vpow2.f32 %v6629_v11  ;;  %8147 = vmatprep.subr.bf16.mxu0 %v8146_v52  ;;  %8851 = vmatprep.subr.bf16.mxu1 %v8850_v57  ;;  %v8854_v14 = vpack.c.bf16 %v3479_v1, %v3475_v61  ;;  %v3491_v25 = vld [vmem:[%s17801_s8 + $0x2d8] sm:$0xff]  ;;  %v3488_v52 = vld [vmem:[%s17801_s8 + $0x2c0] sm:$0xff]  ;;  %v8860_v57 = vpack.c.bf16 %v3486_v43, %v3482_v37  ;;  %v8158_v58 = vpack.c.bf16 %v3493_v45, %v3489_v44  ;;  %v3490_v0 = vld [vmem:[%s17801_s8 + $0x2d0] sm:$0xff] }
 0x37d   :  { %9670 = vpow2.f32 %v6631_v34  ;;  %v3494_v59 = vld [vmem:[%s17801_s8 + $0x2f0] sm:$0xff]  ;;  %v8862_v61 = vpack.c.bf16 %v3495_v49, %v3491_v25  ;;  %v3497_v1 = vld [vmem:[%s17801_s8 + $0x308] sm:$0xff] }
 0x37e   :  { %9672 = vpow2.f32 %v6630_v63  ;;  %v3481_v63 = vld [vmem:[%s17801_s8 + $0x288] sm:$0xff]  ;;  %v3506_v35 = vld [vmem:[%s17801_s8 + $0x350] sm:$0xff] }
 0x37f   :  { %9674 = vpow2.f32 %v6632_v22  ;;  %v3485_v22 = vld [vmem:[%s17801_s8 + $0x2a8] sm:$0xff]  ;;  %8149 = vmatpush1.bf16.msra.mxu0 %v8148_v15  ;;  %8853 = vmatpush1.bf16.msra.mxu1 %v8852_v33  ;;  %v8160_v15 = vpack.c.bf16 %v3492_v54, %v3488_v52  ;;  %v3510_v36 = vld [vmem:[%s17801_s8 + $0x370] sm:$0xff] }
 0x380   :  { %8151 = vmatprep.subr.bf16.mxu0 %v8150_v19  ;;  %v8154_v32 = vpack.c.bf16 %v3485_v22, %v3481_v63  ;;  %8855 = vmatprep.subr.bf16.mxu1 %v8854_v14  ;;  %v3496_v19 = vld [vmem:[%s17801_s8 + $0x300] sm:$0xff]  ;;  %v3505_v14 = vld [vmem:[%s17801_s8 + $0x348] sm:$0xff]  ;;  %v3507_v22 = vld [vmem:[%s17801_s8 + $0x358] sm:$0xff]  ;;  %v8872_v43 = vpack.c.bf16 %v3510_v36, %v3506_v35 }
 0x383   :  { %8153 = vmatpush1.bf16.msra.mxu0 %v8152_v31  ;;  %8857 = vmatpush1.bf16.msra.mxu1 %v8856_v20  ;;  %v3508_v31 = vld [vmem:[%s17801_s8 + $0x360] sm:$0xff] }
 0x384   :  { %8155 = vmatprep.subr.bf16.mxu0 %v8154_v32  ;;  %8859 = vmatprep.subr.bf16.mxu1 %v8858_v39 }
 0x386   :  { %v9669_v60 = vpop.eup %9668 }
 0x387   :  { %v9671_v2 = vpop.eup %9670  ;;  %v2940_v3 = vadd.f32 1.0, %v9669_v60  ;;  %8157 = vmatpush1.bf16.msra.mxu0 %v8156_v51  ;;  %8861 = vmatpush1.bf16.msra.mxu1 %v8860_v57 }
 0x388   :  { %v9673_v7 = vpop.eup %9672  ;;  %v2942_v8 = vadd.f32 1.0, %v9671_v2  ;;  %v3501_v2 = vld [vmem:[%s17801_s8 + $0x328] sm:$0xff]  ;;  %8159 = vmatprep.subr.bf16.mxu0 %v8158_v58  ;;  %8863 = vmatprep.subr.bf16.mxu1 %v8862_v61 }
 0x389   :  { %v9675_v11 = vpop.eup %9674  ;;  %9676 = vrcp.f32 %v2940_v3  ;;  %v2941_v34 = vadd.f32 1.0, %v9673_v7  ;;  %v3499_v3 = vld [vmem:[%s17801_s8 + $0x318] sm:$0xff]  ;;  %v8162_v33 = vpack.c.bf16 %v3501_v2, %v3497_v1 }
 0x38a   :  { %9678 = vrcp.f32 %v2942_v8  ;;  %v2943_v23 = vadd.f32 1.0, %v9675_v11  ;;  %v8864_v8 = vpack.c.bf16 %v3494_v59, %v3490_v0  ;;  %v8866_v11 = vpack.c.bf16 %v3503_v4, %v3499_v3 }
 0x38b   :  { %9680 = vrcp.f32 %v2941_v34  ;;  %v3502_v34 = vld [vmem:[%s17801_s8 + $0x330] sm:$0xff]  ;;  %8161 = vmatpush1.bf16.msra.mxu0 %v8160_v15 }
 0x38c   :  { %9682 = vrcp.f32 %v2943_v23  ;;  %v3511_v23 = vld [vmem:[%s17801_s8 + $0x378] sm:$0xff]  ;;  %8865 = vmatpush1.bf16.msra.mxu1 %v8864_v8  ;;  %8163 = vmatprep.subr.bf16.mxu0 %v8162_v33  ;;  %v8868_v27 = vpack.c.bf16 %v3502_v34, %v3498_v40 }
 0x38d   :  { %v2690_v13 = vpop.f32.mrb[10].mxu0  ;;  %v2761_v38 = vpop.f32.mrb[10].mxu1  ;;  %8867 = vmatprep.subr.bf16.mxu1 %v8866_v11  ;;  %v8870_v32 = vpack.c.bf16 %v3511_v23, %v3507_v22 }
 0x38e   :  { %v2691_v26 = vadd.f32 %v2690_v13, %v2442_v24  ;;  %v2762_v47 = vadd.f32 %v2761_v38, %v2450_v41  ;;  %v2692_v21 = vpop.f32.mrb[11].mxu0  ;;  %v2763_v48 = vpop.f32.mrb[11].mxu1  ;;  %v8164_v41 = vpack.c.bf16 %v3500_v50, %v3496_v19 }
 0x38f   :  { %v2693_v18 = vadd.f32 %v2692_v21, %v2446_v28  ;;  %v2764_v56 = vadd.f32 %v2763_v48, %v2454_v29  ;;  %v8166_v28 = vpack.c.bf16 %v3509_v16, %v3505_v14  ;;  %v3504_v29 = vld [vmem:[%s17801_s8 + $0x340] sm:$0xff]  ;;  %v2420_v21 = vld [vmem:[%s17798_s5 + $0x8] sm:$0x7] }
 0x390   :  { %v6633_v55 = vmul.f32 -1.442695, %v2691_v26  ;;  %v6635_v9 = vmul.f32 -1.442695, %v2762_v47  ;;  %8165 = vmatpush1.bf16.msra.mxu0 %v8164_v41  ;;  %v8168_v13 = vpack.c.bf16 %v3508_v31, %v3504_v29  ;;  %8869 = vmatpush1.bf16.msra.mxu1 %v8868_v27  ;;  %v2462_v51 = vrot.slane %v2420_v21, %v12953_v42 }
 0x391   :  { %v6634_v60 = vmul.f32 -1.442695, %v2693_v18  ;;  %v6636_v30 = vmul.f32 -1.442695, %v2764_v56  ;;  %8167 = vmatprep.subr.bf16.mxu0 %v8166_v28  ;;  %8871 = vmatprep.subr.bf16.mxu1 %v8870_v32  ;;  %v2458_v18 = vrot.slane %v2420_v21, %v13146_v53  ;;  %v2466_v56 = vrot.slane %v2420_v21, %v13158_v17 }
 0x392   :  { %9684 = vpow2.f32 %v6633_v55 }
 0x393   :  { %v9677_v6 = vpop.eup %9676  ;;  %9686 = vpow2.f32 %v6635_v9 }
 0x394   :  { %v9679_v7 = vpop.eup %9678  ;;  %9688 = vpow2.f32 %v6634_v60  ;;  %8169 = vmatpush1.bf16.msra.mxu0 %v8168_v13  ;;  %8873 = vmatpush1.bf16.msra.mxu1 %v8872_v43 }
 0x395   :  { %v9681_v10 = vpop.eup %9680  ;;  %9690 = vpow2.f32 %v6636_v30 }
 0x396   :  { %v9683_v63 = vpop.eup %9682  ;;  %v3201_v24 = vcombine.low %v9677_v6, %v9681_v10 }
 0x397   :  { %v3202_v5 = vcombine.low %v9679_v7, %v9683_v63 }
 0x398   :  { %v13546_v20 = vrot.slane %v3201_v24, %v10097_v12 }
 0x399   :  { %v13555_v37 = vrot.slane %v3202_v5, %v10097_v12  ;;  %v6640_v5 = vld [vmem:[#allocation2] ss:$0 sm:$0xff] }
 0x39b   :  { %v3217_v38 = vcombine.low %v13546_v20, %v13555_v37  ;;  %v3528_v20 = vld [vmem:[%s17801_s8 + $0x400] sm:$0xff] }
 0x39c   :  { %v9685_v39 = vpop.eup %9684  ;;  %v3532_v37 = vld [vmem:[%s17801_s8 + $0x420] sm:$0xff] }
 0x39d   :  { %v9687_v44 = vpop.eup %9686  ;;  %v2944_v45 = vadd.f32 1.0, %v9685_v39 }
 0x39e   :  { %v9689_v26 = vpop.eup %9688  ;;  %v2946_v47 = vadd.f32 1.0, %v9687_v44  ;;  %v3513_v44 = vld [vmem:[%s17801_s8 + $0x388] sm:$0xff] }
 0x39f   :  { %v9691_v48 = vpop.eup %9690  ;;  %9692 = vrcp.f32 %v2944_v45  ;;  %v2945_v25 = vadd.f32 1.0, %v9689_v26  ;;  %v3517_v45 = vld [vmem:[%s17801_s8 + $0x3a8] sm:$0xff]  ;;  %v3515_v26 = vld [vmem:[%s17801_s8 + $0x398] sm:$0xff] }
 0x3a0   :  { %9694 = vrcp.f32 %v2946_v47  ;;  %v2947_v49 = vadd.f32 1.0, %v9691_v48  ;;  %v8170_v21 = vpack.c.bf16 %v3517_v45, %v3513_v44  ;;  %v3519_v48 = vld [vmem:[%s17801_s8 + $0x3b8] sm:$0xff]  ;;  %v3536_v45 = vld [vmem:[%s17801_s8 + $0x440] sm:$0xff] }
 0x3a1   :  { %9696 = vrcp.f32 %v2945_v25  ;;  %v3512_v25 = vld [vmem:[%s17801_s8 + $0x380] sm:$0xff] }
 0x3a2   :  { %9698 = vrcp.f32 %v2947_v49  ;;  %v3516_v49 = vld [vmem:[%s17801_s8 + $0x3a0] sm:$0xff]  ;;  %8171 = vmatprep.subr.bf16.mxu0 %v8170_v21  ;;  %v3542_v21 = vld [vmem:[%s17801_s8 + $0x470] sm:$0xff] }
 0x3a4   :  { %v2832_v52 = vpop.f32.mrb[12].mxu0  ;;  %v2903_v54 = vpop.f32.mrb[12].mxu1 }
 0x3a5   :  { %v2833_v55 = vadd.f32 %v2832_v52, %v2458_v18  ;;  %v2904_v9 = vadd.f32 %v2903_v54, %v2466_v56  ;;  %v2834_v57 = vpop.f32.mrb[13].mxu0  ;;  %v7046_v58 = vpop.f32.mrb[13].mxu1  ;;  %v8874_v18 = vpack.c.bf16 %v3519_v48, %v3515_v26  ;;  %v8172_v56 = vpack.c.bf16 %v3516_v49, %v3512_v25  ;;  %v3518_v52 = vld [vmem:[%s17801_s8 + $0x3b0] sm:$0xff]  ;;  %v3540_v26 = vld [vmem:[%s17801_s8 + $0x460] sm:$0xff]  ;;  %v3545_v48 = vld [vmem:[%s17801_s8 + $0x488] sm:$0xff] }
 0x3a6   :  { %v2835_v0 = vadd.f32 %v2834_v57, %v2462_v51  ;;  %v3514_v51 = vld [vmem:[%s17801_s8 + $0x390] sm:$0xff]  ;;  %v3523_v57 = vld [vmem:[%s17801_s8 + $0x3d8] sm:$0xff] }
 0x3a7   :  { %v6637_v59 = vmul.f32 -1.442695, %v2833_v55  ;;  %v6639_v60 = vmul.f32 -1.442695, %v2904_v9  ;;  %v8876_v54 = vpack.c.bf16 %v3518_v52, %v3514_v51  ;;  %8875 = vmatprep.subr.bf16.mxu1 %v8874_v18  ;;  %8173 = vmatpush1.bf16.msra.mxu0 %v8172_v56  ;;  %v3521_v55 = vld [vmem:[%s17801_s8 + $0x3c8] sm:$0xff]  ;;  %v3547_v51 = vld [vmem:[%s17801_s8 + $0x498] sm:$0xff] }
 0x3a8   :  { %v6638_v30 = vmul.f32 -1.442695, %v2835_v0  ;;  %v3525_v9 = vld [vmem:[%s17801_s8 + $0x3e8] sm:$0xff]  ;;  %v3527_v0 = vld [vmem:[%s17801_s8 + $0x3f8] sm:$0xff] }
 0x3a9   :  { %v9693_v61 = vpop.eup %9692  ;;  %9700 = vpow2.f32 %v6637_v59  ;;  %8877 = vmatpush1.bf16.msra.mxu1 %v8876_v54  ;;  %v8174_v58 = vpack.c.bf16 %v3525_v9, %v3521_v55  ;;  %v3520_v59 = vld [vmem:[%s17801_s8 + $0x3c0] sm:$0xff]  ;;  %v3549_v56 = vld [vmem:[%s17801_s8 + $0x4a8] sm:$0xff]  ;;  %v3551_v52 = vld [vmem:[%s17801_s8 + $0x4b8] sm:$0xff]  ;;  %v8184_v54 = vpack.c.bf16 %v3540_v26, %v3536_v45 }
 0x3aa   :  { %v9695_v1 = vpop.eup %9694  ;;  %9702 = vpow2.f32 %v6639_v60  ;;  %v3524_v60 = vld [vmem:[%s17801_s8 + $0x3e0] sm:$0xff]  ;;  %v3581_v45 = vld [vmem:[%s17801_s8 + $0x5a8] sm:$0xff]  ;;  %v3579_v26 = vld [vmem:[%s17801_s8 + $0x598] sm:$0xff] }
 0x3ab   :  { %v9697_v2 = vpop.eup %9696  ;;  %9704 = vpow2.f32 %v6638_v30  ;;  %v8878_v30 = vpack.c.bf16 %v3527_v0, %v3523_v57  ;;  %8175 = vmatprep.subr.bf16.mxu0 %v8174_v58  ;;  %v3544_v9 = vld [vmem:[%s17801_s8 + $0x480] sm:$0xff]  ;;  %v8186_v58 = vpack.c.bf16 %v3549_v56, %v3545_v48  ;;  %v8890_v0 = vpack.c.bf16 %v3551_v52, %v3547_v51  ;;  %v3578_v51 = vld [vmem:[%s17801_s8 + $0x590] sm:$0xff] }
 0x3ac   :  { %v9699_v3 = vpop.eup %9698  ;;  %v3218_v4 = vcombine.low %v9693_v61, %v9697_v2  ;;  %v8176_v61 = vpack.c.bf16 %v3524_v60, %v3520_v59  ;;  %v3526_v2 = vld [vmem:[%s17801_s8 + $0x3f0] sm:$0xff]  ;;  %v3548_v57 = vld [vmem:[%s17801_s8 + $0x4a0] sm:$0xff] }
 0x3ad   :  { %v3219_v6 = vcombine.low %v9695_v1, %v9699_v3  ;;  %v3522_v1 = vld [vmem:[%s17801_s8 + $0x3d0] sm:$0xff]  ;;  %8879 = vmatprep.subr.bf16.mxu1 %v8878_v30  ;;  %v3553_v30 = vld [vmem:[%s17801_s8 + $0x4c8] sm:$0xff] }
 0x3ae   :  { %v13566_v15 = vrot.slane %v3218_v4, %v10097_v12  ;;  %v8880_v3 = vpack.c.bf16 %v3526_v2, %v3522_v1  ;;  %8177 = vmatpush1.bf16.msra.mxu0 %v8176_v61  ;;  %v3529_v4 = vld [vmem:[%s17801_s8 + $0x408] sm:$0xff]  ;;  %v3546_v59 = vld [vmem:[%s17801_s8 + $0x490] sm:$0xff]  ;;  %v3555_v1 = vld [vmem:[%s17801_s8 + $0x4d8] sm:$0xff] }
 0x3af   :  { %v13569_v7 = vrot.slane %v3219_v6, %v10097_v12  ;;  %v3533_v6 = vld [vmem:[%s17801_s8 + $0x428] sm:$0xff]  ;;  %v3550_v60 = vld [vmem:[%s17801_s8 + $0x4b0] sm:$0xff]  ;;  %v3559_v2 = vld [vmem:[%s17801_s8 + $0x4f8] sm:$0xff] }
 0x3b0   :  { %8881 = vmatpush1.bf16.msra.mxu1 %v8880_v3  ;;  %v3557_v61 = vld [vmem:[%s17801_s8 + $0x4e8] sm:$0xff]  ;;  %v8188_v3 = vpack.c.bf16 %v3548_v57, %v3544_v9  ;;  %v3582_v52 = vld [vmem:[%s17801_s8 + $0x5b0] sm:$0xff]  ;;  %v3587_v9 = vld [vmem:[%s17801_s8 + $0x5d8] sm:$0xff] }
 0x3b1   :  { %v3234_v8 = vcombine.low %v13566_v15, %v13569_v7  ;;  %v3534_v15 = vld [vmem:[%s17801_s8 + $0x430] sm:$0xff]  ;;  %v3591_v57 = vld [vmem:[%s17801_s8 + $0x5f8] sm:$0xff] }
 0x3b3   :  { %v9701_v33 = vpop.eup %9700 }
 0x3b4   :  { %v9703_v19 = vpop.eup %9702  ;;  %v2948_v50 = vadd.f32 1.0, %v9701_v33  ;;  %v3531_v33 = vld [vmem:[%s17801_s8 + $0x418] sm:$0xff] }
 0x3b5   :  { %v9705_v40 = vpop.eup %9704  ;;  %v2950_v10 = vadd.f32 1.0, %v9703_v19  ;;  %v8178_v19 = vpack.c.bf16 %v3533_v6, %v3529_v4  ;;  %v8892_v4 = vpack.c.bf16 %v3550_v60, %v3546_v59  ;;  %v3552_v6 = vld [vmem:[%s17801_s8 + $0x4c0] sm:$0xff] }
 0x3b6   :  { %9706 = vrcp.f32 %v2948_v50  ;;  %v2949_v11 = vadd.f32 1.0, %v9705_v40  ;;  %v3535_v50 = vld [vmem:[%s17801_s8 + $0x438] sm:$0xff]  ;;  %v3584_v59 = vld [vmem:[%s17801_s8 + $0x5c0] sm:$0xff] }
 0x3b7   :  { %9708 = vrcp.f32 %v2950_v10  ;;  %v8882_v40 = vpack.c.bf16 %v3535_v50, %v3531_v33  ;;  %8179 = vmatprep.subr.bf16.mxu0 %v8178_v19  ;;  %v9748_v10 = vmov 269488144   ;;  %v3556_v33 = vld [vmem:[%s17801_s8 + $0x4e0] sm:$0xff]  ;;  %v8190_v19 = vpack.c.bf16 %v3557_v61, %v3553_v30 }
 0x3b8   :  { %9710 = vrcp.f32 %v2949_v11  ;;  %v3262_v11 = vunpack.c.l.s4 %v9748_v10  ;;  %v8894_v50 = vpack.c.bf16 %v3559_v2, %v3555_v1  ;;  %v3558_v10 = vld [vmem:[%s17801_s8 + $0x4f0] sm:$0xff]  ;;  %v3588_v60 = vld [vmem:[%s17801_s8 + $0x5e0] sm:$0xff]  ;;  %v8910_v61 = vpack.c.bf16 %v3591_v57, %v3587_v9 }
 0x3b9   :  { %8883 = vmatprep.subr.bf16.mxu1 %v8882_v40  ;;  %v3554_v40 = vld [vmem:[%s17801_s8 + $0x4d0] sm:$0xff] }
 0x3ba   :  { %v3586_v1 = vld [vmem:[%s17801_s8 + $0x5d0] sm:$0xff] }
 0x3bb   :  { %v3590_v2 = vld [vmem:[%s17801_s8 + $0x5f0] sm:$0xff] }
 0x3bc   :  { %v3618_v9 = vld [vmem:[%s17801_s8 + $0x6d0] sm:$0xff] }
 0x3bd   :  { %v3622_v57 = vld [vmem:[%s17801_s8 + $0x6f0] sm:$0xff] }
 0x3c0   :  { %v9707_v34 = vpop.eup %9706 }
 0x3c1   :  { %v9709_v14 = vpop.eup %9708 }
 0x3c2   :  { %v9711_v16 = vpop.eup %9710  ;;  %v3249_v24 = vrot.slane %v9709_v14, %v10097_v12 }
 0x3c3   :  { %v3235_v63 = vcombine.low %v9707_v34, %v9711_v16  ;;  %v3263_v34 = vunpack.c.0.s8 %v3262_v11  ;;  %v3561_v11 = vld [vmem:[%s17801_s8 + $0x508] sm:$0xff] }
 0x3c5   :  { %v6879_v22 = vpop.f32.mrb[14].mxu0  ;;  %v3242_v23 = vrot.slane %v3235_v63, %v10097_v12  ;;  %v3266_v14 = vsub.s32 %v3263_v34, %v10070_v62  ;;  %v9716_v63 = vld [vmem:[%s17793_s0] sm:$0xff]  ;;  %v9718_v62 = vld [vmem:[%s17793_s0 + $0x10] sm:$0x3f]  ;;  %v3565_v34 = vld [vmem:[%s17801_s8 + $0x528] sm:$0xff] }
 0x3c6   :  { %v6914_v41 = vpop.f32.mrb[14].mxu1  ;;  %v6880_v27 = vpop.f32.mrb[15].mxu0 }
 0x3c7   :  { %v6881_v28 = vadd.f32 %v6880_v27, %v6879_v22  ;;  %v6915_v29 = vpop.f32.mrb[15].mxu1  ;;  %v3250_v31 = vcombine.low %v3242_v23, %v3249_v24  ;;  %v3254_v22 = vmul.f32 %v9716_v63, %v3217_v38  ;;  %v9717_v23 = vld [vmem:[%s17793_s0 + $0x8] sm:$0xff]  ;;  %v3530_v38 = vld [vmem:[%s17801_s8 + $0x410] sm:$0xff]  ;;  %v8192_v63 = vpack.c.bf16 %v3556_v33, %v3552_v6  ;;  %v3595_v6 = vld [vmem:[%s17801_s8 + $0x618] sm:$0xff] }
 0x3c8   :  { %v6916_v32 = vadd.f32 %v6915_v29, %v6914_v41  ;;  %v3255_v24 = vmul.f32 %v9717_v23, %v3234_v8  ;;  %v3560_v23 = vld [vmem:[%s17801_s8 + $0x500] sm:$0xff]  ;;  %v3599_v33 = vld [vmem:[%s17801_s8 + $0x638] sm:$0xff] }
 0x3c9   :  { %v3111_v35 = vadd.f32 %v6881_v28, %v6640_v5  ;;  %v3256_v41 = vmul.f32 %v9718_v62, %v3250_v31  ;;  %v3537_v31 = vld [vmem:[%s17801_s8 + $0x448] sm:$0xff]  ;;  %v8194_v62 = vpack.c.bf16 %v3565_v34, %v3561_v11  ;;  %v8914_v34 = vpack.c.bf16 %v3599_v33, %v3595_v6  ;;  %v3626_v6 = vld [vmem:[%s17801_s8 + $0x710] sm:$0xff] }
 0x3ca   :  { %v3630_v33 = vld [vmem:[%s17801_s8 + $0x730] sm:$0xff] }
 0x3cb   :  { %v3181_v36 = vadd.f32 %v6916_v32, %v3111_v35  ;;  %v3541_v32 = vld [vmem:[%s17801_s8 + $0x468] sm:$0xff]  ;;  %v3539_v35 = vld [vmem:[%s17801_s8 + $0x458] sm:$0xff] }
 0x3cc   :  { %v8182_v49 = vpack.c.bf16 %v3541_v32, %v3537_v31  ;;  %v3568_v31 = vld [vmem:[%s17801_s8 + $0x540] sm:$0xff] }
 0x3cd   :  { %v6641_v13 = vmul.f32 -1.442695, %v3181_v36  ;;  %v3543_v36 = vld [vmem:[%s17801_s8 + $0x478] sm:$0xff]  ;;  %v3572_v32 = vld [vmem:[%s17801_s8 + $0x560] sm:$0xff] }
 0x3ce   :  { %v8886_v18 = vpack.c.bf16 %v3543_v36, %v3539_v35 }
 0x3cf   :  { %9712 = vpow2.f32 %v6641_v13 }
 0x3d9   :  { %v9713_v39 = vpop.eup %9712 }
 0x3da   :  { %v3187_v43 = vadd.f32 1.0, %v9713_v39  ;;  %v8180_v39 = vpack.c.bf16 %v3532_v37, %v3528_v20  ;;  %v3569_v20 = vld [vmem:[%s17801_s8 + $0x548] sm:$0xff] }
 0x3db   :  { %v3573_v37 = vld [vmem:[%s17801_s8 + $0x568] sm:$0xff] }
 0x3dc   :  { %9714 = vrcp.f32 %v3187_v43  ;;  %v8884_v43 = vpack.c.bf16 %v3534_v15, %v3530_v38  ;;  %v3571_v38 = vld [vmem:[%s17801_s8 + $0x558] sm:$0xff]  ;;  %v8198_v35 = vpack.c.bf16 %v3573_v37, %v3569_v20 }
 0x3dd   :  { %v3575_v15 = vld [vmem:[%s17801_s8 + $0x578] sm:$0xff] }
 0x3de   :  { %v8902_v36 = vpack.c.bf16 %v3575_v15, %v3571_v38  ;;  %v3602_v38 = vld [vmem:[%s17801_s8 + $0x650] sm:$0xff] }
 0x3df   :  { %v3606_v15 = vld [vmem:[%s17801_s8 + $0x670] sm:$0xff] }
 0x3e6   :  { %v9715_v47 = vpop.eup %9714 }
 0x3e7   :  { %3259 = vperm.xlu0 %9661, %v9715_v47   ;;  %v3538_v47 = vld [vmem:[%s17801_s8 + $0x450] sm:$0xff] }
 0x3e8   :  { %v8888_v55 = vpack.c.bf16 %v3542_v21, %v3538_v47  ;;  %v3583_v47 = vld [vmem:[%s17801_s8 + $0x5b8] sm:$0xff]  ;;  %v8200_v21 = vpack.c.bf16 %v3572_v32, %v3568_v31 }
 0x3e9   :  { %v8906_v56 = vpack.c.bf16 %v3583_v47, %v3579_v26  ;;  %v3611_v31 = vld [vmem:[%s17801_s8 + $0x698] sm:$0xff]  ;;  %v3610_v26 = vld [vmem:[%s17801_s8 + $0x690] sm:$0xff] }
 0x3ea   :  { %v3615_v32 = vld [vmem:[%s17801_s8 + $0x6b8] sm:$0xff]  ;;  %v3614_v47 = vld [vmem:[%s17801_s8 + $0x6b0] sm:$0xff] }
 0x466   :  { %v3260_v16 = vpop.permute.xlu0 %3259 }
 0x467   :  { %v3267_v5 = vrot.slane %v3260_v16, %v3266_v14  ;;  %v3563_v14 = vld [vmem:[%s17801_s8 + $0x518] sm:$0xff] }
 0x468   :  { %v3567_v16 = vld [vmem:[%s17801_s8 + $0x538] sm:$0xff] }
 0x469   :  { %v3269_v27 = vmul.f32 %v3267_v5, %v3254_v22  ;;  %v13651_v28 = vmul.f32 %v3267_v5, %v3255_v24  ;;  %v13653_v29 = vmul.f32 %v3267_v5, %v3256_v41  ;;  %v8896_v22 = vpack.c.bf16 %v3558_v10, %v3554_v40  ;;  %v3564_v24 = vld [vmem:[%s17801_s8 + $0x520] sm:$0xff]  ;;  %v3562_v5 = vld [vmem:[%s17801_s8 + $0x510] sm:$0xff] }
 0x46a   :  { %v8898_v41 = vpack.c.bf16 %v3567_v16, %v3563_v14  ;;  %v3592_v40 = vld [vmem:[%s17801_s8 + $0x600] sm:$0xff]  ;;  %v3594_v14 = vld [vmem:[%s17801_s8 + $0x610] sm:$0xff] }
 0x46b   :  { %v3275_v7 = vcombine.high %v3269_v27, %v3269_v27  ;;  %v3282_v8 = vrot.slane %v3269_v27, %v10097_v12  ;;  %v3566_v27 = vld [vmem:[%s17801_s8 + $0x530] sm:$0xff]  ;;  %v3596_v10 = vld [vmem:[%s17801_s8 + $0x620] sm:$0xff] }
 0x46c   :  { %v3598_v16 = vld [vmem:[%s17801_s8 + $0x630] sm:$0xff] }
 0x46d   :  { %v3290_v13 = vcombine.high %v3282_v8, %v3282_v8  ;;  %v13681_v44 = vrot.slane %v3275_v7, %v10097_v12  ;;  %v8196_v7 = vpack.c.bf16 %v3564_v24, %v3560_v23  ;;  %v3603_v23 = vld [vmem:[%s17801_s8 + $0x658] sm:$0xff] }
 0x46e   :  { %v3607_v24 = vld [vmem:[%s17801_s8 + $0x678] sm:$0xff] }
 0x46f   :  { %4894 = vmatprep.mubr.f32.mxu0 %v3290_v13  ;;  %5675 = vmatprep.mubr.f32.mxu1 %v3290_v13  ;;  %v3291_v25 = vcombine.high %v13681_v44, %v13681_v44  ;;  %v3570_v13 = vld [vmem:[%s17801_s8 + $0x550] sm:$0xff]  ;;  %v8918_v37 = vpack.c.bf16 %v3607_v24, %v3603_v23 }
 0x470   :  { %4895 = vmatmul.mubr.f32.vlgmr.msra.gmra.mrb[16].mxu0 %v3282_v8  ;;  %5676 = vmatmul.mubr.f32.vlgmr.msra.gmra.mrb[16].mxu1 %v3282_v8  ;;  %v8900_v8 = vpack.c.bf16 %v3566_v27, %v3562_v5  ;;  %v3600_v5 = vld [vmem:[%s17801_s8 + $0x640] sm:$0xff]  ;;  %v3634_v23 = vld [vmem:[%s17801_s8 + $0x750] sm:$0xff] }
 0x471   :  { %8181 = vmatpush1.bf16.msra.mxu0 %v8180_v39  ;;  %8885 = vmatpush1.bf16.msra.mxu1 %v8884_v43  ;;  %v3574_v39 = vld [vmem:[%s17801_s8 + $0x570] sm:$0xff]  ;;  %v3577_v43 = vld [vmem:[%s17801_s8 + $0x588] sm:$0xff]  ;;  %v3604_v27 = vld [vmem:[%s17801_s8 + $0x660] sm:$0xff] }
 0x472   :  { %4965 = vmatprep.mubr.f32.mxu0 %v3291_v25  ;;  %5746 = vmatprep.mubr.f32.mxu1 %v3291_v25  ;;  %v8904_v48 = vpack.c.bf16 %v3574_v39, %v3570_v13  ;;  %v3576_v25 = vld [vmem:[%s17801_s8 + $0x580] sm:$0xff]  ;;  %v3638_v24 = vld [vmem:[%s17801_s8 + $0x770] sm:$0xff] }
 0x473   :  { %8183 = vmatprep.subr.bf16.mxu0 %v8182_v49  ;;  %8887 = vmatprep.subr.bf16.mxu1 %v8886_v18  ;;  %v3580_v49 = vld [vmem:[%s17801_s8 + $0x5a0] sm:$0xff]  ;;  %v8202_v18 = vpack.c.bf16 %v3581_v45, %v3577_v43  ;;  %v8922_v45 = vpack.c.bf16 %v3615_v32, %v3611_v31  ;;  %v3642_v31 = vld [vmem:[%s17801_s8 + $0x790] sm:$0xff] }
 0x474   :  { %v3608_v13 = vld [vmem:[%s17801_s8 + $0x680] sm:$0xff]  ;;  %v3646_v32 = vld [vmem:[%s17801_s8 + $0x7b0] sm:$0xff] }
 0x475   :  { %8185 = vmatpush1.bf16.msra.mxu0 %v8184_v54  ;;  %8889 = vmatpush1.bf16.msra.mxu1 %v8888_v55  ;;  %v3585_v54 = vld [vmem:[%s17801_s8 + $0x5c8] sm:$0xff]  ;;  %v3612_v39 = vld [vmem:[%s17801_s8 + $0x6a0] sm:$0xff] }
 0x476   :  { %8187 = vmatprep.subr.bf16.mxu0 %v8186_v58  ;;  %8891 = vmatprep.subr.bf16.mxu1 %v8890_v0  ;;  %v3589_v55 = vld [vmem:[%s17801_s8 + $0x5e8] sm:$0xff]  ;;  %v8204_v58 = vpack.c.bf16 %v3580_v49, %v3576_v25  ;;  %v8908_v0 = vpack.c.bf16 %v3582_v52, %v3578_v51  ;;  %v3619_v25 = vld [vmem:[%s17801_s8 + $0x6d8] sm:$0xff]  ;;  %v3616_v51 = vld [vmem:[%s17801_s8 + $0x6c0] sm:$0xff] }
 0x477   :  { %v8206_v30 = vpack.c.bf16 %v3589_v55, %v3585_v54  ;;  %v3623_v49 = vld [vmem:[%s17801_s8 + $0x6f8] sm:$0xff]  ;;  %v3620_v52 = vld [vmem:[%s17801_s8 + $0x6e0] sm:$0xff] }
 0x478   :  { %v8926_v55 = vpack.c.bf16 %v3623_v49, %v3619_v25  ;;  %v3650_v25 = vld [vmem:[%s17801_s8 + $0x7d0] sm:$0xff] }
 0x479   :  { %8189 = vmatpush1.bf16.msra.mxu0 %v8188_v3  ;;  %8893 = vmatpush1.bf16.msra.mxu1 %v8892_v4  ;;  %v3593_v3 = vld [vmem:[%s17801_s8 + $0x608] sm:$0xff]  ;;  %v3654_v49 = vld [vmem:[%s17801_s8 + $0x7f0] sm:$0xff] }
 0x47a   :  { %8191 = vmatprep.subr.bf16.mxu0 %v8190_v19  ;;  %8895 = vmatprep.subr.bf16.mxu1 %v8894_v50  ;;  %v3597_v4 = vld [vmem:[%s17801_s8 + $0x628] sm:$0xff]  ;;  %v8208_v19 = vpack.c.bf16 %v3588_v60, %v3584_v59  ;;  %v8912_v50 = vpack.c.bf16 %v3590_v2, %v3586_v1  ;;  %v3627_v59 = vld [vmem:[%s17801_s8 + $0x718] sm:$0xff]  ;;  %v3624_v1 = vld [vmem:[%s17801_s8 + $0x700] sm:$0xff] }
 0x47b   :  { %v8210_v11 = vpack.c.bf16 %v3597_v4, %v3593_v3  ;;  %v3631_v60 = vld [vmem:[%s17801_s8 + $0x738] sm:$0xff]  ;;  %v3628_v2 = vld [vmem:[%s17801_s8 + $0x720] sm:$0xff] }
 0x47c   :  { %v8930_v4 = vpack.c.bf16 %v3631_v60, %v3627_v59  ;;  %v14053_v59 = vrot.slane %v13651_v28, %v10097_v12  ;;  %v3658_v60 = vld [vmem:[%s17801_s8 + $0x810] sm:$0xff] }
 0x47d   :  { %8193 = vmatpush1.bf16.msra.mxu0 %v8192_v63  ;;  %8897 = vmatpush1.bf16.msra.mxu1 %v8896_v22  ;;  %v3601_v63 = vld [vmem:[%s17801_s8 + $0x648] sm:$0xff] }
 0x47e   :  { %8195 = vmatprep.subr.bf16.mxu0 %v8194_v62  ;;  %8899 = vmatprep.subr.bf16.mxu1 %v8898_v41  ;;  %v3605_v22 = vld [vmem:[%s17801_s8 + $0x668] sm:$0xff]  ;;  %v8212_v62 = vpack.c.bf16 %v3596_v10, %v3592_v40  ;;  %v8916_v41 = vpack.c.bf16 %v3598_v16, %v3594_v14  ;;  %v3635_v40 = vld [vmem:[%s17801_s8 + $0x758] sm:$0xff]  ;;  %v3632_v14 = vld [vmem:[%s17801_s8 + $0x740] sm:$0xff] }
 0x47f   :  { %v8214_v20 = vpack.c.bf16 %v3605_v22, %v3601_v63  ;;  %v3639_v10 = vld [vmem:[%s17801_s8 + $0x778] sm:$0xff]  ;;  %v3636_v16 = vld [vmem:[%s17801_s8 + $0x760] sm:$0xff] }
 0x480   :  { %v8934_v22 = vpack.c.bf16 %v3639_v10, %v3635_v40  ;;  %v3307_v40 = vcombine.high %v14053_v59, %v14053_v59 }
 0x481   :  { %8197 = vmatpush1.bf16.msra.mxu0 %v8196_v7  ;;  %8901 = vmatpush1.bf16.msra.mxu1 %v8900_v8  ;;  %v3609_v7 = vld [vmem:[%s17801_s8 + $0x688] sm:$0xff] }
 0x482   :  { %8199 = vmatprep.subr.bf16.mxu0 %v8198_v35  ;;  %8903 = vmatprep.subr.bf16.mxu1 %v8902_v36  ;;  %v3613_v8 = vld [vmem:[%s17801_s8 + $0x6a8] sm:$0xff]  ;;  %v8216_v35 = vpack.c.bf16 %v3604_v27, %v3600_v5  ;;  %v8920_v36 = vpack.c.bf16 %v3606_v15, %v3602_v38  ;;  %v3643_v5 = vld [vmem:[%s17801_s8 + $0x798] sm:$0xff]  ;;  %v3640_v38 = vld [vmem:[%s17801_s8 + $0x780] sm:$0xff] }
 0x483   :  { %v8218_v43 = vpack.c.bf16 %v3613_v8, %v3609_v7  ;;  %v3647_v27 = vld [vmem:[%s17801_s8 + $0x7b8] sm:$0xff]  ;;  %v3644_v15 = vld [vmem:[%s17801_s8 + $0x7a0] sm:$0xff] }
 0x484   :  { %v8938_v8 = vpack.c.bf16 %v3647_v27, %v3643_v5  ;;  %v3674_v5 = vld [vmem:[%s17801_s8 + $0x890] sm:$0xff] }
 0x485   :  { %8201 = vmatpush1.bf16.msra.mxu0 %v8200_v21  ;;  %8905 = vmatpush1.bf16.msra.mxu1 %v8904_v48  ;;  %v3617_v21 = vld [vmem:[%s17801_s8 + $0x6c8] sm:$0xff] }
 0x486   :  { %8203 = vmatprep.subr.bf16.mxu0 %v8202_v18  ;;  %8907 = vmatprep.subr.bf16.mxu1 %v8906_v56  ;;  %v3621_v48 = vld [vmem:[%s17801_s8 + $0x6e8] sm:$0xff]  ;;  %v8220_v18 = vpack.c.bf16 %v3612_v39, %v3608_v13  ;;  %v8924_v56 = vpack.c.bf16 %v3614_v47, %v3610_v26  ;;  %v3651_v13 = vld [vmem:[%s17801_s8 + $0x7d8] sm:$0xff]  ;;  %v3648_v26 = vld [vmem:[%s17801_s8 + $0x7c0] sm:$0xff] }
 0x487   :  { %v8222_v54 = vpack.c.bf16 %v3621_v48, %v3617_v21  ;;  %v3655_v39 = vld [vmem:[%s17801_s8 + $0x7f8] sm:$0xff]  ;;  %v3652_v47 = vld [vmem:[%s17801_s8 + $0x7e0] sm:$0xff] }
 0x488   :  { %v8942_v48 = vpack.c.bf16 %v3655_v39, %v3651_v13  ;;  %v3682_v13 = vld [vmem:[%s17801_s8 + $0x8d0] sm:$0xff] }
 0x489   :  { %8205 = vmatpush1.bf16.msra.mxu0 %v8204_v58  ;;  %8909 = vmatpush1.bf16.msra.mxu1 %v8908_v0  ;;  %v3625_v58 = vld [vmem:[%s17801_s8 + $0x708] sm:$0xff] }
 0x48a   :  { %8207 = vmatprep.subr.bf16.mxu0 %v8206_v30  ;;  %8911 = vmatprep.subr.bf16.mxu1 %v8910_v61  ;;  %v3629_v0 = vld [vmem:[%s17801_s8 + $0x728] sm:$0xff]  ;;  %v8224_v30 = vpack.c.bf16 %v3620_v52, %v3616_v51  ;;  %v8928_v61 = vpack.c.bf16 %v3622_v57, %v3618_v9  ;;  %v3659_v51 = vld [vmem:[%s17801_s8 + $0x818] sm:$0xff] }
 0x48b   :  { %v8226_v3 = vpack.c.bf16 %v3629_v0, %v3625_v58  ;;  %v3663_v52 = vld [vmem:[%s17801_s8 + $0x838] sm:$0xff]  ;;  %v3656_v58 = vld [vmem:[%s17801_s8 + $0x800] sm:$0xff] }
 0x48c   :  { %v8946_v57 = vpack.c.bf16 %v3663_v52, %v3659_v51  ;;  %v3660_v0 = vld [vmem:[%s17801_s8 + $0x820] sm:$0xff]  ;;  %v3690_v51 = vld [vmem:[%s17801_s8 + $0x910] sm:$0xff] }
 0x48d   :  { %8209 = vmatpush1.bf16.msra.mxu0 %v8208_v19  ;;  %8913 = vmatpush1.bf16.msra.mxu1 %v8912_v50  ;;  %v3633_v19 = vld [vmem:[%s17801_s8 + $0x748] sm:$0xff] }
 0x48e   :  { %8211 = vmatprep.subr.bf16.mxu0 %v8210_v11  ;;  %8915 = vmatprep.subr.bf16.mxu1 %v8914_v34  ;;  %v3637_v50 = vld [vmem:[%s17801_s8 + $0x768] sm:$0xff]  ;;  %v8228_v11 = vpack.c.bf16 %v3628_v2, %v3624_v1  ;;  %v8932_v34 = vpack.c.bf16 %v3630_v33, %v3626_v6  ;;  %v3667_v2 = vld [vmem:[%s17801_s8 + $0x858] sm:$0xff]  ;;  %v3664_v33 = vld [vmem:[%s17801_s8 + $0x840] sm:$0xff] }
 0x48f   :  { %v8230_v63 = vpack.c.bf16 %v3637_v50, %v3633_v19  ;;  %v3669_v1 = vld [vmem:[%s17801_s8 + $0x868] sm:$0xff]  ;;  %v3668_v19 = vld [vmem:[%s17801_s8 + $0x860] sm:$0xff]  ;;  %v3666_v50 = vld [vmem:[%s17801_s8 + $0x850] sm:$0xff] }
 0x491   :  { %8213 = vmatpush1.bf16.msra.mxu0 %v8212_v62  ;;  %8917 = vmatpush1.bf16.msra.mxu1 %v8916_v41  ;;  %v3641_v62 = vld [vmem:[%s17801_s8 + $0x788] sm:$0xff] }
 0x492   :  { %8215 = vmatprep.subr.bf16.mxu0 %v8214_v20  ;;  %8919 = vmatprep.subr.bf16.mxu1 %v8918_v37  ;;  %v3645_v41 = vld [vmem:[%s17801_s8 + $0x7a8] sm:$0xff]  ;;  %v8232_v20 = vpack.c.bf16 %v3636_v16, %v3632_v14  ;;  %v8936_v37 = vpack.c.bf16 %v3638_v24, %v3634_v23  ;;  %v8248_v23 = vpack.c.bf16 %v3668_v19, %v3664_v33  ;;  %v3707_v19 = vld [vmem:[%s17801_s8 + $0x998] sm:$0xff] }
 0x493   :  { %v8234_v7 = vpack.c.bf16 %v3645_v41, %v3641_v62  ;;  %v3673_v14 = vld [vmem:[%s17801_s8 + $0x888] sm:$0xff]  ;;  %v3672_v41 = vld [vmem:[%s17801_s8 + $0x880] sm:$0xff] }
 0x494   :  { %v3677_v16 = vld [vmem:[%s17801_s8 + $0x8a8] sm:$0xff] }
 0x495   :  { %8217 = vmatpush1.bf16.msra.mxu0 %v8216_v35  ;;  %8921 = vmatpush1.bf16.msra.mxu1 %v8920_v36  ;;  %v3649_v35 = vld [vmem:[%s17801_s8 + $0x7c8] sm:$0xff]  ;;  %v8250_v62 = vpack.c.bf16 %v3677_v16, %v3673_v14  ;;  %v3708_v14 = vld [vmem:[%s17801_s8 + $0x9a0] sm:$0xff]  ;;  %v3706_v16 = vld [vmem:[%s17801_s8 + $0x990] sm:$0xff] }
 0x496   :  { %8219 = vmatprep.subr.bf16.mxu0 %v8218_v43  ;;  %8923 = vmatprep.subr.bf16.mxu1 %v8922_v45  ;;  %v3653_v36 = vld [vmem:[%s17801_s8 + $0x7e8] sm:$0xff]  ;;  %v8236_v43 = vpack.c.bf16 %v3644_v15, %v3640_v38  ;;  %v8940_v45 = vpack.c.bf16 %v3646_v32, %v3642_v31  ;;  %v3683_v15 = vld [vmem:[%s17801_s8 + $0x8d8] sm:$0xff] }
 0x497   :  { %v8238_v21 = vpack.c.bf16 %v3653_v36, %v3649_v35  ;;  %v3685_v38 = vld [vmem:[%s17801_s8 + $0x8e8] sm:$0xff]  ;;  %v3680_v35 = vld [vmem:[%s17801_s8 + $0x8c0] sm:$0xff] }
 0x498   :  { %v3684_v36 = vld [vmem:[%s17801_s8 + $0x8e0] sm:$0xff]  ;;  %v3709_v33 = vld [vmem:[%s17801_s8 + $0x9a8] sm:$0xff] }
 0x499   :  { %8221 = vmatpush1.bf16.msra.mxu0 %v8220_v18  ;;  %8925 = vmatpush1.bf16.msra.mxu1 %v8924_v56  ;;  %v3657_v18 = vld [vmem:[%s17801_s8 + $0x808] sm:$0xff] }
 0x49a   :  { %8223 = vmatprep.subr.bf16.mxu0 %v8222_v54  ;;  %8927 = vmatprep.subr.bf16.mxu1 %v8926_v55  ;;  %v3661_v56 = vld [vmem:[%s17801_s8 + $0x828] sm:$0xff]  ;;  %v8240_v54 = vpack.c.bf16 %v3652_v47, %v3648_v26  ;;  %v8944_v55 = vpack.c.bf16 %v3654_v49, %v3650_v25  ;;  %v3691_v47 = vld [vmem:[%s17801_s8 + $0x918] sm:$0xff] }
 0x49b   :  { %v8242_v9 = vpack.c.bf16 %v3661_v56, %v3657_v18  ;;  %v3693_v26 = vld [vmem:[%s17801_s8 + $0x928] sm:$0xff]  ;;  %v3688_v18 = vld [vmem:[%s17801_s8 + $0x900] sm:$0xff] }
 0x49c   :  { %v3692_v56 = vld [vmem:[%s17801_s8 + $0x920] sm:$0xff] }
 0x49d   :  { %8225 = vmatpush1.bf16.msra.mxu0 %v8224_v30  ;;  %8929 = vmatpush1.bf16.msra.mxu1 %v8928_v61  ;;  %v3662_v30 = vld [vmem:[%s17801_s8 + $0x830] sm:$0xff]  ;;  %v3665_v61 = vld [vmem:[%s17801_s8 + $0x848] sm:$0xff] }
 0x49e   :  { %8227 = vmatprep.subr.bf16.mxu0 %v8226_v3  ;;  %8931 = vmatprep.subr.bf16.mxu1 %v8930_v4  ;;  %v3671_v3 = vld [vmem:[%s17801_s8 + $0x878] sm:$0xff]  ;;  %v8244_v4 = vpack.c.bf16 %v3660_v0, %v3656_v58  ;;  %v8948_v6 = vpack.c.bf16 %v3662_v30, %v3658_v60  ;;  %v8246_v10 = vpack.c.bf16 %v3669_v1, %v3665_v61  ;;  %v3696_v61 = vld [vmem:[%s17801_s8 + $0x940] sm:$0xff] }
 0x49f   :  { %v3703_v58 = vld [vmem:[%s17801_s8 + $0x978] sm:$0xff]  ;;  %v8260_v0 = vpack.c.bf16 %v3692_v56, %v3688_v18  ;;  %v3700_v1 = vld [vmem:[%s17801_s8 + $0x960] sm:$0xff] }
 0x4a0   :  { %v3735_v18 = vld [vmem:[%s17801_s8 + $0xa78] sm:$0xff] }
 0x4a1   :  { %8229 = vmatpush1.bf16.msra.mxu0 %v8228_v11  ;;  %8933 = vmatpush1.bf16.msra.mxu1 %v8932_v34  ;;  %v8950_v11 = vpack.c.bf16 %v3671_v3, %v3667_v2  ;;  %v3670_v34 = vld [vmem:[%s17801_s8 + $0x870] sm:$0xff] }
 0x4a2   :  { %8231 = vmatprep.subr.bf16.mxu0 %v8230_v63  ;;  %8935 = vmatprep.subr.bf16.mxu1 %v8934_v22  ;;  %v3675_v63 = vld [vmem:[%s17801_s8 + $0x898] sm:$0xff]  ;;  %v8952_v24 = vpack.c.bf16 %v3670_v34, %v3666_v50  ;;  %v3698_v2 = vld [vmem:[%s17801_s8 + $0x950] sm:$0xff]  ;;  %v3704_v34 = vld [vmem:[%s17801_s8 + $0x980] sm:$0xff] }
 0x4a3   :  { %v3679_v22 = vld [vmem:[%s17801_s8 + $0x8b8] sm:$0xff] }
 0x4a4   :  { %v8954_v27 = vpack.c.bf16 %v3679_v22, %v3675_v63  ;;  %v3711_v50 = vld [vmem:[%s17801_s8 + $0x9b8] sm:$0xff]  ;;  %v3710_v22 = vld [vmem:[%s17801_s8 + $0x9b0] sm:$0xff] }
 0x4a5   :  { %8233 = vmatpush1.bf16.msra.mxu0 %v8232_v20  ;;  %8937 = vmatpush1.bf16.msra.mxu1 %v8936_v37  ;;  %v3678_v20 = vld [vmem:[%s17801_s8 + $0x8b0] sm:$0xff]  ;;  %v3681_v37 = vld [vmem:[%s17801_s8 + $0x8c8] sm:$0xff]  ;;  %v8970_v63 = vpack.c.bf16 %v3711_v50, %v3707_v19 }
 0x4a6   :  { %8235 = vmatprep.subr.bf16.mxu0 %v8234_v7  ;;  %8939 = vmatprep.subr.bf16.mxu1 %v8938_v8  ;;  %v3687_v7 = vld [vmem:[%s17801_s8 + $0x8f8] sm:$0xff]  ;;  %v8956_v31 = vpack.c.bf16 %v3678_v20, %v3674_v5  ;;  %v8254_v32 = vpack.c.bf16 %v3685_v38, %v3681_v37  ;;  %v8972_v5 = vpack.c.bf16 %v3710_v22, %v3706_v16  ;;  %v3712_v20 = vld [vmem:[%s17801_s8 + $0x9c0] sm:$0xff]  ;;  %v3714_v38 = vld [vmem:[%s17801_s8 + $0x9d0] sm:$0xff] }
 0x4a7   :  { %v8958_v39 = vpack.c.bf16 %v3687_v7, %v3683_v15  ;;  %v3716_v37 = vld [vmem:[%s17801_s8 + $0x9e0] sm:$0xff]  ;;  %v3718_v7 = vld [vmem:[%s17801_s8 + $0x9f0] sm:$0xff] }
 0x4a8   :  { %v3742_v50 = vld [vmem:[%s17801_s8 + $0xab0] sm:$0xff]  ;;  %v3744_v22 = vld [vmem:[%s17801_s8 + $0xac0] sm:$0xff] }
 0x4a9   :  { %8237 = vmatpush1.bf16.msra.mxu0 %v8236_v43  ;;  %8941 = vmatpush1.bf16.msra.mxu1 %v8940_v45  ;;  %v3686_v43 = vld [vmem:[%s17801_s8 + $0x8f0] sm:$0xff]  ;;  %v3689_v45 = vld [vmem:[%s17801_s8 + $0x908] sm:$0xff] }
 0x4aa   :  { %8239 = vmatprep.subr.bf16.mxu0 %v8238_v21  ;;  %8943 = vmatprep.subr.bf16.mxu1 %v8942_v48  ;;  %v3695_v21 = vld [vmem:[%s17801_s8 + $0x938] sm:$0xff]  ;;  %v8256_v48 = vpack.c.bf16 %v3684_v36, %v3680_v35  ;;  %v8960_v25 = vpack.c.bf16 %v3686_v43, %v3682_v13  ;;  %v8258_v49 = vpack.c.bf16 %v3693_v26, %v3689_v45  ;;  %v3720_v43 = vld [vmem:[%s17801_s8 + $0xa00] sm:$0xff]  ;;  %v3722_v26 = vld [vmem:[%s17801_s8 + $0xa10] sm:$0xff] }
 0x4ab   :  { %v8962_v52 = vpack.c.bf16 %v3695_v21, %v3691_v47  ;;  %v3727_v35 = vld [vmem:[%s17801_s8 + $0xa38] sm:$0xff]  ;;  %v8272_v36 = vpack.c.bf16 %v3716_v37, %v3712_v20  ;;  %v8976_v13 = vpack.c.bf16 %v3718_v7, %v3714_v38  ;;  %v3724_v45 = vld [vmem:[%s17801_s8 + $0xa20] sm:$0xff]  ;;  %v3726_v21 = vld [vmem:[%s17801_s8 + $0xa30] sm:$0xff] }
 0x4ac   :  { %v8276_v56 = vpack.c.bf16 %v3724_v45, %v3720_v43  ;;  %v3759_v20 = vld [vmem:[%s17801_s8 + $0xb38] sm:$0xff]  ;;  %v3752_v7 = vld [vmem:[%s17801_s8 + $0xb00] sm:$0xff] }
 0x4ad   :  { %8241 = vmatpush1.bf16.msra.mxu0 %v8240_v54  ;;  %8945 = vmatpush1.bf16.msra.mxu1 %v8944_v55  ;;  %v3694_v54 = vld [vmem:[%s17801_s8 + $0x930] sm:$0xff]  ;;  %v3697_v55 = vld [vmem:[%s17801_s8 + $0x948] sm:$0xff]  ;;  %v3767_v43 = vld [vmem:[%s17801_s8 + $0xb78] sm:$0xff] }
 0x4ae   :  { %8243 = vmatprep.subr.bf16.mxu0 %v8242_v9  ;;  %8947 = vmatprep.subr.bf16.mxu1 %v8946_v57  ;;  %v3701_v9 = vld [vmem:[%s17801_s8 + $0x968] sm:$0xff]  ;;  %v3699_v57 = vld [vmem:[%s17801_s8 + $0x958] sm:$0xff]  ;;  %v8964_v60 = vpack.c.bf16 %v3694_v54, %v3690_v51  ;;  %v8980_v51 = vpack.c.bf16 %v3726_v21, %v3722_v26  ;;  %v3728_v54 = vld [vmem:[%s17801_s8 + $0xa40] sm:$0xff] }
 0x4af   :  { %v8262_v30 = vpack.c.bf16 %v3701_v9, %v3697_v55  ;;  %v8966_v3 = vpack.c.bf16 %v3703_v58, %v3699_v57  ;;  %v3732_v55 = vld [vmem:[%s17801_s8 + $0xa60] sm:$0xff]  ;;  %v3730_v9 = vld [vmem:[%s17801_s8 + $0xa50] sm:$0xff] }
 0x4b0   :  { %4966 = vmatmul.mubr.f32.vlgmr.msra.gmra.mrb[16].mxu0 %v13681_v44  ;;  %5747 = vmatmul.mubr.f32.vlgmr.msra.gmra.mrb[16].mxu1 %v13681_v44  ;;  %v3676_v44 = vld [vmem:[%s17801_s8 + $0x8a0] sm:$0xff]  ;;  %v3734_v58 = vld [vmem:[%s17801_s8 + $0xa70] sm:$0xff] }
 0x4b1   :  { %8245 = vmatpush1.bf16.msra.mxu0 %v8244_v4  ;;  %5036 = vmatprep.mubr.f32.mxu0 %v3307_v40  ;;  %v8252_v8 = vpack.c.bf16 %v3676_v44, %v3672_v41  ;;  %v3702_v4 = vld [vmem:[%s17801_s8 + $0x970] sm:$0xff]  ;;  %v3719_v41 = vld [vmem:[%s17801_s8 + $0x9f8] sm:$0xff]  ;;  %v8268_v44 = vpack.c.bf16 %v3708_v14, %v3704_v34  ;;  %v3760_v21 = vld [vmem:[%s17801_s8 + $0xb40] sm:$0xff] }
 0x4b2   :  { %8949 = vmatpush1.bf16.msra.mxu1 %v8948_v6  ;;  %5817 = vmatprep.mubr.f32.mxu1 %v3307_v40  ;;  %v3705_v6 = vld [vmem:[%s17801_s8 + $0x988] sm:$0xff]  ;;  %v8264_v40 = vpack.c.bf16 %v3700_v1, %v3696_v61  ;;  %v3743_v61 = vld [vmem:[%s17801_s8 + $0xab8] sm:$0xff]  ;;  %v8280_v1 = vpack.c.bf16 %v3732_v55, %v3728_v54 }
 0x4b3   :  { %8247 = vmatprep.subr.bf16.mxu0 %v8246_v10  ;;  %8951 = vmatprep.subr.bf16.mxu1 %v8950_v11  ;;  %v8968_v10 = vpack.c.bf16 %v3702_v4, %v3698_v2  ;;  %v8266_v11 = vpack.c.bf16 %v3709_v33, %v3705_v6  ;;  %v8984_v2 = vpack.c.bf16 %v3734_v58, %v3730_v9  ;;  %v3736_v4 = vld [vmem:[%s17801_s8 + $0xa80] sm:$0xff]  ;;  %v3738_v33 = vld [vmem:[%s17801_s8 + $0xa90] sm:$0xff]  ;;  %v3751_v34 = vld [vmem:[%s17801_s8 + $0xaf8] sm:$0xff] }
 0x4b4   :  { %v3740_v6 = vld [vmem:[%s17801_s8 + $0xaa0] sm:$0xff]  ;;  %v8988_v16 = vpack.c.bf16 %v3742_v50, %v3738_v33  ;;  %v3775_v54 = vld [vmem:[%s17801_s8 + $0xbb8] sm:$0xff] }
 0x4b5   :  { %8249 = vmatpush1.bf16.msra.mxu0 %v8248_v23  ;;  %v3713_v23 = vld [vmem:[%s17801_s8 + $0x9c8] sm:$0xff]  ;;  %v8284_v14 = vpack.c.bf16 %v3740_v6, %v3736_v4  ;;  %v3768_v58 = vld [vmem:[%s17801_s8 + $0xb80] sm:$0xff]  ;;  %v3783_v4 = vld [vmem:[%s17801_s8 + $0xbf8] sm:$0xff] }
 0x4b6   :  { %8953 = vmatpush1.bf16.msra.mxu1 %v8952_v24  ;;  %8251 = vmatprep.subr.bf16.mxu0 %v8250_v62  ;;  %v3717_v24 = vld [vmem:[%s17801_s8 + $0x9e8] sm:$0xff]  ;;  %v3715_v62 = vld [vmem:[%s17801_s8 + $0x9d8] sm:$0xff]  ;;  %v3776_v50 = vld [vmem:[%s17801_s8 + $0xbc0] sm:$0xff] }
 0x4b7   :  { %8955 = vmatprep.subr.bf16.mxu1 %v8954_v27  ;;  %v8270_v27 = vpack.c.bf16 %v3717_v24, %v3713_v23  ;;  %v8974_v15 = vpack.c.bf16 %v3719_v41, %v3715_v62  ;;  %v3748_v23 = vld [vmem:[%s17801_s8 + $0xae0] sm:$0xff]  ;;  %v3746_v24 = vld [vmem:[%s17801_s8 + $0xad0] sm:$0xff] }
 0x4b8   :  { %v3750_v41 = vld [vmem:[%s17801_s8 + $0xaf0] sm:$0xff]  ;;  %v8288_v37 = vpack.c.bf16 %v3748_v23, %v3744_v22  ;;  %v3787_v22 = vld [vmem:[%s17801_s8 + $0xc18] sm:$0xff] }
 0x4b9   :  { %8253 = vmatpush1.bf16.msra.mxu0 %v8252_v8  ;;  %v3721_v8 = vld [vmem:[%s17801_s8 + $0xa08] sm:$0xff]  ;;  %v8992_v38 = vpack.c.bf16 %v3750_v41, %v3746_v24  ;;  %v3791_v23 = vld [vmem:[%s17801_s8 + $0xc38] sm:$0xff] }
 0x4ba   :  { %8957 = vmatpush1.bf16.msra.mxu1 %v8956_v31  ;;  %8255 = vmatprep.subr.bf16.mxu0 %v8254_v32  ;;  %v3725_v31 = vld [vmem:[%s17801_s8 + $0xa28] sm:$0xff]  ;;  %v3723_v32 = vld [vmem:[%s17801_s8 + $0xa18] sm:$0xff] }
 0x4bb   :  { %8959 = vmatprep.subr.bf16.mxu1 %v8958_v39  ;;  %v8274_v39 = vpack.c.bf16 %v3725_v31, %v3721_v8  ;;  %v8978_v47 = vpack.c.bf16 %v3727_v35, %v3723_v32  ;;  %v3756_v8 = vld [vmem:[%s17801_s8 + $0xb20] sm:$0xff]  ;;  %v3754_v31 = vld [vmem:[%s17801_s8 + $0xb10] sm:$0xff] }
 0x4bc   :  { %v3758_v35 = vld [vmem:[%s17801_s8 + $0xb30] sm:$0xff]  ;;  %v8292_v45 = vpack.c.bf16 %v3756_v8, %v3752_v7  ;;  %v3795_v8 = vld [vmem:[%s17801_s8 + $0xc58] sm:$0xff] }
 0x4bd   :  { %8257 = vmatpush1.bf16.msra.mxu0 %v8256_v48  ;;  %v3729_v48 = vld [vmem:[%s17801_s8 + $0xa48] sm:$0xff]  ;;  %v8996_v26 = vpack.c.bf16 %v3758_v35, %v3754_v31  ;;  %v3799_v31 = vld [vmem:[%s17801_s8 + $0xc78] sm:$0xff]  ;;  %v3792_v35 = vld [vmem:[%s17801_s8 + $0xc40] sm:$0xff] }
 0x4be   :  { %8961 = vmatpush1.bf16.msra.mxu1 %v8960_v25  ;;  %8259 = vmatprep.subr.bf16.mxu0 %v8258_v49  ;;  %v3733_v25 = vld [vmem:[%s17801_s8 + $0xa68] sm:$0xff]  ;;  %v3731_v49 = vld [vmem:[%s17801_s8 + $0xa58] sm:$0xff] }
 0x4bf   :  { %8963 = vmatprep.subr.bf16.mxu1 %v8962_v52  ;;  %v8278_v52 = vpack.c.bf16 %v3733_v25, %v3729_v48  ;;  %v8982_v57 = vpack.c.bf16 %v3735_v18, %v3731_v49  ;;  %v3764_v48 = vld [vmem:[%s17801_s8 + $0xb60] sm:$0xff]  ;;  %v3762_v25 = vld [vmem:[%s17801_s8 + $0xb50] sm:$0xff] }
 0x4c0   :  { %v3766_v18 = vld [vmem:[%s17801_s8 + $0xb70] sm:$0xff]  ;;  %v8296_v55 = vpack.c.bf16 %v3764_v48, %v3760_v21  ;;  %v9014_v21 = vpack.c.bf16 %v3799_v31, %v3795_v8  ;;  %v3803_v48 = vld [vmem:[%s17801_s8 + $0xc98] sm:$0xff]  ;;  %v3833_v31 = vld [vmem:[%s17801_s8 + $0xd88] sm:$0xff] }
 0x4c1   :  { %8261 = vmatpush1.bf16.msra.mxu0 %v8260_v0  ;;  %v3737_v0 = vld [vmem:[%s17801_s8 + $0xa88] sm:$0xff]  ;;  %v9000_v9 = vpack.c.bf16 %v3766_v18, %v3762_v25  ;;  %v3807_v25 = vld [vmem:[%s17801_s8 + $0xcb8] sm:$0xff]  ;;  %v3830_v8 = vld [vmem:[%s17801_s8 + $0xd70] sm:$0xff] }
 0x4c2   :  { %8965 = vmatpush1.bf16.msra.mxu1 %v8964_v60  ;;  %8263 = vmatprep.subr.bf16.mxu0 %v8262_v30  ;;  %v3741_v60 = vld [vmem:[%s17801_s8 + $0xaa8] sm:$0xff]  ;;  %v3739_v30 = vld [vmem:[%s17801_s8 + $0xa98] sm:$0xff] }
 0x4c3   :  { %8967 = vmatprep.subr.bf16.mxu1 %v8966_v3  ;;  %v8282_v3 = vpack.c.bf16 %v3741_v60, %v3737_v0  ;;  %v8986_v19 = vpack.c.bf16 %v3743_v61, %v3739_v30  ;;  %v3772_v0 = vld [vmem:[%s17801_s8 + $0xba0] sm:$0xff]  ;;  %v3770_v60 = vld [vmem:[%s17801_s8 + $0xb90] sm:$0xff] }
 0x4c4   :  { %v3774_v61 = vld [vmem:[%s17801_s8 + $0xbb0] sm:$0xff]  ;;  %v8300_v6 = vpack.c.bf16 %v3772_v0, %v3768_v58  ;;  %v3811_v58 = vld [vmem:[%s17801_s8 + $0xcd8] sm:$0xff] }
 0x4c5   :  { %8265 = vmatpush1.bf16.msra.mxu0 %v8264_v40  ;;  %v3745_v40 = vld [vmem:[%s17801_s8 + $0xac8] sm:$0xff]  ;;  %v9004_v33 = vpack.c.bf16 %v3774_v61, %v3770_v60  ;;  %v3815_v0 = vld [vmem:[%s17801_s8 + $0xcf8] sm:$0xff] }
 0x4c6   :  { %8969 = vmatpush1.bf16.msra.mxu1 %v8968_v10  ;;  %8267 = vmatprep.subr.bf16.mxu0 %v8266_v11  ;;  %v3749_v10 = vld [vmem:[%s17801_s8 + $0xae8] sm:$0xff]  ;;  %v3747_v11 = vld [vmem:[%s17801_s8 + $0xad8] sm:$0xff] }
 0x4c7   :  { %8971 = vmatprep.subr.bf16.mxu1 %v8970_v63  ;;  %v8286_v63 = vpack.c.bf16 %v3749_v10, %v3745_v40  ;;  %v8990_v62 = vpack.c.bf16 %v3751_v34, %v3747_v11  ;;  %v3780_v40 = vld [vmem:[%s17801_s8 + $0xbe0] sm:$0xff]  ;;  %v3778_v10 = vld [vmem:[%s17801_s8 + $0xbd0] sm:$0xff] }
 0x4c8   :  { %v3782_v34 = vld [vmem:[%s17801_s8 + $0xbf0] sm:$0xff]  ;;  %v8304_v24 = vpack.c.bf16 %v3780_v40, %v3776_v50  ;;  %v3819_v50 = vld [vmem:[%s17801_s8 + $0xd18] sm:$0xff] }
 0x4c9   :  { %8269 = vmatpush1.bf16.msra.mxu0 %v8268_v44  ;;  %v3753_v44 = vld [vmem:[%s17801_s8 + $0xb08] sm:$0xff]  ;;  %v3823_v40 = vld [vmem:[%s17801_s8 + $0xd38] sm:$0xff] }
 0x4ca   :  { %8973 = vmatpush1.bf16.msra.mxu1 %v8972_v5  ;;  %8271 = vmatprep.subr.bf16.mxu0 %v8270_v27  ;;  %v3757_v5 = vld [vmem:[%s17801_s8 + $0xb28] sm:$0xff]  ;;  %v3755_v27 = vld [vmem:[%s17801_s8 + $0xb18] sm:$0xff] }
 0x4cb   :  { %8975 = vmatprep.subr.bf16.mxu1 %v8974_v15  ;;  %v8290_v15 = vpack.c.bf16 %v3757_v5, %v3753_v44  ;;  %v8994_v32 = vpack.c.bf16 %v3759_v20, %v3755_v27  ;;  %v3784_v44 = vld [vmem:[%s17801_s8 + $0xc00] sm:$0xff]  ;;  %v9010_v5 = vpack.c.bf16 %v3791_v23, %v3787_v22  ;;  %v3786_v27 = vld [vmem:[%s17801_s8 + $0xc10] sm:$0xff]  ;;  %v9026_v22 = vpack.c.bf16 %v3823_v40, %v3819_v50  ;;  %v3857_v40 = vld [vmem:[%s17801_s8 + $0xe48] sm:$0xff] }
 0x4cc   :  { %v3790_v20 = vld [vmem:[%s17801_s8 + $0xc30] sm:$0xff] }
 0x4cd   :  { %8273 = vmatpush1.bf16.msra.mxu0 %v8272_v36  ;;  %v3761_v36 = vld [vmem:[%s17801_s8 + $0xb48] sm:$0xff]  ;;  %v3822_v23 = vld [vmem:[%s17801_s8 + $0xd30] sm:$0xff] }
 0x4ce   :  { %8977 = vmatpush1.bf16.msra.mxu1 %v8976_v13  ;;  %8275 = vmatprep.subr.bf16.mxu0 %v8274_v39  ;;  %v3765_v13 = vld [vmem:[%s17801_s8 + $0xb68] sm:$0xff]  ;;  %v3763_v39 = vld [vmem:[%s17801_s8 + $0xb58] sm:$0xff]  ;;  %v3854_v50 = vld [vmem:[%s17801_s8 + $0xe30] sm:$0xff] }
 0x4cf   :  { %8979 = vmatprep.subr.bf16.mxu1 %v8978_v47  ;;  %v8294_v47 = vpack.c.bf16 %v3765_v13, %v3761_v36  ;;  %v8998_v49 = vpack.c.bf16 %v3767_v43, %v3763_v39  ;;  %v3796_v36 = vld [vmem:[%s17801_s8 + $0xc60] sm:$0xff]  ;;  %v3794_v13 = vld [vmem:[%s17801_s8 + $0xc50] sm:$0xff] }
 0x4d0   :  { %v3798_v43 = vld [vmem:[%s17801_s8 + $0xc70] sm:$0xff] }
 0x4d1   :  { %8277 = vmatpush1.bf16.msra.mxu0 %v8276_v56  ;;  %v3769_v56 = vld [vmem:[%s17801_s8 + $0xb88] sm:$0xff]  ;;  %v9016_v18 = vpack.c.bf16 %v3798_v43, %v3794_v13 }
 0x4d2   :  { %8981 = vmatpush1.bf16.msra.mxu1 %v8980_v51  ;;  %8279 = vmatprep.subr.bf16.mxu0 %v8278_v52  ;;  %v3773_v51 = vld [vmem:[%s17801_s8 + $0xba8] sm:$0xff]  ;;  %v3771_v52 = vld [vmem:[%s17801_s8 + $0xb98] sm:$0xff] }
 0x4d3   :  { %8983 = vmatprep.subr.bf16.mxu1 %v8982_v57  ;;  %v8298_v57 = vpack.c.bf16 %v3773_v51, %v3769_v56  ;;  %v9002_v30 = vpack.c.bf16 %v3775_v54, %v3771_v52  ;;  %v3800_v51 = vld [vmem:[%s17801_s8 + $0xc80] sm:$0xff]  ;;  %v3802_v54 = vld [vmem:[%s17801_s8 + $0xc90] sm:$0xff] }
 0x4d4   :  { %v3804_v52 = vld [vmem:[%s17801_s8 + $0xca0] sm:$0xff] }
 0x4d5   :  { %8281 = vmatpush1.bf16.msra.mxu0 %v8280_v1  ;;  %v3777_v1 = vld [vmem:[%s17801_s8 + $0xbc8] sm:$0xff]  ;;  %v8316_v60 = vpack.c.bf16 %v3804_v52, %v3800_v51 }
 0x4d6   :  { %8985 = vmatpush1.bf16.msra.mxu1 %v8984_v2  ;;  %8283 = vmatprep.subr.bf16.mxu0 %v8282_v3  ;;  %v3781_v2 = vld [vmem:[%s17801_s8 + $0xbe8] sm:$0xff]  ;;  %v3779_v3 = vld [vmem:[%s17801_s8 + $0xbd8] sm:$0xff] }
 0x4d7   :  { %8987 = vmatprep.subr.bf16.mxu1 %v8986_v19  ;;  %v8302_v19 = vpack.c.bf16 %v3781_v2, %v3777_v1  ;;  %v9006_v11 = vpack.c.bf16 %v3783_v4, %v3779_v3  ;;  %v3808_v1 = vld [vmem:[%s17801_s8 + $0xcc0] sm:$0xff]  ;;  %v3810_v3 = vld [vmem:[%s17801_s8 + $0xcd0] sm:$0xff]  ;;  %v9022_v4 = vpack.c.bf16 %v3815_v0, %v3811_v58  ;;  %v3849_v0 = vld [vmem:[%s17801_s8 + $0xe08] sm:$0xff] }
 0x4d8   :  { %v3812_v2 = vld [vmem:[%s17801_s8 + $0xce0] sm:$0xff]  ;;  %v3846_v58 = vld [vmem:[%s17801_s8 + $0xdf0] sm:$0xff] }
 0x4d9   :  { %8285 = vmatpush1.bf16.msra.mxu0 %v8284_v14  ;;  %v3785_v14 = vld [vmem:[%s17801_s8 + $0xc08] sm:$0xff] }
 0x4da   :  { %8989 = vmatpush1.bf16.msra.mxu1 %v8988_v16  ;;  %8287 = vmatprep.subr.bf16.mxu0 %v8286_v63  ;;  %v3789_v16 = vld [vmem:[%s17801_s8 + $0xc28] sm:$0xff]  ;;  %v3292_v63 = vcombine.high %v13651_v28, %v13651_v28  ;;  %v3788_v28 = vld [vmem:[%s17801_s8 + $0xc20] sm:$0xff] }
 0x4db   :  { %8991 = vmatprep.subr.bf16.mxu1 %v8990_v62  ;;  %v9008_v62 = vpack.c.bf16 %v3782_v34, %v3778_v10  ;;  %v8306_v41 = vpack.c.bf16 %v3789_v16, %v3785_v14  ;;  %v8308_v7 = vpack.c.bf16 %v3788_v28, %v3784_v44  ;;  %v8320_v10 = vpack.c.bf16 %v3812_v2, %v3808_v1  ;;  %v3816_v14 = vld [vmem:[%s17801_s8 + $0xd00] sm:$0xff]  ;;  %v3831_v44 = vld [vmem:[%s17801_s8 + $0xd78] sm:$0xff] }
 0x4dc   :  { %v3820_v16 = vld [vmem:[%s17801_s8 + $0xd20] sm:$0xff] }
 0x4dd   :  { %8289 = vmatpush1.bf16.msra.mxu0 %v8288_v37  ;;  %v14452_v37 = vrot.slane %v3292_v63, %v10097_v12  ;;  %v3818_v63 = vld [vmem:[%s17801_s8 + $0xd10] sm:$0xff]  ;;  %v8324_v28 = vpack.c.bf16 %v3820_v16, %v3816_v14 }
 0x4de   :  { %8993 = vmatpush1.bf16.msra.mxu1 %v8992_v38  ;;  %8291 = vmatprep.subr.bf16.mxu0 %v8290_v15  ;;  %v3793_v38 = vld [vmem:[%s17801_s8 + $0xc48] sm:$0xff] }
 0x4df   :  { %8995 = vmatprep.subr.bf16.mxu1 %v8994_v32  ;;  %v3797_v15 = vld [vmem:[%s17801_s8 + $0xc68] sm:$0xff]  ;;  %v9012_v32 = vpack.c.bf16 %v3790_v20, %v3786_v27  ;;  %v3824_v20 = vld [vmem:[%s17801_s8 + $0xd40] sm:$0xff] }
 0x4e0   :  { %v8310_v39 = vpack.c.bf16 %v3797_v15, %v3793_v38  ;;  %v3828_v38 = vld [vmem:[%s17801_s8 + $0xd60] sm:$0xff]  ;;  %v3826_v15 = vld [vmem:[%s17801_s8 + $0xd50] sm:$0xff] }
 0x4e1   :  { %8293 = vmatpush1.bf16.msra.mxu0 %v8292_v45  ;;  %v3801_v45 = vld [vmem:[%s17801_s8 + $0xc88] sm:$0xff]  ;;  %v8328_v13 = vpack.c.bf16 %v3828_v38, %v3824_v20 }
 0x4e2   :  { %8997 = vmatpush1.bf16.msra.mxu1 %v8996_v26  ;;  %8295 = vmatprep.subr.bf16.mxu0 %v8294_v47  ;;  %v3805_v26 = vld [vmem:[%s17801_s8 + $0xca8] sm:$0xff]  ;;  %v3308_v47 = vcombine.high %v14452_v37, %v14452_v37 }
 0x4e3   :  { %8999 = vmatprep.subr.bf16.mxu1 %v8998_v49  ;;  %v8312_v49 = vpack.c.bf16 %v3796_v36, %v3792_v35  ;;  %v8314_v56 = vpack.c.bf16 %v3805_v26, %v3801_v45  ;;  %v3835_v35 = vld [vmem:[%s17801_s8 + $0xd98] sm:$0xff]  ;;  %v3832_v45 = vld [vmem:[%s17801_s8 + $0xd80] sm:$0xff] }
 0x4e4   :  { %v3839_v36 = vld [vmem:[%s17801_s8 + $0xdb8] sm:$0xff]  ;;  %v3836_v26 = vld [vmem:[%s17801_s8 + $0xda0] sm:$0xff] }
 0x4e5   :  { %8297 = vmatpush1.bf16.msra.mxu0 %v8296_v55  ;;  %v3806_v55 = vld [vmem:[%s17801_s8 + $0xcb0] sm:$0xff]  ;;  %v8332_v51 = vpack.c.bf16 %v3836_v26, %v3832_v45 }
 0x4e6   :  { %9001 = vmatpush1.bf16.msra.mxu1 %v9000_v9  ;;  %8299 = vmatprep.subr.bf16.mxu0 %v8298_v57  ;;  %v3809_v9 = vld [vmem:[%s17801_s8 + $0xcc8] sm:$0xff] }
 0x4e7   :  { %9003 = vmatprep.subr.bf16.mxu1 %v9002_v30  ;;  %v3813_v57 = vld [vmem:[%s17801_s8 + $0xce8] sm:$0xff]  ;;  %v9020_v30 = vpack.c.bf16 %v3806_v55, %v3802_v54  ;;  %v3844_v55 = vld [vmem:[%s17801_s8 + $0xde0] sm:$0xff] }
 0x4e8   :  { %v8318_v61 = vpack.c.bf16 %v3813_v57, %v3809_v9  ;;  %v3842_v9 = vld [vmem:[%s17801_s8 + $0xdd0] sm:$0xff] }
 0x4e9   :  { %8301 = vmatpush1.bf16.msra.mxu0 %v8300_v6  ;;  %v3814_v6 = vld [vmem:[%s17801_s8 + $0xcf0] sm:$0xff]  ;;  %v9040_v2 = vpack.c.bf16 %v3846_v58, %v3842_v9  ;;  %v3884_v58 = vld [vmem:[%s17801_s8 + $0xf20] sm:$0xff] }
 0x4ea   :  { %9005 = vmatpush1.bf16.msra.mxu1 %v9004_v33  ;;  %8303 = vmatprep.subr.bf16.mxu0 %v8302_v19  ;;  %v3817_v33 = vld [vmem:[%s17801_s8 + $0xd08] sm:$0xff] }
 0x4eb   :  { %9007 = vmatprep.subr.bf16.mxu1 %v9006_v11  ;;  %v3821_v19 = vld [vmem:[%s17801_s8 + $0xd28] sm:$0xff]  ;;  %v9024_v11 = vpack.c.bf16 %v3814_v6, %v3810_v3  ;;  %v3852_v6 = vld [vmem:[%s17801_s8 + $0xe20] sm:$0xff] }
 0x4ec   :  { %v8322_v34 = vpack.c.bf16 %v3821_v19, %v3817_v33  ;;  %v3850_v33 = vld [vmem:[%s17801_s8 + $0xe10] sm:$0xff] }
 0x4ed   :  { %8305 = vmatpush1.bf16.msra.mxu0 %v8304_v24  ;;  %v3825_v24 = vld [vmem:[%s17801_s8 + $0xd48] sm:$0xff]  ;;  %v9044_v16 = vpack.c.bf16 %v3854_v50, %v3850_v33  ;;  %v3892_v50 = vld [vmem:[%s17801_s8 + $0xf60] sm:$0xff] }
 0x4ee   :  { %9009 = vmatpush1.bf16.msra.mxu1 %v9008_v62  ;;  %8307 = vmatprep.subr.bf16.mxu0 %v8306_v41  ;;  %v3829_v62 = vld [vmem:[%s17801_s8 + $0xd68] sm:$0xff]  ;;  %v3827_v41 = vld [vmem:[%s17801_s8 + $0xd58] sm:$0xff] }
 0x4ef   :  { %9011 = vmatprep.subr.bf16.mxu1 %v9010_v5  ;;  %v9028_v5 = vpack.c.bf16 %v3822_v23, %v3818_v63  ;;  %v8326_v27 = vpack.c.bf16 %v3829_v62, %v3825_v24  ;;  %v3860_v23 = vld [vmem:[%s17801_s8 + $0xe60] sm:$0xff]  ;;  %v3858_v24 = vld [vmem:[%s17801_s8 + $0xe50] sm:$0xff] }
 0x4f0   :  { %5037 = vmatmul.mubr.f32.vlgmr.msra.gmra.mrb[16].mxu0 %v14053_v59 }
 0x4f1   :  { %5818 = vmatmul.mubr.f32.vlgmr.msra.gmra.mrb[16].mxu1 %v14053_v59  ;;  %8309 = vmatpush1.bf16.msra.mxu0 %v8308_v7  ;;  %v9018_v59 = vpack.c.bf16 %v3807_v25, %v3803_v48  ;;  %v9030_v7 = vpack.c.bf16 %v3831_v44, %v3827_v41  ;;  %v3838_v48 = vld [vmem:[%s17801_s8 + $0xdb0] sm:$0xff]  ;;  %v3841_v25 = vld [vmem:[%s17801_s8 + $0xdc8] sm:$0xff] }
 0x4f2   :  { %5107 = vmatprep.mubr.f32.mxu0 %v3308_v47  ;;  %9013 = vmatpush1.bf16.msra.mxu1 %v9012_v32  ;;  %v3837_v32 = vld [vmem:[%s17801_s8 + $0xda8] sm:$0xff]  ;;  %v3862_v41 = vld [vmem:[%s17801_s8 + $0xe70] sm:$0xff] }
 0x4f3   :  { %5888 = vmatprep.mubr.f32.mxu1 %v3308_v47  ;;  %8311 = vmatprep.subr.bf16.mxu0 %v8310_v39  ;;  %v9032_v39 = vpack.c.bf16 %v3830_v8, %v3826_v15  ;;  %v8330_v43 = vpack.c.bf16 %v3837_v32, %v3833_v31  ;;  %v3834_v47 = vld [vmem:[%s17801_s8 + $0xd90] sm:$0xff]  ;;  %v3865_v44 = vld [vmem:[%s17801_s8 + $0xe88] sm:$0xff]  ;;  %v9048_v38 = vpack.c.bf16 %v3862_v41, %v3858_v24  ;;  %v3868_v8 = vld [vmem:[%s17801_s8 + $0xea0] sm:$0xff] }
 0x4f4   :  { %9015 = vmatprep.subr.bf16.mxu1 %v9014_v21  ;;  %v9034_v21 = vpack.c.bf16 %v3839_v36, %v3835_v35  ;;  %v9036_v52 = vpack.c.bf16 %v3838_v48, %v3834_v47  ;;  %v3866_v31 = vld [vmem:[%s17801_s8 + $0xe90] sm:$0xff]  ;;  %v3873_v36 = vld [vmem:[%s17801_s8 + $0xec8] sm:$0xff]  ;;  %v3876_v48 = vld [vmem:[%s17801_s8 + $0xee0] sm:$0xff] }
 0x4f5   :  { %8313 = vmatpush1.bf16.msra.mxu0 %v8312_v49  ;;  %v3845_v49 = vld [vmem:[%s17801_s8 + $0xde8] sm:$0xff]  ;;  %v3870_v35 = vld [vmem:[%s17801_s8 + $0xeb0] sm:$0xff]  ;;  %v3900_v41 = vld [vmem:[%s17801_s8 + $0xfa0] sm:$0xff] }
 0x4f6   :  { %9017 = vmatpush1.bf16.msra.mxu1 %v9016_v18  ;;  %8315 = vmatprep.subr.bf16.mxu0 %v8314_v56  ;;  %v3843_v18 = vld [vmem:[%s17801_s8 + $0xdd8] sm:$0xff]  ;;  %v8334_v54 = vpack.c.bf16 %v3845_v49, %v3841_v25  ;;  %v9052_v26 = vpack.c.bf16 %v3870_v35, %v3866_v31  ;;  %v3874_v25 = vld [vmem:[%s17801_s8 + $0xed0] sm:$0xff]  ;;  %v3908_v35 = vld [vmem:[%s17801_s8 + $0xfe0] sm:$0xff] }
 0x4f7   :  { %9019 = vmatprep.subr.bf16.mxu1 %v9018_v59  ;;  %v3847_v56 = vld [vmem:[%s17801_s8 + $0xdf8] sm:$0xff]  ;;  %v3840_v59 = vld [vmem:[%s17801_s8 + $0xdc0] sm:$0xff] }
 0x4f8   :  { %v9038_v57 = vpack.c.bf16 %v3847_v56, %v3843_v18  ;;  %v8336_v1 = vpack.c.bf16 %v3844_v55, %v3840_v59  ;;  %v3878_v18 = vld [vmem:[%s17801_s8 + $0xef0] sm:$0xff]  ;;  %v3881_v56 = vld [vmem:[%s17801_s8 + $0xf08] sm:$0xff] }
 0x4f9   :  { %8317 = vmatpush1.bf16.msra.mxu0 %v8316_v60  ;;  %v3853_v60 = vld [vmem:[%s17801_s8 + $0xe28] sm:$0xff]  ;;  %v9056_v55 = vpack.c.bf16 %v3878_v18, %v3874_v25  ;;  %v3916_v18 = vld [vmem:[%s17801_s8 + $0x1020] sm:$0xff] }
 0x4fa   :  { %9021 = vmatpush1.bf16.msra.mxu1 %v9020_v30  ;;  %8319 = vmatprep.subr.bf16.mxu0 %v8318_v61  ;;  %v3851_v30 = vld [vmem:[%s17801_s8 + $0xe18] sm:$0xff]  ;;  %v8338_v3 = vpack.c.bf16 %v3853_v60, %v3849_v0  ;;  %v3882_v0 = vld [vmem:[%s17801_s8 + $0xf10] sm:$0xff] }
 0x4fb   :  { %9023 = vmatprep.subr.bf16.mxu1 %v9022_v4  ;;  %v3855_v61 = vld [vmem:[%s17801_s8 + $0xe38] sm:$0xff]  ;;  %v3848_v4 = vld [vmem:[%s17801_s8 + $0xe00] sm:$0xff] }
 0x4fc   :  { %v9042_v19 = vpack.c.bf16 %v3855_v61, %v3851_v30  ;;  %v8340_v14 = vpack.c.bf16 %v3852_v6, %v3848_v4  ;;  %v3886_v30 = vld [vmem:[%s17801_s8 + $0xf30] sm:$0xff]  ;;  %v3889_v61 = vld [vmem:[%s17801_s8 + $0xf48] sm:$0xff] }
 0x4fd   :  { %8321 = vmatpush1.bf16.msra.mxu0 %v8320_v10  ;;  %v3861_v10 = vld [vmem:[%s17801_s8 + $0xe68] sm:$0xff]  ;;  %v9060_v6 = vpack.c.bf16 %v3886_v30, %v3882_v0  ;;  %v3924_v30 = vld [vmem:[%s17801_s8 + $0x1060] sm:$0xff] }
 0x4fe   :  { %9025 = vmatpush1.bf16.msra.mxu1 %v9024_v11  ;;  %8323 = vmatprep.subr.bf16.mxu0 %v8322_v34  ;;  %v3859_v11 = vld [vmem:[%s17801_s8 + $0xe58] sm:$0xff]  ;;  %v8342_v63 = vpack.c.bf16 %v3861_v10, %v3857_v40  ;;  %v3890_v40 = vld [vmem:[%s17801_s8 + $0xf50] sm:$0xff] }
 0x4ff   :  { %9027 = vmatprep.subr.bf16.mxu1 %v9026_v22  ;;  %v3863_v34 = vld [vmem:[%s17801_s8 + $0xe78] sm:$0xff]  ;;  %v3856_v22 = vld [vmem:[%s17801_s8 + $0xe40] sm:$0xff] }
 0x500   :  { %v9046_v62 = vpack.c.bf16 %v3863_v34, %v3859_v11  ;;  %v8344_v20 = vpack.c.bf16 %v3860_v23, %v3856_v22  ;;  %v3894_v11 = vld [vmem:[%s17801_s8 + $0xf70] sm:$0xff]  ;;  %v3897_v34 = vld [vmem:[%s17801_s8 + $0xf88] sm:$0xff] }
 0x501   :  { %8325 = vmatpush1.bf16.msra.mxu0 %v8324_v28  ;;  %v3869_v28 = vld [vmem:[%s17801_s8 + $0xea8] sm:$0xff]  ;;  %v9064_v23 = vpack.c.bf16 %v3894_v11, %v3890_v40 }
 0x502   :  { %9029 = vmatpush1.bf16.msra.mxu1 %v9028_v5  ;;  %8327 = vmatprep.subr.bf16.mxu0 %v8326_v27  ;;  %v3867_v5 = vld [vmem:[%s17801_s8 + $0xe98] sm:$0xff]  ;;  %v8346_v15 = vpack.c.bf16 %v3869_v28, %v3865_v44  ;;  %v3898_v44 = vld [vmem:[%s17801_s8 + $0xf90] sm:$0xff] }
 0x503   :  { %9031 = vmatprep.subr.bf16.mxu1 %v9030_v7  ;;  %v3871_v27 = vld [vmem:[%s17801_s8 + $0xeb8] sm:$0xff]  ;;  %v3864_v7 = vld [vmem:[%s17801_s8 + $0xe80] sm:$0xff] }
 0x504   :  { %v9050_v32 = vpack.c.bf16 %v3871_v27, %v3867_v5  ;;  %v8348_v45 = vpack.c.bf16 %v3868_v8, %v3864_v7  ;;  %v3902_v5 = vld [vmem:[%s17801_s8 + $0xfb0] sm:$0xff]  ;;  %v3905_v27 = vld [vmem:[%s17801_s8 + $0xfc8] sm:$0xff] }
 0x505   :  { %8329 = vmatpush1.bf16.msra.mxu0 %v8328_v13  ;;  %v3877_v13 = vld [vmem:[%s17801_s8 + $0xee8] sm:$0xff]  ;;  %v9068_v8 = vpack.c.bf16 %v3902_v5, %v3898_v44  ;;  %v3936_v5 = vld [vmem:[%s17801_s8 + $0x10c0] sm:$0xff] }
 0x506   :  { %9033 = vmatpush1.bf16.msra.mxu1 %v9032_v39  ;;  %8331 = vmatprep.subr.bf16.mxu0 %v8330_v43  ;;  %v3875_v39 = vld [vmem:[%s17801_s8 + $0xed8] sm:$0xff]  ;;  %v8350_v47 = vpack.c.bf16 %v3877_v13, %v3873_v36  ;;  %v3906_v36 = vld [vmem:[%s17801_s8 + $0xfd0] sm:$0xff] }
 0x507   :  { %9035 = vmatprep.subr.bf16.mxu1 %v9034_v21  ;;  %v3879_v43 = vld [vmem:[%s17801_s8 + $0xef8] sm:$0xff]  ;;  %v3872_v21 = vld [vmem:[%s17801_s8 + $0xec0] sm:$0xff] }
 0x508   :  { %v9054_v49 = vpack.c.bf16 %v3879_v43, %v3875_v39  ;;  %v8352_v59 = vpack.c.bf16 %v3876_v48, %v3872_v21  ;;  %v3910_v39 = vld [vmem:[%s17801_s8 + $0xff0] sm:$0xff]  ;;  %v3913_v43 = vld [vmem:[%s17801_s8 + $0x1008] sm:$0xff] }
 0x509   :  { %8333 = vmatpush1.bf16.msra.mxu0 %v8332_v51  ;;  %v3885_v51 = vld [vmem:[%s17801_s8 + $0xf28] sm:$0xff]  ;;  %v9072_v48 = vpack.c.bf16 %v3910_v39, %v3906_v36  ;;  %v3944_v39 = vld [vmem:[%s17801_s8 + $0x1100] sm:$0xff] }
 0x50a   :  { %9037 = vmatpush1.bf16.msra.mxu1 %v9036_v52  ;;  %8335 = vmatprep.subr.bf16.mxu0 %v8334_v54  ;;  %v3883_v52 = vld [vmem:[%s17801_s8 + $0xf18] sm:$0xff]  ;;  %v8354_v9 = vpack.c.bf16 %v3885_v51, %v3881_v56  ;;  %v3914_v51 = vld [vmem:[%s17801_s8 + $0x1010] sm:$0xff] }
 0x50b   :  { %9039 = vmatprep.subr.bf16.mxu1 %v9038_v57  ;;  %v3887_v54 = vld [vmem:[%s17801_s8 + $0xf38] sm:$0xff]  ;;  %v3880_v57 = vld [vmem:[%s17801_s8 + $0xf00] sm:$0xff] }
 0x50c   :  { %v9058_v60 = vpack.c.bf16 %v3887_v54, %v3883_v52  ;;  %v8356_v4 = vpack.c.bf16 %v3884_v58, %v3880_v57  ;;  %v3918_v52 = vld [vmem:[%s17801_s8 + $0x1030] sm:$0xff]  ;;  %v14844_v54 = vrot.slane %v13653_v29, %v10097_v12  ;;  %v3923_v57 = vld [vmem:[%s17801_s8 + $0x1058] sm:$0xff] }
 0x50d   :  { %8337 = vmatpush1.bf16.msra.mxu0 %v8336_v1  ;;  %v3893_v1 = vld [vmem:[%s17801_s8 + $0xf68] sm:$0xff]  ;;  %v3927_v58 = vld [vmem:[%s17801_s8 + $0x1078] sm:$0xff]  ;;  %v9076_v0 = vpack.c.bf16 %v3918_v52, %v3914_v51  ;;  %v3952_v52 = vld [vmem:[%s17801_s8 + $0x1140] sm:$0xff] }
 0x50e   :  { %9041 = vmatpush1.bf16.msra.mxu1 %v9040_v2  ;;  %8339 = vmatprep.subr.bf16.mxu0 %v8338_v3  ;;  %v3891_v2 = vld [vmem:[%s17801_s8 + $0xf58] sm:$0xff]  ;;  %v8358_v33 = vpack.c.bf16 %v3893_v1, %v3889_v61  ;;  %v3922_v61 = vld [vmem:[%s17801_s8 + $0x1050] sm:$0xff] }
 0x50f   :  { %9043 = vmatprep.subr.bf16.mxu1 %v9042_v19  ;;  %v3895_v3 = vld [vmem:[%s17801_s8 + $0xf78] sm:$0xff]  ;;  %v3888_v19 = vld [vmem:[%s17801_s8 + $0xf40] sm:$0xff] }
 0x510   :  { %v9062_v10 = vpack.c.bf16 %v3895_v3, %v3891_v2  ;;  %v8360_v22 = vpack.c.bf16 %v3892_v50, %v3888_v19  ;;  %v3926_v2 = vld [vmem:[%s17801_s8 + $0x1070] sm:$0xff]  ;;  %v3929_v3 = vld [vmem:[%s17801_s8 + $0x1088] sm:$0xff]  ;;  %v3931_v19 = vld [vmem:[%s17801_s8 + $0x1098] sm:$0xff] }
 0x511   :  { %8341 = vmatpush1.bf16.msra.mxu0 %v8340_v14  ;;  %v3901_v14 = vld [vmem:[%s17801_s8 + $0xfa8] sm:$0xff]  ;;  %v3935_v50 = vld [vmem:[%s17801_s8 + $0x10b8] sm:$0xff] }
 0x512   :  { %9045 = vmatpush1.bf16.msra.mxu1 %v9044_v16  ;;  %8343 = vmatprep.subr.bf16.mxu0 %v8342_v63  ;;  %v3899_v16 = vld [vmem:[%s17801_s8 + $0xf98] sm:$0xff]  ;;  %v8362_v24 = vpack.c.bf16 %v3901_v14, %v3897_v34  ;;  %v3928_v34 = vld [vmem:[%s17801_s8 + $0x1080] sm:$0xff] }
 0x513   :  { %9047 = vmatprep.subr.bf16.mxu1 %v9046_v62  ;;  %v3903_v63 = vld [vmem:[%s17801_s8 + $0xfb8] sm:$0xff]  ;;  %v3896_v62 = vld [vmem:[%s17801_s8 + $0xf80] sm:$0xff] }
 0x514   :  { %v9066_v28 = vpack.c.bf16 %v3903_v63, %v3899_v16  ;;  %v8364_v7 = vpack.c.bf16 %v3900_v41, %v3896_v62  ;;  %v3932_v14 = vld [vmem:[%s17801_s8 + $0x10a0] sm:$0xff]  ;;  %v3930_v16 = vld [vmem:[%s17801_s8 + $0x1090] sm:$0xff]  ;;  %v3943_v62 = vld [vmem:[%s17801_s8 + $0x10f8] sm:$0xff] }
 0x515   :  { %8345 = vmatpush1.bf16.msra.mxu0 %v8344_v20  ;;  %v3909_v20 = vld [vmem:[%s17801_s8 + $0xfe8] sm:$0xff]  ;;  %v3934_v63 = vld [vmem:[%s17801_s8 + $0x10b0] sm:$0xff]  ;;  %v8380_v41 = vpack.c.bf16 %v3932_v14, %v3928_v34 }
 0x516   :  { %9049 = vmatpush1.bf16.msra.mxu1 %v9048_v38  ;;  %8347 = vmatprep.subr.bf16.mxu0 %v8346_v15  ;;  %v3907_v38 = vld [vmem:[%s17801_s8 + $0xfd8] sm:$0xff]  ;;  %v8366_v31 = vpack.c.bf16 %v3909_v20, %v3905_v27  ;;  %v9084_v44 = vpack.c.bf16 %v3934_v63, %v3930_v16  ;;  %v3940_v27 = vld [vmem:[%s17801_s8 + $0x10e0] sm:$0xff]  ;;  %v3938_v20 = vld [vmem:[%s17801_s8 + $0x10d0] sm:$0xff] }
 0x517   :  { %9051 = vmatprep.subr.bf16.mxu1 %v9050_v32  ;;  %v3911_v15 = vld [vmem:[%s17801_s8 + $0xff8] sm:$0xff]  ;;  %v3904_v32 = vld [vmem:[%s17801_s8 + $0xfc0] sm:$0xff] }
 0x518   :  { %v9070_v13 = vpack.c.bf16 %v3911_v15, %v3907_v38  ;;  %v8368_v21 = vpack.c.bf16 %v3908_v35, %v3904_v32  ;;  %v3942_v15 = vld [vmem:[%s17801_s8 + $0x10f0] sm:$0xff]  ;;  %v3951_v32 = vld [vmem:[%s17801_s8 + $0x1138] sm:$0xff]  ;;  %v8384_v35 = vpack.c.bf16 %v3940_v27, %v3936_v5  ;;  %v3972_v63 = vld [vmem:[%s17801_s8 + $0x11e0] sm:$0xff] }
 0x519   :  { %8349 = vmatpush1.bf16.msra.mxu0 %v8348_v45  ;;  %v3917_v45 = vld [vmem:[%s17801_s8 + $0x1028] sm:$0xff]  ;;  %v9088_v36 = vpack.c.bf16 %v3942_v15, %v3938_v20  ;;  %v3980_v15 = vld [vmem:[%s17801_s8 + $0x1220] sm:$0xff] }
 0x51a   :  { %9053 = vmatpush1.bf16.msra.mxu1 %v9052_v26  ;;  %8351 = vmatprep.subr.bf16.mxu0 %v8350_v47  ;;  %v3915_v26 = vld [vmem:[%s17801_s8 + $0x1018] sm:$0xff]  ;;  %v8370_v25 = vpack.c.bf16 %v3917_v45, %v3913_v43  ;;  %v3948_v43 = vld [vmem:[%s17801_s8 + $0x1120] sm:$0xff]  ;;  %v3946_v45 = vld [vmem:[%s17801_s8 + $0x1110] sm:$0xff] }
 0x51b   :  { %9055 = vmatprep.subr.bf16.mxu1 %v9054_v49  ;;  %v3919_v47 = vld [vmem:[%s17801_s8 + $0x1038] sm:$0xff]  ;;  %v3912_v49 = vld [vmem:[%s17801_s8 + $0x1000] sm:$0xff] }
 0x51c   :  { %v9074_v56 = vpack.c.bf16 %v3919_v47, %v3915_v26  ;;  %v3950_v47 = vld [vmem:[%s17801_s8 + $0x1130] sm:$0xff] }
 0x51d   :  { %8353 = vmatpush1.bf16.msra.mxu0 %v8352_v59  ;;  %v3921_v59 = vld [vmem:[%s17801_s8 + $0x1048] sm:$0xff] }
 0x51e   :  { %9057 = vmatpush1.bf16.msra.mxu1 %v9056_v55  ;;  %8355 = vmatprep.subr.bf16.mxu0 %v8354_v9  ;;  %v3925_v55 = vld [vmem:[%s17801_s8 + $0x1068] sm:$0xff]  ;;  %v8372_v9 = vpack.c.bf16 %v3916_v18, %v3912_v49  ;;  %v3959_v49 = vld [vmem:[%s17801_s8 + $0x1178] sm:$0xff]  ;;  %v8388_v18 = vpack.c.bf16 %v3948_v43, %v3944_v39 }
 0x51f   :  { %9059 = vmatprep.subr.bf16.mxu1 %v9058_v60  ;;  %v3920_v60 = vld [vmem:[%s17801_s8 + $0x1040] sm:$0xff]  ;;  %v8374_v1 = vpack.c.bf16 %v3925_v55, %v3921_v59  ;;  %v3954_v55 = vld [vmem:[%s17801_s8 + $0x1150] sm:$0xff] }
 0x520   :  { %v8376_v40 = vpack.c.bf16 %v3924_v30, %v3920_v60  ;;  %v3956_v59 = vld [vmem:[%s17801_s8 + $0x1160] sm:$0xff]  ;;  %v3963_v60 = vld [vmem:[%s17801_s8 + $0x1198] sm:$0xff] }
 0x521   :  { %8357 = vmatpush1.bf16.msra.mxu0 %v8356_v4  ;;  %v3933_v4 = vld [vmem:[%s17801_s8 + $0x10a8] sm:$0xff]  ;;  %v3967_v30 = vld [vmem:[%s17801_s8 + $0x11b8] sm:$0xff] }
 0x522   :  { %9061 = vmatpush1.bf16.msra.mxu1 %v9060_v6  ;;  %8359 = vmatprep.subr.bf16.mxu0 %v8358_v33  ;;  %v3324_v6 = vcombine.high %v14844_v54, %v14844_v54  ;;  %v9078_v33 = vpack.c.bf16 %v3927_v58, %v3923_v57  ;;  %v8378_v11 = vpack.c.bf16 %v3933_v4, %v3929_v3  ;;  %v3958_v57 = vld [vmem:[%s17801_s8 + $0x1170] sm:$0xff]  ;;  %v3961_v58 = vld [vmem:[%s17801_s8 + $0x1188] sm:$0xff]  ;;  %v3960_v3 = vld [vmem:[%s17801_s8 + $0x1180] sm:$0xff] }
 0x523   :  { %9063 = vmatprep.subr.bf16.mxu1 %v9062_v10  ;;  %v9080_v10 = vpack.c.bf16 %v3926_v2, %v3922_v61  ;;  %v8392_v61 = vpack.c.bf16 %v3956_v59, %v3952_v52  ;;  %v3964_v4 = vld [vmem:[%s17801_s8 + $0x11a0] sm:$0xff] }
 0x524   :  { %v8396_v34 = vpack.c.bf16 %v3964_v4, %v3960_v3 }
 0x525   :  { %8361 = vmatpush1.bf16.msra.mxu0 %v8360_v22  ;;  %v3937_v22 = vld [vmem:[%s17801_s8 + $0x10c8] sm:$0xff] }
 0x526   :  { %9065 = vmatpush1.bf16.msra.mxu1 %v9064_v23  ;;  %8363 = vmatprep.subr.bf16.mxu0 %v8362_v24  ;;  %v3941_v23 = vld [vmem:[%s17801_s8 + $0x10e8] sm:$0xff]  ;;  %v3939_v24 = vld [vmem:[%s17801_s8 + $0x10d8] sm:$0xff] }
 0x527   :  { %9067 = vmatprep.subr.bf16.mxu1 %v9066_v28  ;;  %v8382_v28 = vpack.c.bf16 %v3941_v23, %v3937_v22  ;;  %v9086_v38 = vpack.c.bf16 %v3943_v62, %v3939_v24  ;;  %v3970_v22 = vld [vmem:[%s17801_s8 + $0x11d0] sm:$0xff]  ;;  %v3977_v62 = vld [vmem:[%s17801_s8 + $0x1208] sm:$0xff] }
 0x528   :  { %v3974_v24 = vld [vmem:[%s17801_s8 + $0x11f0] sm:$0xff] }
 0x529   :  { %8365 = vmatpush1.bf16.msra.mxu0 %v8364_v7  ;;  %v3945_v7 = vld [vmem:[%s17801_s8 + $0x1108] sm:$0xff]  ;;  %v9104_v27 = vpack.c.bf16 %v3974_v24, %v3970_v22  ;;  %v4012_v24 = vld [vmem:[%s17801_s8 + $0x1320] sm:$0xff] }
 0x52a   :  { %9069 = vmatpush1.bf16.msra.mxu1 %v9068_v8  ;;  %8367 = vmatprep.subr.bf16.mxu0 %v8366_v31  ;;  %v3949_v8 = vld [vmem:[%s17801_s8 + $0x1128] sm:$0xff]  ;;  %v3947_v31 = vld [vmem:[%s17801_s8 + $0x1118] sm:$0xff] }
 0x52b   :  { %9071 = vmatprep.subr.bf16.mxu1 %v9070_v13  ;;  %v8386_v13 = vpack.c.bf16 %v3949_v8, %v3945_v7  ;;  %v9090_v26 = vpack.c.bf16 %v3951_v32, %v3947_v31  ;;  %v3978_v7 = vld [vmem:[%s17801_s8 + $0x1210] sm:$0xff]  ;;  %v3985_v32 = vld [vmem:[%s17801_s8 + $0x1248] sm:$0xff] }
 0x52c   :  { %v3982_v31 = vld [vmem:[%s17801_s8 + $0x1230] sm:$0xff] }
 0x52d   :  { %8369 = vmatpush1.bf16.msra.mxu0 %v8368_v21  ;;  %v3953_v21 = vld [vmem:[%s17801_s8 + $0x1148] sm:$0xff]  ;;  %v9108_v43 = vpack.c.bf16 %v3982_v31, %v3978_v7  ;;  %v4020_v31 = vld [vmem:[%s17801_s8 + $0x1360] sm:$0xff] }
 0x52e   :  { %9073 = vmatpush1.bf16.msra.mxu1 %v9072_v48  ;;  %8371 = vmatprep.subr.bf16.mxu0 %v8370_v25  ;;  %v3957_v48 = vld [vmem:[%s17801_s8 + $0x1168] sm:$0xff]  ;;  %v3955_v25 = vld [vmem:[%s17801_s8 + $0x1158] sm:$0xff] }
 0x52f   :  { %9075 = vmatprep.subr.bf16.mxu1 %v9074_v56  ;;  %v9092_v56 = vpack.c.bf16 %v3950_v47, %v3946_v45  ;;  %v8390_v51 = vpack.c.bf16 %v3957_v48, %v3953_v21  ;;  %v3988_v47 = vld [vmem:[%s17801_s8 + $0x1260] sm:$0xff]  ;;  %v3986_v21 = vld [vmem:[%s17801_s8 + $0x1250] sm:$0xff] }
 0x530   :  { %5108 = vmatmul.mubr.f32.vlgmr.msra.gmra.mrb[16].mxu0 %v14452_v37 }
 0x531   :  { %5889 = vmatmul.mubr.f32.vlgmr.msra.gmra.mrb[16].mxu1 %v14452_v37  ;;  %8373 = vmatpush1.bf16.msra.mxu0 %v8372_v9  ;;  %v9082_v37 = vpack.c.bf16 %v3935_v50, %v3931_v19  ;;  %v9094_v9 = vpack.c.bf16 %v3959_v49, %v3955_v25  ;;  %v3966_v19 = vld [vmem:[%s17801_s8 + $0x11b0] sm:$0xff]  ;;  %v3969_v50 = vld [vmem:[%s17801_s8 + $0x11c8] sm:$0xff] }
 0x532   :  { %5178 = vmatprep.mubr.f32.mxu0 %v3324_v6  ;;  %9077 = vmatpush1.bf16.msra.mxu1 %v9076_v0  ;;  %v3965_v0 = vld [vmem:[%s17801_s8 + $0x11a8] sm:$0xff]  ;;  %v3990_v25 = vld [vmem:[%s17801_s8 + $0x1270] sm:$0xff] }
 0x533   :  { %5959 = vmatprep.mubr.f32.mxu1 %v3324_v6  ;;  %8375 = vmatprep.subr.bf16.mxu0 %v8374_v1  ;;  %v9096_v1 = vpack.c.bf16 %v3958_v57, %v3954_v55  ;;  %v8394_v2 = vpack.c.bf16 %v3965_v0, %v3961_v58  ;;  %v3962_v6 = vld [vmem:[%s17801_s8 + $0x1190] sm:$0xff]  ;;  %v3993_v49 = vld [vmem:[%s17801_s8 + $0x1288] sm:$0xff]  ;;  %v9112_v59 = vpack.c.bf16 %v3990_v25, %v3986_v21  ;;  %v3996_v57 = vld [vmem:[%s17801_s8 + $0x12a0] sm:$0xff] }
 0x534   :  { %9079 = vmatprep.subr.bf16.mxu1 %v9078_v33  ;;  %v9098_v33 = vpack.c.bf16 %v3967_v30, %v3963_v60  ;;  %v9100_v14 = vpack.c.bf16 %v3966_v19, %v3962_v6  ;;  %v3994_v58 = vld [vmem:[%s17801_s8 + $0x1290] sm:$0xff]  ;;  %v4001_v30 = vld [vmem:[%s17801_s8 + $0x12c8] sm:$0xff]  ;;  %v4004_v19 = vld [vmem:[%s17801_s8 + $0x12e0] sm:$0xff] }
 0x535   :  { %8377 = vmatpush1.bf16.msra.mxu0 %v8376_v40  ;;  %v3973_v40 = vld [vmem:[%s17801_s8 + $0x11e8] sm:$0xff]  ;;  %v3998_v60 = vld [vmem:[%s17801_s8 + $0x12b0] sm:$0xff]  ;;  %v4028_v25 = vld [vmem:[%s17801_s8 + $0x13a0] sm:$0xff] }
 0x536   :  { %9081 = vmatpush1.bf16.msra.mxu1 %v9080_v10  ;;  %8379 = vmatprep.subr.bf16.mxu0 %v8378_v11  ;;  %v3971_v10 = vld [vmem:[%s17801_s8 + $0x11d8] sm:$0xff]  ;;  %v8398_v16 = vpack.c.bf16 %v3973_v40, %v3969_v50  ;;  %v9116_v4 = vpack.c.bf16 %v3998_v60, %v3994_v58  ;;  %v4002_v50 = vld [vmem:[%s17801_s8 + $0x12d0] sm:$0xff]  ;;  %v4036_v60 = vld [vmem:[%s17801_s8 + $0x13e0] sm:$0xff] }
 0x537   :  { %9083 = vmatprep.subr.bf16.mxu1 %v9082_v37  ;;  %v3975_v11 = vld [vmem:[%s17801_s8 + $0x11f8] sm:$0xff]  ;;  %v3968_v37 = vld [vmem:[%s17801_s8 + $0x11c0] sm:$0xff] }
 0x538   :  { %v9102_v23 = vpack.c.bf16 %v3975_v11, %v3971_v10  ;;  %v8400_v5 = vpack.c.bf16 %v3972_v63, %v3968_v37  ;;  %v4006_v10 = vld [vmem:[%s17801_s8 + $0x12f0] sm:$0xff]  ;;  %v4009_v11 = vld [vmem:[%s17801_s8 + $0x1308] sm:$0xff] }
 0x539   :  { %8381 = vmatpush1.bf16.msra.mxu0 %v8380_v41  ;;  %v3981_v41 = vld [vmem:[%s17801_s8 + $0x1228] sm:$0xff]  ;;  %v9120_v63 = vpack.c.bf16 %v4006_v10, %v4002_v50  ;;  %v4044_v10 = vld [vmem:[%s17801_s8 + $0x1420] sm:$0xff] }
 0x53a   :  { %9085 = vmatpush1.bf16.msra.mxu1 %v9084_v44  ;;  %8383 = vmatprep.subr.bf16.mxu0 %v8382_v28  ;;  %v3979_v44 = vld [vmem:[%s17801_s8 + $0x1218] sm:$0xff]  ;;  %v8402_v20 = vpack.c.bf16 %v3981_v41, %v3977_v62  ;;  %v4010_v62 = vld [vmem:[%s17801_s8 + $0x1310] sm:$0xff] }
 0x53b   :  { %9087 = vmatprep.subr.bf16.mxu1 %v9086_v38  ;;  %v3983_v28 = vld [vmem:[%s17801_s8 + $0x1238] sm:$0xff]  ;;  %v3976_v38 = vld [vmem:[%s17801_s8 + $0x1200] sm:$0xff] }
 0x53c   :  { %v9106_v8 = vpack.c.bf16 %v3983_v28, %v3979_v44  ;;  %v8404_v39 = vpack.c.bf16 %v3980_v15, %v3976_v38  ;;  %v4014_v44 = vld [vmem:[%s17801_s8 + $0x1330] sm:$0xff]  ;;  %v4017_v28 = vld [vmem:[%s17801_s8 + $0x1348] sm:$0xff] }
 0x53d   :  { %8385 = vmatpush1.bf16.msra.mxu0 %v8384_v35  ;;  %v3989_v35 = vld [vmem:[%s17801_s8 + $0x1268] sm:$0xff]  ;;  %v9124_v15 = vpack.c.bf16 %v4014_v44, %v4010_v62  ;;  %v4048_v44 = vld [vmem:[%s17801_s8 + $0x1440] sm:$0xff] }
 0x53e   :  { %9089 = vmatpush1.bf16.msra.mxu1 %v9088_v36  ;;  %8387 = vmatprep.subr.bf16.mxu0 %v8386_v13  ;;  %v3987_v36 = vld [vmem:[%s17801_s8 + $0x1258] sm:$0xff]  ;;  %v8406_v45 = vpack.c.bf16 %v3989_v35, %v3985_v32  ;;  %v4018_v32 = vld [vmem:[%s17801_s8 + $0x1350] sm:$0xff] }
 0x53f   :  { %9091 = vmatprep.subr.bf16.mxu1 %v9090_v26  ;;  %v3991_v13 = vld [vmem:[%s17801_s8 + $0x1278] sm:$0xff]  ;;  %v3984_v26 = vld [vmem:[%s17801_s8 + $0x1240] sm:$0xff] }
 0x540   :  { %v9110_v48 = vpack.c.bf16 %v3991_v13, %v3987_v36  ;;  %v8408_v52 = vpack.c.bf16 %v3988_v47, %v3984_v26  ;;  %v4022_v36 = vld [vmem:[%s17801_s8 + $0x1370] sm:$0xff]  ;;  %v4025_v13 = vld [vmem:[%s17801_s8 + $0x1388] sm:$0xff] }
 0x541   :  { %8389 = vmatpush1.bf16.msra.mxu0 %v8388_v18  ;;  %v3997_v18 = vld [vmem:[%s17801_s8 + $0x12a8] sm:$0xff]  ;;  %v9128_v47 = vpack.c.bf16 %v4022_v36, %v4018_v32 }
 0x542   :  { %9093 = vmatpush1.bf16.msra.mxu1 %v9092_v56  ;;  %8391 = vmatprep.subr.bf16.mxu0 %v8390_v51  ;;  %v3995_v56 = vld [vmem:[%s17801_s8 + $0x1298] sm:$0xff]  ;;  %v8410_v55 = vpack.c.bf16 %v3997_v18, %v3993_v49  ;;  %v4026_v49 = vld [vmem:[%s17801_s8 + $0x1390] sm:$0xff] }
 0x543   :  { %9095 = vmatprep.subr.bf16.mxu1 %v9094_v9  ;;  %v3999_v51 = vld [vmem:[%s17801_s8 + $0x12b8] sm:$0xff]  ;;  %v3992_v9 = vld [vmem:[%s17801_s8 + $0x1280] sm:$0xff] }
 0x544   :  { %v9114_v0 = vpack.c.bf16 %v3999_v51, %v3995_v56  ;;  %v8412_v3 = vpack.c.bf16 %v3996_v57, %v3992_v9  ;;  %v4030_v56 = vld [vmem:[%s17801_s8 + $0x13b0] sm:$0xff]  ;;  %v4033_v51 = vld [vmem:[%s17801_s8 + $0x13c8] sm:$0xff] }
 0x545   :  { %8393 = vmatpush1.bf16.msra.mxu0 %v8392_v61  ;;  %v4005_v61 = vld [vmem:[%s17801_s8 + $0x12e8] sm:$0xff]  ;;  %v9132_v57 = vpack.c.bf16 %v4030_v56, %v4026_v49  ;;  %v4064_v56 = vld [vmem:[%s17801_s8 + $0x14c0] sm:$0xff] }
 0x546   :  { %9097 = vmatpush1.bf16.msra.mxu1 %v9096_v1  ;;  %8395 = vmatprep.subr.bf16.mxu0 %v8394_v2  ;;  %v4003_v1 = vld [vmem:[%s17801_s8 + $0x12d8] sm:$0xff]  ;;  %v8414_v6 = vpack.c.bf16 %v4005_v61, %v4001_v30  ;;  %v4034_v30 = vld [vmem:[%s17801_s8 + $0x13d0] sm:$0xff] }
 0x547   :  { %9099 = vmatprep.subr.bf16.mxu1 %v9098_v33  ;;  %v4007_v2 = vld [vmem:[%s17801_s8 + $0x12f8] sm:$0xff]  ;;  %v4000_v33 = vld [vmem:[%s17801_s8 + $0x12c0] sm:$0xff] }
 0x548   :  { %v9118_v40 = vpack.c.bf16 %v4007_v2, %v4003_v1  ;;  %v8416_v37 = vpack.c.bf16 %v4004_v19, %v4000_v33  ;;  %v4038_v1 = vld [vmem:[%s17801_s8 + $0x13f0] sm:$0xff]  ;;  %v4041_v2 = vld [vmem:[%s17801_s8 + $0x1408] sm:$0xff] }
 0x549   :  { %8397 = vmatpush1.bf16.msra.mxu0 %v8396_v34  ;;  %v4013_v34 = vld [vmem:[%s17801_s8 + $0x1328] sm:$0xff]  ;;  %v9136_v19 = vpack.c.bf16 %v4038_v1, %v4034_v30  ;;  %v4072_v1 = vld [vmem:[%s17801_s8 + $0x1500] sm:$0xff] }
 0x54a   :  { %9101 = vmatpush1.bf16.msra.mxu1 %v9100_v14  ;;  %8399 = vmatprep.subr.bf16.mxu0 %v8398_v16  ;;  %v4011_v14 = vld [vmem:[%s17801_s8 + $0x1318] sm:$0xff]  ;;  %v8418_v22 = vpack.c.bf16 %v4013_v34, %v4009_v11  ;;  %v4042_v11 = vld [vmem:[%s17801_s8 + $0x1410] sm:$0xff] }
 0x54b   :  { %9103 = vmatprep.subr.bf16.mxu1 %v9102_v23  ;;  %v4015_v16 = vld [vmem:[%s17801_s8 + $0x1338] sm:$0xff]  ;;  %v4008_v23 = vld [vmem:[%s17801_s8 + $0x1300] sm:$0xff] }
 0x54c   :  { %v9122_v41 = vpack.c.bf16 %v4015_v16, %v4011_v14  ;;  %v8420_v38 = vpack.c.bf16 %v4012_v24, %v4008_v23  ;;  %v4046_v14 = vld [vmem:[%s17801_s8 + $0x1430] sm:$0xff]  ;;  %v4049_v16 = vld [vmem:[%s17801_s8 + $0x1448] sm:$0xff]  ;;  %v15249_v23 = vld [vmem:[%s17794_s1] sm:$0xff] }
 0x54d   :  { %8401 = vmatpush1.bf16.msra.mxu0 %v8400_v5  ;;  %v4021_v5 = vld [vmem:[%s17801_s8 + $0x1368] sm:$0xff]  ;;  %v9140_v62 = vpack.c.bf16 %v4046_v14, %v4042_v11  ;;  %v4080_v14 = vld [vmem:[%s17801_s8 + $0x1540] sm:$0xff] }
 0x54e   :  { %9105 = vmatpush1.bf16.msra.mxu1 %v9104_v27  ;;  %8403 = vmatprep.subr.bf16.mxu0 %v8402_v20  ;;  %v4019_v27 = vld [vmem:[%s17801_s8 + $0x1358] sm:$0xff]  ;;  %v8422_v7 = vpack.c.bf16 %v4021_v5, %v4017_v28  ;;  %v4052_v28 = vld [vmem:[%s17801_s8 + $0x1460] sm:$0xff]  ;;  %v4050_v5 = vld [vmem:[%s17801_s8 + $0x1450] sm:$0xff] }
 0x54f   :  { %9107 = vmatprep.subr.bf16.mxu1 %v9106_v8  ;;  %v4023_v20 = vld [vmem:[%s17801_s8 + $0x1378] sm:$0xff]  ;;  %v4016_v8 = vld [vmem:[%s17801_s8 + $0x1340] sm:$0xff]  ;;  %v8440_v32 = vpack.c.bf16 %v4052_v28, %v4048_v44 }
 0x550   :  { %v9126_v35 = vpack.c.bf16 %v4023_v20, %v4019_v27  ;;  %v8424_v26 = vpack.c.bf16 %v4020_v31, %v4016_v8  ;;  %v4054_v20 = vld [vmem:[%s17801_s8 + $0x1470] sm:$0xff]  ;;  %v4059_v8 = vld [vmem:[%s17801_s8 + $0x1498] sm:$0xff] }
 0x551   :  { %8405 = vmatpush1.bf16.msra.mxu0 %v8404_v39  ;;  %v4029_v39 = vld [vmem:[%s17801_s8 + $0x13a8] sm:$0xff]  ;;  %v4063_v31 = vld [vmem:[%s17801_s8 + $0x14b8] sm:$0xff] }
 0x552   :  { %9109 = vmatpush1.bf16.msra.mxu1 %v9108_v43  ;;  %8407 = vmatprep.subr.bf16.mxu0 %v8406_v45  ;;  %v4027_v43 = vld [vmem:[%s17801_s8 + $0x1398] sm:$0xff]  ;;  %v8426_v21 = vpack.c.bf16 %v4029_v39, %v4025_v13  ;;  %v4056_v13 = vld [vmem:[%s17801_s8 + $0x1480] sm:$0xff] }
 0x553   :  { %9111 = vmatprep.subr.bf16.mxu1 %v9110_v48  ;;  %v4031_v45 = vld [vmem:[%s17801_s8 + $0x13b8] sm:$0xff]  ;;  %v4024_v48 = vld [vmem:[%s17801_s8 + $0x1380] sm:$0xff] }
 0x554   :  { %v9130_v18 = vpack.c.bf16 %v4031_v45, %v4027_v43  ;;  %v8428_v9 = vpack.c.bf16 %v4028_v25, %v4024_v48  ;;  %v4060_v39 = vld [vmem:[%s17801_s8 + $0x14a0] sm:$0xff]  ;;  %v4058_v43 = vld [vmem:[%s17801_s8 + $0x1490] sm:$0xff]  ;;  %v4071_v48 = vld [vmem:[%s17801_s8 + $0x14f8] sm:$0xff] }
 0x555   :  { %8409 = vmatpush1.bf16.msra.mxu0 %v8408_v52  ;;  %v4037_v52 = vld [vmem:[%s17801_s8 + $0x13e8] sm:$0xff]  ;;  %v4062_v45 = vld [vmem:[%s17801_s8 + $0x14b0] sm:$0xff]  ;;  %v8444_v25 = vpack.c.bf16 %v4060_v39, %v4056_v13  ;;  %v4095_v44 = vld [vmem:[%s17801_s8 + $0x15b8] sm:$0xff] }
 0x556   :  { %9113 = vmatpush1.bf16.msra.mxu1 %v9112_v59  ;;  %8411 = vmatprep.subr.bf16.mxu0 %v8410_v55  ;;  %v4035_v59 = vld [vmem:[%s17801_s8 + $0x13d8] sm:$0xff]  ;;  %v8430_v58 = vpack.c.bf16 %v4037_v52, %v4033_v51  ;;  %v9148_v49 = vpack.c.bf16 %v4062_v45, %v4058_v43  ;;  %v4068_v51 = vld [vmem:[%s17801_s8 + $0x14e0] sm:$0xff]  ;;  %v4066_v52 = vld [vmem:[%s17801_s8 + $0x14d0] sm:$0xff] }
 0x557   :  { %9115 = vmatprep.subr.bf16.mxu1 %v9114_v0  ;;  %v4039_v55 = vld [vmem:[%s17801_s8 + $0x13f8] sm:$0xff]  ;;  %v4032_v0 = vld [vmem:[%s17801_s8 + $0x13c0] sm:$0xff] }
 0x558   :  { %v9134_v61 = vpack.c.bf16 %v4039_v55, %v4035_v59  ;;  %v8432_v33 = vpack.c.bf16 %v4036_v60, %v4032_v0  ;;  %v4070_v55 = vld [vmem:[%s17801_s8 + $0x14f0] sm:$0xff]  ;;  %v4079_v0 = vld [vmem:[%s17801_s8 + $0x1538] sm:$0xff]  ;;  %v8448_v60 = vpack.c.bf16 %v4068_v51, %v4064_v56  ;;  %v4096_v45 = vld [vmem:[%s17801_s8 + $0x15c0] sm:$0xff] }
 0x559   :  { %8413 = vmatpush1.bf16.msra.mxu0 %v8412_v3  ;;  %v4045_v3 = vld [vmem:[%s17801_s8 + $0x1428] sm:$0xff]  ;;  %v9152_v30 = vpack.c.bf16 %v4070_v55, %v4066_v52  ;;  %v4103_v13 = vld [vmem:[%s17801_s8 + $0x15f8] sm:$0xff]  ;;  %v4104_v55 = vld [vmem:[%s17801_s8 + $0x1600] sm:$0xff] }
 0x55a   :  { %9117 = vmatpush1.bf16.msra.mxu1 %v9116_v4  ;;  %8415 = vmatprep.subr.bf16.mxu0 %v8414_v6  ;;  %v4043_v4 = vld [vmem:[%s17801_s8 + $0x1418] sm:$0xff]  ;;  %v8434_v50 = vpack.c.bf16 %v4045_v3, %v4041_v2  ;;  %v4076_v2 = vld [vmem:[%s17801_s8 + $0x1520] sm:$0xff]  ;;  %v4074_v3 = vld [vmem:[%s17801_s8 + $0x1510] sm:$0xff] }
 0x55b   :  { %9119 = vmatprep.subr.bf16.mxu1 %v9118_v40  ;;  %v4047_v6 = vld [vmem:[%s17801_s8 + $0x1438] sm:$0xff]  ;;  %v4040_v40 = vld [vmem:[%s17801_s8 + $0x1400] sm:$0xff] }
 0x55c   :  { %v9138_v34 = vpack.c.bf16 %v4047_v6, %v4043_v4  ;;  %v8436_v24 = vpack.c.bf16 %v4044_v10, %v4040_v40  ;;  %v4078_v6 = vld [vmem:[%s17801_s8 + $0x1530] sm:$0xff]  ;;  %v4087_v40 = vld [vmem:[%s17801_s8 + $0x1578] sm:$0xff]  ;;  %v8452_v10 = vpack.c.bf16 %v4076_v2, %v4072_v1 }
 0x55d   :  { %8417 = vmatpush1.bf16.msra.mxu0 %v8416_v37  ;;  %v4053_v37 = vld [vmem:[%s17801_s8 + $0x1468] sm:$0xff]  ;;  %v9156_v11 = vpack.c.bf16 %v4078_v6, %v4074_v3  ;;  %v4111_v56 = vld [vmem:[%s17801_s8 + $0x1638] sm:$0xff]  ;;  %v4112_v6 = vld [vmem:[%s17801_s8 + $0x1640] sm:$0xff] }
 0x55e   :  { %9121 = vmatpush1.bf16.msra.mxu1 %v9120_v63  ;;  %8419 = vmatprep.subr.bf16.mxu0 %v8418_v22  ;;  %v4051_v63 = vld [vmem:[%s17801_s8 + $0x1458] sm:$0xff] }
 0x55f   :  { %9123 = vmatprep.subr.bf16.mxu1 %v9122_v41  ;;  %v4055_v22 = vld [vmem:[%s17801_s8 + $0x1478] sm:$0xff]  ;;  %v8438_v41 = vpack.c.bf16 %v4053_v37, %v4049_v16  ;;  %v4084_v16 = vld [vmem:[%s17801_s8 + $0x1560] sm:$0xff]  ;;  %v4082_v37 = vld [vmem:[%s17801_s8 + $0x1550] sm:$0xff] }
 0x560   :  { %v9142_v27 = vpack.c.bf16 %v4055_v22, %v4051_v63  ;;  %v4086_v22 = vld [vmem:[%s17801_s8 + $0x1570] sm:$0xff]  ;;  %v8456_v28 = vpack.c.bf16 %v4084_v16, %v4080_v14  ;;  %v4119_v1 = vld [vmem:[%s17801_s8 + $0x1678] sm:$0xff] }
 0x561   :  { %8421 = vmatpush1.bf16.msra.mxu0 %v8420_v38  ;;  %v4057_v38 = vld [vmem:[%s17801_s8 + $0x1488] sm:$0xff]  ;;  %v4127_v14 = vld [vmem:[%s17801_s8 + $0x16b8] sm:$0xff] }
 0x562   :  { %9125 = vmatpush1.bf16.msra.mxu1 %v9124_v15  ;;  %8423 = vmatprep.subr.bf16.mxu0 %v8422_v7  ;;  %v4061_v15 = vld [vmem:[%s17801_s8 + $0x14a8] sm:$0xff]  ;;  %v15271_v7 = vrot.slane %v15249_v23, %v10097_v12 }
 0x563   :  { %9127 = vmatprep.subr.bf16.mxu1 %v9126_v35  ;;  %v9144_v35 = vpack.c.bf16 %v4054_v20, %v4050_v5  ;;  %v8442_v36 = vpack.c.bf16 %v4061_v15, %v4057_v38  ;;  %v9160_v5 = vpack.c.bf16 %v4086_v22, %v4082_v37  ;;  %v4088_v20 = vld [vmem:[%s17801_s8 + $0x1580] sm:$0xff]  ;;  %v4090_v15 = vld [vmem:[%s17801_s8 + $0x1590] sm:$0xff] }
 0x564   :  { %v4092_v38 = vld [vmem:[%s17801_s8 + $0x15a0] sm:$0xff] }
 0x565   :  { %8425 = vmatpush1.bf16.msra.mxu0 %v8424_v26  ;;  %v4065_v26 = vld [vmem:[%s17801_s8 + $0x14c8] sm:$0xff]  ;;  %v8460_v39 = vpack.c.bf16 %v4092_v38, %v4088_v20  ;;  %v4120_v22 = vld [vmem:[%s17801_s8 + $0x1680] sm:$0xff]  ;;  %v4135_v20 = vld [vmem:[%s17801_s8 + $0x16f8] sm:$0xff] }
 0x566   :  { %9129 = vmatpush1.bf16.msra.mxu1 %v9128_v47  ;;  %8427 = vmatprep.subr.bf16.mxu0 %v8426_v21  ;;  %v4069_v47 = vld [vmem:[%s17801_s8 + $0x14e8] sm:$0xff]  ;;  %v4067_v21 = vld [vmem:[%s17801_s8 + $0x14d8] sm:$0xff] }
 0x567   :  { %9131 = vmatprep.subr.bf16.mxu1 %v9130_v18  ;;  %v8446_v18 = vpack.c.bf16 %v4069_v47, %v4065_v26  ;;  %v9150_v59 = vpack.c.bf16 %v4071_v48, %v4067_v21  ;;  %v4100_v26 = vld [vmem:[%s17801_s8 + $0x15e0] sm:$0xff]  ;;  %v4098_v47 = vld [vmem:[%s17801_s8 + $0x15d0] sm:$0xff] }
 0x568   :  { %v4102_v48 = vld [vmem:[%s17801_s8 + $0x15f0] sm:$0xff]  ;;  %v8464_v51 = vpack.c.bf16 %v4100_v26, %v4096_v45  ;;  %v4143_v45 = vld [vmem:[%s17801_s8 + $0x1738] sm:$0xff] }
 0x569   :  { %8429 = vmatpush1.bf16.msra.mxu0 %v8428_v9  ;;  %v4073_v9 = vld [vmem:[%s17801_s8 + $0x1508] sm:$0xff]  ;;  %v9168_v52 = vpack.c.bf16 %v4102_v48, %v4098_v47  ;;  %v4136_v48 = vld [vmem:[%s17801_s8 + $0x1700] sm:$0xff] }
 0x56a   :  { %9133 = vmatpush1.bf16.msra.mxu1 %v9132_v57  ;;  %8431 = vmatprep.subr.bf16.mxu0 %v8430_v58  ;;  %v4077_v57 = vld [vmem:[%s17801_s8 + $0x1528] sm:$0xff]  ;;  %v4075_v58 = vld [vmem:[%s17801_s8 + $0x1518] sm:$0xff] }
 0x56b   :  { %9135 = vmatprep.subr.bf16.mxu1 %v9134_v61  ;;  %v8450_v61 = vpack.c.bf16 %v4077_v57, %v4073_v9  ;;  %v9154_v4 = vpack.c.bf16 %v4079_v0, %v4075_v58  ;;  %v4108_v9 = vld [vmem:[%s17801_s8 + $0x1620] sm:$0xff]  ;;  %v4106_v57 = vld [vmem:[%s17801_s8 + $0x1610] sm:$0xff] }
 0x56c   :  { %v4110_v0 = vld [vmem:[%s17801_s8 + $0x1630] sm:$0xff]  ;;  %v8468_v2 = vpack.c.bf16 %v4108_v9, %v4104_v55  ;;  %v4151_v55 = vld [vmem:[%s17801_s8 + $0x1778] sm:$0xff] }
 0x56d   :  { %8433 = vmatpush1.bf16.msra.mxu0 %v8432_v33  ;;  %v4081_v33 = vld [vmem:[%s17801_s8 + $0x1548] sm:$0xff]  ;;  %v9172_v3 = vpack.c.bf16 %v4110_v0, %v4106_v57  ;;  %v4144_v0 = vld [vmem:[%s17801_s8 + $0x1740] sm:$0xff] }
 0x56e   :  { %9137 = vmatpush1.bf16.msra.mxu1 %v9136_v19  ;;  %8435 = vmatprep.subr.bf16.mxu0 %v8434_v50  ;;  %v4085_v19 = vld [vmem:[%s17801_s8 + $0x1568] sm:$0xff]  ;;  %v4083_v50 = vld [vmem:[%s17801_s8 + $0x1558] sm:$0xff] }
 0x56f   :  { %9139 = vmatprep.subr.bf16.mxu1 %v9138_v34  ;;  %v8454_v34 = vpack.c.bf16 %v4085_v19, %v4081_v33  ;;  %v9158_v63 = vpack.c.bf16 %v4087_v40, %v4083_v50  ;;  %v4116_v33 = vld [vmem:[%s17801_s8 + $0x1660] sm:$0xff]  ;;  %v4114_v19 = vld [vmem:[%s17801_s8 + $0x1650] sm:$0xff] }
 0x570   :  { %5179 = vmatmul.mubr.f32.vlgmr.msra.gmra.mrb[16].mxu0 %v14844_v54  ;;  %v4118_v40 = vld [vmem:[%s17801_s8 + $0x1670] sm:$0xff]  ;;  %v8472_v16 = vpack.c.bf16 %v4116_v33, %v4112_v6  ;;  %v4159_v6 = vld [vmem:[%s17801_s8 + $0x17b8] sm:$0xff] }
 0x571   :  { %5960 = vmatmul.mubr.f32.vlgmr.msra.gmra.mrb[16].mxu1 %v14844_v54  ;;  %8437 = vmatpush1.bf16.msra.mxu0 %v8436_v24  ;;  %v9146_v54 = vpack.c.bf16 %v4063_v31, %v4059_v8  ;;  %v4089_v24 = vld [vmem:[%s17801_s8 + $0x1588] sm:$0xff]  ;;  %v4094_v31 = vld [vmem:[%s17801_s8 + $0x15b0] sm:$0xff]  ;;  %v9176_v37 = vpack.c.bf16 %v4118_v40, %v4114_v19  ;;  %v4152_v40 = vld [vmem:[%s17801_s8 + $0x1780] sm:$0xff] }
 0x572   :  { %9141 = vmatpush1.bf16.msra.mxu1 %v9140_v62  ;;  %8439 = vmatprep.subr.bf16.mxu0 %v8438_v41  ;;  %v4093_v62 = vld [vmem:[%s17801_s8 + $0x15a8] sm:$0xff]  ;;  %v4091_v41 = vld [vmem:[%s17801_s8 + $0x1598] sm:$0xff]  ;;  %v9164_v43 = vpack.c.bf16 %v4094_v31, %v4090_v15  ;;  %v4128_v31 = vld [vmem:[%s17801_s8 + $0x16c0] sm:$0xff] }
 0x573   :  { %9143 = vmatprep.subr.bf16.mxu1 %v9142_v27  ;;  %5249 = vmatprep.mubr.f32.mxu0 %v15271_v7  ;;  %v8458_v27 = vpack.c.bf16 %v4093_v62, %v4089_v24  ;;  %v9162_v8 = vpack.c.bf16 %v4095_v44, %v4091_v41  ;;  %v4124_v24 = vld [vmem:[%s17801_s8 + $0x16a0] sm:$0xff]  ;;  %v4122_v62 = vld [vmem:[%s17801_s8 + $0x1690] sm:$0xff] }
 0x574   :  { %6030 = vmatprep.mubr.f32.mxu1 %v15271_v7  ;;  %v4126_v44 = vld [vmem:[%s17801_s8 + $0x16b0] sm:$0xff]  ;;  %v8476_v38 = vpack.c.bf16 %v4124_v24, %v4120_v22  ;;  %v4167_v22 = vld [vmem:[%s17801_s8 + $0x17f8] sm:$0xff] }
 0x575   :  { %8441 = vmatpush1.bf16.msra.mxu0 %v8440_v32  ;;  %v4097_v32 = vld [vmem:[%s17801_s8 + $0x15c8] sm:$0xff]  ;;  %v9180_v15 = vpack.c.bf16 %v4126_v44, %v4122_v62  ;;  %v4160_v44 = vld [vmem:[%s17801_s8 + $0x17c0] sm:$0xff] }
 0x576   :  { %9145 = vmatpush1.bf16.msra.mxu1 %v9144_v35  ;;  %8443 = vmatprep.subr.bf16.mxu0 %v8442_v36  ;;  %v4101_v35 = vld [vmem:[%s17801_s8 + $0x15e8] sm:$0xff]  ;;  %v4099_v36 = vld [vmem:[%s17801_s8 + $0x15d8] sm:$0xff] }
 0x577   :  { %9147 = vmatprep.subr.bf16.mxu1 %v9146_v54  ;;  %v8462_v54 = vpack.c.bf16 %v4101_v35, %v4097_v32  ;;  %v9166_v21 = vpack.c.bf16 %v4103_v13, %v4099_v36  ;;  %v4132_v32 = vld [vmem:[%s17801_s8 + $0x16e0] sm:$0xff]  ;;  %v4130_v35 = vld [vmem:[%s17801_s8 + $0x16d0] sm:$0xff] }
 0x578   :  { %v4134_v13 = vld [vmem:[%s17801_s8 + $0x16f0] sm:$0xff]  ;;  %v8480_v26 = vpack.c.bf16 %v4132_v32, %v4128_v31  ;;  %v4175_v31 = vld [vmem:[%s17801_s8 + $0x1838] sm:$0xff] }
 0x579   :  { %8445 = vmatpush1.bf16.msra.mxu0 %v8444_v25  ;;  %v4105_v25 = vld [vmem:[%s17801_s8 + $0x1608] sm:$0xff]  ;;  %v9184_v47 = vpack.c.bf16 %v4134_v13, %v4130_v35  ;;  %v3309_v35 = vcombine.high %v13653_v29, %v13653_v29  ;;  %v4174_v29 = vld [vmem:[%s17801_s8 + $0x1830] sm:$0xff] }
 0x57a   :  { %9149 = vmatpush1.bf16.msra.mxu1 %v9148_v49  ;;  %8447 = vmatprep.subr.bf16.mxu0 %v8446_v18  ;;  %v4109_v49 = vld [vmem:[%s17801_s8 + $0x1628] sm:$0xff]  ;;  %v4107_v18 = vld [vmem:[%s17801_s8 + $0x1618] sm:$0xff] }
 0x57b   :  { %9151 = vmatprep.subr.bf16.mxu1 %v9150_v59  ;;  %v8466_v59 = vpack.c.bf16 %v4109_v49, %v4105_v25  ;;  %v9170_v58 = vpack.c.bf16 %v4111_v56, %v4107_v18  ;;  %v4140_v25 = vld [vmem:[%s17801_s8 + $0x1720] sm:$0xff]  ;;  %v4138_v49 = vld [vmem:[%s17801_s8 + $0x1710] sm:$0xff] }
 0x57c   :  { %v4142_v56 = vld [vmem:[%s17801_s8 + $0x1730] sm:$0xff]  ;;  %v8484_v9 = vpack.c.bf16 %v4140_v25, %v4136_v48  ;;  %v4179_v48 = vld [vmem:[%s17801_s8 + $0x1858] sm:$0xff] }
 0x57d   :  { %8449 = vmatpush1.bf16.msra.mxu0 %v8448_v60  ;;  %v4113_v60 = vld [vmem:[%s17801_s8 + $0x1648] sm:$0xff]  ;;  %v9188_v57 = vpack.c.bf16 %v4142_v56, %v4138_v49  ;;  %v4183_v25 = vld [vmem:[%s17801_s8 + $0x1878] sm:$0xff] }
 0x57e   :  { %9153 = vmatpush1.bf16.msra.mxu1 %v9152_v30  ;;  %8451 = vmatprep.subr.bf16.mxu0 %v8450_v61  ;;  %v4117_v30 = vld [vmem:[%s17801_s8 + $0x1668] sm:$0xff]  ;;  %v4115_v61 = vld [vmem:[%s17801_s8 + $0x1658] sm:$0xff] }
 0x57f   :  { %9155 = vmatprep.subr.bf16.mxu1 %v9154_v4  ;;  %v8470_v4 = vpack.c.bf16 %v4117_v30, %v4113_v60  ;;  %v9174_v50 = vpack.c.bf16 %v4119_v1, %v4115_v61  ;;  %v4148_v60 = vld [vmem:[%s17801_s8 + $0x1760] sm:$0xff]  ;;  %v4146_v30 = vld [vmem:[%s17801_s8 + $0x1750] sm:$0xff] }
 0x580   :  { %v4150_v1 = vld [vmem:[%s17801_s8 + $0x1770] sm:$0xff]  ;;  %v8488_v33 = vpack.c.bf16 %v4148_v60, %v4144_v0  ;;  %v4187_v60 = vld [vmem:[%s17801_s8 + $0x1898] sm:$0xff] }
 0x581   :  { %8453 = vmatpush1.bf16.msra.mxu0 %v8452_v10  ;;  %v4121_v10 = vld [vmem:[%s17801_s8 + $0x1688] sm:$0xff]  ;;  %v9192_v19 = vpack.c.bf16 %v4150_v1, %v4146_v30  ;;  %v4191_v30 = vld [vmem:[%s17801_s8 + $0x18b8] sm:$0xff] }
 0x582   :  { %9157 = vmatpush1.bf16.msra.mxu1 %v9156_v11  ;;  %8455 = vmatprep.subr.bf16.mxu0 %v8454_v34  ;;  %v4125_v11 = vld [vmem:[%s17801_s8 + $0x16a8] sm:$0xff]  ;;  %v4123_v34 = vld [vmem:[%s17801_s8 + $0x1698] sm:$0xff] }
 0x583   :  { %9159 = vmatprep.subr.bf16.mxu1 %v9158_v63  ;;  %v8474_v63 = vpack.c.bf16 %v4125_v11, %v4121_v10  ;;  %v9178_v41 = vpack.c.bf16 %v4127_v14, %v4123_v34  ;;  %v4156_v10 = vld [vmem:[%s17801_s8 + $0x17a0] sm:$0xff]  ;;  %v4154_v11 = vld [vmem:[%s17801_s8 + $0x1790] sm:$0xff] }
 0x584   :  { %v4158_v14 = vld [vmem:[%s17801_s8 + $0x17b0] sm:$0xff]  ;;  %v8492_v24 = vpack.c.bf16 %v4156_v10, %v4152_v40  ;;  %v4197_v40 = vld [vmem:[%s17801_s8 + $0x18e8] sm:$0xff]  ;;  %v4195_v10 = vld [vmem:[%s17801_s8 + $0x18d8] sm:$0xff] }
 0x585   :  { %8457 = vmatpush1.bf16.msra.mxu0 %v8456_v28  ;;  %v4129_v28 = vld [vmem:[%s17801_s8 + $0x16c8] sm:$0xff]  ;;  %v9196_v62 = vpack.c.bf16 %v4158_v14, %v4154_v11  ;;  %v4199_v11 = vld [vmem:[%s17801_s8 + $0x18f8] sm:$0xff] }
 0x586   :  { %9161 = vmatpush1.bf16.msra.mxu1 %v9160_v5  ;;  %8459 = vmatprep.subr.bf16.mxu0 %v8458_v27  ;;  %v4133_v5 = vld [vmem:[%s17801_s8 + $0x16e8] sm:$0xff]  ;;  %v4131_v27 = vld [vmem:[%s17801_s8 + $0x16d8] sm:$0xff] }
 0x587   :  { %9163 = vmatprep.subr.bf16.mxu1 %v9162_v8  ;;  %v8478_v8 = vpack.c.bf16 %v4133_v5, %v4129_v28  ;;  %v9182_v36 = vpack.c.bf16 %v4135_v20, %v4131_v27  ;;  %v4164_v28 = vld [vmem:[%s17801_s8 + $0x17e0] sm:$0xff]  ;;  %v4162_v5 = vld [vmem:[%s17801_s8 + $0x17d0] sm:$0xff] }
 0x588   :  { %v4166_v20 = vld [vmem:[%s17801_s8 + $0x17f0] sm:$0xff]  ;;  %v8496_v32 = vpack.c.bf16 %v4164_v28, %v4160_v44  ;;  %v4205_v44 = vld [vmem:[%s17801_s8 + $0x1928] sm:$0xff]  ;;  %v4203_v28 = vld [vmem:[%s17801_s8 + $0x1918] sm:$0xff] }
 0x589   :  { %8461 = vmatpush1.bf16.msra.mxu0 %v8460_v39  ;;  %v4137_v39 = vld [vmem:[%s17801_s8 + $0x1708] sm:$0xff] }
 0x58a   :  { %9165 = vmatpush1.bf16.msra.mxu1 %v9164_v43  ;;  %8463 = vmatprep.subr.bf16.mxu0 %v8462_v54  ;;  %v4141_v43 = vld [vmem:[%s17801_s8 + $0x1728] sm:$0xff]  ;;  %v4139_v54 = vld [vmem:[%s17801_s8 + $0x1718] sm:$0xff] }
 0x58b   :  { %9167 = vmatprep.subr.bf16.mxu1 %v9166_v21  ;;  %v8482_v21 = vpack.c.bf16 %v4141_v43, %v4137_v39  ;;  %v9186_v18 = vpack.c.bf16 %v4143_v45, %v4139_v54  ;;  %v4168_v39 = vld [vmem:[%s17801_s8 + $0x1800] sm:$0xff]  ;;  %v4170_v54 = vld [vmem:[%s17801_s8 + $0x1810] sm:$0xff] }
 0x58c   :  { %v4172_v43 = vld [vmem:[%s17801_s8 + $0x1820] sm:$0xff]  ;;  %v9204_v56 = vpack.c.bf16 %v4174_v29, %v4170_v54 }
 0x58d   :  { %8465 = vmatpush1.bf16.msra.mxu0 %v8464_v51  ;;  %v4145_v51 = vld [vmem:[%s17801_s8 + $0x1748] sm:$0xff]  ;;  %v8500_v49 = vpack.c.bf16 %v4172_v43, %v4168_v39  ;;  %v4211_v39 = vld [vmem:[%s17801_s8 + $0x1958] sm:$0xff] }
 0x58e   :  { %9169 = vmatpush1.bf16.msra.mxu1 %v9168_v52  ;;  %8467 = vmatprep.subr.bf16.mxu0 %v8466_v59  ;;  %v4149_v52 = vld [vmem:[%s17801_s8 + $0x1768] sm:$0xff]  ;;  %v4147_v59 = vld [vmem:[%s17801_s8 + $0x1758] sm:$0xff] }
 0x58f   :  { %9171 = vmatprep.subr.bf16.mxu1 %v9170_v58  ;;  %v8486_v58 = vpack.c.bf16 %v4149_v52, %v4145_v51  ;;  %v9190_v61 = vpack.c.bf16 %v4151_v55, %v4147_v59  ;;  %v4180_v52 = vld [vmem:[%s17801_s8 + $0x1860] sm:$0xff]  ;;  %v4178_v59 = vld [vmem:[%s17801_s8 + $0x1850] sm:$0xff]  ;;  %v9206_v55 = vpack.c.bf16 %v4183_v25, %v4179_v48  ;;  %v4215_v43 = vld [vmem:[%s17801_s8 + $0x1978] sm:$0xff] }
 0x590   :  { %v9222_v48 = vpack.c.bf16 %v4215_v43, %v4211_v39  ;;  %v4214_v25 = vld [vmem:[%s17801_s8 + $0x1970] sm:$0xff]  ;;  %v4249_v43 = vld [vmem:[%s17801_s8 + $0x1a88] sm:$0xff] }
 0x591   :  { %8469 = vmatpush1.bf16.msra.mxu0 %v8468_v2  ;;  %v4153_v2 = vld [vmem:[%s17801_s8 + $0x1788] sm:$0xff]  ;;  %v4246_v39 = vld [vmem:[%s17801_s8 + $0x1a70] sm:$0xff] }
 0x592   :  { %9173 = vmatpush1.bf16.msra.mxu1 %v9172_v3  ;;  %8471 = vmatprep.subr.bf16.mxu0 %v8470_v4  ;;  %v4157_v3 = vld [vmem:[%s17801_s8 + $0x17a8] sm:$0xff]  ;;  %v4155_v4 = vld [vmem:[%s17801_s8 + $0x1798] sm:$0xff] }
 0x593   :  { %9175 = vmatprep.subr.bf16.mxu1 %v9174_v50  ;;  %v8490_v50 = vpack.c.bf16 %v4157_v3, %v4153_v2  ;;  %v9194_v34 = vpack.c.bf16 %v4159_v6, %v4155_v4  ;;  %v4184_v3 = vld [vmem:[%s17801_s8 + $0x1880] sm:$0xff]  ;;  %v4186_v6 = vld [vmem:[%s17801_s8 + $0x1890] sm:$0xff] }
 0x594   :  { %v4188_v4 = vld [vmem:[%s17801_s8 + $0x18a0] sm:$0xff] }
 0x595   :  { %8473 = vmatpush1.bf16.msra.mxu0 %v8472_v16  ;;  %v4161_v16 = vld [vmem:[%s17801_s8 + $0x17c8] sm:$0xff] }
 0x596   :  { %9177 = vmatpush1.bf16.msra.mxu1 %v9176_v37  ;;  %8475 = vmatprep.subr.bf16.mxu0 %v8474_v63  ;;  %v4165_v37 = vld [vmem:[%s17801_s8 + $0x17e8] sm:$0xff]  ;;  %v4163_v63 = vld [vmem:[%s17801_s8 + $0x17d8] sm:$0xff] }
 0x597   :  { %9179 = vmatprep.subr.bf16.mxu1 %v9178_v41  ;;  %v8494_v41 = vpack.c.bf16 %v4165_v37, %v4161_v16  ;;  %v9198_v27 = vpack.c.bf16 %v4167_v22, %v4163_v63  ;;  %v4192_v37 = vld [vmem:[%s17801_s8 + $0x18c0] sm:$0xff]  ;;  %v4194_v22 = vld [vmem:[%s17801_s8 + $0x18d0] sm:$0xff] }
 0x598   :  { %v4196_v63 = vld [vmem:[%s17801_s8 + $0x18e0] sm:$0xff] }
 0x599   :  { %8477 = vmatpush1.bf16.msra.mxu0 %v8476_v38  ;;  %v4169_v38 = vld [vmem:[%s17801_s8 + $0x1808] sm:$0xff] }
 0x59a   :  { %9181 = vmatpush1.bf16.msra.mxu1 %v9180_v15  ;;  %8479 = vmatprep.subr.bf16.mxu0 %v8478_v8  ;;  %v4173_v15 = vld [vmem:[%s17801_s8 + $0x1828] sm:$0xff]  ;;  %v4171_v8 = vld [vmem:[%s17801_s8 + $0x1818] sm:$0xff] }
 0x59b   :  { %9183 = vmatprep.subr.bf16.mxu1 %v9182_v36  ;;  %v9200_v36 = vpack.c.bf16 %v4166_v20, %v4162_v5  ;;  %v8498_v13 = vpack.c.bf16 %v4173_v15, %v4169_v38  ;;  %v9202_v45 = vpack.c.bf16 %v4175_v31, %v4171_v8  ;;  %v4207_v5 = vld [vmem:[%s17801_s8 + $0x1938] sm:$0xff]  ;;  %v4200_v15 = vld [vmem:[%s17801_s8 + $0x1900] sm:$0xff]  ;;  %v4202_v31 = vld [vmem:[%s17801_s8 + $0x1910] sm:$0xff] }
 0x59c   :  { %v4204_v8 = vld [vmem:[%s17801_s8 + $0x1920] sm:$0xff] }
 0x59d   :  { %8481 = vmatpush1.bf16.msra.mxu0 %v8480_v26  ;;  %v4177_v26 = vld [vmem:[%s17801_s8 + $0x1848] sm:$0xff]  ;;  %v8516_v54 = vpack.c.bf16 %v4204_v8, %v4200_v15 }
 0x59e   :  { %9185 = vmatpush1.bf16.msra.mxu1 %v9184_v47  ;;  %8483 = vmatprep.subr.bf16.mxu0 %v8482_v21  ;;  %v4181_v47 = vld [vmem:[%s17801_s8 + $0x1868] sm:$0xff]  ;;  %v3339_v21 = vcombine.high %v15249_v23, %v15249_v23  ;;  %v4176_v23 = vld [vmem:[%s17801_s8 + $0x1840] sm:$0xff] }
 0x59f   :  { %9187 = vmatprep.subr.bf16.mxu1 %v9186_v18  ;;  %v3323_v18 = vrot.slane %v3309_v35, %v10097_v12  ;;  %v8502_v51 = vpack.c.bf16 %v4181_v47, %v4177_v26  ;;  %v4206_v35 = vld [vmem:[%s17801_s8 + $0x1930] sm:$0xff]  ;;  %v4208_v26 = vld [vmem:[%s17801_s8 + $0x1940] sm:$0xff] }
 0x5a0   :  { %v15667_v0 = vrot.slane %v3339_v21, %v10097_v12  ;;  %v4212_v47 = vld [vmem:[%s17801_s8 + $0x1960] sm:$0xff]  ;;  %v4210_v21 = vld [vmem:[%s17801_s8 + $0x1950] sm:$0xff] }
 0x5a1   :  { %8485 = vmatpush1.bf16.msra.mxu0 %v8484_v9  ;;  %v4182_v9 = vld [vmem:[%s17801_s8 + $0x1870] sm:$0xff] }
 0x5a2   :  { %9189 = vmatpush1.bf16.msra.mxu1 %v9188_v57  ;;  %8487 = vmatprep.subr.bf16.mxu0 %v8486_v58  ;;  %v4185_v57 = vld [vmem:[%s17801_s8 + $0x1888] sm:$0xff]  ;;  %v9208_v1 = vpack.c.bf16 %v4182_v9, %v4178_v59  ;;  %v4220_v9 = vld [vmem:[%s17801_s8 + $0x19a0] sm:$0xff] }
 0x5a3   :  { %9191 = vmatprep.subr.bf16.mxu1 %v9190_v61  ;;  %v4189_v58 = vld [vmem:[%s17801_s8 + $0x18a8] sm:$0xff]  ;;  %v8504_v61 = vpack.c.bf16 %v4180_v52, %v4176_v23  ;;  %v8520_v23 = vpack.c.bf16 %v4212_v47, %v4208_v26  ;;  %v9224_v52 = vpack.c.bf16 %v4214_v25, %v4210_v21  ;;  %v4252_v25 = vld [vmem:[%s17801_s8 + $0x1aa0] sm:$0xff] }
 0x5a4   :  { %v8506_v2 = vpack.c.bf16 %v4189_v58, %v4185_v57  ;;  %v4218_v57 = vld [vmem:[%s17801_s8 + $0x1990] sm:$0xff] }
 0x5a5   :  { %8489 = vmatpush1.bf16.msra.mxu0 %v8488_v33  ;;  %v9210_v33 = vpack.c.bf16 %v4191_v30, %v4187_v60  ;;  %v4222_v60 = vld [vmem:[%s17801_s8 + $0x19b0] sm:$0xff]  ;;  %v4225_v30 = vld [vmem:[%s17801_s8 + $0x19c8] sm:$0xff] }
 0x5a6   :  { %9193 = vmatpush1.bf16.msra.mxu1 %v9192_v19  ;;  %8491 = vmatprep.subr.bf16.mxu0 %v8490_v50  ;;  %v4190_v19 = vld [vmem:[%s17801_s8 + $0x18b0] sm:$0xff]  ;;  %v4193_v50 = vld [vmem:[%s17801_s8 + $0x18c8] sm:$0xff] }
 0x5a7   :  { %9195 = vmatprep.subr.bf16.mxu1 %v9194_v34  ;;  %v8508_v34 = vpack.c.bf16 %v4188_v4, %v4184_v3  ;;  %v9212_v14 = vpack.c.bf16 %v4190_v19, %v4186_v6  ;;  %v8510_v16 = vpack.c.bf16 %v4197_v40, %v4193_v50  ;;  %v9228_v4 = vpack.c.bf16 %v4222_v60, %v4218_v57  ;;  %v4228_v19 = vld [vmem:[%s17801_s8 + $0x19e0] sm:$0xff]  ;;  %v4226_v50 = vld [vmem:[%s17801_s8 + $0x19d0] sm:$0xff] }
 0x5a8   :  { %v4260_v60 = vld [vmem:[%s17801_s8 + $0x1ae0] sm:$0xff] }
 0x5a9   :  { %8493 = vmatpush1.bf16.msra.mxu0 %v8492_v24  ;;  %v9214_v24 = vpack.c.bf16 %v4199_v11, %v4195_v10  ;;  %v4230_v10 = vld [vmem:[%s17801_s8 + $0x19f0] sm:$0xff]  ;;  %v4233_v11 = vld [vmem:[%s17801_s8 + $0x1a08] sm:$0xff] }
 0x5aa   :  { %9197 = vmatpush1.bf16.msra.mxu1 %v9196_v62  ;;  %8495 = vmatprep.subr.bf16.mxu0 %v8494_v41  ;;  %v4198_v62 = vld [vmem:[%s17801_s8 + $0x18f0] sm:$0xff]  ;;  %v4201_v41 = vld [vmem:[%s17801_s8 + $0x1908] sm:$0xff] }
 0x5ab   :  { %9199 = vmatprep.subr.bf16.mxu1 %v9198_v27  ;;  %v8512_v27 = vpack.c.bf16 %v4196_v63, %v4192_v37  ;;  %v9216_v20 = vpack.c.bf16 %v4198_v62, %v4194_v22  ;;  %v8514_v38 = vpack.c.bf16 %v4205_v44, %v4201_v41  ;;  %v9232_v63 = vpack.c.bf16 %v4230_v10, %v4226_v50  ;;  %v4236_v62 = vld [vmem:[%s17801_s8 + $0x1a20] sm:$0xff]  ;;  %v4234_v41 = vld [vmem:[%s17801_s8 + $0x1a10] sm:$0xff] }
 0x5ac   :  { %v4268_v10 = vld [vmem:[%s17801_s8 + $0x1b20] sm:$0xff] }
 0x5ad   :  { %8497 = vmatpush1.bf16.msra.mxu0 %v8496_v32  ;;  %v9218_v32 = vpack.c.bf16 %v4207_v5, %v4203_v28  ;;  %v4238_v28 = vld [vmem:[%s17801_s8 + $0x1a30] sm:$0xff]  ;;  %v4241_v5 = vld [vmem:[%s17801_s8 + $0x1a48] sm:$0xff] }
 0x5ae   :  { %9201 = vmatpush1.bf16.msra.mxu1 %v9200_v36  ;;  %8499 = vmatprep.subr.bf16.mxu0 %v8498_v13  ;;  %v4209_v36 = vld [vmem:[%s17801_s8 + $0x1948] sm:$0xff]  ;;  %v9236_v8 = vpack.c.bf16 %v4238_v28, %v4234_v41  ;;  %v4276_v28 = vld [vmem:[%s17801_s8 + $0x1b60] sm:$0xff] }
 0x5af   :  { %9203 = vmatprep.subr.bf16.mxu1 %v9202_v45  ;;  %v4213_v13 = vld [vmem:[%s17801_s8 + $0x1968] sm:$0xff]  ;;  %v9220_v45 = vpack.c.bf16 %v4206_v35, %v4202_v31  ;;  %v4244_v35 = vld [vmem:[%s17801_s8 + $0x1a60] sm:$0xff] }
 0x5b0   :  { %5250 = vmatmul.mubr.f32.vlgmr.msra.gmra.mrb[16].mxu0 %v3323_v18  ;;  %v8518_v29 = vpack.c.bf16 %v4213_v13, %v4209_v36  ;;  %v4242_v36 = vld [vmem:[%s17801_s8 + $0x1a50] sm:$0xff] }
 0x5b1   :  { %6031 = vmatmul.mubr.f32.vlgmr.msra.gmra.mrb[16].mxu1 %v3323_v18  ;;  %8501 = vmatpush1.bf16.msra.mxu0 %v8500_v49  ;;  %v4217_v49 = vld [vmem:[%s17801_s8 + $0x1988] sm:$0xff]  ;;  %v9240_v47 = vpack.c.bf16 %v4246_v39, %v4242_v36  ;;  %v4284_v39 = vld [vmem:[%s17801_s8 + $0x1ba0] sm:$0xff] }
 0x5b2   :  { %9205 = vmatpush1.bf16.msra.mxu1 %v9204_v56  ;;  %8503 = vmatprep.subr.bf16.mxu0 %v8502_v51  ;;  %v4221_v18 = vld [vmem:[%s17801_s8 + $0x19a8] sm:$0xff]  ;;  %v4219_v56 = vld [vmem:[%s17801_s8 + $0x1998] sm:$0xff] }
 0x5b3   :  { %9207 = vmatprep.subr.bf16.mxu1 %v9206_v55  ;;  %5320 = vmatprep.mubr.f32.mxu0 %v15667_v0  ;;  %v4223_v51 = vld [vmem:[%s17801_s8 + $0x19b8] sm:$0xff]  ;;  %v8522_v59 = vpack.c.bf16 %v4221_v18, %v4217_v49  ;;  %v4216_v55 = vld [vmem:[%s17801_s8 + $0x1980] sm:$0xff]  ;;  %v4250_v49 = vld [vmem:[%s17801_s8 + $0x1a90] sm:$0xff] }
 0x5b4   :  { %6101 = vmatprep.mubr.f32.mxu1 %v15667_v0  ;;  %v9226_v58 = vpack.c.bf16 %v4223_v51, %v4219_v56  ;;  %v8524_v3 = vpack.c.bf16 %v4220_v9, %v4216_v55  ;;  %v4254_v56 = vld [vmem:[%s17801_s8 + $0x1ab0] sm:$0xff]  ;;  %v4257_v51 = vld [vmem:[%s17801_s8 + $0x1ac8] sm:$0xff] }
 0x5b5   :  { %8505 = vmatpush1.bf16.msra.mxu0 %v8504_v61  ;;  %v4229_v61 = vld [vmem:[%s17801_s8 + $0x19e8] sm:$0xff]  ;;  %v9244_v9 = vpack.c.bf16 %v4254_v56, %v4250_v49  ;;  %v4292_v56 = vld [vmem:[%s17801_s8 + $0x1be0] sm:$0xff] }
 0x5b6   :  { %9209 = vmatpush1.bf16.msra.mxu1 %v9208_v1  ;;  %8507 = vmatprep.subr.bf16.mxu0 %v8506_v2  ;;  %v4227_v1 = vld [vmem:[%s17801_s8 + $0x19d8] sm:$0xff]  ;;  %v8526_v6 = vpack.c.bf16 %v4229_v61, %v4225_v30  ;;  %v4258_v30 = vld [vmem:[%s17801_s8 + $0x1ad0] sm:$0xff] }
 0x5b7   :  { %9211 = vmatprep.subr.bf16.mxu1 %v9210_v33  ;;  %v4231_v2 = vld [vmem:[%s17801_s8 + $0x19f8] sm:$0xff]  ;;  %v4224_v33 = vld [vmem:[%s17801_s8 + $0x19c0] sm:$0xff] }
 0x5b8   :  { %v9230_v40 = vpack.c.bf16 %v4231_v2, %v4227_v1  ;;  %v8528_v37 = vpack.c.bf16 %v4228_v19, %v4224_v33  ;;  %v4262_v1 = vld [vmem:[%s17801_s8 + $0x1af0] sm:$0xff]  ;;  %v4265_v2 = vld [vmem:[%s17801_s8 + $0x1b08] sm:$0xff] }
 0x5b9   :  { %8509 = vmatpush1.bf16.msra.mxu0 %v8508_v34  ;;  %v4237_v34 = vld [vmem:[%s17801_s8 + $0x1a28] sm:$0xff]  ;;  %v9248_v19 = vpack.c.bf16 %v4262_v1, %v4258_v30  ;;  %v4300_v1 = vld [vmem:[%s17801_s8 + $0x1c20] sm:$0xff] }
 0x5ba   :  { %9213 = vmatpush1.bf16.msra.mxu1 %v9212_v14  ;;  %8511 = vmatprep.subr.bf16.mxu0 %v8510_v16  ;;  %v4235_v14 = vld [vmem:[%s17801_s8 + $0x1a18] sm:$0xff]  ;;  %v8530_v22 = vpack.c.bf16 %v4237_v34, %v4233_v11  ;;  %v4266_v11 = vld [vmem:[%s17801_s8 + $0x1b10] sm:$0xff] }
 0x5bb   :  { %9215 = vmatprep.subr.bf16.mxu1 %v9214_v24  ;;  %v4239_v16 = vld [vmem:[%s17801_s8 + $0x1a38] sm:$0xff]  ;;  %v4232_v24 = vld [vmem:[%s17801_s8 + $0x1a00] sm:$0xff] }
 0x5bc   :  { %v9234_v44 = vpack.c.bf16 %v4239_v16, %v4235_v14  ;;  %v8532_v15 = vpack.c.bf16 %v4236_v62, %v4232_v24  ;;  %v4270_v14 = vld [vmem:[%s17801_s8 + $0x1b30] sm:$0xff]  ;;  %v4273_v16 = vld [vmem:[%s17801_s8 + $0x1b48] sm:$0xff] }
 0x5bd   :  { %8513 = vmatpush1.bf16.msra.mxu0 %v8512_v27  ;;  %v4245_v27 = vld [vmem:[%s17801_s8 + $0x1a68] sm:$0xff]  ;;  %v9252_v62 = vpack.c.bf16 %v4270_v14, %v4266_v11 }
 0x5be   :  { %9217 = vmatpush1.bf16.msra.mxu1 %v9216_v20  ;;  %8515 = vmatprep.subr.bf16.mxu0 %v8514_v38  ;;  %v4243_v20 = vld [vmem:[%s17801_s8 + $0x1a58] sm:$0xff]  ;;  %v8534_v31 = vpack.c.bf16 %v4245_v27, %v4241_v5  ;;  %v4274_v5 = vld [vmem:[%s17801_s8 + $0x1b50] sm:$0xff] }
 0x5bf   :  { %9219 = vmatprep.subr.bf16.mxu1 %v9218_v32  ;;  %v4247_v38 = vld [vmem:[%s17801_s8 + $0x1a78] sm:$0xff]  ;;  %v4240_v32 = vld [vmem:[%s17801_s8 + $0x1a40] sm:$0xff] }
 0x5c0   :  { %v9238_v13 = vpack.c.bf16 %v4247_v38, %v4243_v20  ;;  %v8536_v26 = vpack.c.bf16 %v4244_v35, %v4240_v32  ;;  %v4278_v20 = vld [vmem:[%s17801_s8 + $0x1b70] sm:$0xff]  ;;  %v4281_v38 = vld [vmem:[%s17801_s8 + $0x1b88] sm:$0xff] }
 0x5c1   :  { %8517 = vmatpush1.bf16.msra.mxu0 %v8516_v54  ;;  %v4253_v54 = vld [vmem:[%s17801_s8 + $0x1aa8] sm:$0xff]  ;;  %v9256_v35 = vpack.c.bf16 %v4278_v20, %v4274_v5 }
 0x5c2   :  { %9221 = vmatpush1.bf16.msra.mxu1 %v9220_v45  ;;  %8519 = vmatprep.subr.bf16.mxu0 %v8518_v29  ;;  %v4251_v45 = vld [vmem:[%s17801_s8 + $0x1a98] sm:$0xff]  ;;  %v8538_v21 = vpack.c.bf16 %v4253_v54, %v4249_v43  ;;  %v4282_v43 = vld [vmem:[%s17801_s8 + $0x1b90] sm:$0xff] }
 0x5c3   :  { %9223 = vmatprep.subr.bf16.mxu1 %v9222_v48  ;;  %v4255_v29 = vld [vmem:[%s17801_s8 + $0x1ab8] sm:$0xff]  ;;  %v4248_v48 = vld [vmem:[%s17801_s8 + $0x1a80] sm:$0xff] }
 0x5c4   :  { %v9242_v18 = vpack.c.bf16 %v4255_v29, %v4251_v45  ;;  %v8540_v55 = vpack.c.bf16 %v4252_v25, %v4248_v48  ;;  %v4286_v45 = vld [vmem:[%s17801_s8 + $0x1bb0] sm:$0xff]  ;;  %v4289_v29 = vld [vmem:[%s17801_s8 + $0x1bc8] sm:$0xff] }
 0x5c5   :  { %8521 = vmatpush1.bf16.msra.mxu0 %v8520_v23  ;;  %v4261_v23 = vld [vmem:[%s17801_s8 + $0x1ae8] sm:$0xff]  ;;  %v9260_v25 = vpack.c.bf16 %v4286_v45, %v4282_v43 }
 0x5c6   :  { %9225 = vmatpush1.bf16.msra.mxu1 %v9224_v52  ;;  %8523 = vmatprep.subr.bf16.mxu0 %v8522_v59  ;;  %v4259_v52 = vld [vmem:[%s17801_s8 + $0x1ad8] sm:$0xff]  ;;  %v8542_v57 = vpack.c.bf16 %v4261_v23, %v4257_v51  ;;  %v4290_v51 = vld [vmem:[%s17801_s8 + $0x1bd0] sm:$0xff] }
 0x5c7   :  { %9227 = vmatprep.subr.bf16.mxu1 %v9226_v58  ;;  %v4263_v59 = vld [vmem:[%s17801_s8 + $0x1af8] sm:$0xff]  ;;  %v4256_v58 = vld [vmem:[%s17801_s8 + $0x1ac0] sm:$0xff] }
 0x5c8   :  { %v9246_v61 = vpack.c.bf16 %v4263_v59, %v4259_v52  ;;  %v8544_v33 = vpack.c.bf16 %v4260_v60, %v4256_v58  ;;  %v4294_v52 = vld [vmem:[%s17801_s8 + $0x1bf0] sm:$0xff]  ;;  %v4297_v59 = vld [vmem:[%s17801_s8 + $0x1c08] sm:$0xff] }
 0x5c9   :  { %8525 = vmatpush1.bf16.msra.mxu0 %v8524_v3  ;;  %v4269_v3 = vld [vmem:[%s17801_s8 + $0x1b28] sm:$0xff]  ;;  %v9264_v60 = vpack.c.bf16 %v4294_v52, %v4290_v51 }
 0x5ca   :  { %9229 = vmatpush1.bf16.msra.mxu1 %v9228_v4  ;;  %8527 = vmatprep.subr.bf16.mxu0 %v8526_v6  ;;  %v4267_v4 = vld [vmem:[%s17801_s8 + $0x1b18] sm:$0xff]  ;;  %v8546_v50 = vpack.c.bf16 %v4269_v3, %v4265_v2  ;;  %v4298_v2 = vld [vmem:[%s17801_s8 + $0x1c10] sm:$0xff] }
 0x5cb   :  { %9231 = vmatprep.subr.bf16.mxu1 %v9230_v40  ;;  %v4271_v6 = vld [vmem:[%s17801_s8 + $0x1b38] sm:$0xff]  ;;  %v4264_v40 = vld [vmem:[%s17801_s8 + $0x1b00] sm:$0xff] }
 0x5cc   :  { %v9250_v34 = vpack.c.bf16 %v4271_v6, %v4267_v4  ;;  %v8548_v24 = vpack.c.bf16 %v4268_v10, %v4264_v40  ;;  %v4302_v4 = vld [vmem:[%s17801_s8 + $0x1c30] sm:$0xff]  ;;  %v4305_v6 = vld [vmem:[%s17801_s8 + $0x1c48] sm:$0xff]  ;;  %v4311_v40 = vld [vmem:[%s17801_s8 + $0x1c78] sm:$0xff] }
 0x5cd   :  { %8529 = vmatpush1.bf16.msra.mxu0 %v8528_v37  ;;  %v4277_v37 = vld [vmem:[%s17801_s8 + $0x1b68] sm:$0xff] }
 0x5ce   :  { %9233 = vmatpush1.bf16.msra.mxu1 %v9232_v63  ;;  %8531 = vmatprep.subr.bf16.mxu0 %v8530_v22  ;;  %v4275_v63 = vld [vmem:[%s17801_s8 + $0x1b58] sm:$0xff]  ;;  %v8550_v41 = vpack.c.bf16 %v4277_v37, %v4273_v16  ;;  %v16042_v10 = vld [vmem:[%s17794_s1 + $0x8] sm:$0xff]  ;;  %v4308_v16 = vld [vmem:[%s17801_s8 + $0x1c60] sm:$0xff] }
 0x5cf   :  { %9235 = vmatprep.subr.bf16.mxu1 %v9234_v44  ;;  %v4279_v22 = vld [vmem:[%s17801_s8 + $0x1b78] sm:$0xff]  ;;  %v4272_v44 = vld [vmem:[%s17801_s8 + $0x1b40] sm:$0xff]  ;;  %v4306_v37 = vld [vmem:[%s17801_s8 + $0x1c50] sm:$0xff] }
 0x5d0   :  { %v9254_v27 = vpack.c.bf16 %v4279_v22, %v4275_v63  ;;  %v8552_v32 = vpack.c.bf16 %v4276_v28, %v4272_v44  ;;  %v4310_v22 = vld [vmem:[%s17801_s8 + $0x1c70] sm:$0xff]  ;;  %v4315_v44 = vld [vmem:[%s17801_s8 + $0x1c98] sm:$0xff] }
 0x5d1   :  { %8533 = vmatpush1.bf16.msra.mxu0 %v8532_v15  ;;  %v4285_v15 = vld [vmem:[%s17801_s8 + $0x1ba8] sm:$0xff]  ;;  %v4319_v28 = vld [vmem:[%s17801_s8 + $0x1cb8] sm:$0xff] }
 0x5d2   :  { %9237 = vmatpush1.bf16.msra.mxu1 %v9236_v8  ;;  %8535 = vmatprep.subr.bf16.mxu0 %v8534_v31  ;;  %v4283_v8 = vld [vmem:[%s17801_s8 + $0x1b98] sm:$0xff]  ;;  %v8554_v36 = vpack.c.bf16 %v4285_v15, %v4281_v38  ;;  %v4312_v38 = vld [vmem:[%s17801_s8 + $0x1c80] sm:$0xff] }
 0x5d3   :  { %9239 = vmatprep.subr.bf16.mxu1 %v9238_v13  ;;  %v4287_v31 = vld [vmem:[%s17801_s8 + $0x1bb8] sm:$0xff]  ;;  %v4280_v13 = vld [vmem:[%s17801_s8 + $0x1b80] sm:$0xff] }
 0x5d4   :  { %v9258_v54 = vpack.c.bf16 %v4287_v31, %v4283_v8  ;;  %v8556_v48 = vpack.c.bf16 %v4284_v39, %v4280_v13  ;;  %v4316_v15 = vld [vmem:[%s17801_s8 + $0x1ca0] sm:$0xff]  ;;  %v4314_v8 = vld [vmem:[%s17801_s8 + $0x1c90] sm:$0xff]  ;;  %v9274_v31 = vpack.c.bf16 %v4319_v28, %v4315_v44  ;;  %v4323_v13 = vld [vmem:[%s17801_s8 + $0x1cd8] sm:$0xff] }
 0x5d5   :  { %8537 = vmatpush1.bf16.msra.mxu0 %v8536_v26  ;;  %v4293_v26 = vld [vmem:[%s17801_s8 + $0x1be8] sm:$0xff]  ;;  %v4327_v39 = vld [vmem:[%s17801_s8 + $0x1cf8] sm:$0xff]  ;;  %v8572_v43 = vpack.c.bf16 %v4316_v15, %v4312_v38  ;;  %v4350_v28 = vld [vmem:[%s17801_s8 + $0x1db0] sm:$0xff] }
 0x5d6   :  { %9241 = vmatpush1.bf16.msra.mxu1 %v9240_v47  ;;  %8539 = vmatprep.subr.bf16.mxu0 %v8538_v21  ;;  %v4291_v47 = vld [vmem:[%s17801_s8 + $0x1bd8] sm:$0xff]  ;;  %v8558_v49 = vpack.c.bf16 %v4293_v26, %v4289_v29  ;;  %v4320_v29 = vld [vmem:[%s17801_s8 + $0x1cc0] sm:$0xff] }
 0x5d7   :  { %9243 = vmatprep.subr.bf16.mxu1 %v9242_v18  ;;  %v4295_v21 = vld [vmem:[%s17801_s8 + $0x1bf8] sm:$0xff]  ;;  %v4288_v18 = vld [vmem:[%s17801_s8 + $0x1bc0] sm:$0xff] }
 0x5d8   :  { %v9262_v23 = vpack.c.bf16 %v4295_v21, %v4291_v47  ;;  %v8560_v58 = vpack.c.bf16 %v4292_v56, %v4288_v18  ;;  %v4324_v26 = vld [vmem:[%s17801_s8 + $0x1ce0] sm:$0xff]  ;;  %v4322_v47 = vld [vmem:[%s17801_s8 + $0x1cd0] sm:$0xff]  ;;  %v9278_v21 = vpack.c.bf16 %v4327_v39, %v4323_v13  ;;  %v4331_v18 = vld [vmem:[%s17801_s8 + $0x1d18] sm:$0xff] }
 0x5d9   :  { %8541 = vmatpush1.bf16.msra.mxu0 %v8540_v55  ;;  %v4301_v55 = vld [vmem:[%s17801_s8 + $0x1c28] sm:$0xff]  ;;  %v4335_v56 = vld [vmem:[%s17801_s8 + $0x1d38] sm:$0xff]  ;;  %v8576_v51 = vpack.c.bf16 %v4324_v26, %v4320_v29  ;;  %v4358_v39 = vld [vmem:[%s17801_s8 + $0x1df0] sm:$0xff] }
 0x5da   :  { %9245 = vmatpush1.bf16.msra.mxu1 %v9244_v9  ;;  %8543 = vmatprep.subr.bf16.mxu0 %v8542_v57  ;;  %v4299_v9 = vld [vmem:[%s17801_s8 + $0x1c18] sm:$0xff]  ;;  %v8562_v30 = vpack.c.bf16 %v4301_v55, %v4297_v59  ;;  %v4328_v59 = vld [vmem:[%s17801_s8 + $0x1d00] sm:$0xff] }
 0x5db   :  { %9247 = vmatprep.subr.bf16.mxu1 %v9246_v61  ;;  %v4303_v57 = vld [vmem:[%s17801_s8 + $0x1c38] sm:$0xff]  ;;  %v4296_v61 = vld [vmem:[%s17801_s8 + $0x1c00] sm:$0xff] }
 0x5dc   :  { %v9266_v3 = vpack.c.bf16 %v4303_v57, %v4299_v9  ;;  %v8564_v11 = vpack.c.bf16 %v4300_v1, %v4296_v61  ;;  %v4332_v55 = vld [vmem:[%s17801_s8 + $0x1d20] sm:$0xff]  ;;  %v4330_v9 = vld [vmem:[%s17801_s8 + $0x1d10] sm:$0xff]  ;;  %v9282_v57 = vpack.c.bf16 %v4335_v56, %v4331_v18  ;;  %v4339_v61 = vld [vmem:[%s17801_s8 + $0x1d58] sm:$0xff] }
 0x5dd   :  { %8545 = vmatpush1.bf16.msra.mxu0 %v8544_v33  ;;  %v4309_v33 = vld [vmem:[%s17801_s8 + $0x1c68] sm:$0xff]  ;;  %v4343_v1 = vld [vmem:[%s17801_s8 + $0x1d78] sm:$0xff]  ;;  %v4366_v56 = vld [vmem:[%s17801_s8 + $0x1e30] sm:$0xff] }
 0x5de   :  { %9249 = vmatpush1.bf16.msra.mxu1 %v9248_v19  ;;  %8547 = vmatprep.subr.bf16.mxu0 %v8546_v50  ;;  %v3354_v19 = vcombine.high %v15271_v7, %v15271_v7  ;;  %v4307_v50 = vld [vmem:[%s17801_s8 + $0x1c58] sm:$0xff]  ;;  %v8566_v14 = vpack.c.bf16 %v4309_v33, %v4305_v6  ;;  %v4304_v7 = vld [vmem:[%s17801_s8 + $0x1c40] sm:$0xff] }
 0x5df   :  { %9251 = vmatprep.subr.bf16.mxu1 %v9250_v34  ;;  %v9268_v34 = vpack.c.bf16 %v4302_v4, %v4298_v2  ;;  %v9270_v63 = vpack.c.bf16 %v4311_v40, %v4307_v50  ;;  %v8568_v5 = vpack.c.bf16 %v4308_v16, %v4304_v7  ;;  %v8580_v2 = vpack.c.bf16 %v4332_v55, %v4328_v59  ;;  %v4336_v6 = vld [vmem:[%s17801_s8 + $0x1d40] sm:$0xff]  ;;  %v4342_v40 = vld [vmem:[%s17801_s8 + $0x1d70] sm:$0xff]  ;;  %v4351_v7 = vld [vmem:[%s17801_s8 + $0x1db8] sm:$0xff] }
 0x5e0   :  { %v4340_v33 = vld [vmem:[%s17801_s8 + $0x1d60] sm:$0xff]  ;;  %v9286_v50 = vpack.c.bf16 %v4343_v1, %v4339_v61  ;;  %v4359_v38 = vld [vmem:[%s17801_s8 + $0x1df8] sm:$0xff]  ;;  %v4374_v1 = vld [vmem:[%s17801_s8 + $0x1e70] sm:$0xff] }
 0x5e1   :  { %8549 = vmatpush1.bf16.msra.mxu0 %v8548_v24  ;;  %v4313_v24 = vld [vmem:[%s17801_s8 + $0x1c88] sm:$0xff]  ;;  %v8584_v16 = vpack.c.bf16 %v4340_v33, %v4336_v6  ;;  %v4367_v29 = vld [vmem:[%s17801_s8 + $0x1e38] sm:$0xff] }
 0x5e2   :  { %9253 = vmatpush1.bf16.msra.mxu1 %v9252_v62  ;;  %8551 = vmatprep.subr.bf16.mxu0 %v8550_v41  ;;  %v4317_v62 = vld [vmem:[%s17801_s8 + $0x1ca8] sm:$0xff]  ;;  %v16064_v41 = vrot.slane %v16042_v10, %v10097_v12  ;;  %v4375_v59 = vld [vmem:[%s17801_s8 + $0x1e78] sm:$0xff] }
 0x5e3   :  { %9255 = vmatprep.subr.bf16.mxu1 %v9254_v27  ;;  %v9272_v27 = vpack.c.bf16 %v4310_v22, %v4306_v37  ;;  %v8570_v20 = vpack.c.bf16 %v4317_v62, %v4313_v24  ;;  %v4344_v22 = vld [vmem:[%s17801_s8 + $0x1d80] sm:$0xff]  ;;  %v4346_v62 = vld [vmem:[%s17801_s8 + $0x1d90] sm:$0xff]  ;;  %v4383_v6 = vld [vmem:[%s17801_s8 + $0x1eb8] sm:$0xff] }
 0x5e4   :  { %v4348_v24 = vld [vmem:[%s17801_s8 + $0x1da0] sm:$0xff] }
 0x5e5   :  { %8553 = vmatpush1.bf16.msra.mxu0 %v8552_v32  ;;  %v4318_v32 = vld [vmem:[%s17801_s8 + $0x1cb0] sm:$0xff]  ;;  %v8588_v15 = vpack.c.bf16 %v4348_v24, %v4344_v22  ;;  %v4391_v22 = vld [vmem:[%s17801_s8 + $0x1ef8] sm:$0xff] }
 0x5e6   :  { %9257 = vmatpush1.bf16.msra.mxu1 %v9256_v35  ;;  %8555 = vmatprep.subr.bf16.mxu0 %v8554_v36  ;;  %v4321_v35 = vld [vmem:[%s17801_s8 + $0x1cc8] sm:$0xff] }
 0x5e7   :  { %9259 = vmatprep.subr.bf16.mxu1 %v9258_v54  ;;  %v4325_v36 = vld [vmem:[%s17801_s8 + $0x1ce8] sm:$0xff]  ;;  %v9276_v54 = vpack.c.bf16 %v4318_v32, %v4314_v8  ;;  %v9292_v8 = vpack.c.bf16 %v4350_v28, %v4346_v62  ;;  %v4352_v32 = vld [vmem:[%s17801_s8 + $0x1dc0] sm:$0xff] }
 0x5e8   :  { %v8574_v45 = vpack.c.bf16 %v4325_v36, %v4321_v35  ;;  %v4356_v35 = vld [vmem:[%s17801_s8 + $0x1de0] sm:$0xff]  ;;  %v4354_v36 = vld [vmem:[%s17801_s8 + $0x1dd0] sm:$0xff] }
 0x5e9   :  { %8557 = vmatpush1.bf16.msra.mxu0 %v8556_v48  ;;  %v4326_v48 = vld [vmem:[%s17801_s8 + $0x1cf0] sm:$0xff]  ;;  %v8592_v26 = vpack.c.bf16 %v4356_v35, %v4352_v32  ;;  %v4384_v28 = vld [vmem:[%s17801_s8 + $0x1ec0] sm:$0xff]  ;;  %v4399_v32 = vld [vmem:[%s17801_s8 + $0x1f38] sm:$0xff] }
 0x5ea   :  { %9261 = vmatpush1.bf16.msra.mxu1 %v9260_v25  ;;  %8559 = vmatprep.subr.bf16.mxu0 %v8558_v49  ;;  %v4329_v25 = vld [vmem:[%s17801_s8 + $0x1d08] sm:$0xff] }
 0x5eb   :  { %9263 = vmatprep.subr.bf16.mxu1 %v9262_v23  ;;  %v4333_v49 = vld [vmem:[%s17801_s8 + $0x1d28] sm:$0xff]  ;;  %v9280_v23 = vpack.c.bf16 %v4326_v48, %v4322_v47  ;;  %v9296_v47 = vpack.c.bf16 %v4358_v39, %v4354_v36  ;;  %v4360_v48 = vld [vmem:[%s17801_s8 + $0x1e00] sm:$0xff] }
 0x5ec   :  { %v8578_v52 = vpack.c.bf16 %v4333_v49, %v4329_v25  ;;  %v4364_v25 = vld [vmem:[%s17801_s8 + $0x1e20] sm:$0xff]  ;;  %v4362_v49 = vld [vmem:[%s17801_s8 + $0x1e10] sm:$0xff] }
 0x5ed   :  { %8561 = vmatpush1.bf16.msra.mxu0 %v8560_v58  ;;  %v4334_v58 = vld [vmem:[%s17801_s8 + $0x1d30] sm:$0xff]  ;;  %v8596_v55 = vpack.c.bf16 %v4364_v25, %v4360_v48  ;;  %v4392_v39 = vld [vmem:[%s17801_s8 + $0x1f00] sm:$0xff]  ;;  %v4407_v48 = vld [vmem:[%s17801_s8 + $0x1f78] sm:$0xff] }
 0x5ee   :  { %9265 = vmatpush1.bf16.msra.mxu1 %v9264_v60  ;;  %8563 = vmatprep.subr.bf16.mxu0 %v8562_v30  ;;  %v4337_v60 = vld [vmem:[%s17801_s8 + $0x1d48] sm:$0xff] }
 0x5ef   :  { %9267 = vmatprep.subr.bf16.mxu1 %v9266_v3  ;;  %v4341_v30 = vld [vmem:[%s17801_s8 + $0x1d68] sm:$0xff]  ;;  %v9284_v3 = vpack.c.bf16 %v4334_v58, %v4330_v9  ;;  %v9300_v9 = vpack.c.bf16 %v4366_v56, %v4362_v49  ;;  %v4368_v58 = vld [vmem:[%s17801_s8 + $0x1e40] sm:$0xff] }
 0x5f0   :  { %5321 = vmatmul.mubr.f32.vlgmr.msra.gmra.mrb[16].mxu0 %v3354_v19  ;;  %v8582_v4 = vpack.c.bf16 %v4341_v30, %v4337_v60  ;;  %v4372_v60 = vld [vmem:[%s17801_s8 + $0x1e60] sm:$0xff]  ;;  %v4370_v30 = vld [vmem:[%s17801_s8 + $0x1e50] sm:$0xff] }
 0x5f1   :  { %8565 = vmatpush1.bf16.msra.mxu0 %v8564_v11  ;;  %6102 = vmatmul.mubr.f32.vlgmr.msra.gmra.mrb[16].mxu1 %v3354_v19  ;;  %v4338_v19 = vld [vmem:[%s17801_s8 + $0x1d50] sm:$0xff]  ;;  %v4345_v11 = vld [vmem:[%s17801_s8 + $0x1d88] sm:$0xff]  ;;  %v8600_v33 = vpack.c.bf16 %v4372_v60, %v4368_v58  ;;  %v4400_v56 = vld [vmem:[%s17801_s8 + $0x1f40] sm:$0xff] }
 0x5f2   :  { %9269 = vmatpush1.bf16.msra.mxu1 %v9268_v34  ;;  %8567 = vmatprep.subr.bf16.mxu0 %v8566_v14  ;;  %v4349_v34 = vld [vmem:[%s17801_s8 + $0x1da8] sm:$0xff]  ;;  %v4347_v14 = vld [vmem:[%s17801_s8 + $0x1d98] sm:$0xff]  ;;  %v9288_v37 = vpack.c.bf16 %v4342_v40, %v4338_v19  ;;  %v9304_v19 = vpack.c.bf16 %v4374_v1, %v4370_v30  ;;  %v4376_v40 = vld [vmem:[%s17801_s8 + $0x1e80] sm:$0xff] }
 0x5f3   :  { %9271 = vmatprep.subr.bf16.mxu1 %v9270_v63  ;;  %5391 = vmatprep.mubr.f32.mxu0 %v16064_v41  ;;  %v8586_v63 = vpack.c.bf16 %v4349_v34, %v4345_v11  ;;  %v9290_v44 = vpack.c.bf16 %v4351_v7, %v4347_v14  ;;  %v4380_v11 = vld [vmem:[%s17801_s8 + $0x1ea0] sm:$0xff]  ;;  %v4378_v34 = vld [vmem:[%s17801_s8 + $0x1e90] sm:$0xff]  ;;  %v4415_v58 = vld [vmem:[%s17801_s8 + $0x1fb8] sm:$0xff] }
 0x5f4   :  { %6172 = vmatprep.mubr.f32.mxu1 %v16064_v41  ;;  %v4382_v7 = vld [vmem:[%s17801_s8 + $0x1eb0] sm:$0xff]  ;;  %v8604_v24 = vpack.c.bf16 %v4380_v11, %v4376_v40  ;;  %v4408_v1 = vld [vmem:[%s17801_s8 + $0x1f80] sm:$0xff]  ;;  %v4423_v40 = vld [vmem:[%s17801_s8 + $0x1ff8] sm:$0xff] }
 0x5f5   :  { %8569 = vmatpush1.bf16.msra.mxu0 %v8568_v5  ;;  %v4353_v5 = vld [vmem:[%s17801_s8 + $0x1dc8] sm:$0xff]  ;;  %v9308_v62 = vpack.c.bf16 %v4382_v7, %v4378_v34  ;;  %v4416_v7 = vld [vmem:[%s17801_s8 + $0x1fc0] sm:$0xff] }
 0x5f6   :  { %9273 = vmatpush1.bf16.msra.mxu1 %v9272_v27  ;;  %8571 = vmatprep.subr.bf16.mxu0 %v8570_v20  ;;  %v4357_v27 = vld [vmem:[%s17801_s8 + $0x1de8] sm:$0xff]  ;;  %v4355_v20 = vld [vmem:[%s17801_s8 + $0x1dd8] sm:$0xff] }
 0x5f7   :  { %9275 = vmatprep.subr.bf16.mxu1 %v9274_v31  ;;  %v8590_v31 = vpack.c.bf16 %v4357_v27, %v4353_v5  ;;  %v9294_v13 = vpack.c.bf16 %v4359_v38, %v4355_v20  ;;  %v4388_v5 = vld [vmem:[%s17801_s8 + $0x1ee0] sm:$0xff]  ;;  %v4386_v27 = vld [vmem:[%s17801_s8 + $0x1ed0] sm:$0xff] }
 0x5f8   :  { %v4390_v38 = vld [vmem:[%s17801_s8 + $0x1ef0] sm:$0xff]  ;;  %v8608_v35 = vpack.c.bf16 %v4388_v5, %v4384_v28  ;;  %v4431_v28 = vld [vmem:[%s17801_s8 + $0x2038] sm:$0xff] }
 0x5f9   :  { %8573 = vmatpush1.bf16.msra.mxu0 %v8572_v43  ;;  %v4361_v43 = vld [vmem:[%s17801_s8 + $0x1e08] sm:$0xff]  ;;  %v9312_v36 = vpack.c.bf16 %v4390_v38, %v4386_v27  ;;  %v4424_v38 = vld [vmem:[%s17801_s8 + $0x2000] sm:$0xff] }
 0x5fa   :  { %9277 = vmatpush1.bf16.msra.mxu1 %v9276_v54  ;;  %8575 = vmatprep.subr.bf16.mxu0 %v8574_v45  ;;  %v4365_v54 = vld [vmem:[%s17801_s8 + $0x1e28] sm:$0xff]  ;;  %v4363_v45 = vld [vmem:[%s17801_s8 + $0x1e18] sm:$0xff] }
 0x5fb   :  { %9279 = vmatprep.subr.bf16.mxu1 %v9278_v21  ;;  %v8594_v21 = vpack.c.bf16 %v4365_v54, %v4361_v43  ;;  %v9298_v18 = vpack.c.bf16 %v4367_v29, %v4363_v45  ;;  %v4396_v43 = vld [vmem:[%s17801_s8 + $0x1f20] sm:$0xff]  ;;  %v4394_v54 = vld [vmem:[%s17801_s8 + $0x1f10] sm:$0xff] }
 0x5fc   :  { %v4398_v29 = vld [vmem:[%s17801_s8 + $0x1f30] sm:$0xff]  ;;  %v8612_v25 = vpack.c.bf16 %v4396_v43, %v4392_v39  ;;  %v3355_v39 = vcombine.high %v15667_v0, %v15667_v0  ;;  %v4435_v43 = vld [vmem:[%s17801_s8 + $0x2058] sm:$0xff]  ;;  %v4436_v0 = vld [vmem:[%s17801_s8 + $0x2060] sm:$0xff] }
 0x5fd   :  { %8577 = vmatpush1.bf16.msra.mxu0 %v8576_v51  ;;  %v4369_v51 = vld [vmem:[%s17801_s8 + $0x1e48] sm:$0xff]  ;;  %v9316_v49 = vpack.c.bf16 %v4398_v29, %v4394_v54  ;;  %v4439_v54 = vld [vmem:[%s17801_s8 + $0x2078] sm:$0xff] }
 0x5fe   :  { %9281 = vmatpush1.bf16.msra.mxu1 %v9280_v23  ;;  %8579 = vmatprep.subr.bf16.mxu0 %v8578_v52  ;;  %v4373_v23 = vld [vmem:[%s17801_s8 + $0x1e68] sm:$0xff]  ;;  %v4371_v52 = vld [vmem:[%s17801_s8 + $0x1e58] sm:$0xff] }
 0x5ff   :  { %9283 = vmatprep.subr.bf16.mxu1 %v9282_v57  ;;  %v8598_v57 = vpack.c.bf16 %v4373_v23, %v4369_v51  ;;  %v9302_v61 = vpack.c.bf16 %v4375_v59, %v4371_v52  ;;  %v4404_v51 = vld [vmem:[%s17801_s8 + $0x1f60] sm:$0xff]  ;;  %v4402_v23 = vld [vmem:[%s17801_s8 + $0x1f50] sm:$0xff] }
 0x600   :  { %v4406_v59 = vld [vmem:[%s17801_s8 + $0x1f70] sm:$0xff]  ;;  %v8616_v60 = vpack.c.bf16 %v4404_v51, %v4400_v56  ;;  %v4443_v56 = vld [vmem:[%s17801_s8 + $0x2098] sm:$0xff] }
 0x601   :  { %8581 = vmatpush1.bf16.msra.mxu0 %v8580_v2  ;;  %v4377_v2 = vld [vmem:[%s17801_s8 + $0x1e88] sm:$0xff]  ;;  %v9320_v30 = vpack.c.bf16 %v4406_v59, %v4402_v23  ;;  %v4447_v51 = vld [vmem:[%s17801_s8 + $0x20b8] sm:$0xff] }
 0x602   :  { %9285 = vmatpush1.bf16.msra.mxu1 %v9284_v3  ;;  %8583 = vmatprep.subr.bf16.mxu0 %v8582_v4  ;;  %v4381_v3 = vld [vmem:[%s17801_s8 + $0x1ea8] sm:$0xff]  ;;  %v4379_v4 = vld [vmem:[%s17801_s8 + $0x1e98] sm:$0xff] }
 0x603   :  { %9287 = vmatprep.subr.bf16.mxu1 %v9286_v50  ;;  %v8602_v50 = vpack.c.bf16 %v4381_v3, %v4377_v2  ;;  %v9306_v14 = vpack.c.bf16 %v4383_v6, %v4379_v4  ;;  %v4412_v2 = vld [vmem:[%s17801_s8 + $0x1fa0] sm:$0xff]  ;;  %v4410_v3 = vld [vmem:[%s17801_s8 + $0x1f90] sm:$0xff] }
 0x604   :  { %v4414_v6 = vld [vmem:[%s17801_s8 + $0x1fb0] sm:$0xff]  ;;  %v8620_v11 = vpack.c.bf16 %v4412_v2, %v4408_v1  ;;  %v4451_v1 = vld [vmem:[%s17801_s8 + $0x20d8] sm:$0xff] }
 0x605   :  { %8585 = vmatpush1.bf16.msra.mxu0 %v8584_v16  ;;  %v4385_v16 = vld [vmem:[%s17801_s8 + $0x1ec8] sm:$0xff]  ;;  %v9324_v34 = vpack.c.bf16 %v4414_v6, %v4410_v3  ;;  %v4455_v2 = vld [vmem:[%s17801_s8 + $0x20f8] sm:$0xff] }
 0x606   :  { %9289 = vmatpush1.bf16.msra.mxu1 %v9288_v37  ;;  %8587 = vmatprep.subr.bf16.mxu0 %v8586_v63  ;;  %v4389_v37 = vld [vmem:[%s17801_s8 + $0x1ee8] sm:$0xff]  ;;  %v4387_v63 = vld [vmem:[%s17801_s8 + $0x1ed8] sm:$0xff] }
 0x607   :  { %9291 = vmatprep.subr.bf16.mxu1 %v9290_v44  ;;  %v8606_v44 = vpack.c.bf16 %v4389_v37, %v4385_v16  ;;  %v9310_v20 = vpack.c.bf16 %v4391_v22, %v4387_v63  ;;  %v4420_v16 = vld [vmem:[%s17801_s8 + $0x1fe0] sm:$0xff]  ;;  %v4418_v37 = vld [vmem:[%s17801_s8 + $0x1fd0] sm:$0xff] }
 0x608   :  { %v4422_v22 = vld [vmem:[%s17801_s8 + $0x1ff0] sm:$0xff]  ;;  %v8624_v5 = vpack.c.bf16 %v4420_v16, %v4416_v7  ;;  %v4459_v7 = vld [vmem:[%s17801_s8 + $0x2118] sm:$0xff] }
 0x609   :  { %8589 = vmatpush1.bf16.msra.mxu0 %v8588_v15  ;;  %v4393_v15 = vld [vmem:[%s17801_s8 + $0x1f08] sm:$0xff]  ;;  %v9328_v27 = vpack.c.bf16 %v4422_v22, %v4418_v37  ;;  %v4463_v16 = vld [vmem:[%s17801_s8 + $0x2138] sm:$0xff] }
 0x60a   :  { %9293 = vmatpush1.bf16.msra.mxu1 %v9292_v8  ;;  %8591 = vmatprep.subr.bf16.mxu0 %v8590_v31  ;;  %v4397_v8 = vld [vmem:[%s17801_s8 + $0x1f28] sm:$0xff]  ;;  %v4395_v31 = vld [vmem:[%s17801_s8 + $0x1f18] sm:$0xff] }
 0x60b   :  { %9295 = vmatprep.subr.bf16.mxu1 %v9294_v13  ;;  %v8610_v13 = vpack.c.bf16 %v4397_v8, %v4393_v15  ;;  %v9314_v45 = vpack.c.bf16 %v4399_v32, %v4395_v31  ;;  %v4428_v15 = vld [vmem:[%s17801_s8 + $0x2020] sm:$0xff]  ;;  %v4426_v8 = vld [vmem:[%s17801_s8 + $0x2010] sm:$0xff] }
 0x60c   :  { %v4430_v32 = vld [vmem:[%s17801_s8 + $0x2030] sm:$0xff] }
 0x60d   :  { %8593 = vmatpush1.bf16.msra.mxu0 %v8592_v26  ;;  %v4401_v26 = vld [vmem:[%s17801_s8 + $0x1f48] sm:$0xff]  ;;  %v9332_v29 = vpack.c.bf16 %v4430_v32, %v4426_v8 }
 0x60e   :  { %9297 = vmatpush1.bf16.msra.mxu1 %v9296_v47  ;;  %8595 = vmatprep.subr.bf16.mxu0 %v8594_v21  ;;  %v4405_v47 = vld [vmem:[%s17801_s8 + $0x1f68] sm:$0xff]  ;;  %v4403_v21 = vld [vmem:[%s17801_s8 + $0x1f58] sm:$0xff] }
 0x60f   :  { %9299 = vmatprep.subr.bf16.mxu1 %v9298_v18  ;;  %v8614_v18 = vpack.c.bf16 %v4405_v47, %v4401_v26  ;;  %v9318_v52 = vpack.c.bf16 %v4407_v48, %v4403_v21  ;;  %v4434_v47 = vld [vmem:[%s17801_s8 + $0x2050] sm:$0xff]  ;;  %v9334_v21 = vpack.c.bf16 %v4439_v54, %v4435_v43  ;;  %v4473_v54 = vld [vmem:[%s17801_s8 + $0x2188] sm:$0xff] }
 0x610   :  { %v4438_v48 = vld [vmem:[%s17801_s8 + $0x2070] sm:$0xff] }
 0x611   :  { %8597 = vmatpush1.bf16.msra.mxu0 %v8596_v55  ;;  %v4409_v55 = vld [vmem:[%s17801_s8 + $0x1f88] sm:$0xff]  ;;  %v4470_v43 = vld [vmem:[%s17801_s8 + $0x2170] sm:$0xff] }
 0x612   :  { %9301 = vmatpush1.bf16.msra.mxu1 %v9300_v9  ;;  %8599 = vmatprep.subr.bf16.mxu0 %v8598_v57  ;;  %v4413_v9 = vld [vmem:[%s17801_s8 + $0x1fa8] sm:$0xff]  ;;  %v4411_v57 = vld [vmem:[%s17801_s8 + $0x1f98] sm:$0xff] }
 0x613   :  { %9303 = vmatprep.subr.bf16.mxu1 %v9302_v61  ;;  %v8618_v61 = vpack.c.bf16 %v4413_v9, %v4409_v55  ;;  %v9322_v4 = vpack.c.bf16 %v4415_v58, %v4411_v57  ;;  %v4440_v55 = vld [vmem:[%s17801_s8 + $0x2080] sm:$0xff]  ;;  %v4442_v57 = vld [vmem:[%s17801_s8 + $0x2090] sm:$0xff]  ;;  %v9338_v58 = vpack.c.bf16 %v4447_v51, %v4443_v56  ;;  %v4481_v51 = vld [vmem:[%s17801_s8 + $0x21c8] sm:$0xff] }
 0x614   :  { %v4444_v9 = vld [vmem:[%s17801_s8 + $0x20a0] sm:$0xff]  ;;  %v4478_v56 = vld [vmem:[%s17801_s8 + $0x21b0] sm:$0xff] }
 0x615   :  { %8601 = vmatpush1.bf16.msra.mxu0 %v8600_v33  ;;  %v4417_v33 = vld [vmem:[%s17801_s8 + $0x1fc8] sm:$0xff]  ;;  %v8636_v3 = vpack.c.bf16 %v4444_v9, %v4440_v55 }
 0x616   :  { %9305 = vmatpush1.bf16.msra.mxu1 %v9304_v19  ;;  %8603 = vmatprep.subr.bf16.mxu0 %v8602_v50  ;;  %v4421_v19 = vld [vmem:[%s17801_s8 + $0x1fe8] sm:$0xff]  ;;  %v4419_v50 = vld [vmem:[%s17801_s8 + $0x1fd8] sm:$0xff] }
 0x617   :  { %9307 = vmatprep.subr.bf16.mxu1 %v9306_v14  ;;  %v8622_v14 = vpack.c.bf16 %v4421_v19, %v4417_v33  ;;  %v9326_v63 = vpack.c.bf16 %v4423_v40, %v4419_v50  ;;  %v4448_v33 = vld [vmem:[%s17801_s8 + $0x20c0] sm:$0xff]  ;;  %v4450_v50 = vld [vmem:[%s17801_s8 + $0x20d0] sm:$0xff]  ;;  %v9342_v40 = vpack.c.bf16 %v4455_v2, %v4451_v1  ;;  %v4489_v2 = vld [vmem:[%s17801_s8 + $0x2208] sm:$0xff] }
 0x618   :  { %v4452_v19 = vld [vmem:[%s17801_s8 + $0x20e0] sm:$0xff]  ;;  %v4486_v1 = vld [vmem:[%s17801_s8 + $0x21f0] sm:$0xff] }
 0x619   :  { %8605 = vmatpush1.bf16.msra.mxu0 %v8604_v24  ;;  %v4425_v24 = vld [vmem:[%s17801_s8 + $0x2008] sm:$0xff]  ;;  %v8640_v37 = vpack.c.bf16 %v4452_v19, %v4448_v33 }
 0x61a   :  { %9309 = vmatpush1.bf16.msra.mxu1 %v9308_v62  ;;  %8607 = vmatprep.subr.bf16.mxu0 %v8606_v44  ;;  %v4429_v62 = vld [vmem:[%s17801_s8 + $0x2028] sm:$0xff]  ;;  %v4427_v44 = vld [vmem:[%s17801_s8 + $0x2018] sm:$0xff] }
 0x61b   :  { %9311 = vmatprep.subr.bf16.mxu1 %v9310_v20  ;;  %v8626_v20 = vpack.c.bf16 %v4429_v62, %v4425_v24  ;;  %v9330_v31 = vpack.c.bf16 %v4431_v28, %v4427_v44  ;;  %v4456_v24 = vld [vmem:[%s17801_s8 + $0x2100] sm:$0xff]  ;;  %v4458_v44 = vld [vmem:[%s17801_s8 + $0x2110] sm:$0xff]  ;;  %v9346_v28 = vpack.c.bf16 %v4463_v16, %v4459_v7  ;;  %v4497_v16 = vld [vmem:[%s17801_s8 + $0x2248] sm:$0xff] }
 0x61c   :  { %v4460_v62 = vld [vmem:[%s17801_s8 + $0x2120] sm:$0xff]  ;;  %v4494_v7 = vld [vmem:[%s17801_s8 + $0x2230] sm:$0xff] }
 0x61d   :  { %8609 = vmatpush1.bf16.msra.mxu0 %v8608_v35  ;;  %v4433_v35 = vld [vmem:[%s17801_s8 + $0x2048] sm:$0xff]  ;;  %v8644_v8 = vpack.c.bf16 %v4460_v62, %v4456_v24 }
 0x61e   :  { %9313 = vmatpush1.bf16.msra.mxu1 %v9312_v36  ;;  %8611 = vmatprep.subr.bf16.mxu0 %v8610_v13  ;;  %v4437_v36 = vld [vmem:[%s17801_s8 + $0x2068] sm:$0xff]  ;;  %v3356_v13 = vcombine.high %v16042_v10, %v16042_v10  ;;  %v4432_v10 = vld [vmem:[%s17801_s8 + $0x2040] sm:$0xff] }
 0x61f   :  { %9315 = vmatprep.subr.bf16.mxu1 %v9314_v45  ;;  %v8628_v45 = vpack.c.bf16 %v4428_v15, %v4424_v38  ;;  %v8630_v26 = vpack.c.bf16 %v4437_v36, %v4433_v35  ;;  %v8632_v23 = vpack.c.bf16 %v4436_v0, %v4432_v10  ;;  %v4467_v38 = vld [vmem:[%s17801_s8 + $0x2158] sm:$0xff]  ;;  %v4464_v35 = vld [vmem:[%s17801_s8 + $0x2140] sm:$0xff] }
 0x620   :  { %v4471_v15 = vld [vmem:[%s17801_s8 + $0x2178] sm:$0xff]  ;;  %v4468_v36 = vld [vmem:[%s17801_s8 + $0x2160] sm:$0xff] }
 0x621   :  { %8613 = vmatpush1.bf16.msra.mxu0 %v8612_v25  ;;  %v4441_v25 = vld [vmem:[%s17801_s8 + $0x2088] sm:$0xff]  ;;  %v8648_v10 = vpack.c.bf16 %v4468_v36, %v4464_v35 }
 0x622   :  { %9317 = vmatpush1.bf16.msra.mxu1 %v9316_v49  ;;  %8615 = vmatprep.subr.bf16.mxu0 %v8614_v18  ;;  %v4445_v49 = vld [vmem:[%s17801_s8 + $0x20a8] sm:$0xff]  ;;  %v16457_v18 = vrot.slane %v3356_v13, %v10097_v12  ;;  %v4466_v13 = vld [vmem:[%s17801_s8 + $0x2150] sm:$0xff] }
 0x623   :  { %9319 = vmatprep.subr.bf16.mxu1 %v9318_v52  ;;  %v9336_v52 = vpack.c.bf16 %v4438_v48, %v4434_v47  ;;  %v8634_v59 = vpack.c.bf16 %v4445_v49, %v4441_v25  ;;  %v9352_v0 = vpack.c.bf16 %v4470_v43, %v4466_v13  ;;  %v4476_v48 = vld [vmem:[%s17801_s8 + $0x21a0] sm:$0xff]  ;;  %v4474_v25 = vld [vmem:[%s17801_s8 + $0x2190] sm:$0xff] }
 0x624   :  { %v9356_v9 = vpack.c.bf16 %v4478_v56, %v4474_v25  ;;  %v4508_v43 = vld [vmem:[%s17801_s8 + $0x22a0] sm:$0xff] }
 0x625   :  { %8617 = vmatpush1.bf16.msra.mxu0 %v8616_v60  ;;  %v4446_v60 = vld [vmem:[%s17801_s8 + $0x20b0] sm:$0xff]  ;;  %v4516_v56 = vld [vmem:[%s17801_s8 + $0x22e0] sm:$0xff] }
 0x626   :  { %9321 = vmatpush1.bf16.msra.mxu1 %v9320_v30  ;;  %8619 = vmatprep.subr.bf16.mxu0 %v8618_v61  ;;  %v4449_v30 = vld [vmem:[%s17801_s8 + $0x20c8] sm:$0xff] }
 0x627   :  { %9323 = vmatprep.subr.bf16.mxu1 %v9322_v4  ;;  %v4453_v61 = vld [vmem:[%s17801_s8 + $0x20e8] sm:$0xff]  ;;  %v9340_v4 = vpack.c.bf16 %v4446_v60, %v4442_v57  ;;  %v4484_v60 = vld [vmem:[%s17801_s8 + $0x21e0] sm:$0xff] }
 0x628   :  { %v8638_v6 = vpack.c.bf16 %v4453_v61, %v4449_v30  ;;  %v4482_v30 = vld [vmem:[%s17801_s8 + $0x21d0] sm:$0xff] }
 0x629   :  { %8621 = vmatpush1.bf16.msra.mxu0 %v8620_v11  ;;  %v4454_v11 = vld [vmem:[%s17801_s8 + $0x20f0] sm:$0xff]  ;;  %v9360_v19 = vpack.c.bf16 %v4486_v1, %v4482_v30  ;;  %v4524_v1 = vld [vmem:[%s17801_s8 + $0x2320] sm:$0xff] }
 0x62a   :  { %9325 = vmatpush1.bf16.msra.mxu1 %v9324_v34  ;;  %8623 = vmatprep.subr.bf16.mxu0 %v8622_v14  ;;  %v4457_v34 = vld [vmem:[%s17801_s8 + $0x2108] sm:$0xff] }
 0x62b   :  { %9327 = vmatprep.subr.bf16.mxu1 %v9326_v63  ;;  %v4461_v14 = vld [vmem:[%s17801_s8 + $0x2128] sm:$0xff]  ;;  %v9344_v63 = vpack.c.bf16 %v4454_v11, %v4450_v50  ;;  %v4492_v11 = vld [vmem:[%s17801_s8 + $0x2220] sm:$0xff] }
 0x62c   :  { %v8642_v22 = vpack.c.bf16 %v4461_v14, %v4457_v34  ;;  %v4490_v34 = vld [vmem:[%s17801_s8 + $0x2210] sm:$0xff] }
 0x62d   :  { %8625 = vmatpush1.bf16.msra.mxu0 %v8624_v5  ;;  %v4462_v5 = vld [vmem:[%s17801_s8 + $0x2130] sm:$0xff]  ;;  %v9364_v62 = vpack.c.bf16 %v4494_v7, %v4490_v34  ;;  %v4532_v7 = vld [vmem:[%s17801_s8 + $0x2360] sm:$0xff] }
 0x62e   :  { %9329 = vmatpush1.bf16.msra.mxu1 %v9328_v27  ;;  %8627 = vmatprep.subr.bf16.mxu0 %v8626_v20  ;;  %v4465_v27 = vld [vmem:[%s17801_s8 + $0x2148] sm:$0xff] }
 0x62f   :  { %9331 = vmatprep.subr.bf16.mxu1 %v9330_v31  ;;  %v4469_v20 = vld [vmem:[%s17801_s8 + $0x2168] sm:$0xff]  ;;  %v9348_v31 = vpack.c.bf16 %v4462_v5, %v4458_v44  ;;  %v4500_v5 = vld [vmem:[%s17801_s8 + $0x2260] sm:$0xff] }
 0x630   :  { %5392 = vmatmul.mubr.f32.vlgmr.msra.gmra.mrb[16].mxu0 %v3355_v39  ;;  %v8646_v32 = vpack.c.bf16 %v4469_v20, %v4465_v27  ;;  %v4498_v27 = vld [vmem:[%s17801_s8 + $0x2250] sm:$0xff] }
 0x631   :  { %8629 = vmatpush1.bf16.msra.mxu0 %v8628_v45  ;;  %6173 = vmatmul.mubr.f32.vlgmr.msra.gmra.mrb[16].mxu1 %v3355_v39  ;;  %v9350_v39 = vpack.c.bf16 %v4471_v15, %v4467_v38  ;;  %v4477_v45 = vld [vmem:[%s17801_s8 + $0x21a8] sm:$0xff]  ;;  %v4502_v38 = vld [vmem:[%s17801_s8 + $0x2270] sm:$0xff] }
 0x632   :  { %9333 = vmatpush1.bf16.msra.mxu1 %v9332_v29  ;;  %8631 = vmatprep.subr.bf16.mxu0 %v8630_v26  ;;  %v4475_v29 = vld [vmem:[%s17801_s8 + $0x2198] sm:$0xff]  ;;  %v8650_v47 = vpack.c.bf16 %v4477_v45, %v4473_v54  ;;  %v4505_v15 = vld [vmem:[%s17801_s8 + $0x2288] sm:$0xff]  ;;  %v9368_v36 = vpack.c.bf16 %v4502_v38, %v4498_v27  ;;  %v4506_v54 = vld [vmem:[%s17801_s8 + $0x2290] sm:$0xff] }
 0x633   :  { %9335 = vmatprep.subr.bf16.mxu1 %v9334_v21  ;;  %5462 = vmatprep.mubr.f32.mxu0 %v16457_v18  ;;  %v4479_v26 = vld [vmem:[%s17801_s8 + $0x21b8] sm:$0xff]  ;;  %v4472_v21 = vld [vmem:[%s17801_s8 + $0x2180] sm:$0xff] }
 0x634   :  { %6243 = vmatprep.mubr.f32.mxu1 %v16457_v18  ;;  %v9354_v49 = vpack.c.bf16 %v4479_v26, %v4475_v29  ;;  %v8652_v55 = vpack.c.bf16 %v4476_v48, %v4472_v21  ;;  %v4510_v29 = vld [vmem:[%s17801_s8 + $0x22b0] sm:$0xff]  ;;  %v4513_v26 = vld [vmem:[%s17801_s8 + $0x22c8] sm:$0xff]  ;;  %v4540_v38 = vld [vmem:[%s17801_s8 + $0x23a0] sm:$0xff] }
 0x635   :  { %8633 = vmatpush1.bf16.msra.mxu0 %v8632_v23  ;;  %v4485_v23 = vld [vmem:[%s17801_s8 + $0x21e8] sm:$0xff]  ;;  %v9372_v48 = vpack.c.bf16 %v4510_v29, %v4506_v54  ;;  %v4548_v29 = vld [vmem:[%s17801_s8 + $0x23e0] sm:$0xff] }
 0x636   :  { %9337 = vmatpush1.bf16.msra.mxu1 %v9336_v52  ;;  %8635 = vmatprep.subr.bf16.mxu0 %v8634_v59  ;;  %v4483_v52 = vld [vmem:[%s17801_s8 + $0x21d8] sm:$0xff]  ;;  %v8654_v57 = vpack.c.bf16 %v4485_v23, %v4481_v51  ;;  %v4514_v51 = vld [vmem:[%s17801_s8 + $0x22d0] sm:$0xff] }
 0x637   :  { %9339 = vmatprep.subr.bf16.mxu1 %v9338_v58  ;;  %v4487_v59 = vld [vmem:[%s17801_s8 + $0x21f8] sm:$0xff]  ;;  %v4480_v58 = vld [vmem:[%s17801_s8 + $0x21c0] sm:$0xff] }
 0x638   :  { %v9358_v61 = vpack.c.bf16 %v4487_v59, %v4483_v52  ;;  %v8656_v33 = vpack.c.bf16 %v4484_v60, %v4480_v58  ;;  %v4518_v52 = vld [vmem:[%s17801_s8 + $0x22f0] sm:$0xff]  ;;  %v4521_v59 = vld [vmem:[%s17801_s8 + $0x2308] sm:$0xff] }
 0x639   :  { %8637 = vmatpush1.bf16.msra.mxu0 %v8636_v3  ;;  %v4493_v3 = vld [vmem:[%s17801_s8 + $0x2228] sm:$0xff]  ;;  %v9376_v60 = vpack.c.bf16 %v4518_v52, %v4514_v51  ;;  %v4556_v52 = vld [vmem:[%s17801_s8 + $0x2420] sm:$0xff] }
 0x63a   :  { %9341 = vmatpush1.bf16.msra.mxu1 %v9340_v4  ;;  %8639 = vmatprep.subr.bf16.mxu0 %v8638_v6  ;;  %v4491_v4 = vld [vmem:[%s17801_s8 + $0x2218] sm:$0xff]  ;;  %v8658_v50 = vpack.c.bf16 %v4493_v3, %v4489_v2  ;;  %v4522_v2 = vld [vmem:[%s17801_s8 + $0x2310] sm:$0xff] }
 0x63b   :  { %9343 = vmatprep.subr.bf16.mxu1 %v9342_v40  ;;  %v4495_v6 = vld [vmem:[%s17801_s8 + $0x2238] sm:$0xff]  ;;  %v4488_v40 = vld [vmem:[%s17801_s8 + $0x2200] sm:$0xff] }
 0x63c   :  { %v9362_v14 = vpack.c.bf16 %v4495_v6, %v4491_v4  ;;  %v8660_v24 = vpack.c.bf16 %v4492_v11, %v4488_v40  ;;  %v4526_v4 = vld [vmem:[%s17801_s8 + $0x2330] sm:$0xff]  ;;  %v4529_v6 = vld [vmem:[%s17801_s8 + $0x2348] sm:$0xff] }
 0x63d   :  { %8641 = vmatpush1.bf16.msra.mxu0 %v8640_v37  ;;  %v4501_v37 = vld [vmem:[%s17801_s8 + $0x2268] sm:$0xff]  ;;  %v9380_v11 = vpack.c.bf16 %v4526_v4, %v4522_v2 }
 0x63e   :  { %9345 = vmatpush1.bf16.msra.mxu1 %v9344_v63  ;;  %8643 = vmatprep.subr.bf16.mxu0 %v8642_v22  ;;  %v4499_v63 = vld [vmem:[%s17801_s8 + $0x2258] sm:$0xff]  ;;  %v8662_v44 = vpack.c.bf16 %v4501_v37, %v4497_v16  ;;  %v4530_v16 = vld [vmem:[%s17801_s8 + $0x2350] sm:$0xff] }
 0x63f   :  { %9347 = vmatprep.subr.bf16.mxu1 %v9346_v28  ;;  %v4503_v22 = vld [vmem:[%s17801_s8 + $0x2278] sm:$0xff]  ;;  %v4496_v28 = vld [vmem:[%s17801_s8 + $0x2240] sm:$0xff] }
 0x640   :  { %v9366_v20 = vpack.c.bf16 %v4503_v22, %v4499_v63  ;;  %v8664_v35 = vpack.c.bf16 %v4500_v5, %v4496_v28  ;;  %v4534_v63 = vld [vmem:[%s17801_s8 + $0x2370] sm:$0xff]  ;;  %v4537_v22 = vld [vmem:[%s17801_s8 + $0x2388] sm:$0xff] }
 0x641   :  { %8645 = vmatpush1.bf16.msra.mxu0 %v8644_v8  ;;  %v4509_v8 = vld [vmem:[%s17801_s8 + $0x22a8] sm:$0xff]  ;;  %v9384_v5 = vpack.c.bf16 %v4534_v63, %v4530_v16 }
 0x642   :  { %9349 = vmatpush1.bf16.msra.mxu1 %v9348_v31  ;;  %8647 = vmatprep.subr.bf16.mxu0 %v8646_v32  ;;  %v4507_v31 = vld [vmem:[%s17801_s8 + $0x2298] sm:$0xff]  ;;  %v8666_v13 = vpack.c.bf16 %v4509_v8, %v4505_v15  ;;  %v4538_v15 = vld [vmem:[%s17801_s8 + $0x2390] sm:$0xff] }
 0x643   :  { %9351 = vmatprep.subr.bf16.mxu1 %v9350_v39  ;;  %v4511_v32 = vld [vmem:[%s17801_s8 + $0x22b8] sm:$0xff]  ;;  %v4504_v39 = vld [vmem:[%s17801_s8 + $0x2280] sm:$0xff] }
 0x644   :  { %v9370_v45 = vpack.c.bf16 %v4511_v32, %v4507_v31  ;;  %v8668_v21 = vpack.c.bf16 %v4508_v43, %v4504_v39  ;;  %v4542_v31 = vld [vmem:[%s17801_s8 + $0x23b0] sm:$0xff]  ;;  %v4545_v32 = vld [vmem:[%s17801_s8 + $0x23c8] sm:$0xff] }
 0x645   :  { %8649 = vmatpush1.bf16.msra.mxu0 %v8648_v10  ;;  %v4517_v10 = vld [vmem:[%s17801_s8 + $0x22e8] sm:$0xff]  ;;  %v9388_v43 = vpack.c.bf16 %v4542_v31, %v4538_v15 }
 0x646   :  { %9353 = vmatpush1.bf16.msra.mxu1 %v9352_v0  ;;  %8651 = vmatprep.subr.bf16.mxu0 %v8650_v47  ;;  %v4515_v0 = vld [vmem:[%s17801_s8 + $0x22d8] sm:$0xff]  ;;  %v8670_v25 = vpack.c.bf16 %v4517_v10, %v4513_v26  ;;  %v4546_v26 = vld [vmem:[%s17801_s8 + $0x23d0] sm:$0xff] }
 0x647   :  { %9355 = vmatprep.subr.bf16.mxu1 %v9354_v49  ;;  %v4519_v47 = vld [vmem:[%s17801_s8 + $0x22f8] sm:$0xff]  ;;  %v4512_v49 = vld [vmem:[%s17801_s8 + $0x22c0] sm:$0xff] }
 0x648   :  { %v9374_v23 = vpack.c.bf16 %v4519_v47, %v4515_v0  ;;  %v8672_v58 = vpack.c.bf16 %v4516_v56, %v4512_v49  ;;  %v4550_v0 = vld [vmem:[%s17801_s8 + $0x23f0] sm:$0xff]  ;;  %v4553_v47 = vld [vmem:[%s17801_s8 + $0x2408] sm:$0xff] }
 0x649   :  { %8653 = vmatpush1.bf16.msra.mxu0 %v8652_v55  ;;  %v4525_v55 = vld [vmem:[%s17801_s8 + $0x2328] sm:$0xff]  ;;  %v9392_v56 = vpack.c.bf16 %v4550_v0, %v4546_v26 }
 0x64a   :  { %9357 = vmatpush1.bf16.msra.mxu1 %v9356_v9  ;;  %8655 = vmatprep.subr.bf16.mxu0 %v8654_v57  ;;  %v4523_v9 = vld [vmem:[%s17801_s8 + $0x2318] sm:$0xff]  ;;  %v8674_v30 = vpack.c.bf16 %v4525_v55, %v4521_v59  ;;  %v4554_v59 = vld [vmem:[%s17801_s8 + $0x2410] sm:$0xff] }
 0x64b   :  { %9359 = vmatprep.subr.bf16.mxu1 %v9358_v61  ;;  %v4527_v57 = vld [vmem:[%s17801_s8 + $0x2338] sm:$0xff]  ;;  %v4520_v61 = vld [vmem:[%s17801_s8 + $0x2300] sm:$0xff] }
 0x64c   :  { %v9378_v3 = vpack.c.bf16 %v4527_v57, %v4523_v9  ;;  %v8676_v40 = vpack.c.bf16 %v4524_v1, %v4520_v61  ;;  %v4558_v9 = vld [vmem:[%s17801_s8 + $0x2430] sm:$0xff]  ;;  %v4561_v57 = vld [vmem:[%s17801_s8 + $0x2448] sm:$0xff]  ;;  %v4567_v61 = vld [vmem:[%s17801_s8 + $0x2478] sm:$0xff] }
 0x64d   :  { %8657 = vmatpush1.bf16.msra.mxu0 %v8656_v33  ;;  %v4533_v33 = vld [vmem:[%s17801_s8 + $0x2368] sm:$0xff]  ;;  %v16832_v1 = vld [vmem:[%s17794_s1 + $0x10] sm:$0x3f] }
 0x64e   :  { %9361 = vmatpush1.bf16.msra.mxu1 %v9360_v19  ;;  %8659 = vmatprep.subr.bf16.mxu0 %v8658_v50  ;;  %v4531_v19 = vld [vmem:[%s17801_s8 + $0x2358] sm:$0xff]  ;;  %v8678_v34 = vpack.c.bf16 %v4533_v33, %v4529_v6  ;;  %v4564_v6 = vld [vmem:[%s17801_s8 + $0x2460] sm:$0xff]  ;;  %v4562_v33 = vld [vmem:[%s17801_s8 + $0x2450] sm:$0xff] }
 0x64f   :  { %9363 = vmatprep.subr.bf16.mxu1 %v9362_v14  ;;  %v4535_v50 = vld [vmem:[%s17801_s8 + $0x2378] sm:$0xff]  ;;  %v4528_v14 = vld [vmem:[%s17801_s8 + $0x2340] sm:$0xff] }
 0x650   :  { %v9382_v37 = vpack.c.bf16 %v4535_v50, %v4531_v19  ;;  %v8680_v28 = vpack.c.bf16 %v4532_v7, %v4528_v14  ;;  %v4566_v50 = vld [vmem:[%s17801_s8 + $0x2470] sm:$0xff]  ;;  %v4571_v14 = vld [vmem:[%s17801_s8 + $0x2498] sm:$0xff] }
 0x651   :  { %8661 = vmatpush1.bf16.msra.mxu0 %v8660_v24  ;;  %v4541_v24 = vld [vmem:[%s17801_s8 + $0x23a8] sm:$0xff]  ;;  %v4575_v7 = vld [vmem:[%s17801_s8 + $0x24b8] sm:$0xff] }
 0x652   :  { %9365 = vmatpush1.bf16.msra.mxu1 %v9364_v62  ;;  %8663 = vmatprep.subr.bf16.mxu0 %v8662_v44  ;;  %v4539_v62 = vld [vmem:[%s17801_s8 + $0x2398] sm:$0xff]  ;;  %v8682_v27 = vpack.c.bf16 %v4541_v24, %v4537_v22  ;;  %v4568_v22 = vld [vmem:[%s17801_s8 + $0x2480] sm:$0xff] }
 0x653   :  { %9367 = vmatprep.subr.bf16.mxu1 %v9366_v20  ;;  %v4543_v44 = vld [vmem:[%s17801_s8 + $0x23b8] sm:$0xff]  ;;  %v4536_v20 = vld [vmem:[%s17801_s8 + $0x2380] sm:$0xff] }
 0x654   :  { %v9386_v8 = vpack.c.bf16 %v4543_v44, %v4539_v62  ;;  %v8684_v39 = vpack.c.bf16 %v4540_v38, %v4536_v20  ;;  %v4572_v24 = vld [vmem:[%s17801_s8 + $0x24a0] sm:$0xff]  ;;  %v4570_v62 = vld [vmem:[%s17801_s8 + $0x2490] sm:$0xff]  ;;  %v9402_v44 = vpack.c.bf16 %v4575_v7, %v4571_v14  ;;  %v4579_v20 = vld [vmem:[%s17801_s8 + $0x24d8] sm:$0xff] }
 0x655   :  { %8665 = vmatpush1.bf16.msra.mxu0 %v8664_v35  ;;  %v4549_v35 = vld [vmem:[%s17801_s8 + $0x23e8] sm:$0xff]  ;;  %v4583_v38 = vld [vmem:[%s17801_s8 + $0x24f8] sm:$0xff]  ;;  %v8700_v15 = vpack.c.bf16 %v4572_v24, %v4568_v22  ;;  %v4606_v7 = vld [vmem:[%s17801_s8 + $0x25b0] sm:$0xff] }
 0x656   :  { %9369 = vmatpush1.bf16.msra.mxu1 %v9368_v36  ;;  %8667 = vmatprep.subr.bf16.mxu0 %v8666_v13  ;;  %v4547_v36 = vld [vmem:[%s17801_s8 + $0x23d8] sm:$0xff]  ;;  %v8686_v54 = vpack.c.bf16 %v4549_v35, %v4545_v32  ;;  %v4576_v32 = vld [vmem:[%s17801_s8 + $0x24c0] sm:$0xff] }
 0x657   :  { %9371 = vmatprep.subr.bf16.mxu1 %v9370_v45  ;;  %v4551_v13 = vld [vmem:[%s17801_s8 + $0x23f8] sm:$0xff]  ;;  %v4544_v45 = vld [vmem:[%s17801_s8 + $0x23c0] sm:$0xff] }
 0x658   :  { %v9390_v10 = vpack.c.bf16 %v4551_v13, %v4547_v36  ;;  %v8688_v49 = vpack.c.bf16 %v4548_v29, %v4544_v45  ;;  %v4580_v35 = vld [vmem:[%s17801_s8 + $0x24e0] sm:$0xff]  ;;  %v4578_v36 = vld [vmem:[%s17801_s8 + $0x24d0] sm:$0xff]  ;;  %v9406_v13 = vpack.c.bf16 %v4583_v38, %v4579_v20  ;;  %v4587_v45 = vld [vmem:[%s17801_s8 + $0x2518] sm:$0xff] }
 0x659   :  { %8669 = vmatpush1.bf16.msra.mxu0 %v8668_v21  ;;  %v4557_v21 = vld [vmem:[%s17801_s8 + $0x2428] sm:$0xff]  ;;  %v4591_v29 = vld [vmem:[%s17801_s8 + $0x2538] sm:$0xff]  ;;  %v8704_v26 = vpack.c.bf16 %v4580_v35, %v4576_v32  ;;  %v4614_v38 = vld [vmem:[%s17801_s8 + $0x25f0] sm:$0xff] }
 0x65a   :  { %9373 = vmatpush1.bf16.msra.mxu1 %v9372_v48  ;;  %8671 = vmatprep.subr.bf16.mxu0 %v8670_v25  ;;  %v4555_v48 = vld [vmem:[%s17801_s8 + $0x2418] sm:$0xff]  ;;  %v8690_v51 = vpack.c.bf16 %v4557_v21, %v4553_v47  ;;  %v4584_v47 = vld [vmem:[%s17801_s8 + $0x2500] sm:$0xff] }
 0x65b   :  { %9375 = vmatprep.subr.bf16.mxu1 %v9374_v23  ;;  %v4559_v25 = vld [vmem:[%s17801_s8 + $0x2438] sm:$0xff]  ;;  %v4552_v23 = vld [vmem:[%s17801_s8 + $0x2400] sm:$0xff] }
 0x65c   :  { %v9394_v55 = vpack.c.bf16 %v4559_v25, %v4555_v48  ;;  %v8692_v2 = vpack.c.bf16 %v4556_v52, %v4552_v23  ;;  %v4588_v21 = vld [vmem:[%s17801_s8 + $0x2520] sm:$0xff]  ;;  %v4586_v48 = vld [vmem:[%s17801_s8 + $0x2510] sm:$0xff]  ;;  %v9410_v25 = vpack.c.bf16 %v4591_v29, %v4587_v45  ;;  %v4595_v23 = vld [vmem:[%s17801_s8 + $0x2558] sm:$0xff] }
 0x65d   :  { %8673 = vmatpush1.bf16.msra.mxu0 %v8672_v58  ;;  %v4565_v58 = vld [vmem:[%s17801_s8 + $0x2468] sm:$0xff]  ;;  %v4599_v52 = vld [vmem:[%s17801_s8 + $0x2578] sm:$0xff]  ;;  %v4622_v29 = vld [vmem:[%s17801_s8 + $0x2630] sm:$0xff] }
 0x65e   :  { %9377 = vmatpush1.bf16.msra.mxu1 %v9376_v60  ;;  %8675 = vmatprep.subr.bf16.mxu0 %v8674_v30  ;;  %v3371_v60 = vcombine.high %v16064_v41, %v16064_v41  ;;  %v4563_v30 = vld [vmem:[%s17801_s8 + $0x2458] sm:$0xff]  ;;  %v8694_v4 = vpack.c.bf16 %v4565_v58, %v4561_v57  ;;  %v4560_v41 = vld [vmem:[%s17801_s8 + $0x2440] sm:$0xff] }
 0x65f   :  { %9379 = vmatprep.subr.bf16.mxu1 %v9378_v3  ;;  %v9396_v3 = vpack.c.bf16 %v4558_v9, %v4554_v59  ;;  %v9398_v19 = vpack.c.bf16 %v4567_v61, %v4563_v30  ;;  %v8696_v16 = vpack.c.bf16 %v4564_v6, %v4560_v41  ;;  %v8708_v59 = vpack.c.bf16 %v4588_v21, %v4584_v47  ;;  %v4592_v57 = vld [vmem:[%s17801_s8 + $0x2540] sm:$0xff]  ;;  %v4598_v61 = vld [vmem:[%s17801_s8 + $0x2570] sm:$0xff]  ;;  %v4607_v41 = vld [vmem:[%s17801_s8 + $0x25b8] sm:$0xff] }
 0x660   :  { %v4596_v58 = vld [vmem:[%s17801_s8 + $0x2560] sm:$0xff]  ;;  %v9414_v30 = vpack.c.bf16 %v4599_v52, %v4595_v23  ;;  %v4615_v22 = vld [vmem:[%s17801_s8 + $0x25f8] sm:$0xff]  ;;  %v4630_v52 = vld [vmem:[%s17801_s8 + $0x2670] sm:$0xff] }
 0x661   :  { %8677 = vmatpush1.bf16.msra.mxu0 %v8676_v40  ;;  %v4569_v40 = vld [vmem:[%s17801_s8 + $0x2488] sm:$0xff]  ;;  %v8712_v6 = vpack.c.bf16 %v4596_v58, %v4592_v57  ;;  %v4623_v32 = vld [vmem:[%s17801_s8 + $0x2638] sm:$0xff] }
 0x662   :  { %9381 = vmatpush1.bf16.msra.mxu1 %v9380_v11  ;;  %8679 = vmatprep.subr.bf16.mxu0 %v8678_v34  ;;  %v4573_v11 = vld [vmem:[%s17801_s8 + $0x24a8] sm:$0xff]  ;;  %v16854_v34 = vrot.slane %v16832_v1, %v10097_v12  ;;  %v4631_v47 = vld [vmem:[%s17801_s8 + $0x2678] sm:$0xff] }
 0x663   :  { %9383 = vmatprep.subr.bf16.mxu1 %v9382_v37  ;;  %v9400_v37 = vpack.c.bf16 %v4566_v50, %v4562_v33  ;;  %v8698_v63 = vpack.c.bf16 %v4573_v11, %v4569_v40  ;;  %v4600_v50 = vld [vmem:[%s17801_s8 + $0x2580] sm:$0xff]  ;;  %v4602_v11 = vld [vmem:[%s17801_s8 + $0x2590] sm:$0xff]  ;;  %v4639_v57 = vld [vmem:[%s17801_s8 + $0x26b8] sm:$0xff] }
 0x664   :  { %v4604_v40 = vld [vmem:[%s17801_s8 + $0x25a0] sm:$0xff] }
 0x665   :  { %8681 = vmatpush1.bf16.msra.mxu0 %v8680_v28  ;;  %v4574_v28 = vld [vmem:[%s17801_s8 + $0x24b0] sm:$0xff]  ;;  %v8716_v24 = vpack.c.bf16 %v4604_v40, %v4600_v50  ;;  %v4647_v50 = vld [vmem:[%s17801_s8 + $0x26f8] sm:$0xff] }
 0x666   :  { %9385 = vmatpush1.bf16.msra.mxu1 %v9384_v5  ;;  %8683 = vmatprep.subr.bf16.mxu0 %v8682_v27  ;;  %v4577_v5 = vld [vmem:[%s17801_s8 + $0x24c8] sm:$0xff] }
 0x667   :  { %9387 = vmatprep.subr.bf16.mxu1 %v9386_v8  ;;  %v4581_v27 = vld [vmem:[%s17801_s8 + $0x24e8] sm:$0xff]  ;;  %v9404_v8 = vpack.c.bf16 %v4574_v28, %v4570_v62  ;;  %v9420_v62 = vpack.c.bf16 %v4606_v7, %v4602_v11  ;;  %v4608_v28 = vld [vmem:[%s17801_s8 + $0x25c0] sm:$0xff] }
 0x668   :  { %v8702_v31 = vpack.c.bf16 %v4581_v27, %v4577_v5  ;;  %v4612_v5 = vld [vmem:[%s17801_s8 + $0x25e0] sm:$0xff]  ;;  %v4610_v27 = vld [vmem:[%s17801_s8 + $0x25d0] sm:$0xff] }
 0x669   :  { %8685 = vmatpush1.bf16.msra.mxu0 %v8684_v39  ;;  %v4582_v39 = vld [vmem:[%s17801_s8 + $0x24f0] sm:$0xff]  ;;  %v8720_v35 = vpack.c.bf16 %v4612_v5, %v4608_v28  ;;  %v4640_v7 = vld [vmem:[%s17801_s8 + $0x26c0] sm:$0xff]  ;;  %v4655_v28 = vld [vmem:[%s17801_s8 + $0x2738] sm:$0xff] }
 0x66a   :  { %9389 = vmatpush1.bf16.msra.mxu1 %v9388_v43  ;;  %8687 = vmatprep.subr.bf16.mxu0 %v8686_v54  ;;  %v4585_v43 = vld [vmem:[%s17801_s8 + $0x2508] sm:$0xff] }
 0x66b   :  { %9391 = vmatprep.subr.bf16.mxu1 %v9390_v10  ;;  %v4589_v54 = vld [vmem:[%s17801_s8 + $0x2528] sm:$0xff]  ;;  %v9408_v10 = vpack.c.bf16 %v4582_v39, %v4578_v36  ;;  %v9424_v36 = vpack.c.bf16 %v4614_v38, %v4610_v27  ;;  %v4616_v39 = vld [vmem:[%s17801_s8 + $0x2600] sm:$0xff] }
 0x66c   :  { %v8706_v0 = vpack.c.bf16 %v4589_v54, %v4585_v43  ;;  %v4620_v43 = vld [vmem:[%s17801_s8 + $0x2620] sm:$0xff]  ;;  %v4618_v54 = vld [vmem:[%s17801_s8 + $0x2610] sm:$0xff] }
 0x66d   :  { %8689 = vmatpush1.bf16.msra.mxu0 %v8688_v49  ;;  %v4590_v49 = vld [vmem:[%s17801_s8 + $0x2530] sm:$0xff]  ;;  %v8724_v21 = vpack.c.bf16 %v4620_v43, %v4616_v39  ;;  %v4648_v38 = vld [vmem:[%s17801_s8 + $0x2700] sm:$0xff]  ;;  %v4663_v39 = vld [vmem:[%s17801_s8 + $0x2778] sm:$0xff] }
 0x66e   :  { %9393 = vmatpush1.bf16.msra.mxu1 %v9392_v56  ;;  %8691 = vmatprep.subr.bf16.mxu0 %v8690_v51  ;;  %v4593_v56 = vld [vmem:[%s17801_s8 + $0x2548] sm:$0xff] }
 0x66f   :  { %9395 = vmatprep.subr.bf16.mxu1 %v9394_v55  ;;  %v4597_v51 = vld [vmem:[%s17801_s8 + $0x2568] sm:$0xff]  ;;  %v9412_v55 = vpack.c.bf16 %v4590_v49, %v4586_v48  ;;  %v9428_v48 = vpack.c.bf16 %v4622_v29, %v4618_v54  ;;  %v4624_v49 = vld [vmem:[%s17801_s8 + $0x2640] sm:$0xff] }
 0x670   :  { %5463 = vmatmul.mubr.f32.vlgmr.msra.gmra.mrb[16].mxu0 %v3371_v60  ;;  %v8710_v9 = vpack.c.bf16 %v4597_v51, %v4593_v56  ;;  %v4628_v56 = vld [vmem:[%s17801_s8 + $0x2660] sm:$0xff]  ;;  %v4626_v51 = vld [vmem:[%s17801_s8 + $0x2650] sm:$0xff] }
 0x671   :  { %8693 = vmatpush1.bf16.msra.mxu0 %v8692_v2  ;;  %6244 = vmatmul.mubr.f32.vlgmr.msra.gmra.mrb[16].mxu1 %v3371_v60  ;;  %v4594_v60 = vld [vmem:[%s17801_s8 + $0x2550] sm:$0xff]  ;;  %v4601_v2 = vld [vmem:[%s17801_s8 + $0x2588] sm:$0xff]  ;;  %v8728_v58 = vpack.c.bf16 %v4628_v56, %v4624_v49  ;;  %v4656_v29 = vld [vmem:[%s17801_s8 + $0x2740] sm:$0xff] }
 0x672   :  { %9397 = vmatpush1.bf16.msra.mxu1 %v9396_v3  ;;  %8695 = vmatprep.subr.bf16.mxu0 %v8694_v4  ;;  %v4605_v3 = vld [vmem:[%s17801_s8 + $0x25a8] sm:$0xff]  ;;  %v4603_v4 = vld [vmem:[%s17801_s8 + $0x2598] sm:$0xff]  ;;  %v9416_v33 = vpack.c.bf16 %v4598_v61, %v4594_v60  ;;  %v9432_v60 = vpack.c.bf16 %v4630_v52, %v4626_v51  ;;  %v4632_v61 = vld [vmem:[%s17801_s8 + $0x2680] sm:$0xff] }
 0x673   :  { %9399 = vmatprep.subr.bf16.mxu1 %v9398_v19  ;;  %5533 = vmatprep.mubr.f32.mxu0 %v16854_v34  ;;  %v8714_v19 = vpack.c.bf16 %v4605_v3, %v4601_v2  ;;  %v9418_v14 = vpack.c.bf16 %v4607_v41, %v4603_v4  ;;  %v4636_v2 = vld [vmem:[%s17801_s8 + $0x26a0] sm:$0xff]  ;;  %v4634_v3 = vld [vmem:[%s17801_s8 + $0x2690] sm:$0xff]  ;;  %v4671_v49 = vld [vmem:[%s17801_s8 + $0x27b8] sm:$0xff] }
 0x674   :  { %6314 = vmatprep.mubr.f32.mxu1 %v16854_v34  ;;  %v4638_v41 = vld [vmem:[%s17801_s8 + $0x26b0] sm:$0xff]  ;;  %v8732_v40 = vpack.c.bf16 %v4636_v2, %v4632_v61  ;;  %v4664_v52 = vld [vmem:[%s17801_s8 + $0x2780] sm:$0xff]  ;;  %v4679_v61 = vld [vmem:[%s17801_s8 + $0x27f8] sm:$0xff] }
 0x675   :  { %8697 = vmatpush1.bf16.msra.mxu0 %v8696_v16  ;;  %v4609_v16 = vld [vmem:[%s17801_s8 + $0x25c8] sm:$0xff]  ;;  %v9436_v11 = vpack.c.bf16 %v4638_v41, %v4634_v3  ;;  %v4672_v41 = vld [vmem:[%s17801_s8 + $0x27c0] sm:$0xff] }
 0x676   :  { %9401 = vmatpush1.bf16.msra.mxu1 %v9400_v37  ;;  %8699 = vmatprep.subr.bf16.mxu0 %v8698_v63  ;;  %v4613_v37 = vld [vmem:[%s17801_s8 + $0x25e8] sm:$0xff]  ;;  %v4611_v63 = vld [vmem:[%s17801_s8 + $0x25d8] sm:$0xff] }
 0x677   :  { %9403 = vmatprep.subr.bf16.mxu1 %v9402_v44  ;;  %v8718_v44 = vpack.c.bf16 %v4613_v37, %v4609_v16  ;;  %v9422_v20 = vpack.c.bf16 %v4615_v22, %v4611_v63  ;;  %v4644_v16 = vld [vmem:[%s17801_s8 + $0x26e0] sm:$0xff]  ;;  %v4642_v37 = vld [vmem:[%s17801_s8 + $0x26d0] sm:$0xff] }
 0x678   :  { %v4646_v22 = vld [vmem:[%s17801_s8 + $0x26f0] sm:$0xff]  ;;  %v8736_v5 = vpack.c.bf16 %v4644_v16, %v4640_v7  ;;  %v4687_v7 = vld [vmem:[%s17801_s8 + $0x2838] sm:$0xff] }
 0x679   :  { %8701 = vmatpush1.bf16.msra.mxu0 %v8700_v15  ;;  %v4617_v15 = vld [vmem:[%s17801_s8 + $0x2608] sm:$0xff]  ;;  %v9440_v27 = vpack.c.bf16 %v4646_v22, %v4642_v37  ;;  %v4680_v22 = vld [vmem:[%s17801_s8 + $0x2800] sm:$0xff] }
 0x67a   :  { %9405 = vmatpush1.bf16.msra.mxu1 %v9404_v8  ;;  %8703 = vmatprep.subr.bf16.mxu0 %v8702_v31  ;;  %v4621_v8 = vld [vmem:[%s17801_s8 + $0x2628] sm:$0xff]  ;;  %v4619_v31 = vld [vmem:[%s17801_s8 + $0x2618] sm:$0xff] }
 0x67b   :  { %9407 = vmatprep.subr.bf16.mxu1 %v9406_v13  ;;  %v8722_v13 = vpack.c.bf16 %v4621_v8, %v4617_v15  ;;  %v9426_v45 = vpack.c.bf16 %v4623_v32, %v4619_v31  ;;  %v4652_v15 = vld [vmem:[%s17801_s8 + $0x2720] sm:$0xff]  ;;  %v4650_v8 = vld [vmem:[%s17801_s8 + $0x2710] sm:$0xff] }
 0x67c   :  { %v4654_v32 = vld [vmem:[%s17801_s8 + $0x2730] sm:$0xff]  ;;  %v8740_v43 = vpack.c.bf16 %v4652_v15, %v4648_v38  ;;  %v3372_v38 = vcombine.high %v16457_v18, %v16457_v18  ;;  %v4691_v15 = vld [vmem:[%s17801_s8 + $0x2858] sm:$0xff]  ;;  %v4692_v18 = vld [vmem:[%s17801_s8 + $0x2860] sm:$0xff] }
 0x67d   :  { %8705 = vmatpush1.bf16.msra.mxu0 %v8704_v26  ;;  %v4625_v26 = vld [vmem:[%s17801_s8 + $0x2648] sm:$0xff]  ;;  %v9444_v54 = vpack.c.bf16 %v4654_v32, %v4650_v8  ;;  %v4695_v8 = vld [vmem:[%s17801_s8 + $0x2878] sm:$0xff] }
 0x67e   :  { %9409 = vmatpush1.bf16.msra.mxu1 %v9408_v10  ;;  %8707 = vmatprep.subr.bf16.mxu0 %v8706_v0  ;;  %v4629_v10 = vld [vmem:[%s17801_s8 + $0x2668] sm:$0xff]  ;;  %v4627_v0 = vld [vmem:[%s17801_s8 + $0x2658] sm:$0xff] }
 0x67f   :  { %9411 = vmatprep.subr.bf16.mxu1 %v9410_v25  ;;  %v8726_v25 = vpack.c.bf16 %v4629_v10, %v4625_v26  ;;  %v9430_v23 = vpack.c.bf16 %v4631_v47, %v4627_v0  ;;  %v4660_v26 = vld [vmem:[%s17801_s8 + $0x2760] sm:$0xff]  ;;  %v4658_v10 = vld [vmem:[%s17801_s8 + $0x2750] sm:$0xff] }
 0x680   :  { %v4662_v47 = vld [vmem:[%s17801_s8 + $0x2770] sm:$0xff]  ;;  %v8744_v56 = vpack.c.bf16 %v4660_v26, %v4656_v29  ;;  %v4699_v29 = vld [vmem:[%s17801_s8 + $0x2898] sm:$0xff] }
 0x681   :  { %8709 = vmatpush1.bf16.msra.mxu0 %v8708_v59  ;;  %v4633_v59 = vld [vmem:[%s17801_s8 + $0x2688] sm:$0xff]  ;;  %v9448_v51 = vpack.c.bf16 %v4662_v47, %v4658_v10  ;;  %v4703_v26 = vld [vmem:[%s17801_s8 + $0x28b8] sm:$0xff] }
 0x682   :  { %9413 = vmatpush1.bf16.msra.mxu1 %v9412_v55  ;;  %8711 = vmatprep.subr.bf16.mxu0 %v8710_v9  ;;  %v4637_v55 = vld [vmem:[%s17801_s8 + $0x26a8] sm:$0xff]  ;;  %v4635_v9 = vld [vmem:[%s17801_s8 + $0x2698] sm:$0xff] }
 0x683   :  { %9415 = vmatprep.subr.bf16.mxu1 %v9414_v30  ;;  %v8730_v30 = vpack.c.bf16 %v4637_v55, %v4633_v59  ;;  %v9434_v4 = vpack.c.bf16 %v4639_v57, %v4635_v9  ;;  %v4668_v59 = vld [vmem:[%s17801_s8 + $0x27a0] sm:$0xff]  ;;  %v4666_v55 = vld [vmem:[%s17801_s8 + $0x2790] sm:$0xff] }
 0x684   :  { %v4670_v57 = vld [vmem:[%s17801_s8 + $0x27b0] sm:$0xff]  ;;  %v8748_v2 = vpack.c.bf16 %v4668_v59, %v4664_v52  ;;  %v4711_v52 = vld [vmem:[%s17801_s8 + $0x28f8] sm:$0xff] }
 0x685   :  { %8713 = vmatpush1.bf16.msra.mxu0 %v8712_v6  ;;  %v4641_v6 = vld [vmem:[%s17801_s8 + $0x26c8] sm:$0xff]  ;;  %v9452_v3 = vpack.c.bf16 %v4670_v57, %v4666_v55  ;;  %v4704_v57 = vld [vmem:[%s17801_s8 + $0x28c0] sm:$0xff] }
 0x686   :  { %9417 = vmatpush1.bf16.msra.mxu1 %v9416_v33  ;;  %8715 = vmatprep.subr.bf16.mxu0 %v8714_v19  ;;  %v4645_v33 = vld [vmem:[%s17801_s8 + $0x26e8] sm:$0xff]  ;;  %v4643_v19 = vld [vmem:[%s17801_s8 + $0x26d8] sm:$0xff] }
 0x687   :  { %9419 = vmatprep.subr.bf16.mxu1 %v9418_v14  ;;  %v8734_v14 = vpack.c.bf16 %v4645_v33, %v4641_v6  ;;  %v9438_v63 = vpack.c.bf16 %v4647_v50, %v4643_v19  ;;  %v4676_v6 = vld [vmem:[%s17801_s8 + $0x27e0] sm:$0xff]  ;;  %v4674_v33 = vld [vmem:[%s17801_s8 + $0x27d0] sm:$0xff] }
 0x688   :  { %v4678_v50 = vld [vmem:[%s17801_s8 + $0x27f0] sm:$0xff]  ;;  %v8752_v16 = vpack.c.bf16 %v4676_v6, %v4672_v41  ;;  %v4719_v41 = vld [vmem:[%s17801_s8 + $0x2938] sm:$0xff] }
 0x689   :  { %8717 = vmatpush1.bf16.msra.mxu0 %v8716_v24  ;;  %v4649_v24 = vld [vmem:[%s17801_s8 + $0x2708] sm:$0xff]  ;;  %v9456_v37 = vpack.c.bf16 %v4678_v50, %v4674_v33  ;;  %v4712_v50 = vld [vmem:[%s17801_s8 + $0x2900] sm:$0xff] }
 0x68a   :  { %9421 = vmatpush1.bf16.msra.mxu1 %v9420_v62  ;;  %8719 = vmatprep.subr.bf16.mxu0 %v8718_v44  ;;  %v4653_v62 = vld [vmem:[%s17801_s8 + $0x2728] sm:$0xff]  ;;  %v4651_v44 = vld [vmem:[%s17801_s8 + $0x2718] sm:$0xff] }
 0x68b   :  { %9423 = vmatprep.subr.bf16.mxu1 %v9422_v20  ;;  %v8738_v20 = vpack.c.bf16 %v4653_v62, %v4649_v24  ;;  %v9442_v31 = vpack.c.bf16 %v4655_v28, %v4651_v44  ;;  %v4684_v24 = vld [vmem:[%s17801_s8 + $0x2820] sm:$0xff]  ;;  %v4682_v62 = vld [vmem:[%s17801_s8 + $0x2810] sm:$0xff] }
 0x68c   :  { %v4686_v28 = vld [vmem:[%s17801_s8 + $0x2830] sm:$0xff] }
 0x68d   :  { %8721 = vmatpush1.bf16.msra.mxu0 %v8720_v35  ;;  %v4657_v35 = vld [vmem:[%s17801_s8 + $0x2748] sm:$0xff]  ;;  %v9460_v32 = vpack.c.bf16 %v4686_v28, %v4682_v62  ;;  %v4720_v28 = vld [vmem:[%s17801_s8 + $0x2940] sm:$0xff] }
 0x68e   :  { %9425 = vmatpush1.bf16.msra.mxu1 %v9424_v36  ;;  %8723 = vmatprep.subr.bf16.mxu0 %v8722_v13  ;;  %v4661_v36 = vld [vmem:[%s17801_s8 + $0x2768] sm:$0xff]  ;;  %v4659_v13 = vld [vmem:[%s17801_s8 + $0x2758] sm:$0xff] }
 0x68f   :  { %9427 = vmatprep.subr.bf16.mxu1 %v9426_v45  ;;  %v8742_v45 = vpack.c.bf16 %v4661_v36, %v4657_v35  ;;  %v9446_v0 = vpack.c.bf16 %v4663_v39, %v4659_v13  ;;  %v4690_v36 = vld [vmem:[%s17801_s8 + $0x2850] sm:$0xff]  ;;  %v9462_v13 = vpack.c.bf16 %v4695_v8, %v4691_v15  ;;  %v4729_v15 = vld [vmem:[%s17801_s8 + $0x2988] sm:$0xff] }
 0x690   :  { %v4694_v39 = vld [vmem:[%s17801_s8 + $0x2870] sm:$0xff]  ;;  %v4733_v8 = vld [vmem:[%s17801_s8 + $0x29a8] sm:$0xff] }
 0x691   :  { %8725 = vmatpush1.bf16.msra.mxu0 %v8724_v21  ;;  %v4665_v21 = vld [vmem:[%s17801_s8 + $0x2788] sm:$0xff] }
 0x692   :  { %9429 = vmatpush1.bf16.msra.mxu1 %v9428_v48  ;;  %8727 = vmatprep.subr.bf16.mxu0 %v8726_v25  ;;  %v4669_v48 = vld [vmem:[%s17801_s8 + $0x27a8] sm:$0xff]  ;;  %v4667_v25 = vld [vmem:[%s17801_s8 + $0x2798] sm:$0xff] }
 0x693   :  { %9431 = vmatprep.subr.bf16.mxu1 %v9430_v23  ;;  %v8746_v23 = vpack.c.bf16 %v4669_v48, %v4665_v21  ;;  %v9450_v9 = vpack.c.bf16 %v4671_v49, %v4667_v25  ;;  %v4700_v21 = vld [vmem:[%s17801_s8 + $0x28a0] sm:$0xff]  ;;  %v4698_v48 = vld [vmem:[%s17801_s8 + $0x2890] sm:$0xff]  ;;  %v9466_v25 = vpack.c.bf16 %v4703_v26, %v4699_v29  ;;  %v4741_v29 = vld [vmem:[%s17801_s8 + $0x29e8] sm:$0xff] }
 0x694   :  { %v4702_v49 = vld [vmem:[%s17801_s8 + $0x28b0] sm:$0xff]  ;;  %v4739_v26 = vld [vmem:[%s17801_s8 + $0x29d8] sm:$0xff] }
 0x695   :  { %8729 = vmatpush1.bf16.msra.mxu0 %v8728_v58  ;;  %v4673_v58 = vld [vmem:[%s17801_s8 + $0x27c8] sm:$0xff]  ;;  %v9468_v55 = vpack.c.bf16 %v4702_v49, %v4698_v48  ;;  %v4740_v48 = vld [vmem:[%s17801_s8 + $0x29e0] sm:$0xff] }
 0x696   :  { %9433 = vmatpush1.bf16.msra.mxu1 %v9432_v60  ;;  %8731 = vmatprep.subr.bf16.mxu0 %v8730_v30  ;;  %v4677_v60 = vld [vmem:[%s17801_s8 + $0x27e8] sm:$0xff]  ;;  %v4675_v30 = vld [vmem:[%s17801_s8 + $0x27d8] sm:$0xff] }
 0x697   :  { %9435 = vmatprep.subr.bf16.mxu1 %v9434_v4  ;;  %v8750_v4 = vpack.c.bf16 %v4677_v60, %v4673_v58  ;;  %v9454_v19 = vpack.c.bf16 %v4679_v61, %v4675_v30  ;;  %v4708_v58 = vld [vmem:[%s17801_s8 + $0x28e0] sm:$0xff]  ;;  %v4706_v60 = vld [vmem:[%s17801_s8 + $0x28d0] sm:$0xff] }
 0x698   :  { %v4710_v61 = vld [vmem:[%s17801_s8 + $0x28f0] sm:$0xff]  ;;  %v8768_v6 = vpack.c.bf16 %v4708_v58, %v4704_v57  ;;  %v4744_v58 = vld [vmem:[%s17801_s8 + $0x2a00] sm:$0xff] }
 0x699   :  { %8733 = vmatpush1.bf16.msra.mxu0 %v8732_v40  ;;  %v4681_v40 = vld [vmem:[%s17801_s8 + $0x2808] sm:$0xff]  ;;  %v9472_v33 = vpack.c.bf16 %v4710_v61, %v4706_v60  ;;  %v4748_v60 = vld [vmem:[%s17801_s8 + $0x2a20] sm:$0xff] }
 0x69a   :  { %9437 = vmatpush1.bf16.msra.mxu1 %v9436_v11  ;;  %8735 = vmatprep.subr.bf16.mxu0 %v8734_v14  ;;  %v4685_v11 = vld [vmem:[%s17801_s8 + $0x2828] sm:$0xff]  ;;  %v4683_v14 = vld [vmem:[%s17801_s8 + $0x2818] sm:$0xff] }
 0x69b   :  { %9439 = vmatprep.subr.bf16.mxu1 %v9438_v63  ;;  %v8754_v63 = vpack.c.bf16 %v4685_v11, %v4681_v40  ;;  %v9458_v44 = vpack.c.bf16 %v4687_v7, %v4683_v14  ;;  %v4716_v40 = vld [vmem:[%s17801_s8 + $0x2920] sm:$0xff]  ;;  %v4714_v11 = vld [vmem:[%s17801_s8 + $0x2910] sm:$0xff] }
 0x69c   :  { %v4718_v7 = vld [vmem:[%s17801_s8 + $0x2930] sm:$0xff] }
 0x69d   :  { %8737 = vmatpush1.bf16.msra.mxu0 %v8736_v5  ;;  %v4689_v5 = vld [vmem:[%s17801_s8 + $0x2848] sm:$0xff]  ;;  %v9476_v62 = vpack.c.bf16 %v4718_v7, %v4714_v11  ;;  %v4756_v11 = vld [vmem:[%s17801_s8 + $0x2a60] sm:$0xff] }
 0x69e   :  { %9441 = vmatpush1.bf16.msra.mxu1 %v9440_v27  ;;  %8739 = vmatprep.subr.bf16.mxu0 %v8738_v20  ;;  %v4693_v27 = vld [vmem:[%s17801_s8 + $0x2868] sm:$0xff]  ;;  %v3373_v20 = vcombine.high %v16832_v1, %v16832_v1  ;;  %v4688_v1 = vld [vmem:[%s17801_s8 + $0x2840] sm:$0xff] }
 0x69f   :  { %9443 = vmatprep.subr.bf16.mxu1 %v9442_v31  ;;  %v8756_v31 = vpack.c.bf16 %v4684_v24, %v4680_v22  ;;  %v8758_v35 = vpack.c.bf16 %v4693_v27, %v4689_v5  ;;  %v8760_v10 = vpack.c.bf16 %v4692_v18, %v4688_v1  ;;  %v4727_v22 = vld [vmem:[%s17801_s8 + $0x2978] sm:$0xff]  ;;  %v8772_v24 = vpack.c.bf16 %v4716_v40, %v4712_v50  ;;  %v4724_v5 = vld [vmem:[%s17801_s8 + $0x2960] sm:$0xff]  ;;  %v4722_v27 = vld [vmem:[%s17801_s8 + $0x2950] sm:$0xff] }
 0x6a0   :  { %v8778_v18 = vpack.c.bf16 %v4733_v8, %v4729_v15  ;;  %v4752_v40 = vld [vmem:[%s17801_s8 + $0x2a40] sm:$0xff]  ;;  %v4766_v15 = vld [vmem:[%s17801_s8 + $0x2ab0] sm:$0xff]  ;;  %v4769_v8 = vld [vmem:[%s17801_s8 + $0x2ac8] sm:$0xff] }
 0x6a1   :  { %8741 = vmatpush1.bf16.msra.mxu0 %v8740_v43  ;;  %v4697_v43 = vld [vmem:[%s17801_s8 + $0x2888] sm:$0xff] }
 0x6a2   :  { %9445 = vmatpush1.bf16.msra.mxu1 %v9444_v54  ;;  %8743 = vmatprep.subr.bf16.mxu0 %v8742_v45  ;;  %v4701_v54 = vld [vmem:[%s17801_s8 + $0x28a8] sm:$0xff]  ;;  %v3387_v45 = vrot.slane %v3373_v20, %v10097_v12  ;;  %v4696_v12 = vld [vmem:[%s17801_s8 + $0x2880] sm:$0xff] }
 0x6a3   :  { %9447 = vmatprep.subr.bf16.mxu1 %v9446_v0  ;;  %v9464_v0 = vpack.c.bf16 %v4694_v39, %v4690_v36  ;;  %v8762_v47 = vpack.c.bf16 %v4701_v54, %v4697_v43  ;;  %v8764_v59 = vpack.c.bf16 %v4700_v21, %v4696_v12  ;;  %v4728_v36 = vld [vmem:[%s17801_s8 + $0x2980] sm:$0xff]  ;;  %v4730_v39 = vld [vmem:[%s17801_s8 + $0x2990] sm:$0xff] }
 0x6a4   :  { %v4734_v54 = vld [vmem:[%s17801_s8 + $0x29b0] sm:$0xff]  ;;  %v4736_v21 = vld [vmem:[%s17801_s8 + $0x29c0] sm:$0xff] }
 0x6a5   :  { %8745 = vmatpush1.bf16.msra.mxu0 %v8744_v56  ;;  %v4705_v56 = vld [vmem:[%s17801_s8 + $0x28c8] sm:$0xff] }
 0x6a6   :  { %9449 = vmatpush1.bf16.msra.mxu1 %v9448_v51  ;;  %8747 = vmatprep.subr.bf16.mxu0 %v8746_v23  ;;  %v4709_v51 = vld [vmem:[%s17801_s8 + $0x28e8] sm:$0xff]  ;;  %v4707_v23 = vld [vmem:[%s17801_s8 + $0x28d8] sm:$0xff] }
 0x6a7   :  { %9451 = vmatprep.subr.bf16.mxu1 %v9450_v9  ;;  %v8766_v9 = vpack.c.bf16 %v4709_v51, %v4705_v56  ;;  %v9470_v30 = vpack.c.bf16 %v4711_v52, %v4707_v23  ;;  %v4742_v56 = vld [vmem:[%s17801_s8 + $0x29f0] sm:$0xff]  ;;  %v4745_v51 = vld [vmem:[%s17801_s8 + $0x2a08] sm:$0xff]  ;;  %v4747_v52 = vld [vmem:[%s17801_s8 + $0x2a18] sm:$0xff] }
 0x6a8   :  { %v4749_v23 = vld [vmem:[%s17801_s8 + $0x2a28] sm:$0xff] }
 0x6a9   :  { %8749 = vmatpush1.bf16.msra.mxu0 %v8748_v2  ;;  %v4713_v2 = vld [vmem:[%s17801_s8 + $0x2908] sm:$0xff]  ;;  %v8786_v57 = vpack.c.bf16 %v4749_v23, %v4745_v51  ;;  %v4782_v51 = vld [vmem:[%s17801_s8 + $0x2b30] sm:$0xff] }
 0x6aa   :  { %9453 = vmatpush1.bf16.msra.mxu1 %v9452_v3  ;;  %8751 = vmatprep.subr.bf16.mxu0 %v8750_v4  ;;  %v4717_v3 = vld [vmem:[%s17801_s8 + $0x2928] sm:$0xff]  ;;  %v4715_v4 = vld [vmem:[%s17801_s8 + $0x2918] sm:$0xff] }
 0x6ab   :  { %9455 = vmatprep.subr.bf16.mxu1 %v9454_v19  ;;  %v8770_v19 = vpack.c.bf16 %v4717_v3, %v4713_v2  ;;  %v9474_v14 = vpack.c.bf16 %v4719_v41, %v4715_v4  ;;  %v4750_v2 = vld [vmem:[%s17801_s8 + $0x2a30] sm:$0xff]  ;;  %v4753_v3 = vld [vmem:[%s17801_s8 + $0x2a48] sm:$0xff]  ;;  %v4755_v41 = vld [vmem:[%s17801_s8 + $0x2a58] sm:$0xff] }
 0x6ac   :  { %v4757_v4 = vld [vmem:[%s17801_s8 + $0x2a68] sm:$0xff] }
 0x6ad   :  { %8753 = vmatpush1.bf16.msra.mxu0 %v8752_v16  ;;  %v4721_v16 = vld [vmem:[%s17801_s8 + $0x2948] sm:$0xff]  ;;  %v8790_v50 = vpack.c.bf16 %v4757_v4, %v4753_v3  ;;  %v4790_v3 = vld [vmem:[%s17801_s8 + $0x2b70] sm:$0xff] }
 0x6ae   :  { %9457 = vmatpush1.bf16.msra.mxu1 %v9456_v37  ;;  %8755 = vmatprep.subr.bf16.mxu0 %v8754_v63  ;;  %v4725_v37 = vld [vmem:[%s17801_s8 + $0x2968] sm:$0xff]  ;;  %v4723_v63 = vld [vmem:[%s17801_s8 + $0x2958] sm:$0xff] }
 0x6af   :  { %9459 = vmatprep.subr.bf16.mxu1 %v9458_v44  ;;  %v8774_v44 = vpack.c.bf16 %v4725_v37, %v4721_v16  ;;  %v9478_v20 = vpack.c.bf16 %v4727_v22, %v4723_v63  ;;  %v4758_v16 = vld [vmem:[%s17801_s8 + $0x2a70] sm:$0xff]  ;;  %v4761_v37 = vld [vmem:[%s17801_s8 + $0x2a88] sm:$0xff]  ;;  %v4763_v22 = vld [vmem:[%s17801_s8 + $0x2a98] sm:$0xff] }
 0x6b0   :  { %5534 = vmatmul.mubr.f32.vlgmr.msra.gmra.mrb[16].mxu0 %v3372_v38  ;;  %v4765_v63 = vld [vmem:[%s17801_s8 + $0x2aa8] sm:$0xff] }
 0x6b1   :  { %8757 = vmatpush1.bf16.msra.mxu0 %v8756_v31  ;;  %6315 = vmatmul.mubr.f32.vlgmr.msra.gmra.mrb[16].mxu1 %v3372_v38  ;;  %v4726_v38 = vld [vmem:[%s17801_s8 + $0x2970] sm:$0xff]  ;;  %v4731_v31 = vld [vmem:[%s17801_s8 + $0x2998] sm:$0xff]  ;;  %v4785_v23 = vld [vmem:[%s17801_s8 + $0x2b48] sm:$0xff] }
 0x6b2   :  { %9461 = vmatpush1.bf16.msra.mxu1 %v9460_v32  ;;  %8759 = vmatprep.subr.bf16.mxu0 %v8758_v35  ;;  %v4735_v32 = vld [vmem:[%s17801_s8 + $0x29b8] sm:$0xff]  ;;  %v8776_v35 = vpack.c.bf16 %v4724_v5, %v4720_v28  ;;  %v9480_v1 = vpack.c.bf16 %v4726_v38, %v4722_v27  ;;  %v8794_v28 = vpack.c.bf16 %v4765_v63, %v4761_v37  ;;  %v4760_v5 = vld [vmem:[%s17801_s8 + $0x2a80] sm:$0xff]  ;;  %v4793_v4 = vld [vmem:[%s17801_s8 + $0x2b88] sm:$0xff] }
 0x6b3   :  { %9463 = vmatprep.subr.bf16.mxu1 %v9462_v13  ;;  %5604 = vmatprep.mubr.f32.mxu0 %v3387_v45  ;;  %v4732_v13 = vld [vmem:[%s17801_s8 + $0x29a0] sm:$0xff]  ;;  %v9482_v43 = vpack.c.bf16 %v4735_v32, %v4731_v31  ;;  %v4773_v31 = vld [vmem:[%s17801_s8 + $0x2ae8] sm:$0xff]  ;;  %v4771_v32 = vld [vmem:[%s17801_s8 + $0x2ad8] sm:$0xff] }
 0x6b4   :  { %6385 = vmatprep.mubr.f32.mxu1 %v3387_v45  ;;  %v4737_v45 = vld [vmem:[%s17801_s8 + $0x29c8] sm:$0xff]  ;;  %v4764_v27 = vld [vmem:[%s17801_s8 + $0x2aa0] sm:$0xff]  ;;  %v4798_v37 = vld [vmem:[%s17801_s8 + $0x2bb0] sm:$0xff] }
 0x6b5   :  { %8761 = vmatpush1.bf16.msra.mxu0 %v8760_v10  ;;  %v4743_v10 = vld [vmem:[%s17801_s8 + $0x29f8] sm:$0xff]  ;;  %v8782_v12 = vpack.c.bf16 %v4741_v29, %v4737_v45  ;;  %v4774_v45 = vld [vmem:[%s17801_s8 + $0x2af0] sm:$0xff]  ;;  %v4777_v29 = vld [vmem:[%s17801_s8 + $0x2b08] sm:$0xff] }
 0x6b6   :  { %9465 = vmatpush1.bf16.msra.mxu1 %v9464_v0  ;;  %8763 = vmatprep.subr.bf16.mxu0 %v8762_v47  ;;  %v8780_v0 = vpack.c.bf16 %v4732_v13, %v4728_v36  ;;  %v9484_v47 = vpack.c.bf16 %v4734_v54, %v4730_v39  ;;  %v9486_v49 = vpack.c.bf16 %v4743_v10, %v4739_v26  ;;  %v4768_v13 = vld [vmem:[%s17801_s8 + $0x2ac0] sm:$0xff]  ;;  %v4781_v26 = vld [vmem:[%s17801_s8 + $0x2b28] sm:$0xff]  ;;  %v4779_v10 = vld [vmem:[%s17801_s8 + $0x2b18] sm:$0xff] }
 0x6b7   :  { %9467 = vmatprep.subr.bf16.mxu1 %v9466_v25  ;;  %v4738_v25 = vld [vmem:[%s17801_s8 + $0x29d0] sm:$0xff]  ;;  %v8798_v36 = vpack.c.bf16 %v4773_v31, %v4769_v8  ;;  %v4772_v39 = vld [vmem:[%s17801_s8 + $0x2ae0] sm:$0xff]  ;;  %v4801_v63 = vld [vmem:[%s17801_s8 + $0x2bc8] sm:$0xff] }
 0x6b8   :  { %v4806_v8 = vld [vmem:[%s17801_s8 + $0x2bf0] sm:$0xff]  ;;  %v6412_v31 = vld [vmem:[%s17803_s10 + $0x80] sm:$0xff] }
 0x6b9   :  { %8765 = vmatpush1.bf16.msra.mxu0 %v8764_v59  ;;  %v4751_v59 = vld [vmem:[%s17801_s8 + $0x2a38] sm:$0xff] }
 0x6ba   :  { %9469 = vmatpush1.bf16.msra.mxu1 %v9468_v55  ;;  %8767 = vmatprep.subr.bf16.mxu0 %v8766_v9  ;;  %v8784_v55 = vpack.c.bf16 %v4740_v48, %v4736_v21  ;;  %v9488_v9 = vpack.c.bf16 %v4742_v56, %v4738_v25  ;;  %v9490_v61 = vpack.c.bf16 %v4751_v59, %v4747_v52  ;;  %v4776_v48 = vld [vmem:[%s17801_s8 + $0x2b00] sm:$0xff]  ;;  %v4789_v52 = vld [vmem:[%s17801_s8 + $0x2b68] sm:$0xff]  ;;  %v4787_v59 = vld [vmem:[%s17801_s8 + $0x2b58] sm:$0xff] }
 0x6bb   :  { %9471 = vmatprep.subr.bf16.mxu1 %v9470_v30  ;;  %v4746_v30 = vld [vmem:[%s17801_s8 + $0x2a10] sm:$0xff]  ;;  %v8802_v21 = vpack.c.bf16 %v4781_v26, %v4777_v29  ;;  %v4780_v25 = vld [vmem:[%s17801_s8 + $0x2b20] sm:$0xff]  ;;  %v6429_v29 = vld [vmem:[%s17803_s10 + $0x108] sm:$0xff] }
 0x6bc   :  { %v6414_v26 = vld [vmem:[%s17803_s10 + $0x90] sm:$0xff] }
 0x6bd   :  { %8769 = vmatpush1.bf16.msra.mxu0 %v8768_v6  ;;  %v4759_v6 = vld [vmem:[%s17801_s8 + $0x2a78] sm:$0xff] }
 0x6be   :  { %9473 = vmatpush1.bf16.msra.mxu1 %v9472_v33  ;;  %8771 = vmatprep.subr.bf16.mxu0 %v8770_v19  ;;  %v8788_v33 = vpack.c.bf16 %v4748_v60, %v4744_v58  ;;  %v9492_v19 = vpack.c.bf16 %v4750_v2, %v4746_v30  ;;  %v9494_v7 = vpack.c.bf16 %v4759_v6, %v4755_v41  ;;  %v4784_v60 = vld [vmem:[%s17801_s8 + $0x2b40] sm:$0xff]  ;;  %v4797_v41 = vld [vmem:[%s17801_s8 + $0x2ba8] sm:$0xff]  ;;  %v4795_v6 = vld [vmem:[%s17801_s8 + $0x2b98] sm:$0xff] }
 0x6bf   :  { %9475 = vmatprep.subr.bf16.mxu1 %v9474_v14  ;;  %v4754_v14 = vld [vmem:[%s17801_s8 + $0x2a50] sm:$0xff]  ;;  %v8806_v58 = vpack.c.bf16 %v4789_v52, %v4785_v23  ;;  %v4788_v30 = vld [vmem:[%s17801_s8 + $0x2b60] sm:$0xff]  ;;  %v6431_v23 = vld [vmem:[%s17803_s10 + $0x118] sm:$0xff] }
 0x6c0   :  { %v6416_v52 = vld [vmem:[%s17803_s10 + $0xa0] sm:$0xff] }
 0x6c1   :  { %8773 = vmatpush1.bf16.msra.mxu0 %v8772_v24  ;;  %v4767_v24 = vld [vmem:[%s17801_s8 + $0x2ab8] sm:$0xff] }
 0x6c2   :  { %9477 = vmatpush1.bf16.msra.mxu1 %v9476_v62  ;;  %8775 = vmatprep.subr.bf16.mxu0 %v8774_v44  ;;  %v8792_v62 = vpack.c.bf16 %v4756_v11, %v4752_v40  ;;  %v9496_v44 = vpack.c.bf16 %v4758_v16, %v4754_v14  ;;  %v9498_v38 = vpack.c.bf16 %v4767_v24, %v4763_v22  ;;  %v4792_v11 = vld [vmem:[%s17801_s8 + $0x2b80] sm:$0xff]  ;;  %v4805_v22 = vld [vmem:[%s17801_s8 + $0x2be8] sm:$0xff]  ;;  %v4803_v24 = vld [vmem:[%s17801_s8 + $0x2bd8] sm:$0xff] }
 0x6c3   :  { %9479 = vmatprep.subr.bf16.mxu1 %v9478_v20  ;;  %v4762_v20 = vld [vmem:[%s17801_s8 + $0x2a90] sm:$0xff]  ;;  %v8810_v40 = vpack.c.bf16 %v4797_v41, %v4793_v4  ;;  %v4796_v14 = vld [vmem:[%s17801_s8 + $0x2ba0] sm:$0xff]  ;;  %v6433_v4 = vld [vmem:[%s17803_s10 + $0x128] sm:$0xff] }
 0x6c4   :  { %v6418_v41 = vld [vmem:[%s17803_s10 + $0xb0] sm:$0xff] }
 0x6c5   :  { %8777 = vmatpush1.bf16.msra.mxu0 %v8776_v35  ;;  %v4775_v35 = vld [vmem:[%s17801_s8 + $0x2af8] sm:$0xff] }
 0x6c6   :  { %9481 = vmatpush1.bf16.msra.mxu1 %v9480_v1  ;;  %8779 = vmatprep.subr.bf16.mxu0 %v8778_v18  ;;  %v8796_v1 = vpack.c.bf16 %v4764_v27, %v4760_v5  ;;  %v9500_v18 = vpack.c.bf16 %v4766_v15, %v4762_v20  ;;  %v9502_v54 = vpack.c.bf16 %v4775_v35, %v4771_v32  ;;  %v4800_v27 = vld [vmem:[%s17801_s8 + $0x2bc0] sm:$0xff]  ;;  %v6413_v32 = vld [vmem:[%s17803_s10 + $0x88] sm:$0xff] }
 0x6c7   :  { %9483 = vmatprep.subr.bf16.mxu1 %v9482_v43  ;;  %v4770_v43 = vld [vmem:[%s17801_s8 + $0x2ad0] sm:$0xff]  ;;  %v8814_v5 = vpack.c.bf16 %v4805_v22, %v4801_v63  ;;  %v4804_v20 = vld [vmem:[%s17801_s8 + $0x2be0] sm:$0xff]  ;;  %v6435_v63 = vld [vmem:[%s17803_s10 + $0x138] sm:$0xff] }
 0x6c8   :  { %v6444_v35 = vld [vmem:[%s17803_s10 + $0x180] sm:$0xff] }
 0x6c9   :  { %8781 = vmatpush1.bf16.msra.mxu0 %v8780_v0  ;;  %v4783_v0 = vld [vmem:[%s17801_s8 + $0x2b38] sm:$0xff]  ;;  %v6420_v22 = vld [vmem:[%s17803_s10 + $0xc0] sm:$0xff] }
 0x6ca   :  { %9485 = vmatpush1.bf16.msra.mxu1 %v9484_v47  ;;  %8783 = vmatprep.subr.bf16.mxu0 %v8782_v12  ;;  %v8800_v47 = vpack.c.bf16 %v4772_v39, %v4768_v13  ;;  %v9504_v12 = vpack.c.bf16 %v4774_v45, %v4770_v43  ;;  %v9506_v56 = vpack.c.bf16 %v4783_v0, %v4779_v10  ;;  %v6396_v39 = vld [vmem:[%s17803_s10] sm:$0xff]  ;;  %v6397_v43 = vld [vmem:[%s17803_s10 + $0x8] sm:$0xff]  ;;  %v6415_v10 = vld [vmem:[%s17803_s10 + $0x98] sm:$0xff] }
 0x6cb   :  { %9487 = vmatprep.subr.bf16.mxu1 %v9486_v49  ;;  %v4778_v49 = vld [vmem:[%s17801_s8 + $0x2b10] sm:$0xff]  ;;  %v9522_v13 = vpack.c.bf16 %v6413_v32, %v6412_v31  ;;  %v3388_v0 = vcombine.high %v16854_v34, %v16854_v34  ;;  %v6399_v34 = vld [vmem:[%s17803_s10 + $0x18] sm:$0xff]  ;;  %v6437_v31 = vld [vmem:[%s17803_s10 + $0x148] sm:$0xff] }
 0x6cc   :  { %v6422_v32 = vld [vmem:[%s17803_s10 + $0xd0] sm:$0xff] }
 0x6cd   :  { %8785 = vmatpush1.bf16.msra.mxu0 %v8784_v55  ;;  %v4791_v55 = vld [vmem:[%s17801_s8 + $0x2b78] sm:$0xff] }
 0x6ce   :  { %9489 = vmatpush1.bf16.msra.mxu1 %v9488_v9  ;;  %8787 = vmatprep.subr.bf16.mxu0 %v8786_v57  ;;  %v8804_v9 = vpack.c.bf16 %v4780_v25, %v4776_v48  ;;  %v9508_v57 = vpack.c.bf16 %v4782_v51, %v4778_v49  ;;  %v9510_v2 = vpack.c.bf16 %v4791_v55, %v4787_v59  ;;  %v6398_v49 = vld [vmem:[%s17803_s10 + $0x10] sm:$0xff]  ;;  %v6417_v59 = vld [vmem:[%s17803_s10 + $0xa8] sm:$0xff]  ;;  %v6448_v55 = vld [vmem:[%s17803_s10 + $0x1a0] sm:$0xff] }
 0x6cf   :  { %9491 = vmatprep.subr.bf16.mxu1 %v9490_v61  ;;  %v4786_v61 = vld [vmem:[%s17801_s8 + $0x2b50] sm:$0xff]  ;;  %v9526_v25 = vpack.c.bf16 %v6415_v10, %v6414_v26  ;;  %v6439_v26 = vld [vmem:[%s17803_s10 + $0x158] sm:$0xff]  ;;  %v6424_v10 = vld [vmem:[%s17803_s10 + $0xe0] sm:$0xff] }
 0x6d1   :  { %8789 = vmatpush1.bf16.msra.mxu0 %v8788_v33  ;;  %v4799_v33 = vld [vmem:[%s17801_s8 + $0x2bb8] sm:$0xff] }
 0x6d2   :  { %9493 = vmatpush1.bf16.msra.mxu1 %v9492_v19  ;;  %8791 = vmatprep.subr.bf16.mxu0 %v8790_v50  ;;  %v8808_v19 = vpack.c.bf16 %v4788_v30, %v4784_v60  ;;  %v9512_v50 = vpack.c.bf16 %v4790_v3, %v4786_v61  ;;  %v9514_v16 = vpack.c.bf16 %v4799_v33, %v4795_v6  ;;  %v6400_v30 = vld [vmem:[%s17803_s10 + $0x20] sm:$0xff]  ;;  %v6401_v61 = vld [vmem:[%s17803_s10 + $0x28] sm:$0xff]  ;;  %v6419_v6 = vld [vmem:[%s17803_s10 + $0xb8] sm:$0xff] }
 0x6d3   :  { %9495 = vmatprep.subr.bf16.mxu1 %v9494_v7  ;;  %v4794_v7 = vld [vmem:[%s17801_s8 + $0x2b90] sm:$0xff]  ;;  %v9530_v60 = vpack.c.bf16 %v6417_v59, %v6416_v52  ;;  %v6441_v52 = vld [vmem:[%s17803_s10 + $0x168] sm:$0xff] }
 0x6d4   :  { %v6450_v33 = vld [vmem:[%s17803_s10 + $0x1b0] sm:$0xff] }
 0x6d5   :  { %8793 = vmatpush1.bf16.msra.mxu0 %v8792_v62  ;;  %v4807_v62 = vld [vmem:[%s17801_s8 + $0x2bf8] sm:$0xff] }
 0x6d6   :  { %9497 = vmatpush1.bf16.msra.mxu1 %v9496_v44  ;;  %8795 = vmatprep.subr.bf16.mxu0 %v8794_v28  ;;  %v8812_v44 = vpack.c.bf16 %v4796_v14, %v4792_v11  ;;  %v9516_v28 = vpack.c.bf16 %v4798_v37, %v4794_v7  ;;  %v9518_v15 = vpack.c.bf16 %v4807_v62, %v4803_v24  ;;  %v6402_v14 = vld [vmem:[%s17803_s10 + $0x30] sm:$0xff]  ;;  %v6403_v7 = vld [vmem:[%s17803_s10 + $0x38] sm:$0xff]  ;;  %v6421_v24 = vld [vmem:[%s17803_s10 + $0xc8] sm:$0xff] }
 0x6d7   :  { %9499 = vmatprep.subr.bf16.mxu1 %v9498_v38  ;;  %v4802_v38 = vld [vmem:[%s17801_s8 + $0x2bd0] sm:$0xff]  ;;  %v9534_v11 = vpack.c.bf16 %v6419_v6, %v6418_v41  ;;  %v6452_v62 = vld [vmem:[%s17803_s10 + $0x1c0] sm:$0xff]  ;;  %v6443_v41 = vld [vmem:[%s17803_s10 + $0x178] sm:$0xff] }
 0x6d9   :  { %8797 = vmatpush1.bf16.msra.mxu0 %v8796_v1  ;;  %v6445_v1 = vld [vmem:[%s17803_s10 + $0x188] sm:$0xff] }
 0x6da   :  { %9501 = vmatpush1.bf16.msra.mxu1 %v9500_v18  ;;  %8799 = vmatprep.subr.bf16.mxu0 %v8798_v36  ;;  %v8816_v18 = vpack.c.bf16 %v4804_v20, %v4800_v27  ;;  %v9520_v36 = vpack.c.bf16 %v4806_v8, %v4802_v38  ;;  %v9554_v45 = vpack.c.bf16 %v6445_v1, %v6444_v35  ;;  %v6404_v20 = vld [vmem:[%s17803_s10 + $0x40] sm:$0xff]  ;;  %v6405_v38 = vld [vmem:[%s17803_s10 + $0x48] sm:$0xff]  ;;  %v6423_v35 = vld [vmem:[%s17803_s10 + $0xd8] sm:$0xff] }
 0x6db   :  { %9503 = vmatprep.subr.bf16.mxu1 %v9502_v54  ;;  %v6428_v54 = vld [vmem:[%s17803_s10 + $0x100] sm:$0xff]  ;;  %v9538_v27 = vpack.c.bf16 %v6421_v24, %v6420_v22  ;;  %v6454_v1 = vld [vmem:[%s17803_s10 + $0x1d0] sm:$0xff] }
 0x6dc   :  { %v9556_v48 = vpack.c.bf16 %v6429_v29, %v6428_v54  ;;  %v6407_v54 = vld [vmem:[%s17803_s10 + $0x58] sm:$0xff] }
 0x6dd   :  { %8801 = vmatpush1.bf16.msra.mxu0 %v8800_v47  ;;  %v6446_v47 = vld [vmem:[%s17803_s10 + $0x190] sm:$0xff] }
 0x6de   :  { %9505 = vmatpush1.bf16.msra.mxu1 %v9504_v12  ;;  %8803 = vmatprep.subr.bf16.mxu0 %v8802_v21  ;;  %v6447_v12 = vld [vmem:[%s17803_s10 + $0x198] sm:$0xff]  ;;  %v9524_v21 = vpack.c.bf16 %v6397_v43, %v6396_v39  ;;  %v9542_v39 = vpack.c.bf16 %v6423_v35, %v6422_v32  ;;  %v6406_v43 = vld [vmem:[%s17803_s10 + $0x50] sm:$0xff] }
 0x6df   :  { %9507 = vmatprep.subr.bf16.mxu1 %v9506_v56  ;;  %v6430_v56 = vld [vmem:[%s17803_s10 + $0x110] sm:$0xff]  ;;  %v9558_v51 = vpack.c.bf16 %v6447_v12, %v6446_v47  ;;  %v6456_v47 = vld [vmem:[%s17803_s10 + $0x1e0] sm:$0xff]  ;;  %v6457_v12 = vld [vmem:[%s17803_s10 + $0x1e8] sm:$0xff] }
 0x6e1   :  { %8805 = vmatpush1.bf16.msra.mxu0 %v8804_v9  ;;  %v6449_v9 = vld [vmem:[%s17803_s10 + $0x1a8] sm:$0xff] }
 0x6e2   :  { %9509 = vmatpush1.bf16.msra.mxu1 %v9508_v57  ;;  %8807 = vmatprep.subr.bf16.mxu0 %v8806_v58  ;;  %v9528_v57 = vpack.c.bf16 %v6399_v34, %v6398_v49  ;;  %v9560_v58 = vpack.c.bf16 %v6431_v23, %v6430_v56  ;;  %v9562_v3 = vpack.c.bf16 %v6449_v9, %v6448_v55  ;;  %v6408_v34 = vld [vmem:[%s17803_s10 + $0x60] sm:$0xff]  ;;  %v6409_v56 = vld [vmem:[%s17803_s10 + $0x68] sm:$0xff]  ;;  %v6426_v55 = vld [vmem:[%s17803_s10 + $0xf0] sm:$0xff] }
 0x6e3   :  { %9511 = vmatprep.subr.bf16.mxu1 %v9510_v2  ;;  %v6432_v2 = vld [vmem:[%s17803_s10 + $0x120] sm:$0xff]  ;;  %v9578_v49 = vpack.c.bf16 %v6457_v12, %v6456_v47  ;;  %v9548_v23 = vpack.c.bf16 %v6409_v56, %v6408_v34  ;;  %v6427_v9 = vld [vmem:[%s17803_s10 + $0xf8] sm:$0xff] }
 0x6e5   :  { %8809 = vmatpush1.bf16.msra.mxu0 %v8808_v19  ;;  %v6451_v19 = vld [vmem:[%s17803_s10 + $0x1b8] sm:$0xff] }
 0x6e6   :  { %9513 = vmatpush1.bf16.msra.mxu1 %v9512_v50  ;;  %8811 = vmatprep.subr.bf16.mxu0 %v8810_v40  ;;  %v9532_v50 = vpack.c.bf16 %v6401_v61, %v6400_v30  ;;  %v9564_v40 = vpack.c.bf16 %v6433_v4, %v6432_v2  ;;  %v9566_v37 = vpack.c.bf16 %v6451_v19, %v6450_v33  ;;  %v6410_v30 = vld [vmem:[%s17803_s10 + $0x70] sm:$0xff]  ;;  %v6411_v61 = vld [vmem:[%s17803_s10 + $0x78] sm:$0xff]  ;;  %v4808_v33 = vld [vmem:[%s17802_s9] sm:$0xf] }
 0x6e7   :  { %9515 = vmatprep.subr.bf16.mxu1 %v9514_v16  ;;  %v6434_v16 = vld [vmem:[%s17803_s10 + $0x130] sm:$0xff]  ;;  %v4813_v19 = vrot.slane %v4808_v33, %v13146_v53 }
 0x6e8   :  { %v6442_v4 = vld [vmem:[%s17803_s10 + $0x170] sm:$0xff] }
 0x6e9   :  { %8813 = vmatpush1.bf16.msra.mxu0 %v8812_v44  ;;  %v6453_v44 = vld [vmem:[%s17803_s10 + $0x1c8] sm:$0xff]  ;;  %v9584_v6 = vpack.c.bf16 %v6443_v41, %v6442_v4 }
 0x6ea   :  { %9517 = vmatpush1.bf16.msra.mxu1 %v9516_v28  ;;  %8815 = vmatprep.subr.bf16.mxu0 %v8814_v5  ;;  %v9536_v28 = vpack.c.bf16 %v6403_v7, %v6402_v14  ;;  %v9568_v5 = vpack.c.bf16 %v6435_v63, %v6434_v16  ;;  %v9570_v8 = vpack.c.bf16 %v6453_v44, %v6452_v62 }
 0x6eb   :  { %9519 = vmatprep.subr.bf16.mxu1 %v9518_v15  ;;  %v6436_v15 = vld [vmem:[%s17803_s10 + $0x140] sm:$0xff] }
 0x6ed   :  { %8817 = vmatpush1.bf16.msra.mxu0 %v8816_v18  ;;  %v6455_v18 = vld [vmem:[%s17803_s10 + $0x1d8] sm:$0xff] }
 0x6ee   :  { %9521 = vmatpush1.bf16.msra.mxu1 %v9520_v36  ;;  %9523 = vmatprep.subr.bf16.mxu0 %v9522_v13  ;;  %v9540_v36 = vpack.c.bf16 %v6405_v38, %v6404_v20  ;;  %v9572_v13 = vpack.c.bf16 %v6437_v31, %v6436_v15  ;;  %v9574_v29 = vpack.c.bf16 %v6455_v18, %v6454_v1 }
 0x6ef   :  { %9555 = vmatprep.subr.bf16.mxu1 %v9554_v45  ;;  %v6438_v45 = vld [vmem:[%s17803_s10 + $0x150] sm:$0xff] }
 0x6f0   :  { %5605 = vmatmul.mubr.f32.vlgmr.msra.gmra.mrb[16].mxu0 %v3388_v0 }
 0x6f1   :  { %6386 = vmatmul.mubr.f32.vlgmr.msra.gmra.mrb[16].mxu1 %v3388_v0  ;;  %9525 = vmatpush3.bf16.msra.mxu0 %v9524_v21  ;;  %v6425_v0 = vld [vmem:[%s17803_s10 + $0xe8] sm:$0xff]  ;;  %v9544_v21 = vpack.c.bf16 %v6407_v54, %v6406_v43 }
 0x6f2   :  { %9557 = vmatpush3.bf16.msra.mxu1 %v9556_v48  ;;  %9527 = vmatprep.subr.bf16.mxu0 %v9526_v25  ;;  %v9576_v48 = vpack.c.bf16 %v6439_v26, %v6438_v45  ;;  %v9546_v25 = vpack.c.bf16 %v6425_v0, %v6424_v10 }
 0x6f3   :  { %9559 = vmatprep.subr.bf16.mxu1 %v9558_v51  ;;  %v6440_v51 = vld [vmem:[%s17803_s10 + $0x160] sm:$0xff] }
 0x6f4   :  { %v9580_v59 = vpack.c.bf16 %v6441_v52, %v6440_v51 }
 0x6f5   :  { %9529 = vmatpush3.bf16.msra.mxu0 %v9528_v57  ;;  %v6458_v57 = vld [vmem:[%s17803_s10 + $0x1f0] sm:$0xff] }
 0x6f6   :  { %9561 = vmatpush3.bf16.msra.mxu1 %v9560_v58  ;;  %9531 = vmatprep.subr.bf16.mxu0 %v9530_v60  ;;  %v9550_v58 = vpack.c.bf16 %v6427_v9, %v6426_v55  ;;  %v6459_v60 = vld [vmem:[%s17803_s10 + $0x1f8] sm:$0xff] }
 0x6f7   :  { %9563 = vmatprep.subr.bf16.mxu1 %v9562_v3  ;;  %v9582_v2 = vpack.c.bf16 %v6459_v60, %v6458_v57  ;;  %v9552_v3 = vpack.c.bf16 %v6411_v61, %v6410_v30 }
 0x6f9   :  { %9533 = vmatpush3.bf16.msra.mxu0 %v9532_v50  ;;  %v4821_v50 = vrot.slane %v4808_v33, %v13158_v17 }
 0x6fa   :  { %9565 = vmatpush3.bf16.msra.mxu1 %v9564_v40  ;;  %9535 = vmatprep.subr.bf16.mxu0 %v9534_v11  ;;  %v4817_v40 = vrot.slane %v4808_v33, %v12953_v42  ;;  %v4825_v11 = vrot.slane %v4808_v33, %v12966_v46  ;;  %v6642_v46 = vld [vmem:[%s17804_s11] ss:$0 sm:$0xff] }
 0x6fb   :  { %9567 = vmatprep.subr.bf16.mxu1 %v9566_v37 }
 0x6fd   :  { %9537 = vmatpush3.bf16.msra.mxu0 %v9536_v28 }
 0x6fe   :  { %9569 = vmatpush3.bf16.msra.mxu1 %v9568_v5  ;;  %9539 = vmatprep.subr.bf16.mxu0 %v9538_v27 }
 0x6ff   :  { %9571 = vmatprep.subr.bf16.mxu1 %v9570_v8 }
 0x701   :  { %9541 = vmatpush3.bf16.msra.mxu0 %v9540_v36 }
 0x702   :  { %9573 = vmatpush3.bf16.msra.mxu1 %v9572_v13  ;;  %9543 = vmatprep.subr.bf16.mxu0 %v9542_v39 }
 0x703   :  { %9575 = vmatprep.subr.bf16.mxu1 %v9574_v29 }
 0x705   :  { %9545 = vmatpush3.bf16.msra.mxu0 %v9544_v21 }
 0x706   :  { %9577 = vmatpush3.bf16.msra.mxu1 %v9576_v48  ;;  %9547 = vmatprep.subr.bf16.mxu0 %v9546_v25 }
 0x707   :  { %9579 = vmatprep.subr.bf16.mxu1 %v9578_v49 }
 0x709   :  { %9549 = vmatpush3.bf16.msra.mxu0 %v9548_v23 }
 0x70a   :  { %9581 = vmatpush3.bf16.msra.mxu1 %v9580_v59  ;;  %9551 = vmatprep.subr.bf16.mxu0 %v9550_v58 }
 0x70b   :  { %9583 = vmatprep.subr.bf16.mxu1 %v9582_v2 }
 0x70d   :  { %9553 = vmatpush3.bf16.msra.mxu0 %v9552_v3 }
 0x70e   :  { %9585 = vmatpush3.bf16.msra.mxu1 %v9584_v6 }
 0x7c3   :  { %v5606_v14 = vpop.f32.mrb[16].mxu0 }
 0x7c4   :  { %v9590_v7 = vadd.f32 %v5606_v14, %v4813_v19  ;;  %v6387_v16 = vpop.f32.mrb[16].mxu1  ;;  %v5608_v37 = vpop.f32.mrb[17].mxu0 }
 0x7c5   :  { %v9592_v63 = vadd.f32 %v6387_v16, %v4821_v50  ;;  %v9591_v22 = vadd.f32 %v5608_v37, %v4817_v40  ;;  %v6389_v24 = vpop.f32.mrb[17].mxu1 }
 0x7c6   :  { %v9593_v62 = vadd.f32 %v6389_v24, %v4825_v11  ;;  %v6392_v28 = vmax.f32 %v9590_v7, 0.0 }
 0x7c7   :  { %v6393_v44 = vmax.f32 %v9591_v22, 0.0  ;;  %v6394_v27 = vmax.f32 %v9592_v63, 0.0 }
 0x7c8   :  { %v6395_v5 = vmax.f32 %v9593_v62, 0.0 }
 0x7c9   :  { %6531 = vmatprep.mubr.f32.mxu0 %v6393_v44 }
 0x7ca   :  { %6601 = vmatprep.mubr.f32.mxu1 %v6395_v5  ;;  %6532 = vmatmul.mubr.f32.vlgmr.msra.gmra.mrb[18].mxu0 %v6392_v28 }
 0x7cb   :  { %6602 = vmatmul.mubr.f32.vlgmr.msra.gmra.mrb[18].mxu1 %v6394_v27 }
 0x89d   :  { %v6949_v53 = vpop.f32.mrb[18].mxu0 }
 0x89e   :  { %v6984_v42 = vpop.f32.mrb[18].mxu1  ;;  %v6950_v17 = vpop.f32.mrb[19].mxu0 }
 0x89f   :  { %v6951_v20 = vadd.f32 %v6950_v17, %v6949_v53  ;;  %v6985_v38 = vpop.f32.mrb[19].mxu1 }
 0x8a0   :  { %v6986_v15 = vadd.f32 %v6985_v38, %v6984_v42 }
 0x8a1   :  { %v6534_v8 = vadd.f32 %v6951_v20, %v6642_v46 }
 0x8a3   :  { %v6604_v31 = vadd.f32 %v6986_v15, %v6534_v8 }
 0x8a5   :  { %6608 = vst.msk [vmem:[#allocation3] sm:$0x3] %vm6607_vm2, %v6604_v31 }
 0x8a6   :  { %9730 = shalt.err (!%p9727_p4)
}
 0x8a7   :  { %s9731_s20 = scalar_lea.hbm %s17805_s12, 32 }
 0x8a8   :  { %p9732_p5 = scmp.ne.s32.totalorder %s17805_s12, %s9731_s20  ;;  %p9735_p6 = scmp.lt.u32.totalorder %s9731_s20, %s17805_s12 }
 0x8aa   :  { %p9737_p7 = pnand %p9735_p6, %p9732_p5 }
 0x8ac   :  { %9740 = shalt.err (!%p9737_p7)
}
 0x8ad   :  { %6618 = dma.vmem_to_hbm [thread:$0]  %s6616_s18, 32, %s17805_s12, [#allocation4]  }
 0x8ae   :  { %9741 = dma.done.wait [#allocation4], 32  }
 0x8af   :  { %9742 = vsyncadd [#allocation4], 4294967264 }
 0x8b0   :  { %6622 = vsyncpa [#allocation4], 1 }

</bundles_post_ra>
